<compile_context>
chip_gen: v7x
topology: tpu7x:2x2x1
jax: 0.10.0
libtpu: 0.0.40
codegen_flags: <defaults>
</compile_context>

<pallas_src>
import functools
import math

import jax
import jax.numpy as jnp
from jax import lax
from jax.experimental import pallas as pl
from jax.experimental.pallas import tpu as pltpu


# ---------------------------------------------------------------------------
# Pallas kernels
# ---------------------------------------------------------------------------
def _sepconv_kernel(x_ref, dww_ref, pww_ref, bias_ref, *rest, H, W, Cin,
                    input_relu, output_relu, has_residual):
    """Fused SeparableConv2d: dw3x3(+BN) -> pw1x1(+BN) (+ReLU) (+residual).

    Lane-dense layouts:
      x_ref    : (1, H+2, (W+2)*Cin)  padded input, W and C folded into lanes
      dww_ref  : (9, 1, W*Cin)        per-tap depthwise weights (dw-BN scale folded)
      pww_ref  : (W*Cin, W*Cout) bf16 block-diagonal pointwise weights (out-BN scale folded)
      bias_ref : (1, W*Cout)          folded dw-BN bias through pw + outer-BN bias
      res_ref  : (1, H, W*Cout)       optional residual (BlockA identity skip)
      o_ref    : (1, H, W*Cout)
    """
    if has_residual:
        res_ref, o_ref = rest
    else:
        (o_ref,) = rest

    L = W * Cin
    x = x_ref[0]                               # (H+2, (W+2)*Cin), stays in VMEM/vregs
    if input_relu:                             # BlockA start_with_relu, fused here
        x = jnp.maximum(x, 0.0)

    # Depthwise 3x3 MAC on the VPU (lane axis = W*Cin -> dense lanes).
    acc = None
    for ky in range(3):
        for kx in range(3):
            tap = x[ky:ky + H, kx * Cin:kx * Cin + L]
            term = tap * dww_ref[3 * ky + kx]
            acc = term if acc is None else acc + term

    # Pointwise conv on the MXU; block-diagonal weights keep the flat lane layout,
    # so no in-kernel reshape is needed and the store is lane-dense.
    y = jnp.dot(acc.astype(jnp.bfloat16), pww_ref[...],
                preferred_element_type=jnp.float32)
    y = y + bias_ref[...]
    if output_relu:
        y = jnp.maximum(y, 0.0)
    if has_residual:
        y = y + res_ref[0]
    o_ref[0] = y


def _pw_kernel(x_ref, w_ref, bias_ref, res_ref, o_ref, *, relu):
    """1x1 conv (block-diag weights) + folded BN + residual add (BlockA skip path)."""
    y = jnp.dot(x_ref[0].astype(jnp.bfloat16), w_ref[...],
                preferred_element_type=jnp.float32)
    y = y + bias_ref[...]
    if relu:
        y = jnp.maximum(y, 0.0)
    o_ref[0] = y + res_ref[0]


# ---------------------------------------------------------------------------
# Wrappers (host-side weight folding / layout plumbing; all reshapes are free)
# ---------------------------------------------------------------------------
def _block_diag(w, reps):
    """(Cin,Cout) -> (reps*Cin, reps*Cout) block-diagonal, for lane-flattened 1x1 conv."""
    return jnp.kron(jnp.eye(reps, dtype=w.dtype), w)


def sepconv_apply(x, p, *, input_relu, output_relu, residual=None):
    """x: (N,H,W,Cin) NHWC.  p: dw_w(3,3,Cin), dw_bn, pw_w(Cin,Cout), out_bn."""
    N, H, W, Cin = x.shape
    Cout = p['pw_w'].shape[1]
    s_dw, b_dw = p['dw_bn']
    s_out, b_out = p['out_bn']

    # Fold both eval-mode BNs:
    #   out = (dw(x) * s_dw) @ (pw * s_out) + [s_out * (b_dw @ pw) + b_out]
    dw_eff = (p['dw_w'] * s_dw[None, None, :]).reshape(9, 1, Cin)
    dww = jnp.tile(dw_eff, (1, 1, W))                               # (9,1,W*Cin)
    pw_eff = p['pw_w'] * s_out[None, :]
    big_w = _block_diag(pw_eff, W).astype(jnp.bfloat16)             # (W*Cin, W*Cout)
    bias = s_out * jnp.einsum('c,co->o', b_dw, p['pw_w'],
                              precision=lax.Precision.HIGHEST) + b_out
    bias = jnp.tile(bias, W)[None, :]                               # (1, W*Cout)

    xp = jnp.pad(x, ((0, 0), (1, 1), (1, 1), (0, 0)))
    xp = xp.reshape(N, H + 2, (W + 2) * Cin)                        # contiguous reshape

    inputs = [xp, dww, big_w, bias]
    in_specs = [
        pl.BlockSpec((1, H + 2, (W + 2) * Cin), lambda n: (n, 0, 0)),
        pl.BlockSpec((9, 1, W * Cin), lambda n: (0, 0, 0)),
        pl.BlockSpec((W * Cin, W * Cout), lambda n: (0, 0)),
        pl.BlockSpec((1, W * Cout), lambda n: (0, 0)),
    ]
    if residual is not None:
        inputs.append(residual.reshape(N, H, W * Cout))
        in_specs.append(pl.BlockSpec((1, H, W * Cout), lambda n: (n, 0, 0)))

    out = pl.pallas_call(
        functools.partial(_sepconv_kernel, H=H, W=W, Cin=Cin,
                          input_relu=input_relu, output_relu=output_relu,
                          has_residual=residual is not None),
        out_shape=jax.ShapeDtypeStruct((N, H, W * Cout), jnp.float32),
        grid=(N,),                    # batch-parallel: feeds both TCs on v7x
        in_specs=in_specs,
        out_specs=pl.BlockSpec((1, H, W * Cout), lambda n: (n, 0, 0)),
        compiler_params=pltpu.CompilerParams(dimension_semantics=("parallel",)),
    )(*inputs)
    return out.reshape(N, H, W, Cout)


def skip_conv_add(x, w, bn, residual):
    """BlockA skip path: BN(1x1 conv(x)) + residual, fused in one kernel."""
    N, H, W, Cin = x.shape
    Cout = w.shape[1]
    s, b = bn
    big_w = _block_diag(w * s[None, :], W).astype(jnp.bfloat16)
    bias = jnp.tile(b, W)[None, :]
    out = pl.pallas_call(
        functools.partial(_pw_kernel, relu=False),
        out_shape=jax.ShapeDtypeStruct((N, H, W * Cout), jnp.float32),
        grid=(N,),
        in_specs=[
            pl.BlockSpec((1, H, W * Cin), lambda n: (n, 0, 0)),
            pl.BlockSpec((W * Cin, W * Cout), lambda n: (0, 0)),
            pl.BlockSpec((1, W * Cout), lambda n: (0, 0)),
            pl.BlockSpec((1, H, W * Cout), lambda n: (n, 0, 0)),
        ],
        out_specs=pl.BlockSpec((1, H, W * Cout), lambda n: (n, 0, 0)),
        compiler_params=pltpu.CompilerParams(dimension_semantics=("parallel",)),
    )(x.reshape(N, H, W * Cin), big_w, bias, residual.reshape(N, H, W * Cout))
    return out.reshape(N, H, W, Cout)


# ---------------------------------------------------------------------------
# Module forwards (NHWC internally, NCHW at the public boundary)
# ---------------------------------------------------------------------------
def blocka_fwd(x, p, stride):
    # rep = [ReLU, sep1, BN, ReLU, sep2, BN, ReLU, sep3, BN]; ReLUs/BNs fused in-kernel.
    h = sepconv_apply(x, p['sep1'], input_relu=True, output_relu=True)
    h = sepconv_apply(h, p['sep2'], input_relu=False, output_relu=True)
    if stride == 1 and 'skip_w' not in p:
        # identity skip: residual add fused into sep3's kernel
        return sepconv_apply(h, p['sep3'], input_relu=False, output_relu=False,
                             residual=x)
    # stride-2 / projection skip.  The strided depthwise conv is computed at stride 1
    # and subsampled (values at the kept positions are identical); the 1x1 projection
    # + BN + residual add are fused in a second kernel.
    h = sepconv_apply(h, p['sep3'], input_relu=False, output_relu=False)
    h = h[:, ::stride, ::stride, :]
    xs = x[:, ::stride, ::stride, :]
    if 'skip_w' in p:
        return skip_conv_add(xs, p['skip_w'], p['skip_bn'], h)
    return h + xs


def enc_forward(blocks, x_nchw):
    """Enc.forward: NCHW in (PyTorch convention) -> NCHW out."""
    x = jnp.transpose(x_nchw, (0, 2, 3, 1)).astype(jnp.float32)   # -> NHWC
    x = blocka_fwd(x, blocks[0], 2)
    for p in blocks[1:]:
        x = blocka_fwd(x, p, 1)
    return jnp.transpose(x, (0, 3, 1, 2))


# ---------------------------------------------------------------------------
# Pure-JAX reference (XLA convs) for correctness checking
# ---------------------------------------------------------------------------
def _sepconv_ref(x, p, stride):
    C = x.shape[-1]
    s_dw, b_dw = p['dw_bn']
    s_out, b_out = p['out_bn']
    xp = jnp.pad(x, ((0, 0), (1, 1), (1, 1), (0, 0)))
    dw = lax.conv_general_dilated(
        xp, p['dw_w'].reshape(3, 3, 1, C),
        window_strides=(stride, stride), padding='VALID',
        dimension_numbers=('NHWC', 'HWIO', 'NHWC'),
        feature_group_count=C, precision=lax.Precision.HIGHEST)
    dw = dw * s_dw + b_dw
    y = jnp.einsum('nhwc,co->nhwo', dw, p['pw_w'], precision=lax.Precision.HIGHEST)
    return y * s_out + b_out


def _blocka_ref(x, p, stride):
    h = jnp.maximum(x, 0.0)
    h = jnp.maximum(_sepconv_ref(h, p['sep1'], 1), 0.0)
    h = jnp.maximum(_sepconv_ref(h, p['sep2'], 1), 0.0)
    h = _sepconv_ref(h, p['sep3'], stride)
    if 'skip_w' in p:
        s, b = p['skip_bn']
        xs = x[:, ::stride, ::stride, :]
        skip = jnp.einsum('nhwc,co->nhwo', xs, p['skip_w'],
                          precision=lax.Precision.HIGHEST) * s + b
    else:
        skip = x
    return h + skip


def enc_reference(blocks, x_nchw):
    x = jnp.transpose(x_nchw, (0, 2, 3, 1)).astype(jnp.float32)
    x = _blocka_ref(x, blocks[0], 2)
    for p in blocks[1:]:
        x = _blocka_ref(x, p, 1)
    return jnp.transpose(x, (0, 3, 1, 2))


# ---------------------------------------------------------------------------
# Deterministic synthetic parameters
# ---------------------------------------------------------------------------
class ParamGen:
    def __init__(self, key):
        self._key = key
        self._count = 0

    def normal(self, shape, scale=1.0):
        self._count += 1
        k = jax.random.fold_in(self._key, self._count)
        return scale * jax.random.normal(k, shape, dtype=jnp.float32)


def make_bn(pg, c):
    # eval-mode BN folded into a per-channel affine (scale, bias)
    gamma = 1.0 + 0.1 * pg.normal((c,))
    beta = 0.1 * pg.normal((c,))
    mean = 0.1 * pg.normal((c,))
    var = 1.0 + 0.1 * jnp.abs(pg.normal((c,)))
    scale = gamma / jnp.sqrt(var + 1e-5)
    return scale, beta - mean * scale


def make_sep(pg, cin, cout):
    return dict(dw_w=pg.normal((3, 3, cin), 1.0 / 3.0),
                dw_bn=make_bn(pg, cin),
                pw_w=pg.normal((cin, cout), 1.0 / math.sqrt(cin)),
                out_bn=make_bn(pg, cout))


def make_blocka(pg, cin, cout, stride):
    inter = cout // 4
    p = dict(sep1=make_sep(pg, cin, inter),
             sep2=make_sep(pg, inter, inter),
             sep3=make_sep(pg, inter, cout))
    if cin != cout or stride != 1:
        p['skip_w'] = pg.normal((cin, cout), 1.0 / math.sqrt(cin))
        p['skip_bn'] = make_bn(pg, cout)
    return p


def make_enc(pg, cin, cout, blocks):
    return ([make_blocka(pg, cin, cout, 2)] +
            [make_blocka(pg, cout, cout, 1) for _ in range(blocks - 1)])


# ---------------------------------------------------------------------------
if __name__ == "__main__":
    IN_C, OUT_C, BLOCKS = 8, 48, 4          # Enc(8, 48, 4): DFANet's enc2 stage
    N, H, W = 2, 32, 32

    key = jax.random.PRNGKey(0)
    k_param, k_x = jax.random.split(key)
    params = make_enc(ParamGen(k_param), IN_C, OUT_C, BLOCKS)
    x = jax.random.normal(k_x, (N, IN_C, H, W), dtype=jnp.float32)   # NCHW

    fwd = jax.jit(enc_forward)
    out = fwd(params, x)
    jax.block_until_ready(out)

    assert out.shape == (N, OUT_C, H // 2, W // 2), out.shape
    assert bool(jnp.all(jnp.isfinite(out)))

    # Correctness vs. a pure-JAX reference of the same (eval-mode) module.
    ref = jax.jit(enc_reference)(params, x)
    jax.block_until_ready(ref)
    err = float(jnp.max(jnp.abs(out - ref)))
    scale = float(jnp.max(jnp.abs(ref)))
    assert err <= 5e-2 * scale + 1e-4, (err, scale)   # bf16 MXU operands -> loose tol

    print("KERNEL_OK")
</pallas_src>

<mosaic_0001>
module attributes {stable_mosaic.version = 11 : i64} {
  func.func @_sepconv_kernel(%arg0: i32, %arg1: memref<1x34x272xf32, #tpu.memory_space<vmem>>, %arg2: memref<9x1x256xf32, #tpu.memory_space<vmem>>, %arg3: memref<256x384xbf16, #tpu.memory_space<vmem>>, %arg4: memref<1x384xf32, #tpu.memory_space<vmem>>, %arg5: memref<1x32x384xf32, #tpu.memory_space<vmem>>) attributes {dimension_semantics = [#tpu.dimension_semantics<parallel>], iteration_bounds = array<i64: 2>, scalar_prefetch = 0 : i64, scratch_operands = 0 : i64, tpu.core_type = #tpu.core_type<tc>, window_params = [{transform_indices = @transform_0, window_bounds = array<i64: 1, 34, 272>}, {pipeline_mode = #tpu.pipeline_mode<synchronous>, transform_indices = @transform_1, window_bounds = array<i64: 9, 1, 256>}, {pipeline_mode = #tpu.pipeline_mode<synchronous>, transform_indices = @transform_2, window_bounds = array<i64: 256, 384>}, {pipeline_mode = #tpu.pipeline_mode<synchronous>, transform_indices = @transform_3, window_bounds = array<i64: 1, 384>}, {transform_indices = @transform_4, window_bounds = array<i64: 1, 32, 384>}]} {
    %c0 = arith.constant 0 : index
    %c0_0 = arith.constant 0 : index
    %c0_1 = arith.constant 0 : index
    %0 = vector.load %arg1[%c0, %c0_0, %c0_1] : memref<1x34x272xf32, #tpu.memory_space<vmem>>, vector<1x34x272xf32>
    %1 = vector.shape_cast %0 : vector<1x34x272xf32> to vector<34x272xf32>
    %cst = arith.constant 0.000000e+00 : f32
    %2 = vector.broadcast %cst : f32 to vector<34x272xf32>
    %3 = arith.maximumf %1, %2 : vector<34x272xf32>
    %4 = vector.extract_strided_slice %3 {offsets = [0, 0], sizes = [32, 256], strides = [1, 1]} : vector<34x272xf32> to vector<32x256xf32>
    %c0_2 = arith.constant 0 : index
    %c0_3 = arith.constant 0 : index
    %c0_4 = arith.constant 0 : index
    %5 = vector.load %arg2[%c0_2, %c0_3, %c0_4] : memref<9x1x256xf32, #tpu.memory_space<vmem>>, vector<1x1x256xf32>
    %6 = vector.shape_cast %5 : vector<1x1x256xf32> to vector<1x256xf32>
    %7 = vector.broadcast %6 : vector<1x256xf32> to vector<32x256xf32>
    %8 = arith.mulf %4, %7 : vector<32x256xf32>
    %9 = vector.extract_strided_slice %3 {offsets = [0, 8], sizes = [32, 256], strides = [1, 1]} : vector<34x272xf32> to vector<32x256xf32>
    %c1 = arith.constant 1 : index
    %c0_5 = arith.constant 0 : index
    %c0_6 = arith.constant 0 : index
    %10 = vector.load %arg2[%c1, %c0_5, %c0_6] : memref<9x1x256xf32, #tpu.memory_space<vmem>>, vector<1x1x256xf32>
    %11 = vector.shape_cast %10 : vector<1x1x256xf32> to vector<1x256xf32>
    %12 = vector.broadcast %11 : vector<1x256xf32> to vector<32x256xf32>
    %13 = arith.mulf %9, %12 : vector<32x256xf32>
    %14 = arith.addf %8, %13 : vector<32x256xf32>
    %15 = vector.extract_strided_slice %3 {offsets = [0, 16], sizes = [32, 256], strides = [1, 1]} : vector<34x272xf32> to vector<32x256xf32>
    %c2 = arith.constant 2 : index
    %c0_7 = arith.constant 0 : index
    %c0_8 = arith.constant 0 : index
    %16 = vector.load %arg2[%c2, %c0_7, %c0_8] : memref<9x1x256xf32, #tpu.memory_space<vmem>>, vector<1x1x256xf32>
    %17 = vector.shape_cast %16 : vector<1x1x256xf32> to vector<1x256xf32>
    %18 = vector.broadcast %17 : vector<1x256xf32> to vector<32x256xf32>
    %19 = arith.mulf %15, %18 : vector<32x256xf32>
    %20 = arith.addf %14, %19 : vector<32x256xf32>
    %21 = vector.extract_strided_slice %3 {offsets = [1, 0], sizes = [32, 256], strides = [1, 1]} : vector<34x272xf32> to vector<32x256xf32>
    %c3 = arith.constant 3 : index
    %c0_9 = arith.constant 0 : index
    %c0_10 = arith.constant 0 : index
    %22 = vector.load %arg2[%c3, %c0_9, %c0_10] : memref<9x1x256xf32, #tpu.memory_space<vmem>>, vector<1x1x256xf32>
    %23 = vector.shape_cast %22 : vector<1x1x256xf32> to vector<1x256xf32>
    %24 = vector.broadcast %23 : vector<1x256xf32> to vector<32x256xf32>
    %25 = arith.mulf %21, %24 : vector<32x256xf32>
    %26 = arith.addf %20, %25 : vector<32x256xf32>
    %27 = vector.extract_strided_slice %3 {offsets = [1, 8], sizes = [32, 256], strides = [1, 1]} : vector<34x272xf32> to vector<32x256xf32>
    %c4 = arith.constant 4 : index
    %c0_11 = arith.constant 0 : index
    %c0_12 = arith.constant 0 : index
    %28 = vector.load %arg2[%c4, %c0_11, %c0_12] : memref<9x1x256xf32, #tpu.memory_space<vmem>>, vector<1x1x256xf32>
    %29 = vector.shape_cast %28 : vector<1x1x256xf32> to vector<1x256xf32>
    %30 = vector.broadcast %29 : vector<1x256xf32> to vector<32x256xf32>
    %31 = arith.mulf %27, %30 : vector<32x256xf32>
    %32 = arith.addf %26, %31 : vector<32x256xf32>
    %33 = vector.extract_strided_slice %3 {offsets = [1, 16], sizes = [32, 256], strides = [1, 1]} : vector<34x272xf32> to vector<32x256xf32>
    %c5 = arith.constant 5 : index
    %c0_13 = arith.constant 0 : index
    %c0_14 = arith.constant 0 : index
    %34 = vector.load %arg2[%c5, %c0_13, %c0_14] : memref<9x1x256xf32, #tpu.memory_space<vmem>>, vector<1x1x256xf32>
    %35 = vector.shape_cast %34 : vector<1x1x256xf32> to vector<1x256xf32>
    %36 = vector.broadcast %35 : vector<1x256xf32> to vector<32x256xf32>
    %37 = arith.mulf %33, %36 : vector<32x256xf32>
    %38 = arith.addf %32, %37 : vector<32x256xf32>
    %39 = vector.extract_strided_slice %3 {offsets = [2, 0], sizes = [32, 256], strides = [1, 1]} : vector<34x272xf32> to vector<32x256xf32>
    %c6 = arith.constant 6 : index
    %c0_15 = arith.constant 0 : index
    %c0_16 = arith.constant 0 : index
    %40 = vector.load %arg2[%c6, %c0_15, %c0_16] : memref<9x1x256xf32, #tpu.memory_space<vmem>>, vector<1x1x256xf32>
    %41 = vector.shape_cast %40 : vector<1x1x256xf32> to vector<1x256xf32>
    %42 = vector.broadcast %41 : vector<1x256xf32> to vector<32x256xf32>
    %43 = arith.mulf %39, %42 : vector<32x256xf32>
    %44 = arith.addf %38, %43 : vector<32x256xf32>
    %45 = vector.extract_strided_slice %3 {offsets = [2, 8], sizes = [32, 256], strides = [1, 1]} : vector<34x272xf32> to vector<32x256xf32>
    %c7 = arith.constant 7 : index
    %c0_17 = arith.constant 0 : index
    %c0_18 = arith.constant 0 : index
    %46 = vector.load %arg2[%c7, %c0_17, %c0_18] : memref<9x1x256xf32, #tpu.memory_space<vmem>>, vector<1x1x256xf32>
    %47 = vector.shape_cast %46 : vector<1x1x256xf32> to vector<1x256xf32>
    %48 = vector.broadcast %47 : vector<1x256xf32> to vector<32x256xf32>
    %49 = arith.mulf %45, %48 : vector<32x256xf32>
    %50 = arith.addf %44, %49 : vector<32x256xf32>
    %51 = vector.extract_strided_slice %3 {offsets = [2, 16], sizes = [32, 256], strides = [1, 1]} : vector<34x272xf32> to vector<32x256xf32>
    %c8 = arith.constant 8 : index
    %c0_19 = arith.constant 0 : index
    %c0_20 = arith.constant 0 : index
    %52 = vector.load %arg2[%c8, %c0_19, %c0_20] : memref<9x1x256xf32, #tpu.memory_space<vmem>>, vector<1x1x256xf32>
    %53 = vector.shape_cast %52 : vector<1x1x256xf32> to vector<1x256xf32>
    %54 = vector.broadcast %53 : vector<1x256xf32> to vector<32x256xf32>
    %55 = arith.mulf %51, %54 : vector<32x256xf32>
    %56 = arith.addf %50, %55 : vector<32x256xf32>
    %57 = arith.truncf %56 : vector<32x256xf32> to vector<32x256xbf16>
    %c0_21 = arith.constant 0 : index
    %c0_22 = arith.constant 0 : index
    %58 = vector.load %arg3[%c0_21, %c0_22] : memref<256x384xbf16, #tpu.memory_space<vmem>>, vector<256x384xbf16>
    %cst_23 = arith.constant dense<0.000000e+00> : vector<32x384xf32>
    %59 = tpu.matmul %57, %58, %cst_23 {dimension_numbers = #tpu.dot_dimension_numbers<[1], [0], [0], [1], [0, 0, 1, 1], [], []>} : vector<32x256xbf16>, vector<256x384xbf16>, vector<32x384xf32> -> vector<32x384xf32>
    %c0_24 = arith.constant 0 : index
    %c0_25 = arith.constant 0 : index
    %60 = vector.load %arg4[%c0_24, %c0_25] : memref<1x384xf32, #tpu.memory_space<vmem>>, vector<1x384xf32>
    %61 = vector.broadcast %60 : vector<1x384xf32> to vector<32x384xf32>
    %62 = arith.addf %59, %61 : vector<32x384xf32>
    %cst_26 = arith.constant 0.000000e+00 : f32
    %63 = vector.broadcast %cst_26 : f32 to vector<32x384xf32>
    %64 = arith.maximumf %62, %63 : vector<32x384xf32>
    %c0_27 = arith.constant 0 : index
    %c0_28 = arith.constant 0 : index
    %c0_29 = arith.constant 0 : index
    %65 = vector.load %arg5[%c0_27, %c0_28, %c0_29] : memref<1x32x384xf32, #tpu.memory_space<vmem>>, vector<1x32x384xf32>
    %66 = vector.shape_cast %65 : vector<1x32x384xf32> to vector<32x384xf32>
    %67 = vector.shape_cast %64 : vector<32x384xf32> to vector<1x32x384xf32>
    tpu.vector_store %arg5[%c0_27, %c0_28, %c0_29], %67 {strides = array<i32>} : memref<1x32x384xf32, #tpu.memory_space<vmem>>, vector<1x32x384xf32>,
    return
  }
  func.func @transform_0(%arg0: i32) -> (i32, i32, i32) {
    %c0_i32 = arith.constant 0 : i32
    %c0_i32_0 = arith.constant 0 : i32
    %c0_i32_1 = arith.constant 0 : i32
    return %arg0, %c0_i32, %c0_i32_0 : i32, i32, i32
  }
  func.func @transform_1(%arg0: i32) -> (i32, i32, i32) {
    %c0_i32 = arith.constant 0 : i32
    %c0_i32_0 = arith.constant 0 : i32
    %c0_i32_1 = arith.constant 0 : i32
    %c0_i32_2 = arith.constant 0 : i32
    return %c0_i32, %c0_i32_0, %c0_i32_1 : i32, i32, i32
  }
  func.func @transform_2(%arg0: i32) -> (i32, i32) {
    %c0_i32 = arith.constant 0 : i32
    %c0_i32_0 = arith.constant 0 : i32
    %c0_i32_1 = arith.constant 0 : i32
    return %c0_i32, %c0_i32_0 : i32, i32
  }
  func.func @transform_3(%arg0: i32) -> (i32, i32) {
    %c0_i32 = arith.constant 0 : i32
    %c0_i32_0 = arith.constant 0 : i32
    %c0_i32_1 = arith.constant 0 : i32
    return %c0_i32, %c0_i32_0 : i32, i32
  }
  func.func @transform_4(%arg0: i32) -> (i32, i32, i32) {
    %c0_i32 = arith.constant 0 : i32
    %c0_i32_0 = arith.constant 0 : i32
    %c0_i32_1 = arith.constant 0 : i32
    return %arg0, %c0_i32, %c0_i32_0 : i32, i32, i32
  }
}

module attributes {stable_mosaic.version = 11 : i64} {
  func.func @_sepconv_kernel(%arg0: i32, %arg1: memref<1x34x408xf32, #tpu.memory_space<vmem>>, %arg2: memref<9x1x384xf32, #tpu.memory_space<vmem>>, %arg3: memref<384x384xbf16, #tpu.memory_space<vmem>>, %arg4: memref<1x384xf32, #tpu.memory_space<vmem>>, %arg5: memref<1x32x384xf32, #tpu.memory_space<vmem>>) attributes {dimension_semantics = [#tpu.dimension_semantics<parallel>], iteration_bounds = array<i64: 2>, scalar_prefetch = 0 : i64, scratch_operands = 0 : i64, tpu.core_type = #tpu.core_type<tc>, window_params = [{transform_indices = @transform_0, window_bounds = array<i64: 1, 34, 408>}, {pipeline_mode = #tpu.pipeline_mode<synchronous>, transform_indices = @transform_1, window_bounds = array<i64: 9, 1, 384>}, {pipeline_mode = #tpu.pipeline_mode<synchronous>, transform_indices = @transform_2, window_bounds = array<i64: 384, 384>}, {pipeline_mode = #tpu.pipeline_mode<synchronous>, transform_indices = @transform_3, window_bounds = array<i64: 1, 384>}, {transform_indices = @transform_4, window_bounds = array<i64: 1, 32, 384>}]} {
    %c0 = arith.constant 0 : index
    %c0_0 = arith.constant 0 : index
    %c0_1 = arith.constant 0 : index
    %0 = vector.load %arg1[%c0, %c0_0, %c0_1] : memref<1x34x408xf32, #tpu.memory_space<vmem>>, vector<1x34x408xf32>
    %1 = vector.shape_cast %0 : vector<1x34x408xf32> to vector<34x408xf32>
    %2 = vector.extract_strided_slice %1 {offsets = [0, 0], sizes = [32, 384], strides = [1, 1]} : vector<34x408xf32> to vector<32x384xf32>
    %c0_2 = arith.constant 0 : index
    %c0_3 = arith.constant 0 : index
    %c0_4 = arith.constant 0 : index
    %3 = vector.load %arg2[%c0_2, %c0_3, %c0_4] : memref<9x1x384xf32, #tpu.memory_space<vmem>>, vector<1x1x384xf32>
    %4 = vector.shape_cast %3 : vector<1x1x384xf32> to vector<1x384xf32>
    %5 = vector.broadcast %4 : vector<1x384xf32> to vector<32x384xf32>
    %6 = arith.mulf %2, %5 : vector<32x384xf32>
    %7 = vector.extract_strided_slice %1 {offsets = [0, 12], sizes = [32, 384], strides = [1, 1]} : vector<34x408xf32> to vector<32x384xf32>
    %c1 = arith.constant 1 : index
    %c0_5 = arith.constant 0 : index
    %c0_6 = arith.constant 0 : index
    %8 = vector.load %arg2[%c1, %c0_5, %c0_6] : memref<9x1x384xf32, #tpu.memory_space<vmem>>, vector<1x1x384xf32>
    %9 = vector.shape_cast %8 : vector<1x1x384xf32> to vector<1x384xf32>
    %10 = vector.broadcast %9 : vector<1x384xf32> to vector<32x384xf32>
    %11 = arith.mulf %7, %10 : vector<32x384xf32>
    %12 = arith.addf %6, %11 : vector<32x384xf32>
    %13 = vector.extract_strided_slice %1 {offsets = [0, 24], sizes = [32, 384], strides = [1, 1]} : vector<34x408xf32> to vector<32x384xf32>
    %c2 = arith.constant 2 : index
    %c0_7 = arith.constant 0 : index
    %c0_8 = arith.constant 0 : index
    %14 = vector.load %arg2[%c2, %c0_7, %c0_8] : memref<9x1x384xf32, #tpu.memory_space<vmem>>, vector<1x1x384xf32>
    %15 = vector.shape_cast %14 : vector<1x1x384xf32> to vector<1x384xf32>
    %16 = vector.broadcast %15 : vector<1x384xf32> to vector<32x384xf32>
    %17 = arith.mulf %13, %16 : vector<32x384xf32>
    %18 = arith.addf %12, %17 : vector<32x384xf32>
    %19 = vector.extract_strided_slice %1 {offsets = [1, 0], sizes = [32, 384], strides = [1, 1]} : vector<34x408xf32> to vector<32x384xf32>
    %c3 = arith.constant 3 : index
    %c0_9 = arith.constant 0 : index
    %c0_10 = arith.constant 0 : index
    %20 = vector.load %arg2[%c3, %c0_9, %c0_10] : memref<9x1x384xf32, #tpu.memory_space<vmem>>, vector<1x1x384xf32>
    %21 = vector.shape_cast %20 : vector<1x1x384xf32> to vector<1x384xf32>
    %22 = vector.broadcast %21 : vector<1x384xf32> to vector<32x384xf32>
    %23 = arith.mulf %19, %22 : vector<32x384xf32>
    %24 = arith.addf %18, %23 : vector<32x384xf32>
    %25 = vector.extract_strided_slice %1 {offsets = [1, 12], sizes = [32, 384], strides = [1, 1]} : vector<34x408xf32> to vector<32x384xf32>
    %c4 = arith.constant 4 : index
    %c0_11 = arith.constant 0 : index
    %c0_12 = arith.constant 0 : index
    %26 = vector.load %arg2[%c4, %c0_11, %c0_12] : memref<9x1x384xf32, #tpu.memory_space<vmem>>, vector<1x1x384xf32>
    %27 = vector.shape_cast %26 : vector<1x1x384xf32> to vector<1x384xf32>
    %28 = vector.broadcast %27 : vector<1x384xf32> to vector<32x384xf32>
    %29 = arith.mulf %25, %28 : vector<32x384xf32>
    %30 = arith.addf %24, %29 : vector<32x384xf32>
    %31 = vector.extract_strided_slice %1 {offsets = [1, 24], sizes = [32, 384], strides = [1, 1]} : vector<34x408xf32> to vector<32x384xf32>
    %c5 = arith.constant 5 : index
    %c0_13 = arith.constant 0 : index
    %c0_14 = arith.constant 0 : index
    %32 = vector.load %arg2[%c5, %c0_13, %c0_14] : memref<9x1x384xf32, #tpu.memory_space<vmem>>, vector<1x1x384xf32>
    %33 = vector.shape_cast %32 : vector<1x1x384xf32> to vector<1x384xf32>
    %34 = vector.broadcast %33 : vector<1x384xf32> to vector<32x384xf32>
    %35 = arith.mulf %31, %34 : vector<32x384xf32>
    %36 = arith.addf %30, %35 : vector<32x384xf32>
    %37 = vector.extract_strided_slice %1 {offsets = [2, 0], sizes = [32, 384], strides = [1, 1]} : vector<34x408xf32> to vector<32x384xf32>
    %c6 = arith.constant 6 : index
    %c0_15 = arith.constant 0 : index
    %c0_16 = arith.constant 0 : index
    %38 = vector.load %arg2[%c6, %c0_15, %c0_16] : memref<9x1x384xf32, #tpu.memory_space<vmem>>, vector<1x1x384xf32>
    %39 = vector.shape_cast %38 : vector<1x1x384xf32> to vector<1x384xf32>
    %40 = vector.broadcast %39 : vector<1x384xf32> to vector<32x384xf32>
    %41 = arith.mulf %37, %40 : vector<32x384xf32>
    %42 = arith.addf %36, %41 : vector<32x384xf32>
    %43 = vector.extract_strided_slice %1 {offsets = [2, 12], sizes = [32, 384], strides = [1, 1]} : vector<34x408xf32> to vector<32x384xf32>
    %c7 = arith.constant 7 : index
    %c0_17 = arith.constant 0 : index
    %c0_18 = arith.constant 0 : index
    %44 = vector.load %arg2[%c7, %c0_17, %c0_18] : memref<9x1x384xf32, #tpu.memory_space<vmem>>, vector<1x1x384xf32>
    %45 = vector.shape_cast %44 : vector<1x1x384xf32> to vector<1x384xf32>
    %46 = vector.broadcast %45 : vector<1x384xf32> to vector<32x384xf32>
    %47 = arith.mulf %43, %46 : vector<32x384xf32>
    %48 = arith.addf %42, %47 : vector<32x384xf32>
    %49 = vector.extract_strided_slice %1 {offsets = [2, 24], sizes = [32, 384], strides = [1, 1]} : vector<34x408xf32> to vector<32x384xf32>
    %c8 = arith.constant 8 : index
    %c0_19 = arith.constant 0 : index
    %c0_20 = arith.constant 0 : index
    %50 = vector.load %arg2[%c8, %c0_19, %c0_20] : memref<9x1x384xf32, #tpu.memory_space<vmem>>, vector<1x1x384xf32>
    %51 = vector.shape_cast %50 : vector<1x1x384xf32> to vector<1x384xf32>
    %52 = vector.broadcast %51 : vector<1x384xf32> to vector<32x384xf32>
    %53 = arith.mulf %49, %52 : vector<32x384xf32>
    %54 = arith.addf %48, %53 : vector<32x384xf32>
    %55 = arith.truncf %54 : vector<32x384xf32> to vector<32x384xbf16>
    %c0_21 = arith.constant 0 : index
    %c0_22 = arith.constant 0 : index
    %56 = vector.load %arg3[%c0_21, %c0_22] : memref<384x384xbf16, #tpu.memory_space<vmem>>, vector<384x384xbf16>
    %cst = arith.constant dense<0.000000e+00> : vector<32x384xf32>
    %57 = tpu.matmul %55, %56, %cst {dimension_numbers = #tpu.dot_dimension_numbers<[1], [0], [0], [1], [0, 0, 1, 1], [], []>} : vector<32x384xbf16>, vector<384x384xbf16>, vector<32x384xf32> -> vector<32x384xf32>
    %c0_23 = arith.constant 0 : index
    %c0_24 = arith.constant 0 : index
    %58 = vector.load %arg4[%c0_23, %c0_24] : memref<1x384xf32, #tpu.memory_space<vmem>>, vector<1x384xf32>
    %59 = vector.broadcast %58 : vector<1x384xf32> to vector<32x384xf32>
    %60 = arith.addf %57, %59 : vector<32x384xf32>
    %cst_25 = arith.constant 0.000000e+00 : f32
    %61 = vector.broadcast %cst_25 : f32 to vector<32x384xf32>
    %62 = arith.maximumf %60, %61 : vector<32x384xf32>
    %c0_26 = arith.constant 0 : index
    %c0_27 = arith.constant 0 : index
    %c0_28 = arith.constant 0 : index
    %63 = vector.load %arg5[%c0_26, %c0_27, %c0_28] : memref<1x32x384xf32, #tpu.memory_space<vmem>>, vector<1x32x384xf32>
    %64 = vector.shape_cast %63 : vector<1x32x384xf32> to vector<32x384xf32>
    %65 = vector.shape_cast %62 : vector<32x384xf32> to vector<1x32x384xf32>
    tpu.vector_store %arg5[%c0_26, %c0_27, %c0_28], %65 {strides = array<i32>} : memref<1x32x384xf32, #tpu.memory_space<vmem>>, vector<1x32x384xf32>,
    return
  }
  func.func @transform_0(%arg0: i32) -> (i32, i32, i32) {
    %c0_i32 = arith.constant 0 : i32
    %c0_i32_0 = arith.constant 0 : i32
    %c0_i32_1 = arith.constant 0 : i32
    return %arg0, %c0_i32, %c0_i32_0 : i32, i32, i32
  }
  func.func @transform_1(%arg0: i32) -> (i32, i32, i32) {
    %c0_i32 = arith.constant 0 : i32
    %c0_i32_0 = arith.constant 0 : i32
    %c0_i32_1 = arith.constant 0 : i32
    %c0_i32_2 = arith.constant 0 : i32
    return %c0_i32, %c0_i32_0, %c0_i32_1 : i32, i32, i32
  }
  func.func @transform_2(%arg0: i32) -> (i32, i32) {
    %c0_i32 = arith.constant 0 : i32
    %c0_i32_0 = arith.constant 0 : i32
    %c0_i32_1 = arith.constant 0 : i32
    return %c0_i32, %c0_i32_0 : i32, i32
  }
  func.func @transform_3(%arg0: i32) -> (i32, i32) {
    %c0_i32 = arith.constant 0 : i32
    %c0_i32_0 = arith.constant 0 : i32
    %c0_i32_1 = arith.constant 0 : i32
    return %c0_i32, %c0_i32_0 : i32, i32
  }
  func.func @transform_4(%arg0: i32) -> (i32, i32, i32) {
    %c0_i32 = arith.constant 0 : i32
    %c0_i32_0 = arith.constant 0 : i32
    %c0_i32_1 = arith.constant 0 : i32
    return %arg0, %c0_i32, %c0_i32_0 : i32, i32, i32
  }
}

module attributes {stable_mosaic.version = 11 : i64} {
  func.func @_sepconv_kernel(%arg0: i32, %arg1: memref<1x34x408xf32, #tpu.memory_space<vmem>>, %arg2: memref<9x1x384xf32, #tpu.memory_space<vmem>>, %arg3: memref<384x1536xbf16, #tpu.memory_space<vmem>>, %arg4: memref<1x1536xf32, #tpu.memory_space<vmem>>, %arg5: memref<1x32x1536xf32, #tpu.memory_space<vmem>>) attributes {dimension_semantics = [#tpu.dimension_semantics<parallel>], iteration_bounds = array<i64: 2>, scalar_prefetch = 0 : i64, scratch_operands = 0 : i64, tpu.core_type = #tpu.core_type<tc>, window_params = [{transform_indices = @transform_0, window_bounds = array<i64: 1, 34, 408>}, {pipeline_mode = #tpu.pipeline_mode<synchronous>, transform_indices = @transform_1, window_bounds = array<i64: 9, 1, 384>}, {pipeline_mode = #tpu.pipeline_mode<synchronous>, transform_indices = @transform_2, window_bounds = array<i64: 384, 1536>}, {pipeline_mode = #tpu.pipeline_mode<synchronous>, transform_indices = @transform_3, window_bounds = array<i64: 1, 1536>}, {transform_indices = @transform_4, window_bounds = array<i64: 1, 32, 1536>}]} {
    %c0 = arith.constant 0 : index
    %c0_0 = arith.constant 0 : index
    %c0_1 = arith.constant 0 : index
    %0 = vector.load %arg1[%c0, %c0_0, %c0_1] : memref<1x34x408xf32, #tpu.memory_space<vmem>>, vector<1x34x408xf32>
    %1 = vector.shape_cast %0 : vector<1x34x408xf32> to vector<34x408xf32>
    %2 = vector.extract_strided_slice %1 {offsets = [0, 0], sizes = [32, 384], strides = [1, 1]} : vector<34x408xf32> to vector<32x384xf32>
    %c0_2 = arith.constant 0 : index
    %c0_3 = arith.constant 0 : index
    %c0_4 = arith.constant 0 : index
    %3 = vector.load %arg2[%c0_2, %c0_3, %c0_4] : memref<9x1x384xf32, #tpu.memory_space<vmem>>, vector<1x1x384xf32>
    %4 = vector.shape_cast %3 : vector<1x1x384xf32> to vector<1x384xf32>
    %5 = vector.broadcast %4 : vector<1x384xf32> to vector<32x384xf32>
    %6 = arith.mulf %2, %5 : vector<32x384xf32>
    %7 = vector.extract_strided_slice %1 {offsets = [0, 12], sizes = [32, 384], strides = [1, 1]} : vector<34x408xf32> to vector<32x384xf32>
    %c1 = arith.constant 1 : index
    %c0_5 = arith.constant 0 : index
    %c0_6 = arith.constant 0 : index
    %8 = vector.load %arg2[%c1, %c0_5, %c0_6] : memref<9x1x384xf32, #tpu.memory_space<vmem>>, vector<1x1x384xf32>
    %9 = vector.shape_cast %8 : vector<1x1x384xf32> to vector<1x384xf32>
    %10 = vector.broadcast %9 : vector<1x384xf32> to vector<32x384xf32>
    %11 = arith.mulf %7, %10 : vector<32x384xf32>
    %12 = arith.addf %6, %11 : vector<32x384xf32>
    %13 = vector.extract_strided_slice %1 {offsets = [0, 24], sizes = [32, 384], strides = [1, 1]} : vector<34x408xf32> to vector<32x384xf32>
    %c2 = arith.constant 2 : index
    %c0_7 = arith.constant 0 : index
    %c0_8 = arith.constant 0 : index
    %14 = vector.load %arg2[%c2, %c0_7, %c0_8] : memref<9x1x384xf32, #tpu.memory_space<vmem>>, vector<1x1x384xf32>
    %15 = vector.shape_cast %14 : vector<1x1x384xf32> to vector<1x384xf32>
    %16 = vector.broadcast %15 : vector<1x384xf32> to vector<32x384xf32>
    %17 = arith.mulf %13, %16 : vector<32x384xf32>
    %18 = arith.addf %12, %17 : vector<32x384xf32>
    %19 = vector.extract_strided_slice %1 {offsets = [1, 0], sizes = [32, 384], strides = [1, 1]} : vector<34x408xf32> to vector<32x384xf32>
    %c3 = arith.constant 3 : index
    %c0_9 = arith.constant 0 : index
    %c0_10 = arith.constant 0 : index
    %20 = vector.load %arg2[%c3, %c0_9, %c0_10] : memref<9x1x384xf32, #tpu.memory_space<vmem>>, vector<1x1x384xf32>
    %21 = vector.shape_cast %20 : vector<1x1x384xf32> to vector<1x384xf32>
    %22 = vector.broadcast %21 : vector<1x384xf32> to vector<32x384xf32>
    %23 = arith.mulf %19, %22 : vector<32x384xf32>
    %24 = arith.addf %18, %23 : vector<32x384xf32>
    %25 = vector.extract_strided_slice %1 {offsets = [1, 12], sizes = [32, 384], strides = [1, 1]} : vector<34x408xf32> to vector<32x384xf32>
    %c4 = arith.constant 4 : index
    %c0_11 = arith.constant 0 : index
    %c0_12 = arith.constant 0 : index
    %26 = vector.load %arg2[%c4, %c0_11, %c0_12] : memref<9x1x384xf32, #tpu.memory_space<vmem>>, vector<1x1x384xf32>
    %27 = vector.shape_cast %26 : vector<1x1x384xf32> to vector<1x384xf32>
    %28 = vector.broadcast %27 : vector<1x384xf32> to vector<32x384xf32>
    %29 = arith.mulf %25, %28 : vector<32x384xf32>
    %30 = arith.addf %24, %29 : vector<32x384xf32>
    %31 = vector.extract_strided_slice %1 {offsets = [1, 24], sizes = [32, 384], strides = [1, 1]} : vector<34x408xf32> to vector<32x384xf32>
    %c5 = arith.constant 5 : index
    %c0_13 = arith.constant 0 : index
    %c0_14 = arith.constant 0 : index
    %32 = vector.load %arg2[%c5, %c0_13, %c0_14] : memref<9x1x384xf32, #tpu.memory_space<vmem>>, vector<1x1x384xf32>
    %33 = vector.shape_cast %32 : vector<1x1x384xf32> to vector<1x384xf32>
    %34 = vector.broadcast %33 : vector<1x384xf32> to vector<32x384xf32>
    %35 = arith.mulf %31, %34 : vector<32x384xf32>
    %36 = arith.addf %30, %35 : vector<32x384xf32>
    %37 = vector.extract_strided_slice %1 {offsets = [2, 0], sizes = [32, 384], strides = [1, 1]} : vector<34x408xf32> to vector<32x384xf32>
    %c6 = arith.constant 6 : index
    %c0_15 = arith.constant 0 : index
    %c0_16 = arith.constant 0 : index
    %38 = vector.load %arg2[%c6, %c0_15, %c0_16] : memref<9x1x384xf32, #tpu.memory_space<vmem>>, vector<1x1x384xf32>
    %39 = vector.shape_cast %38 : vector<1x1x384xf32> to vector<1x384xf32>
    %40 = vector.broadcast %39 : vector<1x384xf32> to vector<32x384xf32>
    %41 = arith.mulf %37, %40 : vector<32x384xf32>
    %42 = arith.addf %36, %41 : vector<32x384xf32>
    %43 = vector.extract_strided_slice %1 {offsets = [2, 12], sizes = [32, 384], strides = [1, 1]} : vector<34x408xf32> to vector<32x384xf32>
    %c7 = arith.constant 7 : index
    %c0_17 = arith.constant 0 : index
    %c0_18 = arith.constant 0 : index
    %44 = vector.load %arg2[%c7, %c0_17, %c0_18] : memref<9x1x384xf32, #tpu.memory_space<vmem>>, vector<1x1x384xf32>
    %45 = vector.shape_cast %44 : vector<1x1x384xf32> to vector<1x384xf32>
    %46 = vector.broadcast %45 : vector<1x384xf32> to vector<32x384xf32>
    %47 = arith.mulf %43, %46 : vector<32x384xf32>
    %48 = arith.addf %42, %47 : vector<32x384xf32>
    %49 = vector.extract_strided_slice %1 {offsets = [2, 24], sizes = [32, 384], strides = [1, 1]} : vector<34x408xf32> to vector<32x384xf32>
    %c8 = arith.constant 8 : index
    %c0_19 = arith.constant 0 : index
    %c0_20 = arith.constant 0 : index
    %50 = vector.load %arg2[%c8, %c0_19, %c0_20] : memref<9x1x384xf32, #tpu.memory_space<vmem>>, vector<1x1x384xf32>
    %51 = vector.shape_cast %50 : vector<1x1x384xf32> to vector<1x384xf32>
    %52 = vector.broadcast %51 : vector<1x384xf32> to vector<32x384xf32>
    %53 = arith.mulf %49, %52 : vector<32x384xf32>
    %54 = arith.addf %48, %53 : vector<32x384xf32>
    %55 = arith.truncf %54 : vector<32x384xf32> to vector<32x384xbf16>
    %c0_21 = arith.constant 0 : index
    %c0_22 = arith.constant 0 : index
    %56 = vector.load %arg3[%c0_21, %c0_22] : memref<384x1536xbf16, #tpu.memory_space<vmem>>, vector<384x1536xbf16>
    %cst = arith.constant dense<0.000000e+00> : vector<32x1536xf32>
    %57 = tpu.matmul %55, %56, %cst {dimension_numbers = #tpu.dot_dimension_numbers<[1], [0], [0], [1], [0, 0, 1, 1], [], []>} : vector<32x384xbf16>, vector<384x1536xbf16>, vector<32x1536xf32> -> vector<32x1536xf32>
    %c0_23 = arith.constant 0 : index
    %c0_24 = arith.constant 0 : index
    %58 = vector.load %arg4[%c0_23, %c0_24] : memref<1x1536xf32, #tpu.memory_space<vmem>>, vector<1x1536xf32>
    %59 = vector.broadcast %58 : vector<1x1536xf32> to vector<32x1536xf32>
    %60 = arith.addf %57, %59 : vector<32x1536xf32>
    %c0_25 = arith.constant 0 : index
    %c0_26 = arith.constant 0 : index
    %c0_27 = arith.constant 0 : index
    %61 = vector.load %arg5[%c0_25, %c0_26, %c0_27] : memref<1x32x1536xf32, #tpu.memory_space<vmem>>, vector<1x32x1536xf32>
    %62 = vector.shape_cast %61 : vector<1x32x1536xf32> to vector<32x1536xf32>
    %63 = vector.shape_cast %60 : vector<32x1536xf32> to vector<1x32x1536xf32>
    tpu.vector_store %arg5[%c0_25, %c0_26, %c0_27], %63 {strides = array<i32>} : memref<1x32x1536xf32, #tpu.memory_space<vmem>>, vector<1x32x1536xf32>,
    return
  }
  func.func @transform_0(%arg0: i32) -> (i32, i32, i32) {
    %c0_i32 = arith.constant 0 : i32
    %c0_i32_0 = arith.constant 0 : i32
    %c0_i32_1 = arith.constant 0 : i32
    return %arg0, %c0_i32, %c0_i32_0 : i32, i32, i32
  }
  func.func @transform_1(%arg0: i32) -> (i32, i32, i32) {
    %c0_i32 = arith.constant 0 : i32
    %c0_i32_0 = arith.constant 0 : i32
    %c0_i32_1 = arith.constant 0 : i32
    %c0_i32_2 = arith.constant 0 : i32
    return %c0_i32, %c0_i32_0, %c0_i32_1 : i32, i32, i32
  }
  func.func @transform_2(%arg0: i32) -> (i32, i32) {
    %c0_i32 = arith.constant 0 : i32
    %c0_i32_0 = arith.constant 0 : i32
    %c0_i32_1 = arith.constant 0 : i32
    return %c0_i32, %c0_i32_0 : i32, i32
  }
  func.func @transform_3(%arg0: i32) -> (i32, i32) {
    %c0_i32 = arith.constant 0 : i32
    %c0_i32_0 = arith.constant 0 : i32
    %c0_i32_1 = arith.constant 0 : i32
    return %c0_i32, %c0_i32_0 : i32, i32
  }
  func.func @transform_4(%arg0: i32) -> (i32, i32, i32) {
    %c0_i32 = arith.constant 0 : i32
    %c0_i32_0 = arith.constant 0 : i32
    %c0_i32_1 = arith.constant 0 : i32
    return %arg0, %c0_i32, %c0_i32_0 : i32, i32, i32
  }
}

module attributes {stable_mosaic.version = 11 : i64} {
  func.func @_pw_kernel(%arg0: i32, %arg1: memref<1x16x128xf32, #tpu.memory_space<vmem>>, %arg2: memref<128x768xbf16, #tpu.memory_space<vmem>>, %arg3: memref<1x768xf32, #tpu.memory_space<vmem>>, %arg4: memref<1x16x768xf32, #tpu.memory_space<vmem>>, %arg5: memref<1x16x768xf32, #tpu.memory_space<vmem>>) attributes {dimension_semantics = [#tpu.dimension_semantics<parallel>], iteration_bounds = array<i64: 2>, scalar_prefetch = 0 : i64, scratch_operands = 0 : i64, tpu.core_type = #tpu.core_type<tc>, window_params = [{transform_indices = @transform_0, window_bounds = array<i64: 1, 16, 128>}, {pipeline_mode = #tpu.pipeline_mode<synchronous>, transform_indices = @transform_1, window_bounds = array<i64: 128, 768>}, {pipeline_mode = #tpu.pipeline_mode<synchronous>, transform_indices = @transform_2, window_bounds = array<i64: 1, 768>}, {transform_indices = @transform_3, window_bounds = array<i64: 1, 16, 768>}, {transform_indices = @transform_4, window_bounds = array<i64: 1, 16, 768>}]} {
    %c0 = arith.constant 0 : index
    %c0_0 = arith.constant 0 : index
    %c0_1 = arith.constant 0 : index
    %0 = vector.load %arg1[%c0, %c0_0, %c0_1] : memref<1x16x128xf32, #tpu.memory_space<vmem>>, vector<1x16x128xf32>
    %1 = vector.shape_cast %0 : vector<1x16x128xf32> to vector<16x128xf32>
    %2 = arith.truncf %1 : vector<16x128xf32> to vector<16x128xbf16>
    %c0_2 = arith.constant 0 : index
    %c0_3 = arith.constant 0 : index
    %3 = vector.load %arg2[%c0_2, %c0_3] : memref<128x768xbf16, #tpu.memory_space<vmem>>, vector<128x768xbf16>
    %cst = arith.constant dense<0.000000e+00> : vector<16x768xf32>
    %4 = tpu.matmul %2, %3, %cst {dimension_numbers = #tpu.dot_dimension_numbers<[1], [0], [0], [1], [0, 0, 1, 1], [], []>} : vector<16x128xbf16>, vector<128x768xbf16>, vector<16x768xf32> -> vector<16x768xf32>
    %c0_4 = arith.constant 0 : index
    %c0_5 = arith.constant 0 : index
    %5 = vector.load %arg3[%c0_4, %c0_5] : memref<1x768xf32, #tpu.memory_space<vmem>>, vector<1x768xf32>
    %6 = vector.broadcast %5 : vector<1x768xf32> to vector<16x768xf32>
    %7 = arith.addf %4, %6 : vector<16x768xf32>
    %c0_6 = arith.constant 0 : index
    %c0_7 = arith.constant 0 : index
    %c0_8 = arith.constant 0 : index
    %8 = vector.load %arg4[%c0_6, %c0_7, %c0_8] : memref<1x16x768xf32, #tpu.memory_space<vmem>>, vector<1x16x768xf32>
    %9 = vector.shape_cast %8 : vector<1x16x768xf32> to vector<16x768xf32>
    %10 = arith.addf %7, %9 : vector<16x768xf32>
    %c0_9 = arith.constant 0 : index
    %c0_10 = arith.constant 0 : index
    %c0_11 = arith.constant 0 : index
    %11 = vector.load %arg5[%c0_9, %c0_10, %c0_11] : memref<1x16x768xf32, #tpu.memory_space<vmem>>, vector<1x16x768xf32>
    %12 = vector.shape_cast %11 : vector<1x16x768xf32> to vector<16x768xf32>
    %13 = vector.shape_cast %10 : vector<16x768xf32> to vector<1x16x768xf32>
    tpu.vector_store %arg5[%c0_9, %c0_10, %c0_11], %13 {strides = array<i32>} : memref<1x16x768xf32, #tpu.memory_space<vmem>>, vector<1x16x768xf32>,
    return
  }
  func.func @transform_0(%arg0: i32) -> (i32, i32, i32) {
    %c0_i32 = arith.constant 0 : i32
    %c0_i32_0 = arith.constant 0 : i32
    %c0_i32_1 = arith.constant 0 : i32
    return %arg0, %c0_i32, %c0_i32_0 : i32, i32, i32
  }
  func.func @transform_1(%arg0: i32) -> (i32, i32) {
    %c0_i32 = arith.constant 0 : i32
    %c0_i32_0 = arith.constant 0 : i32
    %c0_i32_1 = arith.constant 0 : i32
    return %c0_i32, %c0_i32_0 : i32, i32
  }
  func.func @transform_2(%arg0: i32) -> (i32, i32) {
    %c0_i32 = arith.constant 0 : i32
    %c0_i32_0 = arith.constant 0 : i32
    %c0_i32_1 = arith.constant 0 : i32
    return %c0_i32, %c0_i32_0 : i32, i32
  }
  func.func @transform_3(%arg0: i32) -> (i32, i32, i32) {
    %c0_i32 = arith.constant 0 : i32
    %c0_i32_0 = arith.constant 0 : i32
    %c0_i32_1 = arith.constant 0 : i32
    return %arg0, %c0_i32, %c0_i32_0 : i32, i32, i32
  }
  func.func @transform_4(%arg0: i32) -> (i32, i32, i32) {
    %c0_i32 = arith.constant 0 : i32
    %c0_i32_0 = arith.constant 0 : i32
    %c0_i32_1 = arith.constant 0 : i32
    return %arg0, %c0_i32, %c0_i32_0 : i32, i32, i32
  }
}

module attributes {stable_mosaic.version = 11 : i64} {
  func.func @_sepconv_kernel(%arg0: i32, %arg1: memref<1x18x864xf32, #tpu.memory_space<vmem>>, %arg2: memref<9x1x768xf32, #tpu.memory_space<vmem>>, %arg3: memref<768x192xbf16, #tpu.memory_space<vmem>>, %arg4: memref<1x192xf32, #tpu.memory_space<vmem>>, %arg5: memref<1x16x192xf32, #tpu.memory_space<vmem>>) attributes {dimension_semantics = [#tpu.dimension_semantics<parallel>], iteration_bounds = array<i64: 2>, scalar_prefetch = 0 : i64, scratch_operands = 0 : i64, tpu.core_type = #tpu.core_type<tc>, window_params = [{transform_indices = @transform_0, window_bounds = array<i64: 1, 18, 864>}, {pipeline_mode = #tpu.pipeline_mode<synchronous>, transform_indices = @transform_1, window_bounds = array<i64: 9, 1, 768>}, {pipeline_mode = #tpu.pipeline_mode<synchronous>, transform_indices = @transform_2, window_bounds = array<i64: 768, 192>}, {pipeline_mode = #tpu.pipeline_mode<synchronous>, transform_indices = @transform_3, window_bounds = array<i64: 1, 192>}, {transform_indices = @transform_4, window_bounds = array<i64: 1, 16, 192>}]} {
    %c0 = arith.constant 0 : index
    %c0_0 = arith.constant 0 : index
    %c0_1 = arith.constant 0 : index
    %0 = vector.load %arg1[%c0, %c0_0, %c0_1] : memref<1x18x864xf32, #tpu.memory_space<vmem>>, vector<1x18x864xf32>
    %1 = vector.shape_cast %0 : vector<1x18x864xf32> to vector<18x864xf32>
    %cst = arith.constant 0.000000e+00 : f32
    %2 = vector.broadcast %cst : f32 to vector<18x864xf32>
    %3 = arith.maximumf %1, %2 : vector<18x864xf32>
    %4 = vector.extract_strided_slice %3 {offsets = [0, 0], sizes = [16, 768], strides = [1, 1]} : vector<18x864xf32> to vector<16x768xf32>
    %c0_2 = arith.constant 0 : index
    %c0_3 = arith.constant 0 : index
    %c0_4 = arith.constant 0 : index
    %5 = vector.load %arg2[%c0_2, %c0_3, %c0_4] : memref<9x1x768xf32, #tpu.memory_space<vmem>>, vector<1x1x768xf32>
    %6 = vector.shape_cast %5 : vector<1x1x768xf32> to vector<1x768xf32>
    %7 = vector.broadcast %6 : vector<1x768xf32> to vector<16x768xf32>
    %8 = arith.mulf %4, %7 : vector<16x768xf32>
    %9 = vector.extract_strided_slice %3 {offsets = [0, 48], sizes = [16, 768], strides = [1, 1]} : vector<18x864xf32> to vector<16x768xf32>
    %c1 = arith.constant 1 : index
    %c0_5 = arith.constant 0 : index
    %c0_6 = arith.constant 0 : index
    %10 = vector.load %arg2[%c1, %c0_5, %c0_6] : memref<9x1x768xf32, #tpu.memory_space<vmem>>, vector<1x1x768xf32>
    %11 = vector.shape_cast %10 : vector<1x1x768xf32> to vector<1x768xf32>
    %12 = vector.broadcast %11 : vector<1x768xf32> to vector<16x768xf32>
    %13 = arith.mulf %9, %12 : vector<16x768xf32>
    %14 = arith.addf %8, %13 : vector<16x768xf32>
    %15 = vector.extract_strided_slice %3 {offsets = [0, 96], sizes = [16, 768], strides = [1, 1]} : vector<18x864xf32> to vector<16x768xf32>
    %c2 = arith.constant 2 : index
    %c0_7 = arith.constant 0 : index
    %c0_8 = arith.constant 0 : index
    %16 = vector.load %arg2[%c2, %c0_7, %c0_8] : memref<9x1x768xf32, #tpu.memory_space<vmem>>, vector<1x1x768xf32>
    %17 = vector.shape_cast %16 : vector<1x1x768xf32> to vector<1x768xf32>
    %18 = vector.broadcast %17 : vector<1x768xf32> to vector<16x768xf32>
    %19 = arith.mulf %15, %18 : vector<16x768xf32>
    %20 = arith.addf %14, %19 : vector<16x768xf32>
    %21 = vector.extract_strided_slice %3 {offsets = [1, 0], sizes = [16, 768], strides = [1, 1]} : vector<18x864xf32> to vector<16x768xf32>
    %c3 = arith.constant 3 : index
    %c0_9 = arith.constant 0 : index
    %c0_10 = arith.constant 0 : index
    %22 = vector.load %arg2[%c3, %c0_9, %c0_10] : memref<9x1x768xf32, #tpu.memory_space<vmem>>, vector<1x1x768xf32>
    %23 = vector.shape_cast %22 : vector<1x1x768xf32> to vector<1x768xf32>
    %24 = vector.broadcast %23 : vector<1x768xf32> to vector<16x768xf32>
    %25 = arith.mulf %21, %24 : vector<16x768xf32>
    %26 = arith.addf %20, %25 : vector<16x768xf32>
    %27 = vector.extract_strided_slice %3 {offsets = [1, 48], sizes = [16, 768], strides = [1, 1]} : vector<18x864xf32> to vector<16x768xf32>
    %c4 = arith.constant 4 : index
    %c0_11 = arith.constant 0 : index
    %c0_12 = arith.constant 0 : index
    %28 = vector.load %arg2[%c4, %c0_11, %c0_12] : memref<9x1x768xf32, #tpu.memory_space<vmem>>, vector<1x1x768xf32>
    %29 = vector.shape_cast %28 : vector<1x1x768xf32> to vector<1x768xf32>
    %30 = vector.broadcast %29 : vector<1x768xf32> to vector<16x768xf32>
    %31 = arith.mulf %27, %30 : vector<16x768xf32>
    %32 = arith.addf %26, %31 : vector<16x768xf32>
    %33 = vector.extract_strided_slice %3 {offsets = [1, 96], sizes = [16, 768], strides = [1, 1]} : vector<18x864xf32> to vector<16x768xf32>
    %c5 = arith.constant 5 : index
    %c0_13 = arith.constant 0 : index
    %c0_14 = arith.constant 0 : index
    %34 = vector.load %arg2[%c5, %c0_13, %c0_14] : memref<9x1x768xf32, #tpu.memory_space<vmem>>, vector<1x1x768xf32>
    %35 = vector.shape_cast %34 : vector<1x1x768xf32> to vector<1x768xf32>
    %36 = vector.broadcast %35 : vector<1x768xf32> to vector<16x768xf32>
    %37 = arith.mulf %33, %36 : vector<16x768xf32>
    %38 = arith.addf %32, %37 : vector<16x768xf32>
    %39 = vector.extract_strided_slice %3 {offsets = [2, 0], sizes = [16, 768], strides = [1, 1]} : vector<18x864xf32> to vector<16x768xf32>
    %c6 = arith.constant 6 : index
    %c0_15 = arith.constant 0 : index
    %c0_16 = arith.constant 0 : index
    %40 = vector.load %arg2[%c6, %c0_15, %c0_16] : memref<9x1x768xf32, #tpu.memory_space<vmem>>, vector<1x1x768xf32>
    %41 = vector.shape_cast %40 : vector<1x1x768xf32> to vector<1x768xf32>
    %42 = vector.broadcast %41 : vector<1x768xf32> to vector<16x768xf32>
    %43 = arith.mulf %39, %42 : vector<16x768xf32>
    %44 = arith.addf %38, %43 : vector<16x768xf32>
    %45 = vector.extract_strided_slice %3 {offsets = [2, 48], sizes = [16, 768], strides = [1, 1]} : vector<18x864xf32> to vector<16x768xf32>
    %c7 = arith.constant 7 : index
    %c0_17 = arith.constant 0 : index
    %c0_18 = arith.constant 0 : index
    %46 = vector.load %arg2[%c7, %c0_17, %c0_18] : memref<9x1x768xf32, #tpu.memory_space<vmem>>, vector<1x1x768xf32>
    %47 = vector.shape_cast %46 : vector<1x1x768xf32> to vector<1x768xf32>
    %48 = vector.broadcast %47 : vector<1x768xf32> to vector<16x768xf32>
    %49 = arith.mulf %45, %48 : vector<16x768xf32>
    %50 = arith.addf %44, %49 : vector<16x768xf32>
    %51 = vector.extract_strided_slice %3 {offsets = [2, 96], sizes = [16, 768], strides = [1, 1]} : vector<18x864xf32> to vector<16x768xf32>
    %c8 = arith.constant 8 : index
    %c0_19 = arith.constant 0 : index
    %c0_20 = arith.constant 0 : index
    %52 = vector.load %arg2[%c8, %c0_19, %c0_20] : memref<9x1x768xf32, #tpu.memory_space<vmem>>, vector<1x1x768xf32>
    %53 = vector.shape_cast %52 : vector<1x1x768xf32> to vector<1x768xf32>
    %54 = vector.broadcast %53 : vector<1x768xf32> to vector<16x768xf32>
    %55 = arith.mulf %51, %54 : vector<16x768xf32>
    %56 = arith.addf %50, %55 : vector<16x768xf32>
    %57 = arith.truncf %56 : vector<16x768xf32> to vector<16x768xbf16>
    %c0_21 = arith.constant 0 : index
    %c0_22 = arith.constant 0 : index
    %58 = vector.load %arg3[%c0_21, %c0_22] : memref<768x192xbf16, #tpu.memory_space<vmem>>, vector<768x192xbf16>
    %cst_23 = arith.constant dense<0.000000e+00> : vector<16x192xf32>
    %59 = tpu.matmul %57, %58, %cst_23 {dimension_numbers = #tpu.dot_dimension_numbers<[1], [0], [0], [1], [0, 0, 1, 1], [], []>} : vector<16x768xbf16>, vector<768x192xbf16>, vector<16x192xf32> -> vector<16x192xf32>
    %c0_24 = arith.constant 0 : index
    %c0_25 = arith.constant 0 : index
    %60 = vector.load %arg4[%c0_24, %c0_25] : memref<1x192xf32, #tpu.memory_space<vmem>>, vector<1x192xf32>
    %61 = vector.broadcast %60 : vector<1x192xf32> to vector<16x192xf32>
    %62 = arith.addf %59, %61 : vector<16x192xf32>
    %cst_26 = arith.constant 0.000000e+00 : f32
    %63 = vector.broadcast %cst_26 : f32 to vector<16x192xf32>
    %64 = arith.maximumf %62, %63 : vector<16x192xf32>
    %c0_27 = arith.constant 0 : index
    %c0_28 = arith.constant 0 : index
    %c0_29 = arith.constant 0 : index
    %65 = vector.load %arg5[%c0_27, %c0_28, %c0_29] : memref<1x16x192xf32, #tpu.memory_space<vmem>>, vector<1x16x192xf32>
    %66 = vector.shape_cast %65 : vector<1x16x192xf32> to vector<16x192xf32>
    %67 = vector.shape_cast %64 : vector<16x192xf32> to vector<1x16x192xf32>
    tpu.vector_store %arg5[%c0_27, %c0_28, %c0_29], %67 {strides = array<i32>} : memref<1x16x192xf32, #tpu.memory_space<vmem>>, vector<1x16x192xf32>,
    return
  }
  func.func @transform_0(%arg0: i32) -> (i32, i32, i32) {
    %c0_i32 = arith.constant 0 : i32
    %c0_i32_0 = arith.constant 0 : i32
    %c0_i32_1 = arith.constant 0 : i32
    return %arg0, %c0_i32, %c0_i32_0 : i32, i32, i32
  }
  func.func @transform_1(%arg0: i32) -> (i32, i32, i32) {
    %c0_i32 = arith.constant 0 : i32
    %c0_i32_0 = arith.constant 0 : i32
    %c0_i32_1 = arith.constant 0 : i32
    %c0_i32_2 = arith.constant 0 : i32
    return %c0_i32, %c0_i32_0, %c0_i32_1 : i32, i32, i32
  }
  func.func @transform_2(%arg0: i32) -> (i32, i32) {
    %c0_i32 = arith.constant 0 : i32
    %c0_i32_0 = arith.constant 0 : i32
    %c0_i32_1 = arith.constant 0 : i32
    return %c0_i32, %c0_i32_0 : i32, i32
  }
  func.func @transform_3(%arg0: i32) -> (i32, i32) {
    %c0_i32 = arith.constant 0 : i32
    %c0_i32_0 = arith.constant 0 : i32
    %c0_i32_1 = arith.constant 0 : i32
    return %c0_i32, %c0_i32_0 : i32, i32
  }
  func.func @transform_4(%arg0: i32) -> (i32, i32, i32) {
    %c0_i32 = arith.constant 0 : i32
    %c0_i32_0 = arith.constant 0 : i32
    %c0_i32_1 = arith.constant 0 : i32
    return %arg0, %c0_i32, %c0_i32_0 : i32, i32, i32
  }
}

module attributes {stable_mosaic.version = 11 : i64} {
  func.func @_sepconv_kernel(%arg0: i32, %arg1: memref<1x18x216xf32, #tpu.memory_space<vmem>>, %arg2: memref<9x1x192xf32, #tpu.memory_space<vmem>>, %arg3: memref<192x192xbf16, #tpu.memory_space<vmem>>, %arg4: memref<1x192xf32, #tpu.memory_space<vmem>>, %arg5: memref<1x16x192xf32, #tpu.memory_space<vmem>>) attributes {dimension_semantics = [#tpu.dimension_semantics<parallel>], iteration_bounds = array<i64: 2>, scalar_prefetch = 0 : i64, scratch_operands = 0 : i64, tpu.core_type = #tpu.core_type<tc>, window_params = [{transform_indices = @transform_0, window_bounds = array<i64: 1, 18, 216>}, {pipeline_mode = #tpu.pipeline_mode<synchronous>, transform_indices = @transform_1, window_bounds = array<i64: 9, 1, 192>}, {pipeline_mode = #tpu.pipeline_mode<synchronous>, transform_indices = @transform_2, window_bounds = array<i64: 192, 192>}, {pipeline_mode = #tpu.pipeline_mode<synchronous>, transform_indices = @transform_3, window_bounds = array<i64: 1, 192>}, {transform_indices = @transform_4, window_bounds = array<i64: 1, 16, 192>}]} {
    %c0 = arith.constant 0 : index
    %c0_0 = arith.constant 0 : index
    %c0_1 = arith.constant 0 : index
    %0 = vector.load %arg1[%c0, %c0_0, %c0_1] : memref<1x18x216xf32, #tpu.memory_space<vmem>>, vector<1x18x216xf32>
    %1 = vector.shape_cast %0 : vector<1x18x216xf32> to vector<18x216xf32>
    %2 = vector.extract_strided_slice %1 {offsets = [0, 0], sizes = [16, 192], strides = [1, 1]} : vector<18x216xf32> to vector<16x192xf32>
    %c0_2 = arith.constant 0 : index
    %c0_3 = arith.constant 0 : index
    %c0_4 = arith.constant 0 : index
    %3 = vector.load %arg2[%c0_2, %c0_3, %c0_4] : memref<9x1x192xf32, #tpu.memory_space<vmem>>, vector<1x1x192xf32>
    %4 = vector.shape_cast %3 : vector<1x1x192xf32> to vector<1x192xf32>
    %5 = vector.broadcast %4 : vector<1x192xf32> to vector<16x192xf32>
    %6 = arith.mulf %2, %5 : vector<16x192xf32>
    %7 = vector.extract_strided_slice %1 {offsets = [0, 12], sizes = [16, 192], strides = [1, 1]} : vector<18x216xf32> to vector<16x192xf32>
    %c1 = arith.constant 1 : index
    %c0_5 = arith.constant 0 : index
    %c0_6 = arith.constant 0 : index
    %8 = vector.load %arg2[%c1, %c0_5, %c0_6] : memref<9x1x192xf32, #tpu.memory_space<vmem>>, vector<1x1x192xf32>
    %9 = vector.shape_cast %8 : vector<1x1x192xf32> to vector<1x192xf32>
    %10 = vector.broadcast %9 : vector<1x192xf32> to vector<16x192xf32>
    %11 = arith.mulf %7, %10 : vector<16x192xf32>
    %12 = arith.addf %6, %11 : vector<16x192xf32>
    %13 = vector.extract_strided_slice %1 {offsets = [0, 24], sizes = [16, 192], strides = [1, 1]} : vector<18x216xf32> to vector<16x192xf32>
    %c2 = arith.constant 2 : index
    %c0_7 = arith.constant 0 : index
    %c0_8 = arith.constant 0 : index
    %14 = vector.load %arg2[%c2, %c0_7, %c0_8] : memref<9x1x192xf32, #tpu.memory_space<vmem>>, vector<1x1x192xf32>
    %15 = vector.shape_cast %14 : vector<1x1x192xf32> to vector<1x192xf32>
    %16 = vector.broadcast %15 : vector<1x192xf32> to vector<16x192xf32>
    %17 = arith.mulf %13, %16 : vector<16x192xf32>
    %18 = arith.addf %12, %17 : vector<16x192xf32>
    %19 = vector.extract_strided_slice %1 {offsets = [1, 0], sizes = [16, 192], strides = [1, 1]} : vector<18x216xf32> to vector<16x192xf32>
    %c3 = arith.constant 3 : index
    %c0_9 = arith.constant 0 : index
    %c0_10 = arith.constant 0 : index
    %20 = vector.load %arg2[%c3, %c0_9, %c0_10] : memref<9x1x192xf32, #tpu.memory_space<vmem>>, vector<1x1x192xf32>
    %21 = vector.shape_cast %20 : vector<1x1x192xf32> to vector<1x192xf32>
    %22 = vector.broadcast %21 : vector<1x192xf32> to vector<16x192xf32>
    %23 = arith.mulf %19, %22 : vector<16x192xf32>
    %24 = arith.addf %18, %23 : vector<16x192xf32>
    %25 = vector.extract_strided_slice %1 {offsets = [1, 12], sizes = [16, 192], strides = [1, 1]} : vector<18x216xf32> to vector<16x192xf32>
    %c4 = arith.constant 4 : index
    %c0_11 = arith.constant 0 : index
    %c0_12 = arith.constant 0 : index
    %26 = vector.load %arg2[%c4, %c0_11, %c0_12] : memref<9x1x192xf32, #tpu.memory_space<vmem>>, vector<1x1x192xf32>
    %27 = vector.shape_cast %26 : vector<1x1x192xf32> to vector<1x192xf32>
    %28 = vector.broadcast %27 : vector<1x192xf32> to vector<16x192xf32>
    %29 = arith.mulf %25, %28 : vector<16x192xf32>
    %30 = arith.addf %24, %29 : vector<16x192xf32>
    %31 = vector.extract_strided_slice %1 {offsets = [1, 24], sizes = [16, 192], strides = [1, 1]} : vector<18x216xf32> to vector<16x192xf32>
    %c5 = arith.constant 5 : index
    %c0_13 = arith.constant 0 : index
    %c0_14 = arith.constant 0 : index
    %32 = vector.load %arg2[%c5, %c0_13, %c0_14] : memref<9x1x192xf32, #tpu.memory_space<vmem>>, vector<1x1x192xf32>
    %33 = vector.shape_cast %32 : vector<1x1x192xf32> to vector<1x192xf32>
    %34 = vector.broadcast %33 : vector<1x192xf32> to vector<16x192xf32>
    %35 = arith.mulf %31, %34 : vector<16x192xf32>
    %36 = arith.addf %30, %35 : vector<16x192xf32>
    %37 = vector.extract_strided_slice %1 {offsets = [2, 0], sizes = [16, 192], strides = [1, 1]} : vector<18x216xf32> to vector<16x192xf32>
    %c6 = arith.constant 6 : index
    %c0_15 = arith.constant 0 : index
    %c0_16 = arith.constant 0 : index
    %38 = vector.load %arg2[%c6, %c0_15, %c0_16] : memref<9x1x192xf32, #tpu.memory_space<vmem>>, vector<1x1x192xf32>
    %39 = vector.shape_cast %38 : vector<1x1x192xf32> to vector<1x192xf32>
    %40 = vector.broadcast %39 : vector<1x192xf32> to vector<16x192xf32>
    %41 = arith.mulf %37, %40 : vector<16x192xf32>
    %42 = arith.addf %36, %41 : vector<16x192xf32>
    %43 = vector.extract_strided_slice %1 {offsets = [2, 12], sizes = [16, 192], strides = [1, 1]} : vector<18x216xf32> to vector<16x192xf32>
    %c7 = arith.constant 7 : index
    %c0_17 = arith.constant 0 : index
    %c0_18 = arith.constant 0 : index
    %44 = vector.load %arg2[%c7, %c0_17, %c0_18] : memref<9x1x192xf32, #tpu.memory_space<vmem>>, vector<1x1x192xf32>
    %45 = vector.shape_cast %44 : vector<1x1x192xf32> to vector<1x192xf32>
    %46 = vector.broadcast %45 : vector<1x192xf32> to vector<16x192xf32>
    %47 = arith.mulf %43, %46 : vector<16x192xf32>
    %48 = arith.addf %42, %47 : vector<16x192xf32>
    %49 = vector.extract_strided_slice %1 {offsets = [2, 24], sizes = [16, 192], strides = [1, 1]} : vector<18x216xf32> to vector<16x192xf32>
    %c8 = arith.constant 8 : index
    %c0_19 = arith.constant 0 : index
    %c0_20 = arith.constant 0 : index
    %50 = vector.load %arg2[%c8, %c0_19, %c0_20] : memref<9x1x192xf32, #tpu.memory_space<vmem>>, vector<1x1x192xf32>
    %51 = vector.shape_cast %50 : vector<1x1x192xf32> to vector<1x192xf32>
    %52 = vector.broadcast %51 : vector<1x192xf32> to vector<16x192xf32>
    %53 = arith.mulf %49, %52 : vector<16x192xf32>
    %54 = arith.addf %48, %53 : vector<16x192xf32>
    %55 = arith.truncf %54 : vector<16x192xf32> to vector<16x192xbf16>
    %c0_21 = arith.constant 0 : index
    %c0_22 = arith.constant 0 : index
    %56 = vector.load %arg3[%c0_21, %c0_22] : memref<192x192xbf16, #tpu.memory_space<vmem>>, vector<192x192xbf16>
    %cst = arith.constant dense<0.000000e+00> : vector<16x192xf32>
    %57 = tpu.matmul %55, %56, %cst {dimension_numbers = #tpu.dot_dimension_numbers<[1], [0], [0], [1], [0, 0, 1, 1], [], []>} : vector<16x192xbf16>, vector<192x192xbf16>, vector<16x192xf32> -> vector<16x192xf32>
    %c0_23 = arith.constant 0 : index
    %c0_24 = arith.constant 0 : index
    %58 = vector.load %arg4[%c0_23, %c0_24] : memref<1x192xf32, #tpu.memory_space<vmem>>, vector<1x192xf32>
    %59 = vector.broadcast %58 : vector<1x192xf32> to vector<16x192xf32>
    %60 = arith.addf %57, %59 : vector<16x192xf32>
    %cst_25 = arith.constant 0.000000e+00 : f32
    %61 = vector.broadcast %cst_25 : f32 to vector<16x192xf32>
    %62 = arith.maximumf %60, %61 : vector<16x192xf32>
    %c0_26 = arith.constant 0 : index
    %c0_27 = arith.constant 0 : index
    %c0_28 = arith.constant 0 : index
    %63 = vector.load %arg5[%c0_26, %c0_27, %c0_28] : memref<1x16x192xf32, #tpu.memory_space<vmem>>, vector<1x16x192xf32>
    %64 = vector.shape_cast %63 : vector<1x16x192xf32> to vector<16x192xf32>
    %65 = vector.shape_cast %62 : vector<16x192xf32> to vector<1x16x192xf32>
    tpu.vector_store %arg5[%c0_26, %c0_27, %c0_28], %65 {strides = array<i32>} : memref<1x16x192xf32, #tpu.memory_space<vmem>>, vector<1x16x192xf32>,
    return
  }
  func.func @transform_0(%arg0: i32) -> (i32, i32, i32) {
    %c0_i32 = arith.constant 0 : i32
    %c0_i32_0 = arith.constant 0 : i32
    %c0_i32_1 = arith.constant 0 : i32
    return %arg0, %c0_i32, %c0_i32_0 : i32, i32, i32
  }
  func.func @transform_1(%arg0: i32) -> (i32, i32, i32) {
    %c0_i32 = arith.constant 0 : i32
    %c0_i32_0 = arith.constant 0 : i32
    %c0_i32_1 = arith.constant 0 : i32
    %c0_i32_2 = arith.constant 0 : i32
    return %c0_i32, %c0_i32_0, %c0_i32_1 : i32, i32, i32
  }
  func.func @transform_2(%arg0: i32) -> (i32, i32) {
    %c0_i32 = arith.constant 0 : i32
    %c0_i32_0 = arith.constant 0 : i32
    %c0_i32_1 = arith.constant 0 : i32
    return %c0_i32, %c0_i32_0 : i32, i32
  }
  func.func @transform_3(%arg0: i32) -> (i32, i32) {
    %c0_i32 = arith.constant 0 : i32
    %c0_i32_0 = arith.constant 0 : i32
    %c0_i32_1 = arith.constant 0 : i32
    return %c0_i32, %c0_i32_0 : i32, i32
  }
  func.func @transform_4(%arg0: i32) -> (i32, i32, i32) {
    %c0_i32 = arith.constant 0 : i32
    %c0_i32_0 = arith.constant 0 : i32
    %c0_i32_1 = arith.constant 0 : i32
    return %arg0, %c0_i32, %c0_i32_0 : i32, i32, i32
  }
}

module attributes {stable_mosaic.version = 11 : i64} {
  func.func @_sepconv_kernel(%arg0: i32, %arg1: memref<1x18x216xf32, #tpu.memory_space<vmem>>, %arg2: memref<9x1x192xf32, #tpu.memory_space<vmem>>, %arg3: memref<192x768xbf16, #tpu.memory_space<vmem>>, %arg4: memref<1x768xf32, #tpu.memory_space<vmem>>, %arg5: memref<1x16x768xf32, #tpu.memory_space<vmem>>, %arg6: memref<1x16x768xf32, #tpu.memory_space<vmem>>) attributes {dimension_semantics = [#tpu.dimension_semantics<parallel>], iteration_bounds = array<i64: 2>, scalar_prefetch = 0 : i64, scratch_operands = 0 : i64, tpu.core_type = #tpu.core_type<tc>, window_params = [{transform_indices = @transform_0, window_bounds = array<i64: 1, 18, 216>}, {pipeline_mode = #tpu.pipeline_mode<synchronous>, transform_indices = @transform_1, window_bounds = array<i64: 9, 1, 192>}, {pipeline_mode = #tpu.pipeline_mode<synchronous>, transform_indices = @transform_2, window_bounds = array<i64: 192, 768>}, {pipeline_mode = #tpu.pipeline_mode<synchronous>, transform_indices = @transform_3, window_bounds = array<i64: 1, 768>}, {transform_indices = @transform_4, window_bounds = array<i64: 1, 16, 768>}, {transform_indices = @transform_5, window_bounds = array<i64: 1, 16, 768>}]} {
    %c0 = arith.constant 0 : index
    %c0_0 = arith.constant 0 : index
    %c0_1 = arith.constant 0 : index
    %0 = vector.load %arg1[%c0, %c0_0, %c0_1] : memref<1x18x216xf32, #tpu.memory_space<vmem>>, vector<1x18x216xf32>
    %1 = vector.shape_cast %0 : vector<1x18x216xf32> to vector<18x216xf32>
    %2 = vector.extract_strided_slice %1 {offsets = [0, 0], sizes = [16, 192], strides = [1, 1]} : vector<18x216xf32> to vector<16x192xf32>
    %c0_2 = arith.constant 0 : index
    %c0_3 = arith.constant 0 : index
    %c0_4 = arith.constant 0 : index
    %3 = vector.load %arg2[%c0_2, %c0_3, %c0_4] : memref<9x1x192xf32, #tpu.memory_space<vmem>>, vector<1x1x192xf32>
    %4 = vector.shape_cast %3 : vector<1x1x192xf32> to vector<1x192xf32>
    %5 = vector.broadcast %4 : vector<1x192xf32> to vector<16x192xf32>
    %6 = arith.mulf %2, %5 : vector<16x192xf32>
    %7 = vector.extract_strided_slice %1 {offsets = [0, 12], sizes = [16, 192], strides = [1, 1]} : vector<18x216xf32> to vector<16x192xf32>
    %c1 = arith.constant 1 : index
    %c0_5 = arith.constant 0 : index
    %c0_6 = arith.constant 0 : index
    %8 = vector.load %arg2[%c1, %c0_5, %c0_6] : memref<9x1x192xf32, #tpu.memory_space<vmem>>, vector<1x1x192xf32>
    %9 = vector.shape_cast %8 : vector<1x1x192xf32> to vector<1x192xf32>
    %10 = vector.broadcast %9 : vector<1x192xf32> to vector<16x192xf32>
    %11 = arith.mulf %7, %10 : vector<16x192xf32>
    %12 = arith.addf %6, %11 : vector<16x192xf32>
    %13 = vector.extract_strided_slice %1 {offsets = [0, 24], sizes = [16, 192], strides = [1, 1]} : vector<18x216xf32> to vector<16x192xf32>
    %c2 = arith.constant 2 : index
    %c0_7 = arith.constant 0 : index
    %c0_8 = arith.constant 0 : index
    %14 = vector.load %arg2[%c2, %c0_7, %c0_8] : memref<9x1x192xf32, #tpu.memory_space<vmem>>, vector<1x1x192xf32>
    %15 = vector.shape_cast %14 : vector<1x1x192xf32> to vector<1x192xf32>
    %16 = vector.broadcast %15 : vector<1x192xf32> to vector<16x192xf32>
    %17 = arith.mulf %13, %16 : vector<16x192xf32>
    %18 = arith.addf %12, %17 : vector<16x192xf32>
    %19 = vector.extract_strided_slice %1 {offsets = [1, 0], sizes = [16, 192], strides = [1, 1]} : vector<18x216xf32> to vector<16x192xf32>
    %c3 = arith.constant 3 : index
    %c0_9 = arith.constant 0 : index
    %c0_10 = arith.constant 0 : index
    %20 = vector.load %arg2[%c3, %c0_9, %c0_10] : memref<9x1x192xf32, #tpu.memory_space<vmem>>, vector<1x1x192xf32>
    %21 = vector.shape_cast %20 : vector<1x1x192xf32> to vector<1x192xf32>
    %22 = vector.broadcast %21 : vector<1x192xf32> to vector<16x192xf32>
    %23 = arith.mulf %19, %22 : vector<16x192xf32>
    %24 = arith.addf %18, %23 : vector<16x192xf32>
    %25 = vector.extract_strided_slice %1 {offsets = [1, 12], sizes = [16, 192], strides = [1, 1]} : vector<18x216xf32> to vector<16x192xf32>
    %c4 = arith.constant 4 : index
    %c0_11 = arith.constant 0 : index
    %c0_12 = arith.constant 0 : index
    %26 = vector.load %arg2[%c4, %c0_11, %c0_12] : memref<9x1x192xf32, #tpu.memory_space<vmem>>, vector<1x1x192xf32>
    %27 = vector.shape_cast %26 : vector<1x1x192xf32> to vector<1x192xf32>
    %28 = vector.broadcast %27 : vector<1x192xf32> to vector<16x192xf32>
    %29 = arith.mulf %25, %28 : vector<16x192xf32>
    %30 = arith.addf %24, %29 : vector<16x192xf32>
    %31 = vector.extract_strided_slice %1 {offsets = [1, 24], sizes = [16, 192], strides = [1, 1]} : vector<18x216xf32> to vector<16x192xf32>
    %c5 = arith.constant 5 : index
    %c0_13 = arith.constant 0 : index
    %c0_14 = arith.constant 0 : index
    %32 = vector.load %arg2[%c5, %c0_13, %c0_14] : memref<9x1x192xf32, #tpu.memory_space<vmem>>, vector<1x1x192xf32>
    %33 = vector.shape_cast %32 : vector<1x1x192xf32> to vector<1x192xf32>
    %34 = vector.broadcast %33 : vector<1x192xf32> to vector<16x192xf32>
    %35 = arith.mulf %31, %34 : vector<16x192xf32>
    %36 = arith.addf %30, %35 : vector<16x192xf32>
    %37 = vector.extract_strided_slice %1 {offsets = [2, 0], sizes = [16, 192], strides = [1, 1]} : vector<18x216xf32> to vector<16x192xf32>
    %c6 = arith.constant 6 : index
    %c0_15 = arith.constant 0 : index
    %c0_16 = arith.constant 0 : index
    %38 = vector.load %arg2[%c6, %c0_15, %c0_16] : memref<9x1x192xf32, #tpu.memory_space<vmem>>, vector<1x1x192xf32>
    %39 = vector.shape_cast %38 : vector<1x1x192xf32> to vector<1x192xf32>
    %40 = vector.broadcast %39 : vector<1x192xf32> to vector<16x192xf32>
    %41 = arith.mulf %37, %40 : vector<16x192xf32>
    %42 = arith.addf %36, %41 : vector<16x192xf32>
    %43 = vector.extract_strided_slice %1 {offsets = [2, 12], sizes = [16, 192], strides = [1, 1]} : vector<18x216xf32> to vector<16x192xf32>
    %c7 = arith.constant 7 : index
    %c0_17 = arith.constant 0 : index
    %c0_18 = arith.constant 0 : index
    %44 = vector.load %arg2[%c7, %c0_17, %c0_18] : memref<9x1x192xf32, #tpu.memory_space<vmem>>, vector<1x1x192xf32>
    %45 = vector.shape_cast %44 : vector<1x1x192xf32> to vector<1x192xf32>
    %46 = vector.broadcast %45 : vector<1x192xf32> to vector<16x192xf32>
    %47 = arith.mulf %43, %46 : vector<16x192xf32>
    %48 = arith.addf %42, %47 : vector<16x192xf32>
    %49 = vector.extract_strided_slice %1 {offsets = [2, 24], sizes = [16, 192], strides = [1, 1]} : vector<18x216xf32> to vector<16x192xf32>
    %c8 = arith.constant 8 : index
    %c0_19 = arith.constant 0 : index
    %c0_20 = arith.constant 0 : index
    %50 = vector.load %arg2[%c8, %c0_19, %c0_20] : memref<9x1x192xf32, #tpu.memory_space<vmem>>, vector<1x1x192xf32>
    %51 = vector.shape_cast %50 : vector<1x1x192xf32> to vector<1x192xf32>
    %52 = vector.broadcast %51 : vector<1x192xf32> to vector<16x192xf32>
    %53 = arith.mulf %49, %52 : vector<16x192xf32>
    %54 = arith.addf %48, %53 : vector<16x192xf32>
    %55 = arith.truncf %54 : vector<16x192xf32> to vector<16x192xbf16>
    %c0_21 = arith.constant 0 : index
    %c0_22 = arith.constant 0 : index
    %56 = vector.load %arg3[%c0_21, %c0_22] : memref<192x768xbf16, #tpu.memory_space<vmem>>, vector<192x768xbf16>
    %cst = arith.constant dense<0.000000e+00> : vector<16x768xf32>
    %57 = tpu.matmul %55, %56, %cst {dimension_numbers = #tpu.dot_dimension_numbers<[1], [0], [0], [1], [0, 0, 1, 1], [], []>} : vector<16x192xbf16>, vector<192x768xbf16>, vector<16x768xf32> -> vector<16x768xf32>
    %c0_23 = arith.constant 0 : index
    %c0_24 = arith.constant 0 : index
    %58 = vector.load %arg4[%c0_23, %c0_24] : memref<1x768xf32, #tpu.memory_space<vmem>>, vector<1x768xf32>
    %59 = vector.broadcast %58 : vector<1x768xf32> to vector<16x768xf32>
    %60 = arith.addf %57, %59 : vector<16x768xf32>
    %c0_25 = arith.constant 0 : index
    %c0_26 = arith.constant 0 : index
    %c0_27 = arith.constant 0 : index
    %61 = vector.load %arg5[%c0_25, %c0_26, %c0_27] : memref<1x16x768xf32, #tpu.memory_space<vmem>>, vector<1x16x768xf32>
    %62 = vector.shape_cast %61 : vector<1x16x768xf32> to vector<16x768xf32>
    %63 = arith.addf %60, %62 : vector<16x768xf32>
    %c0_28 = arith.constant 0 : index
    %c0_29 = arith.constant 0 : index
    %c0_30 = arith.constant 0 : index
    %64 = vector.load %arg6[%c0_28, %c0_29, %c0_30] : memref<1x16x768xf32, #tpu.memory_space<vmem>>, vector<1x16x768xf32>
    %65 = vector.shape_cast %64 : vector<1x16x768xf32> to vector<16x768xf32>
    %66 = vector.shape_cast %63 : vector<16x768xf32> to vector<1x16x768xf32>
    tpu.vector_store %arg6[%c0_28, %c0_29, %c0_30], %66 {strides = array<i32>} : memref<1x16x768xf32, #tpu.memory_space<vmem>>, vector<1x16x768xf32>,
    return
  }
  func.func @transform_0(%arg0: i32) -> (i32, i32, i32) {
    %c0_i32 = arith.constant 0 : i32
    %c0_i32_0 = arith.constant 0 : i32
    %c0_i32_1 = arith.constant 0 : i32
    return %arg0, %c0_i32, %c0_i32_0 : i32, i32, i32
  }
  func.func @transform_1(%arg0: i32) -> (i32, i32, i32) {
    %c0_i32 = arith.constant 0 : i32
    %c0_i32_0 = arith.constant 0 : i32
    %c0_i32_1 = arith.constant 0 : i32
    %c0_i32_2 = arith.constant 0 : i32
    return %c0_i32, %c0_i32_0, %c0_i32_1 : i32, i32, i32
  }
  func.func @transform_2(%arg0: i32) -> (i32, i32) {
    %c0_i32 = arith.constant 0 : i32
    %c0_i32_0 = arith.constant 0 : i32
    %c0_i32_1 = arith.constant 0 : i32
    return %c0_i32, %c0_i32_0 : i32, i32
  }
  func.func @transform_3(%arg0: i32) -> (i32, i32) {
    %c0_i32 = arith.constant 0 : i32
    %c0_i32_0 = arith.constant 0 : i32
    %c0_i32_1 = arith.constant 0 : i32
    return %c0_i32, %c0_i32_0 : i32, i32
  }
  func.func @transform_4(%arg0: i32) -> (i32, i32, i32) {
    %c0_i32 = arith.constant 0 : i32
    %c0_i32_0 = arith.constant 0 : i32
    %c0_i32_1 = arith.constant 0 : i32
    return %arg0, %c0_i32, %c0_i32_0 : i32, i32, i32
  }
  func.func @transform_5(%arg0: i32) -> (i32, i32, i32) {
    %c0_i32 = arith.constant 0 : i32
    %c0_i32_0 = arith.constant 0 : i32
    %c0_i32_1 = arith.constant 0 : i32
    return %arg0, %c0_i32, %c0_i32_0 : i32, i32, i32
  }
}

</mosaic_0001>

<bundles_post_ra>
// kernel: tile.120
= control target key start
LH: loop header
LB: loop body
LE: loop exit
PB: predicated region body
PF: predicated region fallthrough
CT: control target
= control target key end

     0   :  { %s40_s0 = inlined_call_operand.vmem [shape: f32[12], index: 0, kind: input, shape index: {}]   ;;  %s41_s1 = inlined_call_operand.vmem [shape: f32[32,12], index: 1, kind: output, shape index: {}]  }
   0x1   :  { %v4_v0 = vld [vmem:[%s40_s0] ss:$0 sm:$0xff] }
   0x2   :  { %5 = vst [vmem:[%s41_s1] sm:$0xff] %v4_v0  ;;  %12 = vst [vmem:[%s41_s1 + $0x8] sm:$0xff] %v4_v0 }
   0x3   :  { %13 = vst [vmem:[%s41_s1 + $0x10] sm:$0xff] %v4_v0  ;;  %14 = vst [vmem:[%s41_s1 + $0x18] sm:$0xff] %v4_v0 }

// kernel: tile.121
= control target key start
LH: loop header
LB: loop body
LE: loop exit
PB: predicated region body
PF: predicated region fallthrough
CT: control target
= control target key end

     0   :  { %vm9_vm0 = vcmask 31744   ;;  %vm13_vm1 = vcmask 64512   ;;  %s310_s14 = smov 124   ;;  %s311_s15 = smov 116   ;;  %vm3_vm2 = vcmask 97280   ;;  %vm16_vm3 = vcmask 1048544   ;;  %s466_s0 = inlined_call_operand.vmem [shape: f32[32,12], index: 0, kind: input, shape index: {}]   ;;  %s467_s1 = inlined_call_operand.vmem [shape: f32[1,384], index: 1, kind: output, shape index: {}]  }
   0x1   :  { %v244_v0 = vld [vmem:[%s466_s0 + $0x15] sm:$0x1]   ;;  %v248_v3 = vld [vmem:[%s466_s0 + $0x1f] sm:$0x1]   ;;  %v246_v4 = vld [vmem:[%s466_s0 + $0xa] sm:$0x1]  }
   0x2   :  { %v245_v1 = vld [vmem:[%s466_s0 + $0x15] sm:$0x1]   ;;  %34 = vrot.lane.b32.xlu1 %v248_v3, %s311_s15  ;;  %v247_v5 = vld [vmem:[%s466_s0 + $0xa] sm:$0x1]   ;;  %v249_v7 = vld [vmem:[%s466_s0 + $0x14] sm:$0x1]  }
   0x3   :  { %v10_v2 = vsel %vm9_vm0, %v245_v1, %v244_v0  ;;  %v24_v6 = vsel %vm13_vm1, %v247_v5, %v246_v4  ;;  %s312_s20 = smov 120   ;;  %s313_s21 = smov 112   ;;  %v250_v8 = vld [vmem:[%s466_s0 + $0x9] sm:$0x1]   ;;  %v251_v9 = vld [vmem:[%s466_s0 + $0x1e] sm:$0x1]  }
   0x4   :  { %11 = vrot.lane.b32.xlu0 %v10_v2, %s310_s14  ;;  %s314_s26 = smov 108   ;;  %s315_s27 = smov 104   ;;  %v252_v10 = vld [vmem:[%s466_s0 + $0x13] sm:$0x1]   ;;  %v253_v11 = vld [vmem:[%s466_s0 + $0x8] sm:$0x1]  }
   0x5   :  { %s316_s3 = smov 100   ;;  %s317_s4 = smov 96   ;;  %v254_v12 = vld [vmem:[%s466_s0 + $0x1d] sm:$0x1]   ;;  %v255_v13 = vld [vmem:[%s466_s0 + $0x12] sm:$0x1]  }
   0x6   :  { %41 = vrot.lane.b32.xlu1 %v249_v7, %s313_s21  ;;  %v2_v14 = vld [vmem:[%s466_s0] sm:$0x1]   ;;  %s318_s11 = smov 92   ;;  %s319_s12 = smov 88   ;;  %v256_v15 = vld [vmem:[%s466_s0 + $0x7] sm:$0x1]  }
   0x7   :  { %4 = vst.msk [vmem:[#allocation0] sm:$0x1] %vm3_vm2, %v2_v14   ;;  %v257_v16 = vld [vmem:[%s466_s0 + $0x1c] sm:$0x1]   ;;  %s320_s17 = smov 84   ;;  %s321_s18 = smov 80  }
   0x8   :  { %25 = vrot.lane.b32.xlu0 %v24_v6, %s312_s20  ;;  %v258_v17 = vld [vmem:[%s466_s0 + $0x11] sm:$0x1]   ;;  %v259_v18 = vld [vmem:[%s466_s0 + $0x6] sm:$0x1]   ;;  %s322_s23 = smov 76   ;;  %s323_s24 = smov 72  }
   0x9   :  { %v260_v19 = vld [vmem:[%s466_s0 + $0x1b] sm:$0x1]   ;;  %v261_v20 = vld [vmem:[%s466_s0 + $0x10] sm:$0x1]   ;;  %s324_s29 = smov 68   ;;  %s325_s30 = smov 64  }
   0xa   :  { %54 = vrot.lane.b32.xlu1 %v251_v9, %s315_s27  ;;  %v262_v21 = vld [vmem:[%s466_s0 + $0x5] sm:$0x1]   ;;  %v263_v22 = vld [vmem:[%s466_s0 + $0x1a] sm:$0x1]   ;;  %s326_s6 = smov 60   ;;  %s327_s7 = smov 56  }
   0xb   :  { %v264_v23 = vld [vmem:[%s466_s0 + $0xf] sm:$0x1]   ;;  %v265_v24 = vld [vmem:[%s466_s0 + $0x4] sm:$0x1]   ;;  %s329_s13 = smov 48   ;;  %s331_s19 = smov 40  }
   0xc   :  { %48 = vrot.lane.b32.xlu0 %v250_v8, %s314_s26  ;;  %v266_v25 = vld [vmem:[%s466_s0 + $0x19] sm:$0x1]   ;;  %v267_v26 = vld [vmem:[%s466_s0 + $0xe] sm:$0x1]   ;;  %v268_v27 = vld [vmem:[%s466_s0 + $0x3] sm:$0x1]  }
   0xd   :  { %v269_v28 = vld [vmem:[%s466_s0 + $0x18] sm:$0x1]   ;;  %s333_s25 = smov 32   ;;  %v270_v29 = vld [vmem:[%s466_s0 + $0xd] sm:$0x1]   ;;  %s335_s2 = smov 24  }
   0xe   :  { %68 = vrot.lane.b32.xlu1 %v253_v11, %s317_s4  ;;  %v271_v30 = vld [vmem:[%s466_s0 + $0x2] sm:$0x1]   ;;  %v272_v31 = vld [vmem:[%s466_s0 + $0x17] sm:$0x1]   ;;  %v273_v32 = vld [vmem:[%s466_s0 + $0xc] sm:$0x1]  }
   0xf   :  { %s337_s8 = smov 16   ;;  %v274_v33 = vld [vmem:[%s466_s0 + $0x1] sm:$0x1]   ;;  %v275_v34 = vld [vmem:[%s466_s0 + $0x16] sm:$0x1]   ;;  %s339_s14 = smov 8  }
  0x10   :  { %61 = vrot.lane.b32.xlu0 %v252_v10, %s316_s3  ;;  %v276_v35 = vld [vmem:[%s466_s0 + $0xb] sm:$0x1]   ;;  %s340_s0 = smov 4   ;;  %vm36_vm4 = vcmask 1048480   ;;  %vm30_vm5 = vcmask 1048512   ;;  %vm43_vm6 = vcmask 1015680  }
  0x11   :  { %vm50_vm7 = vcmask 982880   ;;  %vm56_vm8 = vcmask 950080   ;;  %vm63_vm9 = vcmask 917280   ;;  %vm70_vm10 = vcmask 884480  }
  0x12   :  { %81 = vrot.lane.b32.xlu1 %v255_v13, %s319_s12  ;;  %s328_s12 = smov 52   ;;  %vm76_vm11 = vcmask 851680   ;;  %vm83_vm12 = vcmask 818880   ;;  %vm90_vm13 = vcmask 786080   ;;  %vm96_vm14 = vcmask 753280  }
  0x13   :  { %vm103_vm15 = vcmask 720480   ;;  %vm123_vm2 = vcmask 622080  }
  0x14   :  { %74 = vrot.lane.b32.xlu0 %v254_v12, %s318_s11 }
  0x16   :  { %94 = vrot.lane.b32.xlu1 %v257_v16, %s321_s18  ;;  %s330_s18 = smov 44  }
  0x18   :  { %88 = vrot.lane.b32.xlu0 %v256_v15, %s320_s17 }
  0x1a   :  { %108 = vrot.lane.b32.xlu1 %v259_v18, %s323_s24  ;;  %s332_s24 = smov 36  }
  0x1c   :  { %101 = vrot.lane.b32.xlu0 %v258_v17, %s322_s23 }
  0x1e   :  { %121 = vrot.lane.b32.xlu1 %v261_v20, %s325_s30  ;;  %s334_s30 = smov 28  }
  0x20   :  { %114 = vrot.lane.b32.xlu0 %v260_v19, %s324_s29 }
  0x22   :  { %134 = vrot.lane.b32.xlu1 %v263_v22, %s327_s7  ;;  %s336_s7 = smov 20  }
  0x24   :  { %128 = vrot.lane.b32.xlu0 %v262_v21, %s326_s6 }
  0x26   :  { %148 = vrot.lane.b32.xlu1 %v265_v24, %s329_s13  ;;  %s338_s13 = smov 12  }
  0x28   :  { %141 = vrot.lane.b32.xlu0 %v264_v23, %s328_s12 }
  0x2a   :  { %161 = vrot.lane.b32.xlu1 %v267_v26, %s331_s19 }
  0x2c   :  { %154 = vrot.lane.b32.xlu0 %v266_v25, %s330_s18 }
  0x2e   :  { %174 = vrot.lane.b32.xlu1 %v269_v28, %s333_s25 }
  0x30   :  { %168 = vrot.lane.b32.xlu0 %v268_v27, %s332_s24 }
  0x32   :  { %188 = vrot.lane.b32.xlu1 %v271_v30, %s335_s2 }
  0x34   :  { %181 = vrot.lane.b32.xlu0 %v270_v29, %s334_s30 }
  0x36   :  { %201 = vrot.lane.b32.xlu1 %v273_v32, %s337_s8 }
  0x38   :  { %194 = vrot.lane.b32.xlu0 %v272_v31, %s336_s7 }
  0x3a   :  { %214 = vrot.lane.b32.xlu1 %v275_v34, %s339_s14 }
  0x3c   :  { %208 = vrot.lane.b32.xlu0 %v274_v33, %s338_s13 }
  0x40   :  { %221 = vrot.lane.b32.xlu0 %v276_v35, %s340_s0 }
  0x74   :  { %v35_v37 = vpop.permute.xlu1 %34  }
  0x76   :  { %v12_v36 = vpop.permute.xlu0 %11  }
  0x77   :  { %15 = vst.msk [vmem:[#allocation0 + $0x10] sm:$0x1] %vm13_vm1, %v12_v36   ;;  %vm116_vm1 = vcmask 654880  }
  0x78   :  { %18 = vst.msk [vmem:[#allocation0 + $0x8] sm:$0x1] %vm16_vm3, %v12_v36   ;;  %v42_v39 = vpop.permute.xlu1 %41   ;;  %vm130_vm3 = vcmask 589280  }
  0x79   :  { %38 = vst.msk [vmem:[#allocation0 + $0x10] sm:$0x1] %vm36_vm4, %v35_v37   ;;  %vm136_vm4 = vcmask 556480  }
  0x7a   :  { %v26_v38 = vpop.permute.xlu0 %25  }
  0x7b   :  { %29 = vst.msk [vmem:[#allocation0 + $0x8] sm:$0x1] %vm9_vm0, %v26_v38   ;;  %vm110_vm0 = vcmask 687680  }
  0x7c   :  { %31 = vst.msk [vmem:[#allocation0] sm:$0x1] %vm30_vm5, %v26_v38   ;;  %v55_v41 = vpop.permute.xlu1 %54   ;;  %vm143_vm5 = vcmask 523680  }
  0x7d   :  { %45 = vst.msk [vmem:[#allocation0 + $0x8] sm:$0x1] %vm43_vm6, %v42_v39   ;;  %vm150_vm6 = vcmask 490880  }
  0x7e   :  { %v49_v40 = vpop.permute.xlu0 %48   ;;  %58 = vst.msk [vmem:[#allocation0 + $0x10] sm:$0x1] %vm56_vm8, %v55_v41   ;;  %vm163_vm8 = vcmask 425280  }
  0x7f   :  { %51 = vst.msk [vmem:[#allocation0] sm:$0x1] %vm50_vm7, %v49_v40   ;;  %vm156_vm7 = vcmask 458080  }
  0x80   :  { %v69_v43 = vpop.permute.xlu1 %68  }
  0x81   :  { %71 = vst.msk [vmem:[#allocation0] sm:$0x1] %vm70_vm10, %v69_v43   ;;  %vm176_vm10 = vcmask 359680  }
  0x82   :  { %v62_v42 = vpop.permute.xlu0 %61  }
  0x83   :  { %65 = vst.msk [vmem:[#allocation0 + $0x8] sm:$0x1] %vm63_vm9, %v62_v42   ;;  %vm170_vm9 = vcmask 392480  }
  0x84   :  { %v82_v45 = vpop.permute.xlu1 %81  }
  0x85   :  { %85 = vst.msk [vmem:[#allocation0 + $0x8] sm:$0x1] %vm83_vm12, %v82_v45   ;;  %vm190_vm12 = vcmask 294080  }
  0x86   :  { %v75_v44 = vpop.permute.xlu0 %74  }
  0x87   :  { %78 = vst.msk [vmem:[#allocation0 + $0x10] sm:$0x1] %vm76_vm11, %v75_v44   ;;  %vm183_vm11 = vcmask 326880  }
  0x88   :  { %v95_v47 = vpop.permute.xlu1 %94  }
  0x89   :  { %98 = vst.msk [vmem:[#allocation0 + $0x10] sm:$0x1] %vm96_vm14, %v95_v47   ;;  %vm203_vm14 = vcmask 228480  }
  0x8a   :  { %v89_v46 = vpop.permute.xlu0 %88  }
  0x8b   :  { %91 = vst.msk [vmem:[#allocation0] sm:$0x1] %vm90_vm13, %v89_v46   ;;  %vm196_vm13 = vcmask 261280  }
  0x8c   :  { %v109_v49 = vpop.permute.xlu1 %108  }
  0x8d   :  { %111 = vst.msk [vmem:[#allocation0] sm:$0x1] %vm110_vm0, %v109_v49   ;;  %vm216_vm0 = vcmask 162880  }
  0x8e   :  { %v102_v48 = vpop.permute.xlu0 %101  }
  0x8f   :  { %105 = vst.msk [vmem:[#allocation0 + $0x8] sm:$0x1] %vm103_vm15, %v102_v48   ;;  %vm210_vm15 = vcmask 195680  }
  0x90   :  { %v122_v51 = vpop.permute.xlu1 %121  }
  0x91   :  { %125 = vst.msk [vmem:[#allocation0 + $0x8] sm:$0x1] %vm123_vm2, %v122_v51  }
  0x92   :  { %v115_v50 = vpop.permute.xlu0 %114  }
  0x93   :  { %118 = vst.msk [vmem:[#allocation0 + $0x10] sm:$0x1] %vm116_vm1, %v115_v50   ;;  %vm223_vm1 = vcmask 130080  }
  0x94   :  { %v135_v53 = vpop.permute.xlu1 %134  }
  0x95   :  { %138 = vst.msk [vmem:[#allocation0 + $0x10] sm:$0x1] %vm136_vm4, %v135_v53  }
  0x96   :  { %v129_v52 = vpop.permute.xlu0 %128  }
  0x97   :  { %131 = vst.msk [vmem:[#allocation0] sm:$0x1] %vm130_vm3, %v129_v52  }
  0x98   :  { %v149_v55 = vpop.permute.xlu1 %148  }
  0x99   :  { %151 = vst.msk [vmem:[#allocation0] sm:$0x1] %vm150_vm6, %v149_v55  }
  0x9a   :  { %v142_v54 = vpop.permute.xlu0 %141  }
  0x9b   :  { %145 = vst.msk [vmem:[#allocation0 + $0x8] sm:$0x1] %vm143_vm5, %v142_v54  }
  0x9c   :  { %v162_v57 = vpop.permute.xlu1 %161  }
  0x9d   :  { %165 = vst.msk [vmem:[#allocation0 + $0x8] sm:$0x1] %vm163_vm8, %v162_v57  }
  0x9e   :  { %v155_v56 = vpop.permute.xlu0 %154  }
  0x9f   :  { %158 = vst.msk [vmem:[#allocation0 + $0x10] sm:$0x1] %vm156_vm7, %v155_v56  }
  0xa0   :  { %v175_v59 = vpop.permute.xlu1 %174  }
  0xa1   :  { %178 = vst.msk [vmem:[#allocation0 + $0x10] sm:$0x1] %vm176_vm10, %v175_v59  }
  0xa2   :  { %v169_v58 = vpop.permute.xlu0 %168  }
  0xa3   :  { %171 = vst.msk [vmem:[#allocation0] sm:$0x1] %vm170_vm9, %v169_v58  }
  0xa4   :  { %v189_v61 = vpop.permute.xlu1 %188  }
  0xa5   :  { %191 = vst.msk [vmem:[#allocation0] sm:$0x1] %vm190_vm12, %v189_v61  }
  0xa6   :  { %v182_v60 = vpop.permute.xlu0 %181  }
  0xa7   :  { %185 = vst.msk [vmem:[#allocation0 + $0x8] sm:$0x1] %vm183_vm11, %v182_v60  }
  0xa8   :  { %v202_v63 = vpop.permute.xlu1 %201  }
  0xa9   :  { %205 = vst.msk [vmem:[#allocation0 + $0x8] sm:$0x1] %vm203_vm14, %v202_v63  }
  0xaa   :  { %v195_v62 = vpop.permute.xlu0 %194  }
  0xab   :  { %198 = vst.msk [vmem:[#allocation0 + $0x10] sm:$0x1] %vm196_vm13, %v195_v62  }
  0xac   :  { %v215_v1 = vpop.permute.xlu1 %214  }
  0xad   :  { %218 = vst.msk [vmem:[#allocation0 + $0x10] sm:$0x1] %vm216_vm0, %v215_v1  }
  0xae   :  { %v209_v0 = vpop.permute.xlu0 %208  }
  0xaf   :  { %211 = vst.msk [vmem:[#allocation0] sm:$0x1] %vm210_vm15, %v209_v0  }
  0xb2   :  { %v222_v2 = vpop.permute.xlu0 %221  }
  0xb3   :  { %225 = vst.msk [vmem:[#allocation0 + $0x8] sm:$0x1] %vm223_vm1, %v222_v2  }
  0xb4   :  { %v238_v4 = vld [vmem:[#allocation0 + $0x10] sm:$0x1] }
  0xb5   :  { %278 = vst [vmem:[%s467_s1 + $0x2] sm:$0x1] %v238_v4 }
  0xb6   :  { %v229_v3 = vld [vmem:[#allocation0] sm:$0x1] }
  0xb7   :  { %231 = vst [vmem:[%s467_s1] sm:$0x1] %v229_v3 }
  0xba   :  { %v233_v5 = vld [vmem:[#allocation0 + $0x8] sm:$0x1] }
  0xbb   :  { %277 = vst [vmem:[%s467_s1 + $0x1] sm:$0x1] %v233_v5 }

// kernel: enc_forward.13
= control target key start
LH: loop header
LB: loop body
LE: loop exit
PB: predicated region body
PF: predicated region fallthrough
CT: control target
= control target key end

     0   :  { %s1797_s15 = smov 0   ;;  %s2826_s0 = inlined_call_operand.vmem [shape: f32[2,34,272], index: 0, kind: input, shape index: {}]   ;;  %s2827_s1 = inlined_call_operand.vmem [shape: f32[9,1,256], index: 1, kind: input, shape index: {}]   ;;  %s2828_s2 = inlined_call_operand.vmem [shape: bf16[256,384], index: 2, kind: input, shape index: {}]   ;;  %s2829_s3 = inlined_call_operand.vmem [shape: f32[1,384], index: 3, kind: input, shape index: {}]   ;;  %s2830_s4 = inlined_call_operand.vmem [shape: f32[2,32,384], index: 4, kind: output, shape index: {}]  }
   0x1 LB: > { %s1589_s16 = sadd.s32 4294967295, %s1766_s15   ;;  %p1593_p0 = scmp.ge.s32.totalorder %s1766_s15, 1  ;;  %s1766_s15 = sphi %s1797_s15, %s14_s15  }
   0x2   : > { %p162_p1 = scmp.lt.s32.totalorder %s1766_s15, 3 }
   0x4   : > { %p163_p2 = pnand %p1593_p0, %p162_p1 }
   0x6   : > { %166 = sbr.rel (%p163_p2) target bundleno = 624 (0x270), region = 36 }
   0xd   : > { %v231_v0 = vlaneseq  ;;  %v1596_v2 = vld [vmem:[%s2827_s1 + $0x2] sm:$0x3]  ;;  %v1597_v3 = vld [vmem:[%s2827_s1 + $0x4] sm:$0x3]  ;;  %s1768_s21 = smov 8   ;;  %s1769_s22 = smov 16  }
   0xe   : > { %v1599_v10 = vld [vmem:[%s2827_s1 + $0x8] sm:$0x3]  ;;  %v1600_v13 = vld [vmem:[%s2827_s1 + $0xa] sm:$0x3]  ;;  %v1602_v14 = vld [vmem:[%s2827_s1 + $0xe] sm:$0x3] }
   0xf   : > { %v1805_v1 = vshrl.u32 %v231_v0, 7  ;;  %v1603_v17 = vld [vmem:[%s2827_s1 + $0x10] sm:$0x3]  ;;  %p188_p3 = scmp.lt.s32.totalorder %s1589_s16, 1  ;;  %s1770_s9 = smov 120   ;;  %vm264_vm0 = vcmask 64512  }
  0x10   : > { %s1771_s10 = smov 112   ;;  %vm357_vm1 = vcmask 130048   ;;  %vm784_vm2 = vcmask 1045504   ;;  %vm468_vm3 = vcmask 1046528   ;;  %vm317_vm4 = vcmask 982016  }
  0x11   : > { %2852 = vst [vmem:[#allocation2_spill] sm:$0xff] %v1805_v1  ;;  %v1814_v4 = vsub.s32 0, %v1805_v1  ;;  %v1817_v5 = vsub.s32 1, %v1805_v1  ;;  %s2895_s16 = smov (!%p188_p3, %s1589_s16), 1  ;;  %vm410_vm5 = vcmask 916480  }
  0x12   : > { %s1682_s5 = smul.u32 120, %s2895_s16 }
  0x13   : > { %2853 = vst [vmem:[#allocation3_spill] sm:$0xff] %v1814_v4  ;;  %v255_v6 = vrot.slane %v1596_v2, %v1814_v4  ;;  %v348_v7 = vrot.slane %v1597_v3, %v1814_v4  ;;  %v259_v8 = vrot.slane %v1596_v2, %v1817_v5  ;;  %v352_v9 = vrot.slane %v1597_v3, %v1817_v5  ;;  %s1683_s29 = smul.u32 96, %s2895_s16 }
  0x14   : > { %v509_v11 = vrot.slane %v1599_v10, %v1814_v4  ;;  %v513_v12 = vrot.slane %v1599_v10, %v1817_v5  ;;  %v633_v15 = vrot.slane %v1600_v13, %v1814_v4  ;;  %v637_v16 = vrot.slane %v1600_v13, %v1817_v5  ;;  %s1853_s8 = scalar_lea.vmem %s2826_s0, %s1682_s5 }
  0x15   : > { %260 = vrot.lane.b32.xlu0 %v255_v6, %s1768_s21  ;;  %353 = vrot.lane.b32.xlu1 %v348_v7, %s1769_s22  ;;  %v825_v18 = vrot.slane %v1602_v14, %v1814_v4  ;;  %v829_v19 = vrot.slane %v1602_v14, %v1817_v5  ;;  %v949_v20 = vrot.slane %v1603_v17, %v1814_v4  ;;  %v199_v22 = vld [vmem:[%s1853_s8] sm:$0xff]  ;;  %v201_v24 = vld [vmem:[%s1853_s8 + $0x10] sm:$0xff]  ;;  %s2809_s6 = scalar_lea.vmem %s2830_s4, %s1683_s29 }
  0x16   : > { %v953_v21 = vrot.slane %v1603_v17, %v1817_v5  ;;  %v1856_v23 = vmax.f32 %v199_v22, 0.0  ;;  %v1865_v28 = vmax.f32 %v201_v24, 0.0  ;;  %v204_v29 = vld [vmem:[%s1853_s8 + $0x28] sm:$0xff]  ;;  %v205_v30 = vld [vmem:[%s1853_s8 + $0x30] sm:$0xff]  ;;  %v202_v37 = vld [vmem:[%s1853_s8 + $0x18] sm:$0xff] }
  0x17   : > { %v1878_v35 = vmax.f32 %v204_v29, 0.0  ;;  %v1880_v36 = vmax.f32 %v205_v30, 0.0  ;;  %v1891_v41 = vmax.f32 %v202_v37, 0.0  ;;  %v200_v42 = vld [vmem:[%s1853_s8 + $0x8] sm:$0xff]  ;;  %v203_v48 = vld [vmem:[%s1853_s8 + $0x20] sm:$0xff]  ;;  %v210_v6 = vld [vmem:[%s1853_s8 + $0x58] sm:$0xff] }
  0x18   : > { %v1902_v46 = vmax.f32 %v200_v42, 0.0  ;;  %v1920_v53 = vmax.f32 %v203_v48, 0.0  ;;  %v207_v58 = vld [vmem:[%s1853_s8 + $0x40] sm:$0xff]  ;;  %v1975_v13 = vmax.f32 %v210_v6, 0.0 }
  0x19   : > { %262 = vrot.lane.b32.xlu0 %v259_v8, %s1768_s21  ;;  %355 = vrot.lane.b32.xlu1 %v352_v9, %s1769_s22  ;;  %v1955_v3 = vmax.f32 %v207_v58, 0.0  ;;  %v206_v8 = vld [vmem:[%s1853_s8 + $0x38] sm:$0xff] }
  0x1a   : > { %v1981_v17 = vmax.f32 %v206_v8, 0.0 }
  0x1d   : > { %514 = vrot.lane.b32.xlu0 %v509_v11, %s1768_s21  ;;  %516 = vrot.lane.b32.xlu1 %v513_v12, %s1768_s21 }
  0x21   : > { %638 = vrot.lane.b32.xlu0 %v633_v15, %s1769_s22  ;;  %640 = vrot.lane.b32.xlu1 %v637_v16, %s1769_s22 }
  0x25   : > { %830 = vrot.lane.b32.xlu0 %v825_v18, %s1768_s21  ;;  %832 = vrot.lane.b32.xlu1 %v829_v19, %s1768_s21  ;;  %v208_v18 = vld [vmem:[%s1853_s8 + $0x48] sm:$0xff]  ;;  %v209_v19 = vld [vmem:[%s1853_s8 + $0x50] sm:$0xff] }
  0x26   : > { %v2002_v29 = vmax.f32 %v209_v19, 0.0 }
  0x29   : > { %954 = vrot.lane.b32.xlu0 %v949_v20, %s1769_s22  ;;  %956 = vrot.lane.b32.xlu1 %v953_v21, %s1769_s22 }
  0x87   : > { %v1859_v25 = vpop.permute.xlu0 %260  ;;  %v1861_v26 = vpop.permute.xlu1 %353 }
  0x88   : > { %v269_v27 = vmul.f32 %v1859_v25, %v1856_v23  ;;  %v362_v31 = vmul.f32 %v1861_v26, %v1856_v23  ;;  %v275_v40 = vmul.f32 %v1859_v25, %v1880_v36  ;;  %v272_v44 = vmul.f32 %v1859_v25, %v1891_v41 }
  0x89   : > { %v368_v45 = vmul.f32 %v1861_v26, %v1880_v36  ;;  %v365_v0 = vmul.f32 %v1861_v26, %v1891_v41 }
  0x8a   : > { %293 = vrot.lane.b32.xlu0 %v269_v27, %s1770_s9  ;;  %v2000_v27 = vmax.f32 %v208_v18, 0.0 }
  0x8b   : > { %v1872_v32 = vpop.permute.xlu0 %262  ;;  %v1874_v33 = vpop.permute.xlu1 %355 }
  0x8c   : > { %v271_v34 = vmul.f32 %v1872_v32, %v1865_v28  ;;  %v274_v39 = vmul.f32 %v1872_v32, %v1878_v35  ;;  %v1907_v47 = vsel %vm264_vm0, %v1859_v25, %v1872_v32  ;;  %v364_v50 = vmul.f32 %v1874_v33, %v1865_v28 }
  0x8d   : > { %v270_v52 = vmul.f32 %v1907_v47, %v1902_v46  ;;  %v367_v55 = vmul.f32 %v1874_v33, %v1878_v35  ;;  %v273_v56 = vmul.f32 %v1907_v47, %v1920_v53  ;;  %v1933_v57 = vsel %vm357_vm1, %v1861_v26, %v1874_v33 }
  0x8e   : > { %297 = vrot.lane.b32.xlu1 %v271_v34, %s1770_s9  ;;  %386 = vrot.lane.b32.xlu0 %v362_v31, %s1771_s10  ;;  %v363_v2 = vmul.f32 %v1933_v57, %v1902_v46  ;;  %v277_v15 = vmul.f32 %v1872_v32, %v1955_v3  ;;  %v366_v16 = vmul.f32 %v1933_v57, %v1920_v53 }
  0x8f   : > { %v1885_v38 = vpop.permute.xlu1 %516  ;;  %v1894_v43 = vpop.permute.xlu0 %514  ;;  %v280_v34 = vmul.f32 %v1872_v32, %v1975_v13  ;;  %v276_v37 = vmul.f32 %v1907_v47, %v1981_v17  ;;  %v370_v8 = vmul.f32 %v1874_v33, %v1955_v3 }
  0x92   : > { %303 = vrot.lane.b32.xlu1 %v274_v39, %s1770_s9  ;;  %305 = vrot.lane.b32.xlu0 %v275_v40, %s1770_s9  ;;  %v213_v39 = vld [vmem:[%s1853_s8 + $0x70] sm:$0x3] }
  0x93   : > { %v1910_v49 = vpop.permute.xlu1 %640  ;;  %v1916_v51 = vpop.permute.xlu0 %638 }
  0x96   : > { %299 = vrot.lane.b32.xlu1 %v272_v44, %s1770_s9  ;;  %398 = vrot.lane.b32.xlu0 %v368_v45, %s1771_s10  ;;  %v2021_v44 = vmul.f32 %v1910_v49, %v1955_v3 }
  0x97   : > { %v1924_v54 = vpop.permute.xlu1 %832  ;;  %v1936_v59 = vpop.permute.xlu0 %830 }
  0x98   : > { %v840_v60 = vmul.f32 %v1924_v54, %v1865_v28  ;;  %v1945_v61 = vsel %vm264_vm0, %v1936_v59, %v1924_v54  ;;  %v1949_v62 = vmul.f32 %v1924_v54, %v1878_v35 }
  0x99   : > { %v839_v9 = vmul.f32 %v1945_v61, %v1902_v46  ;;  %v1973_v12 = vmul.f32 %v1945_v61, %v1920_v53 }
  0x9a   : > { %390 = vrot.lane.b32.xlu1 %v364_v50, %s1771_s10  ;;  %295 = vrot.lane.b32.xlu0 %v270_v52, %s1770_s9  ;;  %v874_v63 = vrot.slane %v840_v60, 2  ;;  %v2832_v7 = vrot.slane %v1949_v62, 2  ;;  %v211_v60 = vld [vmem:[%s1853_s8 + $0x60] sm:$0x3] }
  0x9b   : > { %v1964_v10 = vpop.permute.xlu1 %956  ;;  %v871_v14 = vrot.slane %v839_v9, 2  ;;  %v1985_v20 = vpop.permute.xlu0 %954  ;;  %v2831_v21 = vrot.slane %v1973_v12, 2  ;;  %v2833_v9 = vrot.slane %v2021_v44, 1  ;;  %v2064_v18 = vmax.f32 %v211_v60, 0.0 }
  0x9c   : > { %v1969_v11 = vsel %vm784_vm2, %v874_v63, %v2832_v7  ;;  %v1991_v22 = vsel %vm357_vm1, %v1985_v20, %v1964_v10  ;;  %v964_v30 = vmul.f32 %v1964_v10, %v1865_v28  ;;  %v967_v31 = vmul.f32 %v1964_v10, %v1878_v35 }
  0x9d   : > { %2854 = vst [vmem:[#allocation4_spill] sm:$0xff] %v1991_v22  ;;  %v1998_v24 = vsel %vm784_vm2, %v871_v14, %v2831_v21  ;;  %v2015_v40 = vmul.f32 %v1964_v10, %v1955_v3  ;;  %v963_v42 = vmul.f32 %v1991_v22, %v1902_v46  ;;  %v966_v50 = vmul.f32 %v1991_v22, %v1920_v53 }
  0x9e   : > { %396 = vrot.lane.b32.xlu1 %v367_v55, %s1771_s10  ;;  %301 = vrot.lane.b32.xlu0 %v273_v56, %s1770_s9  ;;  %v998_v45 = vrot.slane %v964_v30, 2  ;;  %v999_v48 = vrot.slane %v967_v31, 2  ;;  %v278_v55 = vmul.f32 %v1859_v25, %v2000_v27  ;;  %v2030_v56 = vmax.f32 %v213_v39, 0.0  ;;  %v1696_v30 = vld [vmem:[%s2828_s2 + $0x4] ss:$12 sps:$4 sm:$0xff]  }
  0x9f   : > { %v2834_v32 = vrot.slane %v2015_v40, 2  ;;  %v995_v52 = vrot.slane %v963_v42, 2  ;;  %v2038_v63 = vmul.f32 %v1991_v22, %v1981_v17  ;;  %v996_v6 = vrot.slane %v966_v50, 2  ;;  %v1698_v31 = vld [vmem:[%s2828_s2] ss:$12 sps:$4 sm:$0xff]   ;;  %1408 = vmatprep.subr.bf16.mxu0 %v1696_v30 }
  0xa0   : > { %v2033_v58 = vsel %vm784_vm2, %v998_v45, %v999_v48  ;;  %v660_v19 = vmul.f32 %v1910_v49, %v2030_v56  ;;  %v524_v45 = vmul.f32 %v1885_v38, %v1865_v28  ;;  %v2095_v60 = vmul.f32 %v1885_v38, %v1878_v35  ;;  %1409 = vmatpush1.bf16.msra.mxu0 %v1698_v31 }
  0xa1   : > { %v2049_v25 = vsel %vm784_vm2, %v999_v48, %v2834_v32  ;;  %v2835_v14 = vrot.slane %v2038_v63, 2  ;;  %v2113_v30 = vmul.f32 %v1916_v51, %v1891_v41 }
  0xa2   : > { %392 = vrot.lane.b32.xlu1 %v365_v0, %s1771_s10  ;;  %388 = vrot.lane.b32.xlu0 %v363_v2, %s1771_s10  ;;  %v279_v0 = vmul.f32 %v1907_v47, %v2002_v29  ;;  %v2044_v2 = vmul.f32 %v1916_v51, %v1880_v36  ;;  %v657_v47 = vmul.f32 %v1910_v49, %v1975_v13  ;;  %v701_v50 = vrot.slane %v660_v19, 1  ;;  %v1701_v19 = vld [vmem:[%s2828_s2 + $0x18] ss:$12 sps:$4 sm:$0xff]  }
  0xa3   : > { %v2083_v39 = vsel %vm784_vm2, %v996_v6, %v2835_v14  ;;  %v2844_v32 = vrot.slane %v2113_v30, 1 }
  0xa4   : > { %v695_v42 = vrot.slane %v657_v47, 1  ;;  %v2836_v48 = vrot.slane %v2044_v2, 1  ;;  %v658_v47 = vmul.f32 %v1916_v51, %v2064_v18 }
  0xa6   : > { %309 = vrot.lane.b32.xlu1 %v277_v15, %s1770_s9  ;;  %394 = vrot.lane.b32.xlu0 %v366_v16, %s1771_s10  ;;  %v369_v15 = vmul.f32 %v1933_v57, %v1981_v17  ;;  %v2062_v16 = vsel %vm784_vm2, %v995_v52, %v996_v6  ;;  %v655_v52 = vmul.f32 %v1916_v51, %v2000_v27  ;;  %v697_v14 = vrot.slane %v658_v47, 1 }
  0xa7   : > { %v2102_v6 = vsel %vm468_vm3, %v2833_v9, %v695_v42  ;;  %v2116_v21 = vsel %vm468_vm3, %v695_v42, %v701_v50  ;;  %v2120_v9 = vmul.f32 %v1924_v54, %v1975_v13  ;;  %v372_v42 = vmul.f32 %v1933_v57, %v2002_v29 }
  0xa8   : > { %v691_v7 = vrot.slane %v655_v52, 1  ;;  %v1702_v52 = vld [vmem:[%s2828_s2 + $0x34] ss:$12 sps:$4 sm:$0xff]   ;;  %v558_v57 = vrot.slane %v524_v45, 1 }
  0xaa   : > { %315 = vrot.lane.b32.xlu1 %v280_v34, %s1770_s9  ;;  %307 = vrot.lane.b32.xlu0 %v276_v37, %s1770_s9  ;;  %v522_v34 = vmul.f32 %v1894_v43, %v1856_v23  ;;  %v2078_v37 = vmul.f32 %v1894_v43, %v1891_v41  ;;  %v2132_v50 = vsel %vm468_vm3, %v2836_v48, %v691_v7  ;;  %v559_v48 = vrot.slane %v2095_v60, 1 }
  0xab   : > { %v2139_v47 = vsel %vm468_vm3, %v691_v7, %v697_v14  ;;  %v838_v14 = vmul.f32 %v1936_v59, %v1856_v23  ;;  %v371_v60 = vmul.f32 %v1861_v26, %v2000_v27  ;;  %v1707_v26 = vld [vmem:[%s2828_s2 + $0x48] ss:$12 sps:$4 sm:$0xff]  }
  0xac   : > { %v552_v31 = vrot.slane %v522_v34, 1  ;;  %v2855_v1 = vrot.slane %v2078_v37, 1 }
  0xae   : > { %311 = vrot.lane.b32.xlu1 %v278_v55, %s1770_s9  ;;  %313 = vrot.lane.b32.xlu0 %v279_v0, %s1770_s9  ;;  %v1699_v55 = vld [vmem:[%s2828_s2 + $0x1c] ss:$12 sps:$4 sm:$0xff]   ;;  %v646_v0 = vmul.f32 %v1916_v51, %v1856_v23  ;;  %v554_v7 = vsel %vm468_vm3, %v552_v31, %v2855_v1  ;;  %v1705_v1 = vld [vmem:[%s2828_s2 + $0x4c] ss:$12 sps:$4 sm:$0xff]   ;;  %v2173_v31 = vmul.f32 %v1885_v38, %v1955_v3 }
  0xaf   : > { %1410 = vmatprep.subr.bf16.mxu0 %v1699_v55 }
  0xb0   : > { %1411 = vmatpush1.bf16.msra.mxu0 %v1701_v19  ;;  %v676_v34 = vrot.slane %v646_v0, 1  ;;  %v2155_v19 = vmul.f32 %v1936_v59, %v1891_v41  ;;  %v2166_v0 = vmul.f32 %v1991_v22, %v2002_v29  ;;  %v528_v22 = vmul.f32 %v1894_v43, %v1880_v36 }
  0xb1   : > { %1412 = vmatprep.subr.bf16.mxu0 %v1702_v52  ;;  %v560_v52 = vsel %vm468_vm3, %v558_v57, %v559_v48 }
  0xb2   : > { %402 = vrot.lane.b32.xlu1 %v370_v8, %s1771_s10  ;;  %400 = vrot.lane.b32.xlu0 %v369_v15, %s1771_s10  ;;  %v852_v8 = vmul.f32 %v1924_v54, %v2030_v56  ;;  %v373_v15 = vmul.f32 %v1874_v33, %v1975_v13  ;;  %v1704_v33 = vld [vmem:[%s2828_s2 + $0x30] ss:$12 sps:$4 sm:$0xff]   ;;  %2858 = vst [vmem:[#allocation6_spill] sm:$0xff] %v2166_v0 }
  0xb4   : > { %v893_v55 = vrot.slane %v852_v8, 2  ;;  %v2856_v8 = vrot.slane %v2120_v9, 2  ;;  %1413 = vmatpush1.bf16.msra.mxu0 %v1704_v33 }
  0xb5   : > { %1414 = vmatprep.subr.bf16.mxu0 %v1705_v1  ;;  %v2210_v1 = vmul.f32 %v1894_v43, %v2000_v27 }
  0xb6   : > { %408 = vrot.lane.b32.xlu1 %v373_v15, %s1771_s10  ;;  %406 = vrot.lane.b32.xlu0 %v372_v42, %s1771_s10  ;;  %v2160_v45 = vsel %vm784_vm2, %v2856_v8, %v893_v55  ;;  %v973_v15 = vmul.f32 %v1964_v10, %v1975_v13  ;;  %v976_v42 = vmul.f32 %v1964_v10, %v2030_v56  ;;  %v2841_v8 = vrot.slane %v2166_v0, 2 }
  0xb7   : > { %2857 = vst [vmem:[#allocation5_spill] sm:$0xff] %v2160_v45  ;;  %v678_v55 = vsel %vm468_vm3, %v676_v34, %v2844_v32  ;;  %v868_v45 = vrot.slane %v838_v14, 2  ;;  %v2843_v10 = vrot.slane %v2155_v19, 2  ;;  %v1708_v34 = vld [vmem:[%s2828_s2 + $0x64] ss:$12 sps:$4 sm:$0xff]   ;;  %v2866_v0 = vrot.slane %v2210_v1, 1 }
  0xb8   : > { %v1011_v33 = vrot.slane %v973_v15, 2  ;;  %v1017_v4 = vrot.slane %v976_v42, 2  ;;  %v2205_v14 = vld [vmem:[%s2827_s1 + $0x6] sm:$0x3]  ;;  %1415 = vmatpush1.bf16.msra.mxu0 %v1707_v26  ;;  %v962_v26 = vmul.f32 %v1985_v20, %v1856_v23 }
  0xb9   : > { %1416 = vmatprep.subr.bf16.mxu0 %v1708_v34  ;;  %v2253_v34 = vsel %vm264_vm0, %v1894_v43, %v1885_v38 }
  0xba   : > { %404 = vrot.lane.b32.xlu1 %v371_v60, %s1771_s10  ;;  %579 = vrot.lane.b32.xlu0 %v554_v7, %s1770_s9  ;;  %v2859_v7 = vrot.slane %v2038_v63, 2  ;;  %v2842_v60 = vrot.slane %v2173_v31, 1  ;;  %v2861_v63 = vrot.slane %v2015_v40, 2  ;;  %v2218_v42 = vsel %vm784_vm2, %v1011_v33, %v1017_v4 }
  0xbb   : > { %2863 = vst [vmem:[#allocation9_spill] sm:$0xff] %v2218_v42  ;;  %v651_v40 = vmul.f32 %v1910_v49, %v1878_v35  ;;  %v870_v4 = vsel %vm784_vm2, %v868_v45, %v2843_v10  ;;  %v992_v32 = vrot.slane %v962_v26, 2  ;;  %v523_v26 = vmul.f32 %v2253_v34, %v1902_v46 }
  0xbc   : > { %v2197_v57 = vsel %vm784_vm2, %v2859_v7, %v2841_v8  ;;  %v2215_v15 = vsel %vm784_vm2, %v2861_v63, %v1011_v33  ;;  %v1710_v7 = vld [vmem:[%s2828_s2 + $0x60] ss:$12 sps:$4 sm:$0xff]   ;;  %v648_v8 = vmul.f32 %v1910_v49, %v1865_v28  ;;  %v2236_v33 = vmul.f32 %v1985_v20, %v1891_v41 }
  0xbd   : > { %2860 = vst [vmem:[#allocation7_spill] sm:$0xff] %v2197_v57  ;;  %2862 = vst [vmem:[#allocation8_spill] sm:$0xff] %v2215_v15  ;;  %v561_v28 = vrot.slane %v528_v22, 1  ;;  %v566_v35 = vsel %vm468_vm3, %v559_v48, %v2842_v60  ;;  %1417 = vmatpush1.bf16.msra.mxu0 %v1710_v7  ;;  %v683_v48 = vrot.slane %v651_v40, 1  ;;  %v1711_v7 = vld [vmem:[%s2828_s2 + $0x7c] ss:$12 sps:$4 sm:$0xff]  }
  0xbe   : > { %583 = vrot.lane.b32.xlu1 %v560_v52, %s1770_s9  ;;  %703 = vrot.lane.b32.xlu0 %v678_v55, %s1771_s10  ;;  %v2240_v52 = vrot.slane %v2205_v14, %v1817_v5  ;;  %v682_v22 = vrot.slane %v648_v8, 1  ;;  %v1713_v60 = vld [vmem:[%s2828_s2 + $0x78] ss:$12 sps:$4 sm:$0xff]   ;;  %v2847_v55 = vrot.slane %v2236_v33, 2 }
  0xbf   : > { %1418 = vmatprep.subr.bf16.mxu0 %v1711_v7  ;;  %v568_v57 = vsel %vm468_vm3, %v561_v28, %v2866_v0  ;;  %v1714_v0 = vld [vmem:[%s2828_s2 + $0x94] ss:$12 sps:$4 sm:$0xff]   ;;  %v2306_v7 = vmul.f32 %v2253_v34, %v1981_v17 }
  0xc0   : > { %v449_v45 = vmul.f32 %v2240_v52, %v1902_v46  ;;  %v451_v63 = vmul.f32 %v2240_v52, %v1920_v53  ;;  %v453_v10 = vmul.f32 %v2240_v52, %v1981_v17  ;;  %v2271_v15 = vmul.f32 %v2240_v52, %v2002_v29 }
  0xc1   : > { %1419 = vmatpush1.bf16.msra.mxu0 %v1713_v60  ;;  %v994_v60 = vsel %vm784_vm2, %v992_v32, %v2847_v55  ;;  %v555_v32 = vrot.slane %v523_v26, 1 }
  0xc2   : > { %589 = vrot.lane.b32.xlu1 %v566_v35, %s1770_s9  ;;  %895 = vrot.lane.b32.xlu0 %v870_v4, %s1770_s9  ;;  %v472_v42 = vrot.slane %v449_v45, 1  ;;  %v473_v35 = vrot.slane %v451_v63, 1  ;;  %v2864_v4 = vrot.slane %v2078_v37, 1  ;;  %v477_v40 = vrot.slane %v453_v10, 1  ;;  %2865 = vst [vmem:[#allocation10_spill] sm:$0xff] %v2271_v15 }
  0xc3   : > { %v526_v45 = vmul.f32 %v2253_v34, %v1920_v53  ;;  %v2846_v63 = vrot.slane %v2271_v15, 1  ;;  %1420 = vmatprep.subr.bf16.mxu0 %v1714_v0  ;;  %v1717_v0 = vld [vmem:[%s2828_s2 + $0xac] ss:$12 sps:$4 sm:$0xff]  }
  0xc4   : > { %v562_v8 = vsel %vm468_vm3, %v2864_v4, %v561_v28  ;;  %v2281_v37 = vsel %vm468_vm3, %v472_v42, %v473_v35  ;;  %v2286_v10 = vsel %vm468_vm3, %v473_v35, %v477_v40  ;;  %v1716_v28 = vld [vmem:[%s2828_s2 + $0x90] ss:$12 sps:$4 sm:$0xff]   ;;  %v684_v42 = vsel %vm468_vm3, %v682_v22, %v683_v48 }
  0xc5   : > { %v2315_v22 = vsel %vm468_vm3, %v477_v40, %v2846_v63  ;;  %v556_v4 = vrot.slane %v526_v45, 1  ;;  %1421 = vmatpush1.bf16.msra.mxu0 %v1716_v28  ;;  %v1719_v40 = vld [vmem:[%s2828_s2 + $0xa8] ss:$12 sps:$4 sm:$0xff]   ;;  %v563_v28 = vrot.slane %v2306_v7, 1  ;;  %v1753_v7 = vld [vmem:[%s2828_s2 + $0x150] ss:$12 sps:$4 sm:$0xff]  }
  0xc6   : > { %585 = vrot.lane.b32.xlu1 %v562_v8, %s1770_s9  ;;  %591 = vrot.lane.b32.xlu0 %v568_v57, %s1770_s9  ;;  %v2302_v57 = vld [vmem:[%s2827_s1 + $0xc] sm:$0x3]  ;;  %2869 = vst [vmem:[#allocation13_spill] sm:$0xff] %v2315_v22  ;;  %v2320_v8 = vsel %vm357_vm1, %v1916_v51, %v1910_v49  ;;  %v2870_v49 = vrot.slane %v2021_v44, 1  ;;  %v1720_v44 = vld [vmem:[%s2828_s2 + $0xc4] ss:$12 sps:$4 sm:$0xff]  }
  0xc7   : > { %2867 = vst [vmem:[#allocation11_spill] sm:$0xff] %v2302_v57  ;;  %v2310_v35 = vrot.slane %v2302_v57, %v1817_v5  ;;  %1422 = vmatprep.subr.bf16.mxu0 %v1717_v0  ;;  %v647_v63 = vmul.f32 %v2320_v8, %v1902_v46  ;;  %v650_v55 = vmul.f32 %v2320_v8, %v1920_v53  ;;  %v1723_v0 = vld [vmem:[%s2828_s2 + $0xc0] ss:$12 sps:$4 sm:$0xff]  }
  0xc8   : > { %v690_v51 = vsel %vm468_vm3, %v683_v48, %v2870_v49  ;;  %v1722_v48 = vld [vmem:[%s2828_s2 + $0xc8] ss:$12 sps:$4 sm:$0xff]   ;;  %v2872_v49 = vrot.slane %v2113_v30, 1 }
  0xc9   : > { %2868 = vst [vmem:[#allocation12_spill] sm:$0xff] %v2310_v35  ;;  %v765_v26 = vmul.f32 %v2310_v35, %v1902_v46  ;;  %v767_v45 = vmul.f32 %v2310_v35, %v1920_v53  ;;  %1423 = vmatpush1.bf16.msra.mxu0 %v1719_v40  ;;  %v1724_v40 = vld [vmem:[%s2828_s2 + $0x8] ss:$12 sps:$4 sm:$0xff]   ;;  %1654 = vmatprep.subr.bf16.mxu1 %v1722_v48  ;;  %v679_v15 = vrot.slane %v647_v63, 1  ;;  %v680_v22 = vrot.slane %v650_v55, 1 }
  0xca   : > { %707 = vrot.lane.b32.xlu1 %v684_v42, %s1771_s10  ;;  %1019 = vrot.lane.b32.xlu0 %v994_v60, %s1771_s10  ;;  %v557_v60 = vsel %vm468_vm3, %v555_v32, %v556_v4  ;;  %v2353_v32 = vmul.f32 %v2310_v35, %v1981_v17  ;;  %v1725_v30 = vld [vmem:[%s2828_s2 + $0xdc] ss:$12 sps:$4 sm:$0xff]   ;;  %v1727_v55 = vld [vmem:[%s2828_s2 + $0xe0] ss:$12 sps:$4 sm:$0xff]  }
  0xcb   : > { %v788_v42 = vrot.slane %v765_v26, 2  ;;  %v789_v57 = vrot.slane %v767_v45, 2  ;;  %v2871_v45 = vrot.slane %v2044_v2, 1  ;;  %1424 = vmatprep.subr.bf16.mxu0 %v1720_v44  ;;  %v2379_v2 = vmul.f32 %v2320_v8, %v1981_v17  ;;  %1655 = vmatpush3.bf16.msra.mxu1 %v1724_v40  ;;  %v1729_v63 = vld [vmem:[%s2828_s2 + $0x20] ss:$12 sps:$4 sm:$0xff]  }
  0xcc   : > { %v793_v35 = vrot.slane %v2353_v32, 2  ;;  %1656 = vmatprep.subr.bf16.mxu1 %v1727_v55  ;;  %v1733_v40 = vld [vmem:[%s2828_s2 + $0xf0] ss:$12 sps:$4 sm:$0xff]   ;;  %v2435_v55 = vmul.f32 %v1945_v61, %v1981_v17 }
  0xcd   : > { %v2362_v26 = vsel %vm784_vm2, %v788_v42, %v789_v57  ;;  %v2375_v42 = vmul.f32 %v1924_v54, %v1955_v3  ;;  %1425 = vmatpush1.bf16.msra.mxu0 %v1723_v0  ;;  %v1728_v3 = vld [vmem:[%s2828_s2 + $0xd8] ss:$12 sps:$4 sm:$0xff]   ;;  %v687_v48 = vrot.slane %v2379_v2, 1 }
  0xce   : > { %713 = vrot.lane.b32.xlu1 %v690_v51, %s1771_s10  ;;  %581 = vrot.lane.b32.xlu0 %v557_v60, %s1770_s9  ;;  %v686_v51 = vsel %vm468_vm3, %v2872_v49, %v2871_v45  ;;  %v564_v60 = vsel %vm468_vm3, %v556_v4, %v563_v28  ;;  %v2392_v54 = vsel %vm784_vm2, %v789_v57, %v793_v35  ;;  %v1732_v0 = vld [vmem:[%s2828_s2 + $0xf8] ss:$12 sps:$4 sm:$0xff]   ;;  %v2873_v49 = vrot.slane %v1949_v62, 2 }
  0xcf   : > { %1426 = vmatprep.subr.bf16.mxu0 %v1725_v30  ;;  %v681_v4 = vsel %vm468_vm3, %v679_v15, %v680_v22  ;;  %v881_v44 = vrot.slane %v2375_v42, 2  ;;  %v2405_v57 = vmul.f32 %v1936_v59, %v1880_v36  ;;  %1657 = vmatpush3.bf16.msra.mxu1 %v1729_v63  ;;  %v1730_v15 = vld [vmem:[%s2828_s2 + $0xf4] ss:$12 sps:$4 sm:$0xff]   ;;  %v1734_v45 = vld [vmem:[%s2828_s2 + $0x38] ss:$12 sps:$4 sm:$0xff]  }
  0xd0   : > { %1658 = vmatprep.subr.bf16.mxu1 %v1732_v0  ;;  %v1735_v62 = vld [vmem:[%s2828_s2 + $0x10c] ss:$12 sps:$4 sm:$0xff]   ;;  %v1739_v63 = vld [vmem:[%s2828_s2 + $0x50] ss:$12 sps:$4 sm:$0xff]   ;;  %v2874_v0 = vrot.slane %v2155_v19, 2 }
  0xd1   : > { %1427 = vmatpush1.bf16.msra.mxu0 %v1728_v3  ;;  %v877_v30 = vrot.slane %v2405_v57, 2  ;;  %v212_v3 = vld [vmem:[%s1853_s8 + $0x68] sm:$0x3]  ;;  %v1740_v19 = vld [vmem:[%s2828_s2 + $0x124] ss:$12 sps:$4 sm:$0xff]  }
  0xd2   : > { %709 = vrot.lane.b32.xlu1 %v686_v51, %s1771_s10  ;;  %587 = vrot.lane.b32.xlu0 %v564_v60, %s1770_s9  ;;  %v882_v51 = vsel %vm784_vm2, %v2873_v49, %v881_v44  ;;  %v688_v60 = vsel %vm468_vm3, %v680_v22, %v687_v48  ;;  %v1738_v22 = vld [vmem:[%s2828_s2 + $0x108] ss:$12 sps:$4 sm:$0xff]   ;;  %v536_v49 = vmul.f32 %v1885_v38, %v2030_v56 }
  0xd3   : > { %1428 = vmatprep.subr.bf16.mxu0 %v1730_v15  ;;  %1659 = vmatpush3.bf16.msra.mxu1 %v1734_v45  ;;  %v2452_v15 = vmax.f32 %v212_v3, 0.0  ;;  %v879_v45 = vrot.slane %v2435_v55, 2  ;;  %v1744_v56 = vld [vmem:[%s2828_s2 + $0x68] ss:$12 sps:$4 sm:$0xff]   ;;  %v2876_v3 = vrot.slane %v1973_v12, 2  ;;  %v850_v55 = vmul.f32 %v1936_v59, %v2064_v18 }
  0xd4   : > { %v1747_v12 = vld [vmem:[%s2828_s2 + $0x140] ss:$12 sps:$4 sm:$0xff]  }
  0xd5   : > { %1429 = vmatpush1.bf16.msra.mxu0 %v1733_v40  ;;  %v878_v40 = vsel %vm784_vm2, %v2874_v0, %v877_v30  ;;  %v1748_v0 = vld [vmem:[%s2828_s2 + $0x138] ss:$12 sps:$4 sm:$0xff]   ;;  %v851_v2 = vmul.f32 %v1945_v61, %v2452_v15 }
  0xd6   : > { %899 = vrot.lane.b32.xlu1 %v1969_v11, %s1770_s9  ;;  %705 = vrot.lane.b32.xlu0 %v681_v4, %s1771_s10  ;;  %v533_v11 = vmul.f32 %v1885_v38, %v1975_v13  ;;  %v1737_v13 = vld [vmem:[%s2828_s2 + $0x110] ss:$12 sps:$4 sm:$0xff]   ;;  %v1743_v38 = vld [vmem:[%s2828_s2 + $0x120] ss:$12 sps:$4 sm:$0xff]  }
  0xd7   : > { %1430 = vmatprep.subr.bf16.mxu0 %v1735_v62  ;;  %1660 = vmatprep.subr.bf16.mxu1 %v1737_v13  ;;  %v880_v62 = vsel %vm784_vm2, %v2876_v3, %v879_v45  ;;  %v577_v13 = vrot.slane %v536_v49, 1  ;;  %v2541_v3 = vmul.f32 %v1985_v20, %v1880_v36 }
  0xd8   : > { %v571_v4 = vrot.slane %v533_v11, 1  ;;  %1661 = vmatpush3.bf16.msra.mxu1 %v1739_v63  ;;  %v1742_v11 = vld [vmem:[%s2828_s2 + $0x128] ss:$12 sps:$4 sm:$0xff]   ;;  %v535_v63 = vmul.f32 %v2253_v34, %v2452_v15 }
  0xd9   : > { %1431 = vmatpush1.bf16.msra.mxu0 %v1738_v22  ;;  %1662 = vmatprep.subr.bf16.mxu1 %v1742_v11  ;;  %v1752_v11 = vld [vmem:[%s2828_s2 + $0x158] ss:$12 sps:$4 sm:$0xff]  }
  0xda   : > { %905 = vrot.lane.b32.xlu1 %v882_v51, %s1770_s9  ;;  %711 = vrot.lane.b32.xlu0 %v688_v60, %s1771_s10  ;;  %v532_v51 = vmul.f32 %v2253_v34, %v2002_v29  ;;  %v2875_v60 = vrot.slane %v2173_v31, 1  ;;  %v1745_v31 = vld [vmem:[%s2828_s2 + $0x13c] ss:$12 sps:$4 sm:$0xff]   ;;  %v1749_v34 = vld [vmem:[%s2828_s2 + $0x80] ss:$12 sps:$4 sm:$0xff]  }
  0xdb   : > { %1432 = vmatprep.subr.bf16.mxu0 %v1740_v19  ;;  %v1750_v19 = vld [vmem:[%s2828_s2 + $0x154] ss:$12 sps:$4 sm:$0xff]  }
  0xdc   : > { %v569_v22 = vrot.slane %v532_v51, 1  ;;  %1663 = vmatpush3.bf16.msra.mxu1 %v1744_v56  ;;  %v575_v51 = vrot.slane %v535_v63, 1  ;;  %v1755_v56 = vld [vmem:[%s2828_s2 + $0x16c] ss:$12 sps:$4 sm:$0xff]   ;;  %v1001_v63 = vrot.slane %v2541_v3, 2 }
  0xdd   : > { %1433 = vmatpush1.bf16.msra.mxu0 %v1743_v38  ;;  %1664 = vmatprep.subr.bf16.mxu1 %v1747_v12  ;;  %v534_v38 = vmul.f32 %v1894_v43, %v2064_v18  ;;  %v1759_v43 = vld [vmem:[%s2828_s2 + $0xb0] ss:$12 sps:$4 sm:$0xff]   ;;  %v659_v12 = vmul.f32 %v2320_v8, %v2452_v15 }
  0xde   : > { %901 = vrot.lane.b32.xlu1 %v878_v40, %s1770_s9  ;;  %897 = vrot.lane.b32.xlu0 %v1998_v24, %s1770_s9  ;;  %v572_v24 = vsel %vm468_vm3, %v2875_v60, %v571_v4  ;;  %v578_v40 = vsel %vm468_vm3, %v571_v4, %v577_v13  ;;  %v570_v49 = vsel %vm468_vm3, %v563_v28, %v569_v22  ;;  %v1754_v28 = vld [vmem:[%s2828_s2 + $0x98] ss:$12 sps:$4 sm:$0xff]   ;;  %v1757_v60 = vld [vmem:[%s2828_s2 + $0x170] ss:$12 sps:$4 sm:$0xff]   ;;  %v2877_v13 = vrot.slane %v2210_v1, 1 }
  0xdf   : > { %1434 = vmatprep.subr.bf16.mxu0 %v1745_v31  ;;  %v576_v4 = vsel %vm468_vm3, %v569_v22, %v575_v51  ;;  %v847_v51 = vmul.f32 %v1936_v59, %v2000_v27  ;;  %v889_v59 = vrot.slane %v850_v55, 2 }
  0xe0   : > { %1665 = vmatpush3.bf16.msra.mxu1 %v1749_v34 }
  0xe1   : > { %1435 = vmatpush1.bf16.msra.mxu0 %v1748_v0  ;;  %1666 = vmatprep.subr.bf16.mxu1 %v1752_v11  ;;  %v699_v0 = vrot.slane %v659_v12, 1  ;;  %v883_v11 = vrot.slane %v847_v51, 2 }
  0xe2   : > { %595 = vrot.lane.b32.xlu1 %v572_v24, %s1770_s9  ;;  %903 = vrot.lane.b32.xlu0 %v880_v62, %s1770_s9  ;;  %v1758_v24 = vld [vmem:[%s2828_s2 + $0x168] ss:$12 sps:$4 sm:$0xff]   ;;  %v656_v62 = vmul.f32 %v2320_v8, %v2002_v29 }
  0xe3   : > { %1436 = vmatprep.subr.bf16.mxu0 %v1750_v19  ;;  %v884_v42 = vsel %vm784_vm2, %v877_v30, %v883_v11  ;;  %v890_v30 = vsel %vm784_vm2, %v883_v11, %v889_v59 }
  0xe4   : > { %1667 = vmatpush3.bf16.msra.mxu1 %v1754_v28  ;;  %v693_v31 = vrot.slane %v656_v62, 1 }
  0xe5   : > { %1437 = vmatpush1.bf16.msra.mxu0 %v1753_v7  ;;  %1668 = vmatprep.subr.bf16.mxu1 %v1757_v60  ;;  %v2882_v60 = vld [vmem:[#allocation5_spill] sm:$0xff] }
  0xe6   : > { %601 = vrot.lane.b32.xlu1 %v578_v40, %s1770_s9  ;;  %593 = vrot.lane.b32.xlu0 %v570_v49, %s1770_s9  ;;  %v694_v1 = vsel %vm468_vm3, %v687_v48, %v693_v31  ;;  %v700_v8 = vsel %vm468_vm3, %v693_v31, %v699_v0 }
  0xe7   : > { %1438 = vmatprep.subr.bf16.mxu0 %v1755_v56 }
  0xe8   : > { %1669 = vmatpush3.bf16.msra.mxu1 %v1759_v43 }
  0xe9   : > { %1439 = vmatpush1.bf16.msra.mxu0 %v1758_v24 }
  0xea   : > { %1023 = vrot.lane.b32.xlu1 %v2033_v58, %s1771_s10  ;;  %599 = vrot.lane.b32.xlu0 %v576_v4, %s1770_s9  ;;  %v573_v58 = vrot.slane %v534_v38, 1 }
  0xec   : > { %v574_v22 = vsel %vm468_vm3, %v2877_v13, %v573_v58 }
  0xee   : > { %1029 = vrot.lane.b32.xlu1 %v2049_v25, %s1771_s10  ;;  %1021 = vrot.lane.b32.xlu0 %v2062_v16, %s1771_s10  ;;  %v2878_v25 = vrot.slane %v2236_v33, 2 }
  0xf0   : > { %v1002_v16 = vsel %vm784_vm2, %v2878_v25, %v1001_v63  ;;  %v2883_v25 = vld [vmem:[#allocation7_spill] sm:$0xff] }
  0xf2   : > { %597 = vrot.lane.b32.xlu1 %v574_v22, %s1770_s9  ;;  %1027 = vrot.lane.b32.xlu0 %v2083_v39, %s1771_s10  ;;  %v848_v39 = vmul.f32 %v1945_v61, %v2002_v29  ;;  %v229_v61 = vld [vmem:[%s2827_s1] sm:$0x3] }
  0xf3   : > { %v2604_v7 = vrot.slane %v229_v61, %v1817_v5 }
  0xf4   : > { %v885_v34 = vrot.slane %v848_v39, 2  ;;  %v2884_v39 = vld [vmem:[#allocation6_spill] sm:$0xff] }
  0xf5   : > { %v242_v24 = vmul.f32 %v2604_v7, %v1902_v46 }
  0xf6   : > { %1025 = vrot.lane.b32.xlu1 %v1002_v16, %s1771_s10  ;;  %717 = vrot.lane.b32.xlu0 %v694_v1, %s1771_s10  ;;  %v886_v49 = vsel %vm784_vm2, %v879_v45, %v885_v34  ;;  %v2879_v45 = vrot.slane %v2120_v9, 2  ;;  %v2880_v9 = vld [vmem:[#allocation4_spill] sm:$0xff]  ;;  %v244_v16 = vmul.f32 %v2604_v7, %v1920_v53 }
  0xf7   : > { %v975_v38 = vmul.f32 %v2880_v9, %v2452_v15 }
  0xf8   : > { %v888_v19 = vsel %vm784_vm2, %v881_v44, %v2879_v45  ;;  %v2881_v44 = vld [vmem:[#allocation3_spill] sm:$0xff]  ;;  %v2886_v45 = vld [vmem:[#allocation8_spill] sm:$0xff] }
  0xf9   : > { %v2615_v56 = vrot.slane %v2205_v14, %v2881_v44  ;;  %v2623_v43 = vrot.slane %v229_v61, %v2881_v44  ;;  %v1015_v62 = vrot.slane %v975_v38, 2  ;;  %v971_v14 = vmul.f32 %v1985_v20, %v2000_v27 }
  0xfa   : > { %719 = vrot.lane.b32.xlu1 %v2102_v6, %s1771_s10  ;;  %723 = vrot.lane.b32.xlu0 %v700_v8, %s1771_s10  ;;  %v891_v6 = vrot.slane %v851_v2, 2 }
  0xfb   : > { %v448_v31 = vmul.f32 %v2615_v56, %v1856_v23  ;;  %v450_v46 = vmul.f32 %v2615_v56, %v1891_v41  ;;  %v241_v1 = vmul.f32 %v2623_v43, %v1856_v23  ;;  %v1007_v2 = vrot.slane %v971_v14, 2 }
  0xfc   : > { %v294_v33 = vpop.permute.xlu0 %293 }
  0xfd   : > { %v469_v51 = vrot.slane %v448_v31, 1  ;;  %v470_v61 = vrot.slane %v450_v46, 1 }
  0xfe   : > { %725 = vrot.lane.b32.xlu1 %v2116_v21, %s1771_s10  ;;  %715 = vrot.lane.b32.xlu0 %v2132_v50, %s1771_s10 }
  0xff   : > { %v471_v38 = vsel %vm468_vm3, %v469_v51, %v470_v61 }
 0x100   : > { %v298_v48 = vpop.permute.xlu1 %297  ;;  %v387_v40 = vpop.permute.xlu0 %386 }
 0x102   : > { %721 = vrot.lane.b32.xlu1 %v2139_v47, %s1771_s10  ;;  %909 = vrot.lane.b32.xlu0 %v886_v49, %s1770_s9  ;;  %v892_v47 = vsel %vm784_vm2, %v885_v34, %v891_v6  ;;  %v452_v49 = vmul.f32 %v2615_v56, %v1880_v36 }
 0x104   : > { %v304_v21 = vpop.permute.xlu1 %303  ;;  %v2591_v50 = vpop.permute.xlu0 %305 }
 0x106   : > { %911 = vrot.lane.b32.xlu1 %v888_v19, %s1770_s9  ;;  %915 = vrot.lane.b32.xlu0 %v892_v47, %s1770_s9 }
 0x108   : > { %v300_v28 = vpop.permute.xlu1 %299  ;;  %v2606_v4 = vpop.permute.xlu0 %398 }
 0x10a   : > { %917 = vrot.lane.b32.xlu1 %v2882_v60, %s1770_s9  ;;  %907 = vrot.lane.b32.xlu0 %v884_v42, %s1770_s9  ;;  %v475_v42 = vrot.slane %v452_v49, 1 }
 0x10c   : > { %v391_v58 = vpop.permute.xlu1 %390  ;;  %v296_v57 = vpop.permute.xlu0 %295 }
 0x10d   : > { %v318_v13 = vsel %vm317_vm4, %v294_v33, %v296_v57  ;;  %v319_v22 = vsel %vm317_vm4, %v296_v57, %v298_v48  ;;  %v2885_v33 = vrot.slane %v2884_v39, 2  ;;  %v974_v48 = vmul.f32 %v1985_v20, %v2064_v18  ;;  %v2887_v57 = vld [vmem:[#allocation9_spill] sm:$0xff] }
 0x10e   : > { %v335_v12 = vadd.f32 %v319_v22, %v242_v24  ;;  %913 = vrot.lane.b32.xlu1 %v890_v30, %s1770_s9  ;;  %1033 = vrot.lane.b32.xlu0 %v2883_v25, %s1771_s10  ;;  %v334_v19 = vadd.f32 %v318_v13, %v241_v1  ;;  %v243_v20 = vmul.f32 %v2623_v43, %v1891_v41 }
 0x10f   : > { %v1016_v34 = vsel %vm784_vm2, %v2885_v33, %v1015_v62  ;;  %v476_v22 = vsel %vm468_vm3, %v470_v61, %v475_v42  ;;  %v454_v39 = vmul.f32 %v2615_v56, %v2000_v27 }
 0x110   : > { %v397_v0 = vpop.permute.xlu1 %396  ;;  %v302_v8 = vpop.permute.xlu0 %301 }
 0x111   : > { %v320_v6 = vsel %vm317_vm4, %v300_v28, %v302_v8  ;;  %v321_v53 = vsel %vm317_vm4, %v302_v8, %v304_v21  ;;  %v1008_v28 = vsel %vm784_vm2, %v1001_v63, %v1007_v2  ;;  %v1013_v21 = vrot.slane %v974_v48, 2 }
 0x112   : > { %v337_v55 = vadd.f32 %v321_v53, %v244_v16  ;;  %1035 = vrot.lane.b32.xlu1 %v2886_v45, %s1771_s10  ;;  %1039 = vrot.lane.b32.xlu0 %v1016_v34, %s1771_s10  ;;  %v336_v30 = vadd.f32 %v320_v6, %v243_v20  ;;  %v245_v34 = vmul.f32 %v2623_v43, %v1880_v36  ;;  %v479_v6 = vrot.slane %v454_v39, 1 }
 0x113   : > { %v1014_v13 = vsel %vm784_vm2, %v1007_v2, %v1013_v21  ;;  %v248_v53 = vmul.f32 %v2604_v7, %v2002_v29 }
 0x114   : > { %v393_v47 = vpop.permute.xlu1 %392  ;;  %v389_v11 = vpop.permute.xlu0 %388  ;;  %v480_v20 = vsel %vm468_vm3, %v475_v42, %v479_v6 }
 0x115   : > { %v411_v59 = vsel %vm410_vm5, %v387_v40, %v389_v11  ;;  %v412_v9 = vsel %vm410_vm5, %v389_v11, %v391_v58 }
 0x116   : > { %v427_v60 = vadd.f32 %v411_v59, %v334_v19  ;;  %v428_v24 = vadd.f32 %v412_v9, %v335_v12  ;;  %1041 = vrot.lane.b32.xlu1 %v2887_v57, %s1771_s10  ;;  %1031 = vrot.lane.b32.xlu0 %v1008_v28, %s1771_s10  ;;  %v246_v12 = vmul.f32 %v2604_v7, %v1981_v17 }
 0x118   : > { %v310_v62 = vpop.permute.xlu1 %309  ;;  %v395_v3 = vpop.permute.xlu0 %394  ;;  %v2665_v63 = vadd.f32 %v2281_v37, %v428_v24  ;;  %v2667_v14 = vadd.f32 %v471_v38, %v427_v60  ;;  %v2888_v38 = vld [vmem:[#allocation13_spill] sm:$0xff] }
 0x119   : > { %v413_v40 = vsel %vm410_vm5, %v393_v47, %v395_v3  ;;  %v414_v58 = vsel %vm410_vm5, %v395_v3, %v397_v0 }
 0x11a   : > { %v429_v31 = vadd.f32 %v413_v40, %v336_v30  ;;  %v430_v46 = vadd.f32 %v414_v58, %v337_v55  ;;  %1037 = vrot.lane.b32.xlu1 %v1014_v13, %s1771_s10  ;;  %v456_v55 = vmul.f32 %v2615_v56, %v2064_v18 }
 0x11c   : > { %v316_v25 = vpop.permute.xlu1 %315  ;;  %v308_v37 = vpop.permute.xlu0 %307  ;;  %v2676_v16 = vadd.f32 %v476_v22, %v429_v31  ;;  %v498_v1 = vadd.f32 %v2286_v10, %v430_v46  ;;  %v457_v10 = vmul.f32 %v2240_v52, %v2452_v15  ;;  %v247_v52 = vmul.f32 %v2623_v43, %v2000_v27 }
 0x11d   : > { %v322_v0 = vsel %vm317_vm4, %v2591_v50, %v308_v37  ;;  %v323_v8 = vsel %vm317_vm4, %v308_v37, %v310_v62  ;;  %v483_v42 = vrot.slane %v456_v55, 1 }
 0x11e   : > { %v339_v33 = vadd.f32 %v323_v8, %v246_v12  ;;  %v338_v50 = vadd.f32 %v322_v0, %v245_v34  ;;  %v485_v47 = vrot.slane %v457_v10, 1 }
 0x11f   : > { %v484_v13 = vsel %vm468_vm3, %v479_v6, %v483_v42 }
 0x120   : > { %v312_v2 = vpop.permute.xlu1 %311  ;;  %v314_v17 = vpop.permute.xlu0 %313 }
 0x121   : > { %v324_v48 = vsel %vm317_vm4, %v312_v2, %v314_v17  ;;  %v325_v49 = vsel %vm317_vm4, %v314_v17, %v316_v25 }
 0x122   : > { %v341_v21 = vadd.f32 %v325_v49, %v248_v53  ;;  %v340_v62 = vadd.f32 %v324_v48, %v247_v52 }
 0x124   : > { %v403_v51 = vpop.permute.xlu1 %402  ;;  %v401_v61 = vpop.permute.xlu0 %400 }
 0x125   : > { %v415_v45 = vsel %vm410_vm5, %v2606_v4, %v401_v61  ;;  %v416_v19 = vsel %vm410_vm5, %v401_v61, %v403_v51  ;;  %v2889_v4 = vld [vmem:[#allocation10_spill] sm:$0xff] }
 0x126   : > { %v431_v11 = vadd.f32 %v415_v45, %v338_v50  ;;  %v432_v28 = vadd.f32 %v416_v19, %v339_v33  ;;  %v2890_v24 = vrot.slane %v2889_v4, 1 }
 0x128   : > { %v409_v7 = vpop.permute.xlu1 %408  ;;  %v407_v59 = vpop.permute.xlu0 %406  ;;  %v499_v9 = vadd.f32 %v480_v20, %v431_v11  ;;  %v2701_v60 = vadd.f32 %v2888_v38, %v432_v28  ;;  %v486_v57 = vsel %vm468_vm3, %v2890_v24, %v485_v47 }
 0x129   : > { %v418_v56 = vsel %vm410_vm5, %v407_v59, %v409_v7 }
 0x12a   : > { %v434_v30 = vadd.f32 %v418_v56, %v341_v21 }
 0x12c   : > { %v405_v3 = vpop.permute.xlu1 %404  ;;  %v580_v40 = vpop.permute.xlu0 %579  ;;  %v2707_v58 = vadd.f32 %v486_v57, %v434_v30 }
 0x12d   : > { %v417_v43 = vsel %vm410_vm5, %v405_v3, %v407_v59  ;;  %v2891_v59 = vld [vmem:[#allocation11_spill] sm:$0xff] }
 0x12e   : > { %v433_v22 = vadd.f32 %v417_v43, %v340_v62  ;;  %v2724_v38 = vrot.slane %v2891_v59, %v2881_v44 }
 0x130   : > { %v584_v31 = vpop.permute.xlu1 %583  ;;  %v704_v46 = vpop.permute.xlu0 %703  ;;  %v2711_v12 = vadd.f32 %v484_v13, %v433_v22  ;;  %v766_v57 = vmul.f32 %v2724_v38, %v1891_v41 }
 0x134   : > { %v590_v25 = vpop.permute.xlu1 %589  ;;  %v896_v37 = vpop.permute.xlu0 %895 }
 0x138   : > { %v586_v0 = vpop.permute.xlu1 %585  ;;  %v592_v8 = vpop.permute.xlu0 %591 }
 0x13c   : > { %v708_v39 = vpop.permute.xlu1 %707  ;;  %v2713_v33 = vpop.permute.xlu0 %1019 }
 0x140   : > { %v714_v34 = vpop.permute.xlu1 %713  ;;  %v582_v2 = vpop.permute.xlu0 %581 }
 0x141   : > { %v604_v49 = vsel %vm317_vm4, %v582_v2, %v584_v31  ;;  %v603_v62 = vsel %vm317_vm4, %v580_v40, %v582_v2 }
 0x142   : > { %v620_v6 = vadd.f32 %v604_v49, %v2665_v63  ;;  %v619_v41 = vadd.f32 %v603_v62, %v2667_v14 }
 0x144   : > { %v710_v17 = vpop.permute.xlu1 %709  ;;  %v588_v48 = vpop.permute.xlu0 %587 }
 0x145   : > { %v606_v53 = vsel %vm317_vm4, %v588_v48, %v590_v25  ;;  %v605_v3 = vsel %vm317_vm4, %v586_v0, %v588_v48 }
 0x146   : > { %v622_v55 = vadd.f32 %v606_v53, %v498_v1 }
 0x148   : > { %v900_v10 = vpop.permute.xlu1 %899  ;;  %v706_v50 = vpop.permute.xlu0 %705 }
 0x149   : > { %v728_v51 = vsel %vm410_vm5, %v706_v50, %v708_v39  ;;  %v727_v13 = vsel %vm410_vm5, %v704_v46, %v706_v50  ;;  %v2892_v50 = vld [vmem:[#allocation12_spill] sm:$0xff] }
 0x14a   : > { %v744_v61 = vadd.f32 %v728_v51, %v620_v6  ;;  %v743_v39 = vadd.f32 %v727_v13, %v619_v41  ;;  %v771_v53 = vmul.f32 %v2892_v50, %v2002_v29 }
 0x14c   : > { %v906_v45 = vpop.permute.xlu1 %905  ;;  %v712_v19 = vpop.permute.xlu0 %711  ;;  %v812_v20 = vadd.f32 %v2362_v26, %v744_v61  ;;  %v764_v26 = vmul.f32 %v2724_v38, %v1856_v23 }
 0x14d   : > { %v730_v47 = vsel %vm410_vm5, %v712_v19, %v714_v34  ;;  %v729_v23 = vsel %vm410_vm5, %v710_v17, %v712_v19 }
 0x14e   : > { %v746_v11 = vadd.f32 %v730_v47, %v622_v55  ;;  %v785_v43 = vrot.slane %v764_v26, 2 }
 0x150   : > { %v902_v28 = vpop.permute.xlu1 %901  ;;  %v898_v52 = vpop.permute.xlu0 %897  ;;  %v814_v21 = vadd.f32 %v2392_v54, %v746_v11  ;;  %v2737_v54 = vmul.f32 %v2724_v38, %v1880_v36  ;;  %v621_v36 = vadd.f32 %v605_v3, %v2676_v16 }
 0x151   : > { %v919_v49 = vsel %vm317_vm4, %v896_v37, %v898_v52 }
 0x152   : > { %v791_v22 = vrot.slane %v2737_v54, 2  ;;  %v745_v0 = vadd.f32 %v729_v23, %v621_v36 }
 0x154   : > { %v596_v63 = vpop.permute.xlu1 %595  ;;  %v904_v7 = vpop.permute.xlu0 %903 }
 0x155   : > { %v922_v40 = vsel %vm317_vm4, %v904_v7, %v906_v45  ;;  %v921_v6 = vsel %vm317_vm4, %v902_v28, %v904_v7 }
 0x156   : > { %v938_v14 = vadd.f32 %v922_v40, %v814_v21  ;;  %v772_v40 = vmul.f32 %v2724_v38, %v2064_v18 }
 0x158   : > { %v2726_v56 = vpop.permute.xlu1 %601  ;;  %v594_v1 = vpop.permute.xlu0 %593 }
 0x159   : > { %v607_v4 = vsel %vm317_vm4, %v592_v8, %v594_v1  ;;  %v920_v8 = vsel %vm317_vm4, %v898_v52, %v900_v10  ;;  %v608_v37 = vsel %vm317_vm4, %v594_v1, %v596_v63  ;;  %v797_v52 = vrot.slane %v771_v53, 2 }
 0x15a   : > { %v2731_v24 = vadd.f32 %v607_v4, %v499_v9  ;;  %v786_v9 = vrot.slane %v766_v57, 2  ;;  %v936_v17 = vadd.f32 %v920_v8, %v812_v20  ;;  %v624_v29 = vadd.f32 %v608_v37, %v2701_v60 }
 0x15b   : > { %v798_v62 = vsel %vm784_vm2, %v793_v35, %v797_v52  ;;  %v773_v60 = vmul.f32 %v2892_v50, %v2452_v15  ;;  %v770_v35 = vmul.f32 %v2724_v38, %v2000_v27 }
 0x15c   : > { %v1024_v42 = vpop.permute.xlu1 %1023  ;;  %v2739_v30 = vpop.permute.xlu0 %599  ;;  %v787_v34 = vsel %vm784_vm2, %v785_v43, %v786_v9  ;;  %v792_v46 = vsel %vm784_vm2, %v786_v9, %v791_v22 }
 0x15d   : > { %v811_v51 = vadd.f32 %v787_v34, %v743_v39  ;;  %v813_v61 = vadd.f32 %v792_v46, %v745_v0  ;;  %v610_v32 = vsel %vm317_vm4, %v2739_v30, %v2726_v56  ;;  %v801_v8 = vrot.slane %v773_v60, 2 }
 0x15e   : > { %v626_v39 = vadd.f32 %v610_v32, %v2707_v58 }
 0x15f   : > { %v935_v20 = vadd.f32 %v919_v49, %v811_v51  ;;  %v937_v47 = vadd.f32 %v921_v6, %v813_v61  ;;  %v802_v27 = vsel %vm784_vm2, %v797_v52, %v801_v8 }
 0x160   : > { %v1030_v31 = vpop.permute.xlu1 %1029  ;;  %v1022_v25 = vpop.permute.xlu0 %1021 }
 0x161   : > { %v1044_v2 = vsel %vm410_vm5, %v1022_v25, %v1024_v42  ;;  %v1043_v19 = vsel %vm410_vm5, %v2713_v33, %v1022_v25 }
 0x162   : > { %v1060_v55 = vadd.f32 %v1044_v2, %v936_v17  ;;  %v1059_v7 = vadd.f32 %v1043_v19, %v935_v20  ;;  %v795_v2 = vrot.slane %v770_v35, 2 }
 0x164   : > { %v598_v48 = vpop.permute.xlu1 %597  ;;  %v1028_v16 = vpop.permute.xlu0 %1027 }
 0x165   : > { %v1046_v10 = vsel %vm410_vm5, %v1028_v16, %v1030_v31  ;;  %v609_v15 = vsel %vm317_vm4, %v598_v48, %v2739_v30 }
 0x166   : > { %v1062_v45 = vadd.f32 %v1046_v10, %v938_v14  ;;  %v799_v14 = vrot.slane %v772_v40, 2  ;;  %v796_v10 = vsel %vm784_vm2, %v791_v22, %v795_v2 }
 0x168   : > { %v1026_v11 = vpop.permute.xlu1 %1025  ;;  %v718_v21 = vpop.permute.xlu0 %717  ;;  %v1068_v59 = vpack.c.bf16 %v1062_v45, %v1060_v55  ;;  %v800_v50 = vsel %vm784_vm2, %v795_v2, %v799_v14 }
 0x169   : > { %v1045_v28 = vsel %vm410_vm5, %v1026_v11, %v1028_v16  ;;  %v625_v16 = vadd.f32 %v609_v15, %v2711_v12 }
 0x16a   : > { %v1061_v4 = vadd.f32 %v1045_v28, %v937_v47  ;;  %1440 = vmatprep.mubr.bf16.mxu0 %v1068_v59  ;;  %1493 = vmatprep.mubr.bf16.mxu1 %v1068_v59 }
 0x16c   : > { %v720_v26 = vpop.permute.xlu1 %719  ;;  %v724_v57 = vpop.permute.xlu0 %723  ;;  %v1067_v42 = vpack.c.bf16 %v1061_v4, %v1059_v7 }
 0x16d   : > { %v732_v33 = vsel %vm410_vm5, %v718_v21, %v720_v26  ;;  %v1135_v26 = vld [vmem:[%s2829_s3] sm:$0x7] }
 0x16e   : > { %v748_v3 = vadd.f32 %v732_v33, %v624_v29  ;;  %1441 = vmatmul.mubr.bf16.vlgmr.msra.gmra.mrb[0].mxu0 %v1067_v42  ;;  %1494 = vmatmul.mubr.bf16.vlgmr.msra.gmra.mrb[0].mxu1 %v1067_v42  ;;  %v1140_v33 = vrot.slane %v1135_v26, %v2881_v44 }
 0x170   : > { %v726_v63 = vpop.permute.xlu1 %725  ;;  %v716_v1 = vpop.permute.xlu0 %715  ;;  %v816_v43 = vadd.f32 %v798_v62, %v748_v3  ;;  %v1144_v62 = vrot.slane %v1135_v26, %v1817_v5 }
 0x171   : > { %v734_v25 = vsel %vm410_vm5, %v724_v57, %v726_v63  ;;  %v731_v56 = vsel %vm410_vm5, %v716_v1, %v718_v21 }
 0x172   : > { %v750_v46 = vadd.f32 %v734_v25, %v626_v39  ;;  %v747_v6 = vadd.f32 %v731_v56, %v2731_v24 }
 0x174   : > { %v722_v13 = vpop.permute.xlu1 %721  ;;  %v910_v23 = vpop.permute.xlu0 %909  ;;  %v818_v48 = vadd.f32 %v802_v27, %v750_v46  ;;  %v815_v20 = vadd.f32 %v796_v10, %v747_v6 }
 0x175   : > { %v733_v17 = vsel %vm410_vm5, %v722_v13, %v724_v57  ;;  %v2893_v57 = vld [vmem:[#allocation2_spill] sm:$0xff] }
 0x176   : > { %v749_v30 = vadd.f32 %v733_v17, %v625_v16  ;;  %v1147_v42 = vsub.s32 2, %v2893_v57 }
 0x178   : > { %v912_v9 = vpop.permute.xlu1 %911  ;;  %v916_v41 = vpop.permute.xlu0 %915  ;;  %v817_v47 = vadd.f32 %v800_v50, %v749_v30  ;;  %v1148_v1 = vrot.slane %v1135_v26, %v1147_v42 }
 0x179   : > { %v924_v58 = vsel %vm317_vm4, %v910_v23, %v912_v9 }
 0x17a   : > { %v940_v51 = vadd.f32 %v924_v58, %v816_v43 }
 0x17c   : > { %v918_v36 = vpop.permute.xlu1 %917  ;;  %v908_v31 = vpop.permute.xlu0 %907 }
 0x17d   : > { %v926_v38 = vsel %vm317_vm4, %v916_v41, %v918_v36  ;;  %v923_v45 = vsel %vm317_vm4, %v908_v31, %v910_v23 }
 0x17e   : > { %v942_v12 = vadd.f32 %v926_v38, %v818_v48  ;;  %v939_v21 = vadd.f32 %v923_v45, %v815_v20 }
 0x180   : > { %v914_v0 = vpop.permute.xlu1 %913  ;;  %v1034_v34 = vpop.permute.xlu0 %1033 }
 0x181   : > { %v925_v19 = vsel %vm317_vm4, %v914_v0, %v916_v41 }
 0x182   : > { %v941_v59 = vadd.f32 %v925_v19, %v817_v47 }
 0x184   : > { %v1036_v49 = vpop.permute.xlu1 %1035  ;;  %v1040_v18 = vpop.permute.xlu0 %1039 }
 0x185   : > { %v1048_v53 = vsel %vm410_vm5, %v1034_v34, %v1036_v49 }
 0x186   : > { %v1064_v11 = vadd.f32 %v1048_v53, %v940_v51 }
 0x188   : > { %v1042_v61 = vpop.permute.xlu1 %1041  ;;  %v1032_v55 = vpop.permute.xlu0 %1031 }
 0x189   : > { %v1050_v24 = vsel %vm410_vm5, %v1040_v18, %v1042_v61  ;;  %v1047_v22 = vsel %vm410_vm5, %v1032_v55, %v1034_v34 }
 0x18a   : > { %v1066_v54 = vadd.f32 %v1050_v24, %v942_v12  ;;  %v1063_v7 = vadd.f32 %v1047_v22, %v939_v21 }
 0x18c   : > { %v1038_v37 = vpop.permute.xlu1 %1037  ;;  %v1070_v28 = vpack.c.bf16 %v1066_v54, %v1064_v11 }
 0x18d   : > { %v1049_v52 = vsel %vm410_vm5, %v1038_v37, %v1040_v18 }
 0x18e   : > { %v1065_v4 = vadd.f32 %v1049_v52, %v941_v59  ;;  %1450 = vmatprep.mubr.bf16.mxu0 %v1070_v28  ;;  %1501 = vmatprep.mubr.bf16.mxu1 %v1070_v28 }
 0x190   : > { %v1069_v29 = vpack.c.bf16 %v1065_v4, %v1063_v7 }
 0x192   : > { %1451 = vmatmul.mubr.bf16.gmra.mrb[4].mxu0 %v1069_v29  ;;  %1502 = vmatmul.mubr.bf16.gmra.mrb[4].mxu1 %v1069_v29 }
 0x241   : > { %v1442_v3 = vpop.f32.mrb[0].mxu0  ;;  %v1670_v63 = vpop.f32.mrb[0].mxu1 }
 0x242   : > { %v1443_v43 = vadd.f32 %v1442_v3, %v1140_v33  ;;  %v1444_v13 = vpop.f32.mrb[1].mxu0  ;;  %v1671_v23 = vpop.f32.mrb[1].mxu1 }
 0x243   : > { %v1445_v9 = vadd.f32 %v1444_v13, %v1144_v62  ;;  %v1672_v41 = vadd.f32 %v1671_v23, %v1670_v63  ;;  %v1446_v60 = vpop.f32.mrb[2].mxu0  ;;  %v1673_v44 = vpop.f32.mrb[2].mxu1 }
 0x244   : > { %v1510_v5 = vmax.f32 %v1443_v43, 0.0  ;;  %v1447_v36 = vadd.f32 %v1446_v60, %v1140_v33  ;;  %v1448_v31 = vpop.f32.mrb[3].mxu0  ;;  %v1674_v32 = vpop.f32.mrb[3].mxu1 }
 0x245   : > { %v1511_v35 = vmax.f32 %v1445_v9, 0.0  ;;  %v1496_v25 = vadd.f32 %v1672_v41, %v1148_v1  ;;  %v1449_v8 = vadd.f32 %v1448_v31, %v1144_v62  ;;  %v1675_v40 = vadd.f32 %v1674_v32, %v1673_v44 }
 0x246   : > { %1522 = vst [vmem:[%s2809_s6] sm:$0xff] %v1510_v5  ;;  %v1513_v39 = vmax.f32 %v1447_v36, 0.0 }
 0x247   : > { %1523 = vst [vmem:[%s2809_s6 + $0x8] sm:$0xff] %v1511_v35  ;;  %v1512_v0 = vmax.f32 %v1496_v25, 0.0  ;;  %v1514_v34 = vmax.f32 %v1449_v8, 0.0  ;;  %v1499_v15 = vadd.f32 %v1675_v40, %v1148_v1 }
 0x248   : > { %1525 = vst [vmem:[%s2809_s6 + $0x18] sm:$0xff] %v1513_v39 }
 0x249   : > { %1524 = vst [vmem:[%s2809_s6 + $0x10] sm:$0xff] %v1512_v0  ;;  %1526 = vst [vmem:[%s2809_s6 + $0x20] sm:$0xff] %v1514_v34  ;;  %v1515_v46 = vmax.f32 %v1499_v15, 0.0 }
 0x24b   : > { %1527 = vst [vmem:[%s2809_s6 + $0x28] sm:$0xff] %v1515_v46 }
 0x265   : > { %v1452_v2 = vpop.f32.mrb[4].mxu0  ;;  %v1676_v56 = vpop.f32.mrb[4].mxu1 }
 0x266   : > { %v1453_v17 = vadd.f32 %v1452_v2, %v1140_v33  ;;  %v1454_v27 = vpop.f32.mrb[5].mxu0  ;;  %v1677_v14 = vpop.f32.mrb[5].mxu1 }
 0x267   : > { %v1455_v16 = vadd.f32 %v1454_v27, %v1144_v62  ;;  %v1678_v49 = vadd.f32 %v1677_v14, %v1676_v56  ;;  %v1456_v18 = vpop.f32.mrb[6].mxu0  ;;  %v1679_v58 = vpop.f32.mrb[6].mxu1 }
 0x268   : > { %v1516_v38 = vmax.f32 %v1453_v17, 0.0  ;;  %v1457_v6 = vadd.f32 %v1456_v18, %v1140_v33  ;;  %v1458_v30 = vpop.f32.mrb[7].mxu0  ;;  %v1680_v48 = vpop.f32.mrb[7].mxu1 }
 0x269   : > { %v1517_v10 = vmax.f32 %v1455_v16, 0.0  ;;  %v1504_v50 = vadd.f32 %v1678_v49, %v1148_v1  ;;  %v1459_v53 = vadd.f32 %v1458_v30, %v1144_v62  ;;  %v1681_v51 = vadd.f32 %v1680_v48, %v1679_v58 }
 0x26a   : > { %1528 = vst [vmem:[%s2809_s6 + $0x30] sm:$0xff] %v1516_v38  ;;  %v1519_v12 = vmax.f32 %v1457_v6, 0.0 }
 0x26b   : > { %1529 = vst [vmem:[%s2809_s6 + $0x38] sm:$0xff] %v1517_v10  ;;  %v1518_v61 = vmax.f32 %v1504_v50, 0.0  ;;  %v1520_v55 = vmax.f32 %v1459_v53, 0.0  ;;  %v1507_v45 = vadd.f32 %v1681_v51, %v1148_v1 }
 0x26c   : > { %1531 = vst [vmem:[%s2809_s6 + $0x48] sm:$0xff] %v1519_v12 }
 0x26d   : > { %1530 = vst [vmem:[%s2809_s6 + $0x40] sm:$0xff] %v1518_v61  ;;  %1532 = vst [vmem:[%s2809_s6 + $0x50] sm:$0xff] %v1520_v55  ;;  %v1521_v19 = vmax.f32 %v1507_v45, 0.0 }
 0x26f   : > { %1533 = vst [vmem:[%s2809_s6 + $0x58] sm:$0xff] %v1521_v19 }
 0x270 PF: > { %s14_s15 = sadd.s32 1, %s1766_s15  }
 0x271   : > { %p11_p4 = scmp.ge.s32.totalorder %s14_s15, 4  }
 0x273   :  { %13 = sbr.rel (!%p11_p4) target bundleno = 1 (0x1), region = 74 }

// kernel: enc_forward.14
= control target key start
LH: loop header
LB: loop body
LE: loop exit
PB: predicated region body
PF: predicated region fallthrough
CT: control target
= control target key end

     0   :  { %s2499_s15 = smov 0   ;;  %s4119_s0 = inlined_call_operand.vmem [shape: f32[2,34,408], index: 0, kind: input, shape index: {}]   ;;  %s4120_s1 = inlined_call_operand.vmem [shape: f32[9,1,384], index: 1, kind: input, shape index: {}]   ;;  %s4121_s2 = inlined_call_operand.vmem [shape: bf16[384,384], index: 2, kind: input, shape index: {}]   ;;  %s4122_s3 = inlined_call_operand.vmem [shape: f32[1,384], index: 3, kind: input, shape index: {}]   ;;  %s4123_s4 = inlined_call_operand.vmem [shape: f32[2,32,384], index: 4, kind: output, shape index: {}]  }
   0x1 LB: > { %s2176_s16 = sadd.s32 4294967295, %s2467_s15   ;;  %p2180_p0 = scmp.ge.s32.totalorder %s2467_s15, 1  ;;  %s2467_s15 = sphi %s2499_s15, %s14_s15  }
   0x2   : > { %p162_p1 = scmp.lt.s32.totalorder %s2467_s15, 3 }
   0x4   : > { %p163_p2 = pnand %p2180_p0, %p162_p1 }
   0x6   : > { %166 = sbr.rel (%p163_p2) target bundleno = 698 (0x2ba), region = 36 }
   0xd   : > { %v221_v0 = vlaneseq  ;;  %v2184_v2 = vld [vmem:[%s4120_s1 + $0x6] sm:$0x7]  ;;  %v2183_v3 = vld [vmem:[%s4120_s1 + $0x3] sm:$0x7]  ;;  %s2469_s21 = smov 24   ;;  %s2470_s22 = smov 12  }
   0xe   : > { %v2186_v10 = vld [vmem:[%s4120_s1 + $0xc] sm:$0x7]  ;;  %v2187_v13 = vld [vmem:[%s4120_s1 + $0xf] sm:$0x7]  ;;  %v2189_v14 = vld [vmem:[%s4120_s1 + $0x15] sm:$0x7] }
   0xf   : > { %v222_v1 = vshrl.u32 %v221_v0, 7  ;;  %v2190_v19 = vld [vmem:[%s4120_s1 + $0x18] sm:$0x7]  ;;  %p188_p3 = scmp.lt.s32.totalorder %s2176_s16, 1  ;;  %s2471_s9 = smov 116   ;;  %vm996_vm0 = vcmask 1045504  }
  0x10   : > { %s2472_s10 = smov 104   ;;  %vm269_vm1 = vcmask 97280   ;;  %vm398_vm2 = vcmask 195584   ;;  %vm554_vm3 = vcmask 1046528   ;;  %vm340_vm4 = vcmask 949248  }
  0x11   : > { %v2513_v4 = vsub.s32 1, %v222_v1  ;;  %v2515_v5 = vsub.s32 2, %v222_v1  ;;  %v2551_v22 = vsub.s32 0, %v222_v1  ;;  %s4261_s16 = smov (!%p188_p3, %s2176_s16), 1  ;;  %vm469_vm5 = vcmask 850944  }
  0x12   : > { %s2339_s5 = smul.u32 160, %s4261_s16 }
  0x13   : > { %4167 = vst [vmem:[#allocation2_spill] sm:$0xff] %v2513_v4  ;;  %4168 = vst [vmem:[#allocation3_spill] sm:$0xff] %v2515_v5  ;;  %v387_v6 = vrot.slane %v2184_v2, %v2513_v4  ;;  %v258_v7 = vrot.slane %v2183_v3, %v2513_v4  ;;  %v391_v8 = vrot.slane %v2184_v2, %v2515_v5 }
  0x14   : > { %v262_v9 = vrot.slane %v2183_v3, %v2515_v5  ;;  %v620_v11 = vrot.slane %v2186_v10, %v2515_v5  ;;  %v616_v12 = vrot.slane %v2186_v10, %v2513_v4  ;;  %v791_v15 = vrot.slane %v2187_v13, %v2515_v5  ;;  %4169 = vst [vmem:[#allocation4_spill] sm:$0xff] %v2551_v22  ;;  %s2577_s8 = scalar_lea.vmem %s4119_s0, %s2339_s5 }
  0x15   : > { %394 = vrot.lane.b32.xlu1 %v387_v6, %s2469_s21  ;;  %265 = vrot.lane.b32.xlu0 %v258_v7, %s2470_s22  ;;  %v787_v16 = vrot.slane %v2187_v13, %v2513_v4  ;;  %v1062_v17 = vrot.slane %v2189_v14, %v2515_v5  ;;  %v1058_v18 = vrot.slane %v2189_v14, %v2513_v4  ;;  %v2584_v31 = vld [vmem:[%s2577_s8 + $0x18] sm:$0xff]  ;;  %v2627_v52 = vld [vmem:[%s2577_s8] sm:$0xff] }
  0x16   : > { %v1233_v20 = vrot.slane %v2190_v19, %v2515_v5  ;;  %v1229_v21 = vrot.slane %v2190_v19, %v2513_v4  ;;  %v383_v23 = vrot.slane %v2184_v2, %v2551_v22  ;;  %v254_v24 = vrot.slane %v2183_v3, %v2551_v22  ;;  %v2588_v35 = vld [vmem:[%s2577_s8 + $0x38] sm:$0xff]  ;;  %v2649_v62 = vld [vmem:[%s2577_s8 + $0x10] sm:$0xff]  ;;  %v2658_v2 = vld [vmem:[%s2577_s8 + $0x20] sm:$0xff] }
  0x17   : > { %v783_v25 = vrot.slane %v2187_v13, %v2551_v22  ;;  %v612_v26 = vrot.slane %v2186_v10, %v2551_v22  ;;  %v1225_v27 = vrot.slane %v2190_v19, %v2551_v22  ;;  %v1054_v28 = vrot.slane %v2189_v14, %v2551_v22  ;;  %v2609_v45 = vld [vmem:[%s2577_s8 + $0x58] sm:$0xff]  ;;  %v2661_v3 = vld [vmem:[%s2577_s8 + $0x30] sm:$0xff] }
  0x18   : > { %v2624_v51 = vld [vmem:[%s2577_s8 + $0x78] sm:$0xff] }
  0x19   : > { %396 = vrot.lane.b32.xlu1 %v391_v8, %s2469_s21  ;;  %267 = vrot.lane.b32.xlu0 %v262_v9, %s2470_s22 }
  0x1d   : > { %625 = vrot.lane.b32.xlu1 %v620_v11, %s2470_s22  ;;  %623 = vrot.lane.b32.xlu0 %v616_v12, %s2470_s22  ;;  %v2676_v11 = vld [vmem:[%s2577_s8 + $0x28] sm:$0xff] }
  0x21   : > { %796 = vrot.lane.b32.xlu1 %v791_v15, %s2469_s21  ;;  %794 = vrot.lane.b32.xlu0 %v787_v16, %s2469_s21  ;;  %v2694_v16 = vld [vmem:[%s2577_s8 + $0x50] sm:$0xff] }
  0x25   : > { %1067 = vrot.lane.b32.xlu1 %v1062_v17, %s2470_s22  ;;  %1065 = vrot.lane.b32.xlu0 %v1058_v18, %s2470_s22 }
  0x29   : > { %1238 = vrot.lane.b32.xlu1 %v1233_v20, %s2469_s21  ;;  %1236 = vrot.lane.b32.xlu0 %v1229_v21, %s2469_s21 }
  0x2d   : > { %392 = vrot.lane.b32.xlu1 %v383_v23, %s2469_s21  ;;  %263 = vrot.lane.b32.xlu0 %v254_v24, %s2470_s22  ;;  %v2706_v24 = vld [vmem:[%s2577_s8 + $0x70] sm:$0xff] }
  0x31   : > { %792 = vrot.lane.b32.xlu1 %v783_v25, %s2469_s21  ;;  %621 = vrot.lane.b32.xlu0 %v612_v26, %s2470_s22 }
  0x35   : > { %1234 = vrot.lane.b32.xlu1 %v1225_v27, %s2469_s21  ;;  %1063 = vrot.lane.b32.xlu0 %v1054_v28, %s2470_s22 }
  0x87   : > { %v2579_v29 = vpop.permute.xlu1 %394  ;;  %v2581_v30 = vpop.permute.xlu0 %265 }
  0x8b   : > { %v397_v32 = vpop.permute.xlu1 %396  ;;  %v268_v33 = vpop.permute.xlu0 %267 }
  0x8c   : > { %v279_v34 = vmul.f32 %v268_v33, %v2584_v31  ;;  %v283_v38 = vmul.f32 %v268_v33, %v2588_v35  ;;  %v408_v41 = vmul.f32 %v397_v32, %v2584_v31  ;;  %v412_v44 = vmul.f32 %v397_v32, %v2588_v35 }
  0x8d   : > { %v287_v48 = vmul.f32 %v268_v33, %v2609_v45  ;;  %v291_v56 = vmul.f32 %v268_v33, %v2624_v51  ;;  %v416_v61 = vmul.f32 %v397_v32, %v2609_v45  ;;  %v271_v63 = vsel %vm269_vm1, %v2581_v30, %v268_v33 }
  0x8e   : > { %314 = vrot.lane.b32.xlu1 %v279_v34, %s2471_s9  ;;  %v420_v0 = vmul.f32 %v397_v32, %v2624_v51  ;;  %v278_v1 = vmul.f32 %v271_v63, %v2649_v62  ;;  %v282_v7 = vmul.f32 %v271_v63, %v2661_v3  ;;  %v400_v8 = vsel %vm398_vm2, %v2579_v29, %v397_v32 }
  0x8f   : > { %v2591_v36 = vpop.permute.xlu1 %625  ;;  %v2593_v37 = vpop.permute.xlu0 %623  ;;  %v407_v10 = vmul.f32 %v400_v8, %v2649_v62  ;;  %v411_v14 = vmul.f32 %v400_v8, %v2661_v3  ;;  %v286_v20 = vmul.f32 %v271_v63, %v2694_v16  ;;  %v290_v26 = vmul.f32 %v271_v63, %v2706_v24 }
  0x90   : > { %v636_v17 = vmul.f32 %v2591_v36, %v2584_v31  ;;  %v640_v18 = vmul.f32 %v2591_v36, %v2588_v35  ;;  %v2710_v25 = vmul.f32 %v2591_v36, %v2609_v45  ;;  %v419_v63 = vmul.f32 %v400_v8, %v2706_v24 }
  0x92   : > { %322 = vrot.lane.b32.xlu1 %v283_v38, %s2471_s9  ;;  %v682_v21 = vrot.slane %v636_v17, 1  ;;  %v683_v23 = vrot.slane %v640_v18, 1  ;;  %v4125_v28 = vrot.slane %v2710_v25, 1  ;;  %v415_v38 = vmul.f32 %v400_v8, %v2694_v16 }
  0x93   : > { %v2597_v39 = vpop.permute.xlu1 %796  ;;  %v2599_v40 = vpop.permute.xlu0 %794 }
  0x94   : > { %v684_v27 = vsel %vm554_vm3, %v682_v21, %v683_v23  ;;  %v2727_v33 = vmul.f32 %v2597_v39, %v2609_v45 }
  0x96   : > { %443 = vrot.lane.b32.xlu1 %v408_v41, %s2472_s10  ;;  %v692_v41 = vsel %vm554_vm3, %v683_v23, %v4125_v28 }
  0x97   : > { %v2603_v42 = vpop.permute.xlu1 %1067  ;;  %v2605_v43 = vpop.permute.xlu0 %1065 }
  0x98   : > { %v2795_v18 = vmul.f32 %v2603_v42, %v2609_v45 }
  0x9a   : > { %451 = vrot.lane.b32.xlu1 %v412_v44, %s2472_s10 }
  0x9b   : > { %v2612_v46 = vpop.permute.xlu1 %1238  ;;  %v2614_v47 = vpop.permute.xlu0 %1236 }
  0x9c   : > { %v1249_v49 = vmul.f32 %v2612_v46, %v2584_v31  ;;  %v2621_v50 = vmul.f32 %v2612_v46, %v2588_v35 }
  0x9e   : > { %330 = vrot.lane.b32.xlu1 %v287_v48, %s2471_s9  ;;  %v1295_v53 = vrot.slane %v1249_v49, 2  ;;  %v4128_v54 = vrot.slane %v2621_v50, 2 }
  0x9f   : > { %v2631_v55 = vpop.permute.xlu0 %263  ;;  %v2636_v58 = vpop.permute.xlu1 %392 }
  0xa0   : > { %v276_v57 = vmul.f32 %v2631_v55, %v2627_v52  ;;  %v2641_v59 = vsel %vm996_vm0, %v1295_v53, %v4128_v54  ;;  %v405_v60 = vmul.f32 %v2636_v58, %v2627_v52  ;;  %v280_v6 = vmul.f32 %v2631_v55, %v2658_v2 }
  0xa1   : > { %v409_v9 = vmul.f32 %v2636_v58, %v2658_v2  ;;  %v2681_v12 = vsel %vm269_vm1, %v2631_v55, %v2581_v30  ;;  %v2691_v15 = vsel %vm398_vm2, %v2636_v58, %v2579_v29  ;;  %v807_v29 = vmul.f32 %v2597_v39, %v2584_v31 }
  0xa2   : > { %338 = vrot.lane.b32.xlu1 %v291_v56, %s2471_s9  ;;  %308 = vrot.lane.b32.xlu0 %v276_v57, %s2471_s9  ;;  %v281_v13 = vmul.f32 %v2681_v12, %v2676_v11  ;;  %v410_v19 = vmul.f32 %v2691_v15, %v2676_v11  ;;  %v811_v30 = vmul.f32 %v2597_v39, %v2588_v35  ;;  %v4124_v56 = vrot.slane %v2727_v33, 1 }
  0xa3   : > { %v2721_v32 = vpop.permute.xlu0 %621  ;;  %v2729_v34 = vpop.permute.xlu1 %792  ;;  %v853_v44 = vrot.slane %v807_v29, 1  ;;  %v2745_v53 = vsel %vm269_vm1, %v2593_v37, %v2591_v36  ;;  %v1078_v57 = vmul.f32 %v2603_v42, %v2584_v31  ;;  %v1082_v31 = vmul.f32 %v2603_v42, %v2588_v35  ;;  %v2356_v35 = vld [vmem:[%s4121_s2 + $0x180] ss:$12 sps:$4 sm:$0xff]  }
  0xa4   : > { %v854_v48 = vrot.slane %v811_v30, 1  ;;  %v2738_v49 = vsel %vm269_vm1, %v2721_v32, %v2593_v37  ;;  %v635_v8 = vmul.f32 %v2745_v53, %v2649_v62 }
  0xa5   : > { %v1124_v17 = vrot.slane %v1078_v57, 2  ;;  %v1125_v29 = vrot.slane %v1082_v31, 2  ;;  %v2359_v57 = vld [vmem:[%s4121_s2 + $0x198] ss:$12 sps:$4 sm:$0xff]  }
  0xa6   : > { %459 = vrot.lane.b32.xlu1 %v416_v61, %s2472_s10  ;;  %437 = vrot.lane.b32.xlu0 %v405_v60, %s2472_s10  ;;  %v2751_v60 = vld [vmem:[%s2577_s8 + $0x48] sm:$0xff] }
  0xa7   : > { %v2754_v61 = vld [vmem:[%s2577_s8 + $0x68] sm:$0xff]  ;;  %v2765_v37 = vpop.permute.xlu0 %1063 }
  0xaa   : > { %467 = vrot.lane.b32.xlu1 %v420_v0, %s2472_s10  ;;  %312 = vrot.lane.b32.xlu0 %v278_v1, %s2471_s9  ;;  %v2759_v0 = vmul.f32 %v2738_v49, %v2751_v60  ;;  %v2763_v1 = vmul.f32 %v2738_v49, %v2754_v61 }
  0xac   : > { %v4127_v23 = vrot.slane %v2759_v0, 1 }
  0xae   : > { %316 = vrot.lane.b32.xlu1 %v280_v6, %s2471_s9  ;;  %320 = vrot.lane.b32.xlu0 %v282_v7, %s2471_s9  ;;  %v855_v6 = vsel %vm554_vm3, %v853_v44, %v854_v48  ;;  %v2769_v7 = vld [vmem:[%s2577_s8 + $0x8] sm:$0xff]  ;;  %v2830_v44 = vmul.f32 %v2745_v53, %v2694_v16 }
  0xaf   : > { %v277_v21 = vmul.f32 %v2681_v12, %v2769_v7 }
  0xb2   : > { %445 = vrot.lane.b32.xlu1 %v409_v9, %s2472_s10  ;;  %441 = vrot.lane.b32.xlu0 %v407_v10, %s2472_s10  ;;  %v2773_v9 = vpop.permute.xlu1 %1234  ;;  %v2782_v10 = vsel %vm398_vm2, %v2729_v34, %v2599_v40 }
  0xb3   : > { %v2815_v30 = vmul.f32 %v2782_v10, %v2751_v60 }
  0xb5   : > { %v4172_v54 = vrot.slane %v2815_v30, 1 }
  0xb6   : > { %318 = vrot.lane.b32.xlu1 %v281_v13, %s2471_s9  ;;  %449 = vrot.lane.b32.xlu0 %v411_v14, %s2472_s10  ;;  %v2354_v13 = vld [vmem:[%s4121_s2 + $0x184] ss:$12 sps:$4 sm:$0xff]   ;;  %v863_v14 = vsel %vm554_vm3, %v854_v48, %v4124_v56  ;;  %v2357_v48 = vld [vmem:[%s4121_s2 + $0x19c] ss:$12 sps:$4 sm:$0xff]  }
  0xb7   : > { %1946 = vmatprep.subr.bf16.mxu1 %v2354_v13  ;;  %v406_v13 = vmul.f32 %v2691_v15, %v2769_v7 }
  0xb8   : > { %1947 = vmatpush1.bf16.msra.mxu1 %v2356_v35  ;;  %v4129_v35 = vrot.slane %v2795_v18, 2 }
  0xb9   : > { %1948 = vmatprep.subr.bf16.mxu1 %v2357_v48  ;;  %v2888_v48 = vmul.f32 %v2612_v46, %v2609_v45  ;;  %v2363_v45 = vld [vmem:[%s4121_s2 + $0x1cc] ss:$12 sps:$4 sm:$0xff]  }
  0xba   : > { %447 = vrot.lane.b32.xlu1 %v410_v19, %s2472_s10  ;;  %328 = vrot.lane.b32.xlu0 %v286_v20, %s2471_s9  ;;  %v639_v19 = vmul.f32 %v2745_v53, %v2661_v3  ;;  %v2802_v20 = vsel %vm269_vm1, %v2765_v37, %v2605_v43  ;;  %v1134_v56 = vsel %vm996_vm0, %v1125_v29, %v4129_v35 }
  0xbb   : > { %v2844_v31 = vmul.f32 %v2802_v20, %v2754_v61 }
  0xbc   : > { %1949 = vmatpush1.bf16.msra.mxu1 %v2359_v57 }
  0xbe   : > { %715 = vrot.lane.b32.xlu1 %v684_v27, %s2471_s9  ;;  %336 = vrot.lane.b32.xlu0 %v290_v26, %s2471_s9  ;;  %v4126_v26 = vrot.slane %v2763_v1, 1  ;;  %v2811_v27 = vsel %vm398_vm2, %v2773_v9, %v2614_v47 }
  0xbf   : > { %v2865_v28 = vmul.f32 %v2811_v27, %v2754_v61 }
  0xc2   : > { %723 = vrot.lane.b32.xlu1 %v692_v41, %s2471_s9  ;;  %457 = vrot.lane.b32.xlu0 %v415_v38, %s2472_s10  ;;  %v2819_v38 = vmul.f32 %v2782_v10, %v2754_v61  ;;  %v2824_v41 = vsel %vm398_vm2, %v2599_v40, %v2597_v39  ;;  %v2840_v40 = vmul.f32 %v2802_v20, %v2751_v60 }
  0xc4   : > { %v4175_v35 = vrot.slane %v2840_v40, 2 }
  0xc6   : > { %886 = vrot.lane.b32.xlu1 %v855_v6, %s2472_s10  ;;  %465 = vrot.lane.b32.xlu0 %v419_v63, %s2472_s10  ;;  %v679_v63 = vrot.slane %v635_v8, 1  ;;  %v680_v6 = vrot.slane %v639_v19, 1  ;;  %v2858_v8 = vsel %vm554_vm3, %v4127_v23, %v4126_v26  ;;  %v1126_v19 = vsel %vm996_vm0, %v1124_v17, %v1125_v29  ;;  %v2360_v26 = vld [vmem:[%s4121_s2 + $0x1b4] ss:$12 sps:$4 sm:$0xff]   ;;  %v2362_v17 = vld [vmem:[%s4121_s2 + $0x1b0] ss:$12 sps:$4 sm:$0xff]  }
  0xc7   : > { %4170 = vst [vmem:[#allocation5_spill] sm:$0xff] %v2858_v8  ;;  %1950 = vmatprep.subr.bf16.mxu1 %v2360_v26  ;;  %v810_v23 = vmul.f32 %v2824_v41, %v2661_v3  ;;  %v2365_v26 = vld [vmem:[%s4121_s2 + $0x1c8] ss:$12 sps:$4 sm:$0xff]   ;;  %v4174_v29 = vrot.slane %v2844_v31, 2  ;;  %v2934_v8 = vmul.f32 %v2824_v41, %v2694_v16 }
  0xc8   : > { %v681_v57 = vsel %vm554_vm3, %v679_v63, %v680_v6  ;;  %v4171_v63 = vrot.slane %v2819_v38, 1  ;;  %1951 = vmatpush1.bf16.msra.mxu1 %v2362_v17  ;;  %v4177_v17 = vrot.slane %v2830_v44, 1 }
  0xc9   : > { %1952 = vmatprep.subr.bf16.mxu1 %v2363_v45 }
  0xca   : > { %894 = vrot.lane.b32.xlu1 %v863_v14, %s2472_s10  ;;  %310 = vrot.lane.b32.xlu0 %v277_v21, %s2471_s9  ;;  %v2851_v14 = vmul.f32 %v2811_v27, %v2751_v60  ;;  %v4130_v21 = vrot.slane %v2865_v28, 2 }
  0xcc   : > { %1953 = vmatpush1.bf16.msra.mxu1 %v2365_v26 }
  0xce   : > { %1157 = vrot.lane.b32.xlu1 %v1126_v19, %s2471_s9  ;;  %439 = vrot.lane.b32.xlu0 %v406_v13, %s2472_s10  ;;  %v806_v19 = vmul.f32 %v2824_v41, %v2649_v62  ;;  %v2897_v13 = vsel %vm554_vm3, %v4172_v54, %v4171_v63  ;;  %v2912_v54 = vsel %vm996_vm0, %v4175_v35, %v4174_v29  ;;  %v4131_v29 = vrot.slane %v2888_v48, 2 }
  0xcf   : > { %4173 = vst [vmem:[#allocation6_spill] sm:$0xff] %v2897_v13  ;;  %4176 = vst [vmem:[#allocation7_spill] sm:$0xff] %v2912_v54  ;;  %v648_v63 = vmul.f32 %v2591_v36, %v2624_v51  ;;  %v4178_v13 = vrot.slane %v2851_v14, 2 }
  0xd0   : > { %v850_v54 = vrot.slane %v806_v19, 1 }
  0xd1   : > { %v2929_v35 = vsel %vm996_vm0, %v4178_v13, %v4130_v21  ;;  %v2366_v13 = vld [vmem:[%s4121_s2 + $0x1e4] ss:$12 sps:$4 sm:$0xff]   ;;  %v699_v19 = vrot.slane %v648_v63, 1  ;;  %v860_v21 = vrot.slane %v2934_v8, 1 }
  0xd2   : > { %1165 = vrot.lane.b32.xlu1 %v1134_v56, %s2471_s9  ;;  %713 = vrot.lane.b32.xlu0 %v681_v57, %s2471_s9  ;;  %v2917_v56 = vsel %vm269_vm1, %v2605_v43, %v2603_v42  ;;  %v690_v57 = vsel %vm554_vm3, %v680_v6, %v4177_v17  ;;  %4179 = vst [vmem:[#allocation8_spill] sm:$0xff] %v2929_v35  ;;  %v851_v43 = vrot.slane %v810_v23, 1  ;;  %v2937_v6 = vld [vmem:[%s2577_s8 + $0x98] sm:$0x3]  ;;  %v2368_v23 = vld [vmem:[%s4121_s2 + $0x1e0] ss:$12 sps:$4 sm:$0xff]  }
  0xd3   : > { %v652_v45 = vmul.f32 %v2591_v36, %v2937_v6  ;;  %v1077_v26 = vmul.f32 %v2917_v56, %v2649_v62  ;;  %1954 = vmatprep.subr.bf16.mxu1 %v2366_v13  ;;  %v1081_v63 = vmul.f32 %v2917_v56, %v2661_v3  ;;  %v2369_v36 = vld [vmem:[%s4121_s2 + $0x1fc] ss:$12 sps:$4 sm:$0xff]   ;;  %v2979_v35 = vmul.f32 %v2917_v56, %v2694_v16 }
  0xd4   : > { %1955 = vmatpush1.bf16.msra.mxu1 %v2368_v23  ;;  %v819_v23 = vmul.f32 %v2597_v39, %v2624_v51 }
  0xd5   : > { %1956 = vmatprep.subr.bf16.mxu1 %v2369_v36  ;;  %v823_v36 = vmul.f32 %v2597_v39, %v2937_v6  ;;  %v2375_v39 = vld [vmem:[%s4121_s2 + $0x22c] ss:$12 sps:$4 sm:$0xff]  }
  0xd6   : > { %1328 = vrot.lane.b32.xlu1 %v2641_v59, %s2472_s10  ;;  %721 = vrot.lane.b32.xlu0 %v690_v57, %s2471_s9  ;;  %v4180_v59 = vrot.slane %v2621_v50, 2  ;;  %v852_v57 = vsel %vm554_vm3, %v850_v54, %v851_v43  ;;  %v2371_v50 = vld [vmem:[%s4121_s2 + $0x1f8] ss:$12 sps:$4 sm:$0xff]   ;;  %v4181_v54 = vrot.slane %v2710_v25, 1  ;;  %v2984_v25 = vsel %vm398_vm2, %v2614_v47, %v2612_v46 }
  0xd8   : > { %v1305_v17 = vsel %vm996_vm0, %v4180_v59, %v4131_v29  ;;  %v700_v13 = vsel %vm554_vm3, %v4181_v54, %v699_v19  ;;  %v707_v59 = vrot.slane %v652_v45, 1  ;;  %v1122_v29 = vrot.slane %v1081_v63, 2  ;;  %1957 = vmatpush1.bf16.msra.mxu1 %v2371_v50  ;;  %v2374_v45 = vld [vmem:[%s4121_s2 + $0x210] ss:$12 sps:$4 sm:$0xff]  }
  0xd9   : > { %v870_v63 = vrot.slane %v819_v23, 1  ;;  %v1131_v50 = vrot.slane %v2979_v35, 2  ;;  %v1248_v54 = vmul.f32 %v2984_v25, %v2649_v62  ;;  %v878_v23 = vrot.slane %v823_v36, 1  ;;  %v2401_v35 = vld [vmem:[%s4121_s2 + $0xa8] ss:$12 sps:$4 sm:$0xff]  }
  0xda   : > { %1336 = vrot.lane.b32.xlu1 %v1305_v17, %s2472_s10  ;;  %884 = vrot.lane.b32.xlu0 %v852_v57, %s2472_s10  ;;  %v861_v17 = vsel %vm554_vm3, %v851_v43, %v860_v21  ;;  %v1121_v57 = vrot.slane %v1077_v26, 2  ;;  %v2372_v43 = vld [vmem:[%s4121_s2 + $0x214] ss:$12 sps:$4 sm:$0xff]   ;;  %v708_v26 = vsel %vm554_vm3, %v699_v19, %v707_v59  ;;  %v4182_v59 = vrot.slane %v2727_v33, 1  ;;  %v2378_v33 = vld [vmem:[%s4121_s2 + $0x4] ss:$12 sps:$4 sm:$0xff]  }
  0xdb   : > { %1958 = vmatprep.subr.bf16.mxu1 %v2372_v43  ;;  %v2377_v19 = vld [vmem:[%s4121_s2 + $0x228] ss:$12 sps:$4 sm:$0xff]   ;;  %1893 = vmatprep.subr.bf16.mxu0 %v2378_v33  ;;  %v3058_v33 = vmul.f32 %v2738_v49, %v2676_v11 }
  0xdc   : > { %v1123_v47 = vsel %vm996_vm0, %v1121_v57, %v1122_v29  ;;  %1959 = vmatpush1.bf16.msra.mxu1 %v2374_v45  ;;  %v871_v62 = vsel %vm554_vm3, %v4182_v59, %v870_v63  ;;  %v1292_v57 = vrot.slane %v1248_v54, 2  ;;  %v3021_v45 = vmul.f32 %v2984_v25, %v2694_v16  ;;  %v3040_v59 = vld [vmem:[%s2577_s8 + $0x90] sm:$0x3] }
  0xdd   : > { %1960 = vmatprep.subr.bf16.mxu1 %v2375_v39  ;;  %v879_v54 = vsel %vm554_vm3, %v870_v63, %v878_v23  ;;  %4183 = vst [vmem:[#allocation9_spill] sm:$0xff] %v3040_v59  ;;  %v2383_v63 = vld [vmem:[%s4121_s2 + $0x18] ss:$12 sps:$4 sm:$0xff]  }
  0xde   : > { %731 = vrot.lane.b32.xlu1 %v700_v13, %s2471_s9  ;;  %892 = vrot.lane.b32.xlu0 %v861_v17, %s2472_s10  ;;  %v1252_v13 = vmul.f32 %v2984_v25, %v2661_v3  ;;  %v1090_v3 = vmul.f32 %v2603_v42, %v2624_v51  ;;  %v1132_v17 = vsel %vm996_vm0, %v1122_v29, %v1131_v50  ;;  %v2380_v29 = vld [vmem:[%s4121_s2] ss:$12 sps:$4 sm:$0xff]   ;;  %v1302_v39 = vrot.slane %v3021_v45, 2  ;;  %v2420_v45 = vld [vmem:[%s4121_s2 + $0x108] ss:$12 sps:$4 sm:$0xff]  }
  0xdf   : > { %1894 = vmatpush1.bf16.msra.mxu0 %v2380_v29  ;;  %v651_v29 = vmul.f32 %v2745_v53, %v3040_v59 }
  0xe0   : > { %v1293_v43 = vrot.slane %v1252_v13, 2  ;;  %1961 = vmatpush1.bf16.msra.mxu1 %v2377_v19  ;;  %v1141_v36 = vrot.slane %v1090_v3, 2  ;;  %v647_v19 = vmul.f32 %v2745_v53, %v2706_v24 }
  0xe2   : > { %739 = vrot.lane.b32.xlu1 %v708_v26, %s2471_s9  ;;  %1155 = vrot.lane.b32.xlu0 %v1123_v47, %s2471_s9  ;;  %v4132_v26 = vmov 0   ;;  %v1094_v47 = vmul.f32 %v2603_v42, %v2937_v6  ;;  %v1294_v13 = vsel %vm996_vm0, %v1292_v57, %v1293_v43  ;;  %v2381_v42 = vld [vmem:[%s4121_s2 + $0x1c] ss:$12 sps:$4 sm:$0xff]   ;;  %v697_v57 = vrot.slane %v647_v19, 1 }
  0xe3   : > { %1978 = vmatprep.mubr.bf16.mxu1 %v4132_v26  ;;  %1895 = vmatprep.subr.bf16.mxu0 %v2381_v42  ;;  %v4185_v19 = vrot.slane %v2830_v44, 1  ;;  %v2389_v44 = vld [vmem:[%s4121_s2 + $0x48] ss:$12 sps:$4 sm:$0xff]   ;;  %v1264_v26 = vmul.f32 %v2984_v25, %v3040_v59 }
  0xe4   : > { %v1149_v3 = vrot.slane %v1094_v47, 2  ;;  %1896 = vmatpush1.bf16.msra.mxu0 %v2383_v63  ;;  %v3075_v47 = vmul.f32 %v2721_v32, %v2658_v2  ;;  %v677_v63 = vrot.slane %v3058_v33, 1 }
  0xe5   : > { %v698_v42 = vsel %vm554_vm3, %v4185_v19, %v697_v57 }
  0xe6   : > { %902 = vrot.lane.b32.xlu1 %v871_v62, %s2472_s10  ;;  %1163 = vrot.lane.b32.xlu0 %v1132_v17, %s2471_s9  ;;  %v4184_v62 = vrot.slane %v2795_v18, 2  ;;  %v1303_v17 = vsel %vm996_vm0, %v1293_v43, %v1302_v39  ;;  %v2384_v18 = vld [vmem:[%s4121_s2 + $0x34] ss:$12 sps:$4 sm:$0xff]   ;;  %v2386_v43 = vld [vmem:[%s4121_s2 + $0x30] ss:$12 sps:$4 sm:$0xff]  }
  0xe7   : > { %1897 = vmatprep.subr.bf16.mxu0 %v2384_v18  ;;  %v4186_v18 = vrot.slane %v2759_v0, 1  ;;  %v2392_v0 = vld [vmem:[%s4121_s2 + $0x60] ss:$12 sps:$4 sm:$0xff]  }
  0xe8   : > { %v1142_v23 = vsel %vm996_vm0, %v4184_v62, %v1141_v36  ;;  %v705_v62 = vrot.slane %v651_v29, 1  ;;  %1898 = vmatpush1.bf16.msra.mxu0 %v2386_v43  ;;  %v1261_v29 = vmul.f32 %v2612_v46, %v2624_v51  ;;  %v2390_v51 = vld [vmem:[%s4121_s2 + $0x64] ss:$12 sps:$4 sm:$0xff]  }
  0xe9   : > { %v688_v43 = vsel %vm554_vm3, %v677_v63, %v4186_v18  ;;  %v2393_v18 = vld [vmem:[%s4121_s2 + $0x7c] ss:$12 sps:$4 sm:$0xff]  }
  0xea   : > { %910 = vrot.lane.b32.xlu1 %v879_v54, %s2472_s10  ;;  %1326 = vrot.lane.b32.xlu0 %v1294_v13, %s2472_s10  ;;  %v3063_v54 = vld [vmem:[%s2577_s8 + $0x40] sm:$0xff]  ;;  %v1150_v13 = vsel %vm996_vm0, %v1141_v36, %v1149_v3  ;;  %v2387_v36 = vld [vmem:[%s4121_s2 + $0x4c] ss:$12 sps:$4 sm:$0xff]   ;;  %v674_v3 = vrot.slane %v3075_v47, 1 }
  0xeb   : > { %v3079_v53 = vmul.f32 %v2721_v32, %v3063_v54  ;;  %1899 = vmatprep.subr.bf16.mxu0 %v2387_v36 }
  0xec   : > { %1900 = vmatpush1.bf16.msra.mxu0 %v2389_v44  ;;  %v1089_v44 = vmul.f32 %v2917_v56, %v2706_v24 }
  0xed   : > { %1901 = vmatprep.subr.bf16.mxu0 %v2390_v51  ;;  %v3160_v51 = vmul.f32 %v2729_v34, %v3063_v54 }
  0xee   : > { %1173 = vrot.lane.b32.xlu1 %v1142_v23, %s2471_s9  ;;  %1334 = vrot.lane.b32.xlu0 %v1303_v17, %s2472_s10  ;;  %v818_v23 = vmul.f32 %v2824_v41, %v2706_v24  ;;  %v4135_v17 = vrot.slane %v3079_v53, 1 }
  0xef   : > { %4188 = vst [vmem:[#allocation10_spill] sm:$0xff] %v3160_v51 }
  0xf0   : > { %v868_v19 = vrot.slane %v818_v23, 1  ;;  %v1312_v23 = vrot.slane %v1261_v29, 2  ;;  %1902 = vmatpush1.bf16.msra.mxu0 %v2392_v0 }
  0xf1   : > { %1903 = vmatprep.subr.bf16.mxu0 %v2393_v18  ;;  %v2399_v18 = vld [vmem:[%s4121_s2 + $0xac] ss:$12 sps:$4 sm:$0xff]  }
  0xf2   : > { %1181 = vrot.lane.b32.xlu1 %v1150_v13, %s2471_s9  ;;  %729 = vrot.lane.b32.xlu0 %v698_v42, %s2471_s9  ;;  %v706_v13 = vsel %vm554_vm3, %v697_v57, %v705_v62  ;;  %v822_v42 = vmul.f32 %v2824_v41, %v3040_v59  ;;  %v686_v57 = vsel %vm554_vm3, %v674_v3, %v4135_v17 }
  0xf3   : > { %v1265_v41 = vmul.f32 %v2612_v46, %v2937_v6  ;;  %v869_v62 = vsel %vm554_vm3, %v860_v21, %v868_v19  ;;  %v2395_v46 = vld [vmem:[%s4121_s2 + $0x78] ss:$12 sps:$4 sm:$0xff]   ;;  %v1093_v21 = vmul.f32 %v2917_v56, %v3040_v59  ;;  %v4187_v6 = vrot.slane %v2888_v48, 2  ;;  %v2396_v56 = vld [vmem:[%s4121_s2 + $0x94] ss:$12 sps:$4 sm:$0xff]  }
  0xf4   : > { %v876_v36 = vrot.slane %v822_v42, 1  ;;  %v3144_v42 = vmul.f32 %v2782_v10, %v2676_v11  ;;  %1904 = vmatpush1.bf16.msra.mxu0 %v2395_v46  ;;  %v2398_v48 = vld [vmem:[%s4121_s2 + $0x90] ss:$12 sps:$4 sm:$0xff]   ;;  %v804_v17 = vmul.f32 %v2729_v34, %v2627_v52 }
  0xf5   : > { %v1320_v8 = vrot.slane %v1265_v41, 2  ;;  %v1313_v29 = vsel %vm996_vm0, %v4187_v6, %v1312_v23  ;;  %1905 = vmatprep.subr.bf16.mxu0 %v2396_v56  ;;  %v633_v56 = vmul.f32 %v2721_v32, %v2627_v52 }
  0xf6   : > { %719 = vrot.lane.b32.xlu1 %v688_v43, %s2471_s9  ;;  %737 = vrot.lane.b32.xlu0 %v706_v13, %s2471_s9  ;;  %v877_v43 = vsel %vm554_vm3, %v868_v19, %v876_v36  ;;  %v1139_v13 = vrot.slane %v1089_v44, 2  ;;  %v3156_v19 = vmul.f32 %v2729_v34, %v2658_v2  ;;  %v848_v36 = vrot.slane %v3144_v42, 1 }
  0xf7   : > { %v1321_v41 = vsel %vm996_vm0, %v1312_v23, %v1320_v8  ;;  %v634_v44 = vmul.f32 %v2738_v49, %v2769_v7  ;;  %v4134_v23 = vrot.slane %v3160_v51, 1 }
  0xf8   : > { %1906 = vmatpush1.bf16.msra.mxu0 %v2398_v48 }
  0xf9   : > { %1907 = vmatprep.subr.bf16.mxu0 %v2399_v18 }
  0xfa   : > { %717 = vrot.lane.b32.xlu1 %v686_v57, %s2471_s9  ;;  %900 = vrot.lane.b32.xlu0 %v869_v62, %s2472_s10  ;;  %v1147_v57 = vrot.slane %v1093_v21, 2  ;;  %v1140_v62 = vsel %vm996_vm0, %v1131_v50, %v1139_v13  ;;  %v845_v50 = vrot.slane %v3156_v19, 1  ;;  %v4191_v21 = vrot.slane %v2815_v30, 1  ;;  %v2402_v30 = vld [vmem:[%s4121_s2 + $0xc4] ss:$12 sps:$4 sm:$0xff]  }
  0xfb   : > { %v2435_v19 = vld [vmem:[%s4121_s2 + $0x150] ss:$12 sps:$4 sm:$0xff]  }
  0xfc   : > { %v1148_v8 = vsel %vm996_vm0, %v1139_v13, %v1147_v57  ;;  %v859_v6 = vsel %vm554_vm3, %v848_v36, %v4191_v21  ;;  %1908 = vmatpush1.bf16.msra.mxu0 %v2401_v35  ;;  %v2404_v13 = vld [vmem:[%s4121_s2 + $0xc8] ss:$12 sps:$4 sm:$0xff]   ;;  %v857_v48 = vsel %vm554_vm3, %v845_v50, %v4134_v23  ;;  %v3210_v57 = vmul.f32 %v2765_v37, %v2658_v2 }
  0xfd   : > { %1909 = vmatprep.subr.bf16.mxu0 %v2402_v30  ;;  %2265 = vmatprep.subr.bf16.mxu1 %v2404_v13  ;;  %v1260_v21 = vmul.f32 %v2984_v25, %v2706_v24  ;;  %v4195_v13 = vrot.slane %v2840_v40, 2  ;;  %v2412_v40 = vld [vmem:[%s4121_s2 + $0xf4] ss:$12 sps:$4 sm:$0xff]  }
  0xfe   : > { %1344 = vrot.lane.b32.xlu1 %v1313_v29, %s2472_s10  ;;  %908 = vrot.lane.b32.xlu0 %v877_v43, %s2472_s10  ;;  %v676_v29 = vrot.slane %v634_v44, 1  ;;  %v3191_v43 = vmul.f32 %v2802_v20, %v2676_v11  ;;  %v4139_v30 = vrot.slane %v3210_v57, 2 }
 0x100   : > { %v3162_v0 = vpop.permute.xlu1 %314  ;;  %v678_v18 = vsel %vm554_vm3, %v676_v29, %v677_v63  ;;  %v1119_v35 = vrot.slane %v3191_v43, 2  ;;  %v2410_v63 = vld [vmem:[%s4121_s2 + $0xd8] ss:$12 sps:$4 sm:$0xff]  }
 0x101   : > { %4189 = vst [vmem:[#allocation11_spill] sm:$0xff] %v3162_v0  ;;  %v2437_v43 = vld [vmem:[%s4121_s2 + $0x16c] ss:$12 sps:$4 sm:$0xff]  }
 0x102   : > { %1352 = vrot.lane.b32.xlu1 %v1321_v41, %s2472_s10  ;;  %1171 = vrot.lane.b32.xlu0 %v1140_v62, %s2471_s9  ;;  %v3214_v41 = vmul.f32 %v2765_v37, %v3063_v54  ;;  %v2405_v62 = vld [vmem:[%s4121_s2 + $0xc0] ss:$12 sps:$4 sm:$0xff]  }
 0x103   : > { %1910 = vmatpush1.bf16.msra.mxu0 %v2405_v62 }
 0x104   : > { %v3181_v46 = vpop.permute.xlu1 %322  ;;  %4192 = vst [vmem:[#allocation13_spill] sm:$0xff] %v3214_v41  ;;  %v4133_v33 = vrot.slane %v3214_v41, 2  ;;  %v3406_v41 = vld [vmem:[%s2577_s8 + $0x80] sm:$0x3] }
 0x105   : > { %4190 = vst [vmem:[#allocation12_spill] sm:$0xff] %v3181_v46 }
 0x106   : > { %890 = vrot.lane.b32.xlu1 %v859_v6, %s2472_s10  ;;  %1179 = vrot.lane.b32.xlu0 %v1148_v8, %s2471_s9  ;;  %v673_v8 = vrot.slane %v633_v56, 1  ;;  %v2407_v6 = vld [vmem:[%s4121_s2 + $0xdc] ss:$12 sps:$4 sm:$0xff]   ;;  %v3241_v56 = vmul.f32 %v2811_v27, %v2676_v11  ;;  %v1128_v47 = vsel %vm996_vm0, %v4139_v30, %v4133_v33 }
 0x107   : > { %1911 = vmatprep.subr.bf16.mxu0 %v2407_v6 }
 0x108   : > { %v3219_v44 = vpop.permute.xlu1 %443  ;;  %v675_v62 = vsel %vm554_vm3, %v673_v8, %v674_v3  ;;  %1912 = vmatpush1.bf16.msra.mxu0 %v2410_v63  ;;  %v2415_v3 = vld [vmem:[%s4121_s2 + $0xf0] ss:$12 sps:$4 sm:$0xff]   ;;  %v4138_v8 = vrot.slane %v3241_v56, 2  ;;  %v1318_v63 = vrot.slane %v1264_v26, 2 }
 0x109   : > { %4193 = vst [vmem:[#allocation14_spill] sm:$0xff] %v3219_v44  ;;  %1913 = vmatprep.subr.bf16.mxu0 %v2412_v40  ;;  %v4197_v40 = vrot.slane %v2851_v14, 2  ;;  %v2422_v14 = vld [vmem:[%s4121_s2 + $0x124] ss:$12 sps:$4 sm:$0xff]   ;;  %v649_v44 = vmul.f32 %v2721_v32, %v3406_v41 }
 0x10a   : > { %888 = vrot.lane.b32.xlu1 %v857_v48, %s2472_s10  ;;  %711 = vrot.lane.b32.xlu0 %v678_v18, %s2471_s9  ;;  %v1130_v48 = vsel %vm996_vm0, %v1119_v35, %v4195_v13  ;;  %v1310_v18 = vrot.slane %v1260_v21, 2  ;;  %v3271_v21 = vmul.f32 %v2773_v9, %v2658_v2  ;;  %v3278_v13 = vmul.f32 %v2773_v9, %v3063_v54 }
 0x10c   : > { %v3237_v29 = vpop.permute.xlu1 %451  ;;  %v1311_v6 = vsel %vm996_vm0, %v1302_v39, %v1310_v18  ;;  %4196 = vst [vmem:[#allocation16_spill] sm:$0xff] %v3278_v13  ;;  %1914 = vmatpush1.bf16.msra.mxu0 %v2415_v3  ;;  %v4137_v3 = vrot.slane %v3271_v21, 2  ;;  %v4136_v33 = vrot.slane %v3278_v13, 2  ;;  %v4199_v13 = vrot.slane %v3210_v57, 2 }
 0x10d   : > { %4194 = vst [vmem:[#allocation15_spill] sm:$0xff] %v3237_v29 }
 0x10e   : > { %1161 = vrot.lane.b32.xlu1 %v1130_v48, %s2471_s9  ;;  %709 = vrot.lane.b32.xlu0 %v675_v62, %s2471_s9  ;;  %v805_v48 = vmul.f32 %v2782_v10, %v2769_v7  ;;  %v2417_v62 = vld [vmem:[%s4121_s2 + $0x10c] ss:$12 sps:$4 sm:$0xff]  }
 0x10f   : > { %1915 = vmatprep.subr.bf16.mxu0 %v2417_v62  ;;  %v2425_v62 = vld [vmem:[%s4121_s2 + $0x120] ss:$12 sps:$4 sm:$0xff]  }
 0x110   : > { %v3266_v25 = vpop.permute.xlu1 %330  ;;  %v847_v23 = vrot.slane %v805_v48, 1  ;;  %1916 = vmatpush1.bf16.msra.mxu0 %v2420_v45  ;;  %v1299_v48 = vsel %vm996_vm0, %v4137_v3, %v4136_v33 }
 0x111   : > { %1917 = vmatprep.subr.bf16.mxu0 %v2422_v14  ;;  %v2430_v14 = vld [vmem:[%s4121_s2 + $0x138] ss:$12 sps:$4 sm:$0xff]  }
 0x112   : > { %1159 = vrot.lane.b32.xlu1 %v1128_v47, %s2471_s9  ;;  %1342 = vrot.lane.b32.xlu0 %v1311_v6, %s2472_s10  ;;  %v1301_v47 = vsel %vm996_vm0, %v4138_v8, %v4197_v40  ;;  %v1319_v6 = vsel %vm996_vm0, %v1310_v18, %v1318_v63  ;;  %v849_v45 = vsel %vm554_vm3, %v847_v23, %v848_v36  ;;  %v844_v40 = vrot.slane %v804_v17, 1  ;;  %v3374_v8 = vld [vmem:[%s2577_s8 + $0x88] sm:$0x3] }
 0x113   : > { %v289_v17 = vmul.f32 %v2681_v12, %v2754_v61  ;;  %v650_v59 = vmul.f32 %v2738_v49, %v3374_v8 }
 0x114   : > { %v3290_v26 = vpop.permute.xlu1 %338  ;;  %v3292_v39 = vpop.permute.xlu0 %308  ;;  %1918 = vmatpush1.bf16.msra.mxu0 %v2425_v62  ;;  %v846_v23 = vsel %vm554_vm3, %v844_v40, %v845_v50  ;;  %v3344_v62 = vld [vmem:[%s2577_s8 + $0x60] sm:$0xff] }
 0x116   : > { %1332 = vrot.lane.b32.xlu1 %v1301_v47, %s2472_s10  ;;  %1350 = vrot.lane.b32.xlu0 %v1319_v6, %s2472_s10  ;;  %v1076_v47 = vmul.f32 %v2802_v20, %v2769_v7  ;;  %v2427_v6 = vld [vmem:[%s4121_s2 + $0x13c] ss:$12 sps:$4 sm:$0xff]  }
 0x117   : > { %1919 = vmatprep.subr.bf16.mxu0 %v2427_v6  ;;  %v2432_v6 = vld [vmem:[%s4121_s2 + $0x154] ss:$12 sps:$4 sm:$0xff]  }
 0x118   : > { %v3312_v18 = vpop.permute.xlu1 %459  ;;  %v3314_v63 = vpop.permute.xlu0 %437  ;;  %1920 = vmatpush1.bf16.msra.mxu0 %v2430_v14  ;;  %v1247_v14 = vmul.f32 %v2811_v27, %v2769_v7 }
 0x119   : > { %1921 = vmatprep.subr.bf16.mxu0 %v2432_v6 }
 0x11a   : > { %1330 = vrot.lane.b32.xlu1 %v1299_v48, %s2472_s10  ;;  %882 = vrot.lane.b32.xlu0 %v849_v45, %s2472_s10  ;;  %v1118_v48 = vrot.slane %v1076_v47, 2  ;;  %v1075_v45 = vmul.f32 %v2765_v37, %v2627_v52  ;;  %v288_v47 = vmul.f32 %v2631_v55, %v3344_v62 }
 0x11c   : > { %v3334_v42 = vpop.permute.xlu1 %467  ;;  %v3336_v36 = vpop.permute.xlu0 %312  ;;  %v1120_v33 = vsel %vm996_vm0, %v1118_v48, %v1119_v35  ;;  %v1115_v3 = vrot.slane %v1075_v45, 2  ;;  %1922 = vmatpush1.bf16.msra.mxu0 %v2435_v19  ;;  %v2440_v48 = vld [vmem:[%s4121_s2 + $0x168] ss:$12 sps:$4 sm:$0xff]  }
 0x11d   : > { %1923 = vmatprep.subr.bf16.mxu0 %v2437_v43 }
 0x11e   : > { %334 = vrot.lane.b32.xlu1 %v289_v17, %s2471_s9  ;;  %880 = vrot.lane.b32.xlu0 %v846_v23, %s2472_s10  ;;  %v3365_v17 = vld [vmem:[%s4120_s1 + $0x9] sm:$0x7]  ;;  %v219_v23 = vld [vmem:[%s4120_s1] sm:$0x7] }
 0x11f   : > { %4198 = vst [vmem:[#allocation17_spill] sm:$0xff] %v3365_v17  ;;  %v3378_v30 = vrot.slane %v3365_v17, %v2551_v22  ;;  %v3383_v6 = vrot.slane %v219_v23, %v2551_v22  ;;  %v3389_v35 = vrot.slane %v219_v23, %v2513_v4  ;;  %v1246_v22 = vmul.f32 %v2773_v9, %v2627_v52 }
 0x120   : > { %v317_v50 = vpop.permute.xlu1 %316  ;;  %v3356_v40 = vpop.permute.xlu0 %320  ;;  %v1117_v4 = vsel %vm996_vm0, %v1115_v3, %v4199_v13  ;;  %1924 = vmatpush1.bf16.msra.mxu0 %v2440_v48  ;;  %v417_v13 = vmul.f32 %v2636_v58, %v3344_v62  ;;  %v3426_v3 = vmul.f32 %v2721_v32, %v3344_v62  ;;  %v4201_v48 = vrot.slane %v3241_v56, 2 }
 0x121   : > { %v3410_v29 = vmul.f32 %v3378_v30, %v2658_v2  ;;  %v239_v49 = vmul.f32 %v3383_v6, %v2658_v2  ;;  %v240_v57 = vmul.f32 %v3389_v35, %v2676_v11  ;;  %v1286_v2 = vrot.slane %v1246_v22, 2 }
 0x122   : > { %332 = vrot.lane.b32.xlu1 %v288_v47, %s2471_s9  ;;  %1153 = vrot.lane.b32.xlu0 %v1120_v33, %s2471_s9  ;;  %v418_v33 = vmul.f32 %v2691_v15, %v2754_v61  ;;  %v1289_v47 = vrot.slane %v1247_v14, 2  ;;  %v3414_v61 = vmul.f32 %v3378_v30, %v3063_v54  ;;  %v693_v22 = vrot.slane %v3426_v3, 1  ;;  %v2450_v3 = vld [vmem:[%s2577_s8 + $0x10] sm:$0xff] }
 0x123   : > { %v556_v46 = vrot.slane %v3410_v29, 1  ;;  %v4212_v29 = vrot.slane %v3079_v53, 1 }
 0x124   : > { %v446_v45 = vpop.permute.xlu1 %445  ;;  %v3394_v19 = vpop.permute.xlu0 %441  ;;  %4200 = vst [vmem:[#allocation18_spill] sm:$0xff] %v3414_v61  ;;  %v4152_v0 = vrot.slane %v3414_v61, 1 }
 0x126   : > { %463 = vrot.lane.b32.xlu1 %v418_v33, %s2472_s10  ;;  %1151 = vrot.lane.b32.xlu0 %v1117_v4, %s2471_s9  ;;  %v1291_v4 = vsel %vm996_vm0, %v1289_v47, %v4201_v48  ;;  %v703_v33 = vrot.slane %v650_v59, 1  ;;  %v3443_v59 = vrot.slane %v219_v23, %v2515_v5  ;;  %v4203_v47 = vrot.slane %v2763_v1, 1 }
 0x127   : > { %v701_v48 = vrot.slane %v649_v44, 1  ;;  %v565_v1 = vsel %vm554_vm3, %v556_v46, %v4152_v0 }
 0x128   : > { %v319_v14 = vpop.permute.xlu1 %318  ;;  %v3428_v43 = vpop.permute.xlu0 %449 }
 0x129   : > { %v344_v11 = vsel %vm340_vm4, %v317_v50, %v319_v14  ;;  %v345_v51 = vsel %vm340_vm4, %v319_v14, %v3356_v40  ;;  %v704_v14 = vsel %vm554_vm3, %v4203_v47, %v703_v33  ;;  %v285_v33 = vmul.f32 %v2681_v12, %v2751_v60 }
 0x12a   : > { %v368_v17 = vadd.f32 %v344_v11, %v239_v49  ;;  %461 = vrot.lane.b32.xlu1 %v417_v13, %s2472_s10  ;;  %1324 = vrot.lane.b32.xlu0 %v1291_v4, %s2472_s10  ;;  %v369_v32 = vadd.f32 %v345_v51, %v240_v57  ;;  %v821_v49 = vmul.f32 %v2782_v10, %v3374_v8  ;;  %v4204_v4 = vrot.slane %v3271_v21, 2 }
 0x12b   : > { %v244_v10 = vmul.f32 %v3443_v59, %v2694_v16  ;;  %v702_v16 = vsel %vm554_vm3, %v693_v22, %v701_v48  ;;  %v247_v12 = vmul.f32 %v3443_v59, %v2706_v24  ;;  %v284_v48 = vmul.f32 %v2631_v55, %v3063_v54 }
 0x12c   : > { %v448_v56 = vpop.permute.xlu1 %447  ;;  %v3446_v50 = vpop.permute.xlu0 %328  ;;  %v1288_v51 = vsel %vm996_vm0, %v1286_v2, %v4204_v4  ;;  %v874_v2 = vrot.slane %v821_v49, 1 }
 0x12d   : > { %4202 = vst [vmem:[#allocation19_spill] sm:$0xff] %v3446_v50  ;;  %v473_v13 = vsel %vm469_vm5, %v446_v45, %v448_v56  ;;  %v474_v23 = vsel %vm469_vm5, %v448_v56, %v3428_v43  ;;  %v820_v56 = vmul.f32 %v2729_v34, %v3406_v41 }
 0x12e   : > { %v497_v57 = vadd.f32 %v473_v13, %v368_v17  ;;  %v3464_v44 = vadd.f32 %v474_v23, %v369_v32  ;;  %735 = vrot.lane.b32.xlu1 %v704_v14, %s2471_s9  ;;  %1322 = vrot.lane.b32.xlu0 %v1288_v51, %s2472_s10  ;;  %v3478_v17 = vmul.f32 %v2729_v34, %v3344_v62 }
 0x12f   : > { %v349_v32 = vsel %vm340_vm4, %v3446_v50, %v3266_v25  ;;  %v4207_v25 = vrot.slane %v2819_v38, 1  ;;  %v872_v4 = vrot.slane %v820_v56, 1  ;;  %v1092_v51 = vmul.f32 %v2802_v20, %v3374_v8  ;;  %v2431_v50 = vld [vmem:[%s4121_s2 + $0x80] ss:$12 sps:$4 sm:$0xff]  }
 0x130   : > { %v3470_v45 = vpop.permute.xlu1 %715  ;;  %v3472_v21 = vpop.permute.xlu0 %336  ;;  %v3480_v11 = vadd.f32 %v565_v1, %v497_v57  ;;  %v373_v47 = vadd.f32 %v349_v32, %v244_v10  ;;  %v864_v34 = vrot.slane %v3478_v17, 1  ;;  %v1091_v20 = vmul.f32 %v2765_v37, %v3406_v41 }
 0x131   : > { %4205 = vst [vmem:[#allocation20_spill] sm:$0xff] %v3472_v21  ;;  %v875_v13 = vsel %vm554_vm3, %v4207_v25, %v874_v2  ;;  %v352_v23 = vsel %vm340_vm4, %v3472_v21, %v3290_v26  ;;  %v414_v26 = vmul.f32 %v2691_v15, %v2751_v60  ;;  %v1145_v2 = vrot.slane %v1092_v51, 2 }
 0x132   : > { %733 = vrot.lane.b32.xlu1 %v702_v16, %s2471_s9  ;;  %326 = vrot.lane.b32.xlu0 %v285_v33, %s2471_s9  ;;  %v376_v55 = vadd.f32 %v352_v23, %v247_v12  ;;  %v873_v33 = vsel %vm554_vm3, %v864_v34, %v872_v4  ;;  %v524_v32 = vmul.f32 %v3378_v30, %v2627_v52 }
 0x133   : > { %v236_v60 = vmul.f32 %v3383_v6, %v2627_v52  ;;  %v413_v56 = vmul.f32 %v2636_v58, %v3063_v54  ;;  %v1263_v25 = vmul.f32 %v2811_v27, %v3374_v8 }
 0x134   : > { %v3494_v14 = vpop.permute.xlu1 %723  ;;  %v3496_v49 = vpop.permute.xlu0 %457  ;;  %v555_v23 = vrot.slane %v524_v32, 1  ;;  %v4210_v32 = vld [vmem:[#allocation5_spill] sm:$0xff] }
 0x135   : > { %4206 = vst [vmem:[#allocation21_spill] sm:$0xff] %v3496_v49  ;;  %v478_v24 = vsel %vm469_vm5, %v3496_v49, %v3312_v18  ;;  %v3524_v18 = vmul.f32 %v2765_v37, %v3344_v62  ;;  %v237_v37 = vmul.f32 %v3389_v35, %v2769_v7  ;;  %v4209_v7 = vrot.slane %v2844_v31, 2 }
 0x136   : > { %v3512_v38 = vadd.f32 %v478_v24, %v373_v47  ;;  %906 = vrot.lane.b32.xlu1 %v875_v13, %s2472_s10  ;;  %324 = vrot.lane.b32.xlu0 %v284_v48, %s2471_s9  ;;  %v1143_v47 = vrot.slane %v1091_v20, 2  ;;  %v1316_v51 = vrot.slane %v1263_v25, 2  ;;  %v3567_v31 = vmul.f32 %v2773_v9, %v3344_v62  ;;  %v4213_v25 = vld [vmem:[#allocation17_spill] sm:$0xff] }
 0x137   : > { %v1135_v12 = vrot.slane %v3524_v18, 2  ;;  %v1146_v48 = vsel %vm996_vm0, %v4209_v7, %v1145_v2  ;;  %v1262_v20 = vmul.f32 %v2773_v9, %v3406_v41  ;;  %v4211_v9 = vrot.slane %v2865_v28, 2  ;;  %v4214_v7 = vld [vmem:[#allocation6_spill] sm:$0xff] }
 0x138   : > { %v3516_v1 = vpop.permute.xlu1 %886  ;;  %v3518_v57 = vpop.permute.xlu0 %465 }
 0x139   : > { %4208 = vst [vmem:[#allocation22_spill] sm:$0xff] %v3518_v57  ;;  %v481_v10 = vsel %vm469_vm5, %v3518_v57, %v3334_v42 }
 0x13a   : > { %v3536_v15 = vadd.f32 %v481_v10, %v376_v55  ;;  %904 = vrot.lane.b32.xlu1 %v873_v33, %s2472_s10  ;;  %455 = vrot.lane.b32.xlu0 %v414_v26, %s2472_s10  ;;  %v557_v10 = vsel %vm554_vm3, %v555_v23, %v556_v46  ;;  %v1317_v46 = vsel %vm996_vm0, %v4211_v9, %v1316_v51  ;;  %v4217_v9 = vld [vmem:[#allocation10_spill] sm:$0xff] }
 0x13c   : > { %v3544_v42 = vpop.permute.xlu1 %894  ;;  %v311_v16 = vpop.permute.xlu0 %310 }
 0x13d   : > { %v341_v13 = vsel %vm340_vm4, %v3292_v39, %v311_v16  ;;  %v342_v52 = vsel %vm340_vm4, %v311_v16, %v3336_v36  ;;  %v1144_v39 = vsel %vm996_vm0, %v1135_v12, %v1143_v47  ;;  %v694_v16 = vsel %vm554_vm3, %v4212_v29, %v693_v22 }
 0x13e   : > { %v365_v24 = vadd.f32 %v341_v13, %v236_v60  ;;  %1177 = vrot.lane.b32.xlu1 %v1146_v48, %s2471_s9  ;;  %453 = vrot.lane.b32.xlu0 %v413_v56, %s2472_s10  ;;  %v366_v58 = vadd.f32 %v342_v52, %v237_v37  ;;  %v1306_v56 = vrot.slane %v3567_v31, 2  ;;  %v1314_v47 = vrot.slane %v1262_v20, 2  ;;  %v2451_v48 = vld [vmem:[%s2577_s8 + $0x30] sm:$0xff]  ;;  %v4215_v20 = vld [vmem:[#allocation11_spill] sm:$0xff] }
 0x13f   : > { %v3600_v13 = vrot.slane %v4213_v25, %v2515_v5  ;;  %v241_v51 = vmul.f32 %v2451_v48, %v3443_v59 }
 0x140   : > { %v3560_v4 = vpop.permute.xlu1 %1157  ;;  %v440_v27 = vpop.permute.xlu0 %439  ;;  %v1315_v53 = vsel %vm996_vm0, %v1306_v56, %v1314_v47  ;;  %v4219_v47 = vld [vmem:[#allocation14_spill] sm:$0xff] }
 0x141   : > { %v470_v55 = vsel %vm469_vm5, %v3314_v63, %v440_v27  ;;  %v471_v26 = vsel %vm469_vm5, %v440_v27, %v3394_v19  ;;  %v526_v22 = vmul.f32 %v2450_v3, %v3600_v13  ;;  %v529_v23 = vmul.f32 %v2451_v48, %v3600_v13  ;;  %v3625_v27 = vld [vmem:[%s4120_s1 + $0x12] sm:$0x7] }
 0x142   : > { %v494_v33 = vadd.f32 %v470_v55, %v365_v24  ;;  %v3578_v2 = vadd.f32 %v471_v26, %v366_v58  ;;  %1175 = vrot.lane.b32.xlu1 %v1144_v39, %s2471_s9  ;;  %727 = vrot.lane.b32.xlu0 %v4210_v32, %s2471_s9  ;;  %v2452_v24 = vld [vmem:[%s2577_s8 + $0x50] sm:$0xff]  ;;  %v238_v39 = vmul.f32 %v2450_v3, %v3443_v59 }
 0x143   : > { %v3620_v58 = vmul.f32 %v2452_v24, %v3600_v13  ;;  %v3647_v59 = vrot.slane %v3625_v27, %v2515_v5  ;;  %v562_v17 = vrot.slane %v529_v23, 1 }
 0x144   : > { %v3583_v63 = vpop.permute.xlu1 %1165  ;;  %v3585_v60 = vpop.permute.xlu0 %713  ;;  %v3587_v37 = vadd.f32 %v557_v10, %v494_v33  ;;  %v343_v10 = vsel %vm340_vm4, %v3336_v36, %v4215_v20  ;;  %v4216_v33 = vld [vmem:[#allocation12_spill] sm:$0xff]  ;;  %v472_v36 = vsel %vm469_vm5, %v3394_v19, %v4219_v47 }
 0x145   : > { %v346_v32 = vsel %vm340_vm4, %v3356_v40, %v4216_v33  ;;  %v367_v20 = vadd.f32 %v343_v10, %v238_v39  ;;  %v968_v19 = vmul.f32 %v2450_v3, %v3647_v59  ;;  %v971_v23 = vmul.f32 %v2451_v48, %v3647_v59 }
 0x146   : > { %1348 = vrot.lane.b32.xlu1 %v1317_v46, %s2472_s10  ;;  %725 = vrot.lane.b32.xlu0 %v694_v16, %s2471_s9  ;;  %v4218_v46 = vrot.slane %v4217_v9, 1  ;;  %v561_v16 = vrot.slane %v526_v22, 1  ;;  %v3669_v39 = vmul.f32 %v2452_v24, %v3647_v59 }
 0x147   : > { %v496_v9 = vadd.f32 %v472_v36, %v367_v20 }
 0x148   : > { %v3604_v28 = vpop.permute.xlu1 %1328  ;;  %v3606_v52 = vpop.permute.xlu0 %721  ;;  %v865_v29 = vsel %vm554_vm3, %v4218_v46, %v864_v34  ;;  %v370_v34 = vadd.f32 %v346_v32, %v241_v51  ;;  %v563_v47 = vsel %vm554_vm3, %v561_v16, %v562_v17  ;;  %v743_v32 = vsel %vm340_vm4, %v3585_v60, %v3470_v45  ;;  %v4222_v16 = vld [vmem:[#allocation13_spill] sm:$0xff] }
 0x149   : > { %v746_v3 = vsel %vm340_vm4, %v3606_v52, %v3494_v14  ;;  %v4223_v36 = vrot.slane %v4222_v16, 2  ;;  %v596_v24 = vadd.f32 %v563_v47, %v496_v9  ;;  %v1004_v14 = vrot.slane %v971_v23, 2  ;;  %v4225_v47 = vld [vmem:[#allocation8_spill] sm:$0xff] }
 0x14a   : > { %1346 = vrot.lane.b32.xlu1 %v1315_v53, %s2472_s10  ;;  %898 = vrot.lane.b32.xlu0 %v4214_v7, %s2472_s10  ;;  %v4220_v53 = vld [vmem:[#allocation15_spill] sm:$0xff]  ;;  %v4154_v7 = vrot.slane %v3620_v58, 1  ;;  %v4153_v18 = vrot.slane %v3669_v39, 2 }
 0x14b   : > { %v475_v40 = vsel %vm469_vm5, %v3428_v43, %v4220_v53  ;;  %v1136_v48 = vsel %vm996_vm0, %v4223_v36, %v1135_v12  ;;  %v767_v20 = vadd.f32 %v743_v32, %v596_v24  ;;  %v2453_v24 = vld [vmem:[%s2577_s8 + $0x28] sm:$0xff] }
 0x14c   : > { %v3629_v55 = vpop.permute.xlu1 %1336  ;;  %v3631_v26 = vpop.permute.xlu0 %884  ;;  %v499_v46 = vadd.f32 %v475_v40, %v370_v34  ;;  %v569_v43 = vsel %vm554_vm3, %v562_v17, %v4154_v7  ;;  %v1003_v40 = vrot.slane %v968_v19, 2 }
 0x14d   : > { %v914_v17 = vsel %vm469_vm5, %v3631_v26, %v3516_v1 }
 0x14e   : > { %896 = vrot.lane.b32.xlu0 %v865_v29, %s2472_s10  ;;  %v4221_v29 = vld [vmem:[#allocation7_spill] sm:$0xff]  ;;  %v599_v53 = vadd.f32 %v569_v43, %v499_v46  ;;  %v4224_v46 = vld [vmem:[#allocation2_spill] sm:$0xff]  ;;  %v938_v1 = vadd.f32 %v914_v17, %v767_v20  ;;  %v1011_v43 = vsel %vm996_vm0, %v1004_v14, %v4153_v18  ;;  %v4234_v18 = vld [vmem:[#allocation9_spill] sm:$0xff] }
 0x14f   : > { %v538_v7 = vmul.f32 %v3600_v13, %v4234_v18  ;;  %v980_v21 = vmul.f32 %v3647_v59, %v4234_v18 }
 0x150   : > { %v3656_v22 = vpop.permute.xlu1 %731  ;;  %v3658_v33 = vpop.permute.xlu0 %892  ;;  %v770_v34 = vadd.f32 %v746_v3, %v599_v53  ;;  %v4227_v3 = vld [vmem:[#allocation16_spill] sm:$0xff] }
 0x151   : > { %v917_v45 = vsel %vm469_vm5, %v3658_v33, %v3544_v42  ;;  %v1005_v42 = vsel %vm996_vm0, %v1003_v40, %v1004_v14  ;;  %v3728_v40 = vld [vmem:[%s2577_s8 + $0x48] sm:$0xff]  ;;  %v580_v49 = vrot.slane %v538_v7, 1 }
 0x152   : > { %1169 = vrot.lane.b32.xlu0 %v4221_v29, %s2471_s9  ;;  %v3700_v29 = vrot.slane %v4213_v25, %v4224_v46  ;;  %v941_v19 = vadd.f32 %v917_v45, %v770_v34  ;;  %v4228_v25 = vrot.slane %v4227_v3, 2  ;;  %4229 = vst [vmem:[#allocation17_spill] sm:$0xff] %v3728_v40  ;;  %v1038_v17 = vadd.f32 %v1005_v42, %v938_v1 }
 0x154   : > { %v3671_v51 = vpop.permute.xlu1 %739  ;;  %v3673_v10 = vpop.permute.xlu0 %1155  ;;  %v1307_v16 = vsel %vm996_vm0, %v4228_v25, %v1306_v56  ;;  %v3725_v53 = vmul.f32 %v2453_v24, %v3700_v29  ;;  %v3732_v31 = vmul.f32 %v3728_v40, %v3700_v29  ;;  %v1041_v56 = vadd.f32 %v1011_v43, %v941_v19 }
 0x155   : > { %v1185_v36 = vsel %vm340_vm4, %v3673_v10, %v3560_v4 }
 0x156   : > { %1167 = vrot.lane.b32.xlu0 %v1136_v48, %s2471_s9  ;;  %4230 = vst [vmem:[#allocation6_spill] sm:$0xff] %v3732_v31  ;;  %v1209_v45 = vadd.f32 %v1185_v36, %v1038_v17  ;;  %v4151_v1 = vrot.slane %v3732_v31, 1  ;;  %v2411_v36 = vld [vmem:[%s4121_s2 + $0x20] ss:$12 sps:$4 sm:$0xff]  }
 0x158   : > { %v3694_v12 = vpop.permute.xlu1 %902  ;;  %v3696_v9 = vpop.permute.xlu0 %1163 }
 0x159   : > { %v1188_v48 = vsel %vm340_vm4, %v3696_v9, %v3583_v63 }
 0x15a   : > { %1340 = vrot.lane.b32.xlu0 %v4225_v47, %s2472_s10  ;;  %v1212_v63 = vadd.f32 %v1188_v48, %v1041_v56  ;;  %v4155_v47 = vrot.slane %v3725_v53, 1  ;;  %v4232_v48 = vmov 0  }
 0x15c   : > { %v3708_v23 = vpop.permute.xlu1 %910  ;;  %v3710_v32 = vpop.permute.xlu0 %1326 }
 0x15d   : > { %4226 = vst [vmem:[#allocation5_spill] sm:$0xff] %v3710_v32  ;;  %v1356_v4 = vsel %vm469_vm5, %v3710_v32, %v3604_v28  ;;  %v2406_v28 = vld [vmem:[%s4121_s2 + $0x8] ss:$12 sps:$4 sm:$0xff]  }
 0x15e   : > { %1338 = vrot.lane.b32.xlu0 %v1307_v16, %s2472_s10  ;;  %v1380_v19 = vadd.f32 %v1356_v4, %v1209_v45  ;;  %v567_v16 = vsel %vm554_vm3, %v4155_v47, %v4151_v1  ;;  %v2414_v45 = vld [vmem:[%s4121_s2 + $0xf8] ss:$12 sps:$4 sm:$0xff]   ;;  %v2456_v1 = vld [vmem:[%s2577_s8 + $0x70] sm:$0xff]  ;;  %s2340_s10 = smul.u32 96, %s4261_s16 }
 0x15f   : > { %v598_v56 = vadd.f32 %v567_v16, %v3464_v44  ;;  %v535_v0 = vmul.f32 %v2456_v1, %v3600_v13  ;;  %v977_v57 = vmul.f32 %v2456_v1, %v3647_v59 }
 0x160   : > { %v3738_v14 = vpop.permute.xlu1 %1173  ;;  %v3740_v20 = vpop.permute.xlu0 %1334  ;;  %s4101_s12 = scalar_lea.vmem %s4123_s4, %s2340_s10 }
 0x161   : > { %v1359_v34 = vsel %vm469_vm5, %v3740_v20, %v3629_v55  ;;  %v2409_v55 = vld [vmem:[%s4121_s2 + $0xe0] ss:$12 sps:$4 sm:$0xff]  }
 0x162   : > { %v1383_v42 = vadd.f32 %v1359_v34, %v1212_v63 }
 0x164   : > { %v3750_v43 = vpop.permute.xlu1 %1181  ;;  %v3752_v3 = vpop.permute.xlu0 %729  ;;  %v3754_v25 = vpack.c.bf16 %v1383_v42, %v1380_v19  ;;  %v2416_v19 = vld [vmem:[%s4121_s2 + $0x38] ss:$12 sps:$4 sm:$0xff]  }
 0x166   : > { %4231 = vst [vmem:[#allocation11_spill] sm:$0xff] %v3754_v25  ;;  %1979 = vmatmul.mubr.bf16.vlgmr.msra.gmra.mrb[0].mxu1 %v3754_v25 }
 0x167   : > { %2266 = vmatpush3.bf16.msra.mxu1 %v2406_v28  ;;  %1988 = vmatprep.mubr.bf16.mxu1 %v4232_v48  ;;  %v2419_v28 = vld [vmem:[%s4121_s2 + $0x110] ss:$12 sps:$4 sm:$0xff]  }
 0x168   : > { %v720_v17 = vpop.permute.xlu1 %719  ;;  %v3770_v4 = vpop.permute.xlu0 %737  ;;  %2267 = vmatprep.subr.bf16.mxu1 %v2409_v55  ;;  %v4233_v48 = vld [vmem:[#allocation4_spill] sm:$0xff] }
 0x169   : > { %v745_v63 = vsel %vm340_vm4, %v720_v17, %v3606_v52  ;;  %v2421_v52 = vld [vmem:[%s4121_s2 + $0x50] ss:$12 sps:$4 sm:$0xff]  }
 0x16a   : > { %v769_v34 = vadd.f32 %v745_v63, %v598_v56  ;;  %v3798_v56 = vrot.slane %v3625_v27, %v4233_v48  ;;  %v3804_v63 = vld [vmem:[%s2577_s8 + $0x8] sm:$0xff]  ;;  %v2457_v48 = vld [vmem:[%s2577_s8 + $0x20] sm:$0xff] }
 0x16b   : > { %2268 = vmatpush3.bf16.msra.mxu1 %v2411_v36  ;;  %v3794_v36 = vrot.slane %v3625_v27, %v4224_v46  ;;  %v2426_v27 = vld [vmem:[%s4121_s2 + $0x68] ss:$12 sps:$4 sm:$0xff]  }
 0x16c   : > { %v718_v42 = vpop.permute.xlu1 %717  ;;  %v3780_v44 = vpop.permute.xlu0 %900  ;;  %2269 = vmatprep.subr.bf16.mxu1 %v2414_v45  ;;  %v2424_v45 = vld [vmem:[%s4121_s2 + $0x128] ss:$12 sps:$4 sm:$0xff]   ;;  %v3828_v25 = vmul.f32 %v2457_v48, %v3798_v56  ;;  %v3832_v13 = vmul.f32 %v3798_v56, %v3063_v54  ;;  %v4236_v54 = vrot.slane %v3620_v58, 1 }
 0x16d   : > { %v3820_v5 = vmul.f32 %v2453_v24, %v3794_v36  ;;  %v3824_v46 = vmul.f32 %v3728_v40, %v3794_v36  ;;  %v574_v24 = vrot.slane %v535_v0, 1  ;;  %v2434_v0 = vld [vmem:[%s4121_s2 + $0x158] ss:$12 sps:$4 sm:$0xff]   ;;  %v744_v7 = vsel %vm340_vm4, %v718_v42, %v720_v17 }
 0x16e   : > { %v4239_v42 = vrot.slane %v3832_v13, 2 }
 0x16f   : > { %2270 = vmatpush3.bf16.msra.mxu1 %v2416_v19  ;;  %v525_v19 = vmul.f32 %v3804_v63, %v3700_v29 }
 0x170   : > { %v3788_v55 = vpop.permute.xlu1 %1344  ;;  %v3790_v16 = vpop.permute.xlu0 %908  ;;  %2271 = vmatprep.subr.bf16.mxu1 %v2419_v28 }
 0x171   : > { %v558_v31 = vrot.slane %v525_v19, 1 }
 0x173   : > { %2272 = vmatpush3.bf16.msra.mxu1 %v2421_v52  ;;  %v2429_v52 = vld [vmem:[%s4121_s2 + $0x140] ss:$12 sps:$4 sm:$0xff]  }
 0x174   : > { %v3815_v28 = vpop.permute.xlu1 %1352  ;;  %v3817_v47 = vpop.permute.xlu0 %1171  ;;  %2273 = vmatprep.subr.bf16.mxu1 %v2424_v45  ;;  %v575_v45 = vsel %vm554_vm3, %v4236_v54, %v574_v24 }
 0x175   : > { %v602_v54 = vadd.f32 %v575_v45, %v3512_v38 }
 0x177   : > { %2274 = vmatpush3.bf16.msra.mxu1 %v2426_v27  ;;  %v4235_v27 = vrot.slane %v3725_v53, 1  ;;  %v768_v53 = vadd.f32 %v744_v7, %v3480_v11  ;;  %v2439_v11 = vld [vmem:[%s4121_s2 + $0x170] ss:$12 sps:$4 sm:$0xff]  }
 0x178   : > { %v891_v40 = vpop.permute.xlu1 %890  ;;  %v3840_v48 = vpop.permute.xlu0 %1179  ;;  %2275 = vmatprep.subr.bf16.mxu1 %v2429_v52  ;;  %v581_v52 = vsel %vm554_vm3, %v574_v24, %v580_v49  ;;  %v4238_v49 = vrot.slane %v3820_v5, 2 }
 0x179   : > { %v916_v19 = vsel %vm469_vm5, %v891_v40, %v3658_v33  ;;  %v560_v61 = vsel %vm554_vm3, %v558_v31, %v4235_v27  ;;  %v2436_v33 = vld [vmem:[%s4121_s2 + $0x98] ss:$12 sps:$4 sm:$0xff]   ;;  %v920_v27 = vsel %vm469_vm5, %v3780_v44, %v3694_v12  ;;  %v3907_v12 = vld [vmem:[%s4121_s2 + $0x188] ss:$12 sps:$4 sm:$0xff]  }
 0x17a   : > { %v940_v32 = vadd.f32 %v916_v19, %v769_v34  ;;  %v595_v17 = vadd.f32 %v560_v61, %v3578_v2  ;;  %v4237_v34 = vrot.slane %v3824_v46, 2  ;;  %v749_v61 = vsel %vm340_vm4, %v3752_v3, %v3656_v22 }
 0x17b   : > { %2276 = vmatpush3.bf16.msra.mxu1 %v2431_v50  ;;  %v4240_v50 = vrot.slane %v3828_v25, 2  ;;  %v752_v2 = vsel %vm340_vm4, %v3770_v4, %v3671_v51  ;;  %v923_v22 = vsel %vm469_vm5, %v3790_v16, %v3708_v23  ;;  %v1016_v51 = vrot.slane %v977_v57, 2 }
 0x17c   : > { %v889_v31 = vpop.permute.xlu1 %888  ;;  %v712_v58 = vpop.permute.xlu0 %711  ;;  %v1009_v1 = vsel %vm996_vm0, %v4238_v49, %v4237_v34  ;;  %2277 = vmatprep.subr.bf16.mxu1 %v2434_v0  ;;  %v605_v0 = vadd.f32 %v581_v52, %v3536_v15  ;;  %v1022_v34 = vrot.slane %v980_v21, 2  ;;  %v773_v38 = vadd.f32 %v749_v61, %v602_v54  ;;  %v2458_v54 = vld [vmem:[%s2577_s8] sm:$0xff] }
 0x17d   : > { %v1007_v59 = vsel %vm996_vm0, %v4240_v50, %v4239_v42  ;;  %v915_v18 = vsel %vm469_vm5, %v889_v31, %v891_v40  ;;  %v742_v24 = vsel %vm340_vm4, %v712_v58, %v3585_v60  ;;  %v2441_v60 = vld [vmem:[%s4121_s2 + $0xb0] ss:$12 sps:$4 sm:$0xff]   ;;  %v1040_v45 = vadd.f32 %v1009_v1, %v940_v32 }
 0x17e   : > { %v939_v7 = vadd.f32 %v915_v18, %v768_v53  ;;  %v766_v19 = vadd.f32 %v742_v24, %v595_v17  ;;  %v776_v40 = vadd.f32 %v752_v2, %v605_v0  ;;  %v944_v57 = vadd.f32 %v920_v27, %v773_v38 }
 0x17f   : > { %2278 = vmatpush3.bf16.msra.mxu1 %v2436_v33  ;;  %v4241_v31 = vrot.slane %v3669_v39, 2  ;;  %v1023_v17 = vsel %vm996_vm0, %v1016_v51, %v1022_v34  ;;  %v1194_v42 = vsel %vm340_vm4, %v3840_v48, %v3750_v43  ;;  %v966_v43 = vmul.f32 %v2458_v54, %v3798_v56 }
 0x180   : > { %v3900_v15 = vpop.permute.xlu1 %1161  ;;  %v710_v52 = vpop.permute.xlu0 %709  ;;  %v3902_v53 = vadd.f32 %v1007_v59, %v939_v7  ;;  %2279 = vmatprep.subr.bf16.mxu1 %v2439_v11  ;;  %v947_v23 = vadd.f32 %v923_v22, %v776_v40 }
 0x181   : > { %v1187_v21 = vsel %vm340_vm4, %v3900_v15, %v3696_v9  ;;  %v1017_v32 = vsel %vm996_vm0, %v4241_v31, %v1016_v51  ;;  %v1191_v9 = vsel %vm340_vm4, %v3817_v47, %v3738_v14  ;;  %v967_v14 = vmul.f32 %v3804_v63, %v3794_v36 }
 0x182   : > { %v3912_v33 = vadd.f32 %v1187_v21, %v1040_v45  ;;  %v1044_v39 = vadd.f32 %v1017_v32, %v944_v57  ;;  %v1047_v50 = vadd.f32 %v1023_v17, %v947_v23  ;;  %v741_v51 = vsel %vm340_vm4, %v710_v52, %v712_v58 }
 0x183   : > { %2280 = vmatpush3.bf16.msra.mxu1 %v2441_v60  ;;  %v1000_v60 = vrot.slane %v967_v14, 2  ;;  %v997_v38 = vrot.slane %v966_v43, 2  ;;  %v765_v63 = vadd.f32 %v741_v51, %v3587_v37  ;;  %v4242_v57 = vrot.slane %v3820_v5, 2 }
 0x184   : > { %v1160_v49 = vpop.permute.xlu1 %1159  ;;  %v3918_v1 = vpop.permute.xlu0 %1342  ;;  %2303 = vmatprep.subr.bf16.mxu1 %v3907_v12  ;;  %v1215_v11 = vadd.f32 %v1191_v9, %v1044_v39  ;;  %v1218_v61 = vadd.f32 %v1194_v42, %v1047_v50  ;;  %v4243_v58 = vrot.slane %v3828_v25, 2  ;;  %v3955_v37 = vmul.f32 %v3378_v30, %v3344_v62 }
 0x185   : > { %v1362_v59 = vsel %vm469_vm5, %v3918_v1, %v3788_v55  ;;  %v1002_v23 = vsel %vm996_vm0, %v1000_v60, %v4242_v57  ;;  %v536_v9 = vmul.f32 %v3378_v30, %v3406_v41  ;;  %v245_v25 = vmul.f32 %v3383_v6, %v3344_v62 }
 0x186   : > { %v1386_v0 = vadd.f32 %v1362_v59, %v1215_v11  ;;  %v999_v52 = vsel %vm996_vm0, %v997_v38, %v4243_v58  ;;  %v570_v59 = vrot.slane %v3955_v37, 1  ;;  %v1186_v54 = vsel %vm340_vm4, %v1160_v49, %v3900_v15 }
 0x187   : > { %v576_v11 = vrot.slane %v536_v9, 1 }
 0x188   : > { %v1333_v2 = vpop.permute.xlu1 %1332  ;;  %v3930_v18 = vpop.permute.xlu0 %1350 }
 0x189   : > { %v1365_v24 = vsel %vm469_vm5, %v3930_v18, %v3815_v28  ;;  %v1358_v30 = vsel %vm469_vm5, %v1333_v2, %v3740_v20  ;;  %v577_v51 = vsel %vm554_vm3, %v570_v59, %v576_v11  ;;  %v2443_v11 = vld [vmem:[%s4121_s2 + $0x1a0] ss:$12 sps:$4 sm:$0xff]  }
 0x18a   : > { %v1389_v7 = vadd.f32 %v1365_v24, %v1218_v61  ;;  %v2459_v24 = vld [vmem:[%s2577_s8 + $0x68] sm:$0xff]  ;;  %v1382_v15 = vadd.f32 %v1358_v30, %v3912_v33  ;;  %v4009_v30 = vmul.f32 %v3798_v56, %v3344_v62  ;;  %v2444_v62 = vld [vmem:[%s4121_s2 + $0x1b8] ss:$12 sps:$4 sm:$0xff]  }
 0x18b   : > { %v3967_v14 = vmul.f32 %v2459_v24, %v3700_v29  ;;  %v246_v43 = vmul.f32 %v2459_v24, %v3389_v35 }
 0x18c   : > { %v1331_v27 = vpop.permute.xlu1 %1330  ;;  %v883_v22 = vpop.permute.xlu0 %882  ;;  %v3939_v55 = vpack.c.bf16 %v1389_v7, %v1386_v0 }
 0x18d   : > { %v913_v34 = vsel %vm469_vm5, %v883_v22, %v3631_v26  ;;  %v1357_v57 = vsel %vm469_vm5, %v1331_v27, %v1333_v2 }
 0x18e   : > { %v937_v28 = vadd.f32 %v913_v34, %v766_v19  ;;  %1989 = vmatmul.mubr.bf16.gmra.mrb[4].mxu1 %v3939_v55  ;;  %v4244_v34 = vld [vmem:[#allocation20_spill] sm:$0xff] }
 0x190   : > { %v335_v40 = vpop.permute.xlu1 %334  ;;  %v881_v45 = vpop.permute.xlu0 %880  ;;  %v1037_v19 = vadd.f32 %v1002_v23, %v937_v28  ;;  %v4246_v23 = vld [vmem:[#allocation22_spill] sm:$0xff] }
 0x191   : > { %v912_v21 = vsel %vm469_vm5, %v881_v45, %v883_v22  ;;  %v351_v60 = vsel %vm340_vm4, %v335_v40, %v4244_v34  ;;  %v572_v45 = vrot.slane %v3967_v14, 1 }
 0x192   : > { %v936_v26 = vadd.f32 %v912_v21, %v765_v63  ;;  %v1210_v21 = vadd.f32 %v1186_v54, %v3902_v53 }
 0x194   : > { %v333_v31 = vpop.permute.xlu1 %332  ;;  %v1154_v32 = vpop.permute.xlu0 %1153  ;;  %v1036_v17 = vadd.f32 %v999_v52, %v936_v26  ;;  %v375_v52 = vadd.f32 %v351_v60, %v246_v43 }
 0x195   : > { %v1184_v5 = vsel %vm340_vm4, %v1154_v32, %v3673_v10  ;;  %v350_v61 = vsel %vm340_vm4, %v333_v31, %v335_v40  ;;  %v537_v10 = vmul.f32 %v3700_v29, %v3374_v8  ;;  %v4245_v29 = vld [vmem:[#allocation5_spill] sm:$0xff] }
 0x196   : > { %v1208_v42 = vadd.f32 %v1184_v5, %v1037_v19  ;;  %v374_v0 = vadd.f32 %v350_v61, %v245_v25  ;;  %v1381_v5 = vadd.f32 %v1357_v57, %v1210_v21 }
 0x197   : > { %v578_v58 = vrot.slane %v537_v10, 1  ;;  %v978_v10 = vmul.f32 %v3798_v56, %v3406_v41  ;;  %v1012_v56 = vrot.slane %v4009_v30, 2  ;;  %v4251_v30 = vld [vmem:[#allocation21_spill] sm:$0xff] }
 0x198   : > { %v464_v39 = vpop.permute.xlu1 %463  ;;  %v1152_v50 = vpop.permute.xlu0 %1151 }
 0x199   : > { %v1183_v20 = vsel %vm340_vm4, %v1152_v50, %v1154_v32  ;;  %v480_v40 = vsel %vm469_vm5, %v464_v39, %v4246_v23  ;;  %v579_v53 = vsel %vm554_vm3, %v572_v45, %v578_v58  ;;  %v979_v50 = vmul.f32 %v3794_v36, %v3374_v8 }
 0x19a   : > { %v1207_v26 = vadd.f32 %v1183_v20, %v1036_v17  ;;  %v3998_v17 = vmul.f32 %v2459_v24, %v3794_v36 }
 0x19c   : > { %v462_v7 = vpop.permute.xlu1 %461  ;;  %v1325_v22 = vpop.permute.xlu0 %1324  ;;  %v1014_v43 = vrot.slane %v3998_v17, 2 }
 0x19d   : > { %v479_v38 = vsel %vm469_vm5, %v462_v7, %v464_v39  ;;  %v1355_v28 = vsel %vm469_vm5, %v1325_v22, %v4245_v29  ;;  %v1018_v7 = vrot.slane %v978_v10, 2 }
 0x19e   : > { %v503_v49 = vadd.f32 %v479_v38, %v374_v0  ;;  %v1379_v63 = vadd.f32 %v1355_v28, %v1208_v42  ;;  %v504_v42 = vadd.f32 %v480_v40, %v375_v52  ;;  %v1020_v0 = vrot.slane %v979_v50, 2  ;;  %v2445_v38 = vld [vmem:[%s4121_s2 + $0x1d0] ss:$12 sps:$4 sm:$0xff]   ;;  %v2446_v40 = vld [vmem:[%s4121_s2 + $0x1e8] ss:$12 sps:$4 sm:$0xff]  }
 0x1a0   : > { %v736_v31 = vpop.permute.xlu1 %735  ;;  %v1323_v19 = vpop.permute.xlu0 %1322  ;;  %v1391_v32 = vpack.c.bf16 %v1382_v15, %v1379_v63  ;;  %v603_v9 = vadd.f32 %v577_v51, %v503_v49  ;;  %v604_v54 = vadd.f32 %v579_v53, %v504_v42  ;;  %v2460_v51 = vld [vmem:[%s2577_s8 + $0x40] sm:$0xff]  ;;  %v1021_v28 = vsel %vm996_vm0, %v1014_v43, %v1020_v0 }
 0x1a1   : > { %v1354_v33 = vsel %vm469_vm5, %v1323_v19, %v1325_v22  ;;  %v751_v61 = vsel %vm340_vm4, %v736_v31, %v3770_v4  ;;  %v242_v34 = vmul.f32 %v2460_v51, %v3383_v6  ;;  %v1019_v15 = vsel %vm996_vm0, %v1012_v56, %v1018_v7 }
 0x1a2   : > { %v1378_v25 = vadd.f32 %v1354_v33, %v1207_v26  ;;  %1925 = vmatprep.mubr.bf16.mxu0 %v1391_v32  ;;  %2031 = vmatprep.mubr.bf16.mxu1 %v1391_v32  ;;  %v775_v8 = vadd.f32 %v751_v61, %v604_v54  ;;  %v4247_v26 = vld [vmem:[#allocation18_spill] sm:$0xff] }
 0x1a4   : > { %v734_v2 = vpop.permute.xlu1 %733  ;;  %v3995_v27 = vpop.permute.xlu0 %326  ;;  %v1390_v39 = vpack.c.bf16 %v1381_v5, %v1378_v25  ;;  %v2447_v25 = vld [vmem:[%s4121_s2 + $0x200] ss:$12 sps:$4 sm:$0xff]  }
 0x1a5   : > { %v750_v4 = vsel %vm340_vm4, %v734_v2, %v736_v31  ;;  %v4248_v31 = vrot.slane %v4247_v26, 1 }
 0x1a6   : > { %1926 = vmatmul.mubr.bf16.vlgmr.msra.gmra.mrb[0].mxu0 %v1390_v39  ;;  %2032 = vmatmul.mubr.bf16.vlgmr.msra.gmra.mrb[8].mxu1 %v1390_v39  ;;  %v774_v22 = vadd.f32 %v750_v4, %v603_v9  ;;  %v4250_v39 = vld [vmem:[#allocation19_spill] sm:$0xff] }
 0x1a7   : > { %2304 = vmatpush3.bf16.msra.mxu1 %v3907_v12  ;;  %v571_v19 = vsel %vm554_vm3, %v4248_v31, %v570_v59  ;;  %v2448_v59 = vld [vmem:[%s4121_s2 + $0x218] ss:$12 sps:$4 sm:$0xff]   ;;  %v348_v50 = vsel %vm340_vm4, %v3995_v27, %v4250_v39 }
 0x1a8   : > { %v907_v36 = vpop.permute.xlu1 %906  ;;  %v325_v24 = vpop.permute.xlu0 %324  ;;  %2305 = vmatprep.subr.bf16.mxu1 %v2443_v11 }
 0x1a9   : > { %v922_v41 = vsel %vm469_vm5, %v907_v36, %v3790_v16  ;;  %v347_v29 = vsel %vm340_vm4, %v325_v24, %v3995_v27  ;;  %v4252_v27 = vld [vmem:[#allocation6_spill] sm:$0xff] }
 0x1aa   : > { %v946_v12 = vadd.f32 %v922_v41, %v775_v8  ;;  %v371_v6 = vadd.f32 %v347_v29, %v242_v34  ;;  %v2449_v8 = vld [vmem:[%s4121_s2 + $0x230] ss:$12 sps:$4 sm:$0xff]   ;;  %v4253_v0 = vrot.slane %v4252_v27, 1 }
 0x1ab   : > { %2306 = vmatpush3.bf16.msra.mxu1 %v2443_v11 }
 0x1ac   : > { %v905_v60 = vpop.permute.xlu1 %904  ;;  %v456_v20 = vpop.permute.xlu0 %455  ;;  %2307 = vmatprep.subr.bf16.mxu1 %v2444_v62  ;;  %v1046_v21 = vadd.f32 %v1021_v28, %v946_v12  ;;  %v4254_v12 = vrot.slane %v3832_v13, 2 }
 0x1ad   : > { %v921_v16 = vsel %vm469_vm5, %v905_v60, %v907_v36  ;;  %v477_v10 = vsel %vm469_vm5, %v456_v20, %v4251_v30 }
 0x1ae   : > { %v945_v49 = vadd.f32 %v921_v16, %v774_v22  ;;  %v1013_v22 = vsel %vm996_vm0, %v4254_v12, %v1012_v56 }
 0x1af   : > { %2308 = vmatpush3.bf16.msra.mxu1 %v2444_v62 }
 0x1b0   : > { %v1178_v63 = vpop.permute.xlu1 %1177  ;;  %v454_v57 = vpop.permute.xlu0 %453  ;;  %v1045_v23 = vadd.f32 %v1019_v15, %v945_v49  ;;  %2309 = vmatprep.subr.bf16.mxu1 %v2445_v38 }
 0x1b1   : > { %v1193_v58 = vsel %vm340_vm4, %v1178_v63, %v3840_v48  ;;  %v476_v52 = vsel %vm469_vm5, %v454_v57, %v456_v20  ;;  %v4249_v48 = vld [vmem:[#allocation17_spill] sm:$0xff] }
 0x1b2   : > { %v1217_v32 = vadd.f32 %v1193_v58, %v1046_v21  ;;  %v500_v9 = vadd.f32 %v476_v52, %v371_v6  ;;  %v243_v53 = vmul.f32 %v4249_v48, %v3389_v35  ;;  %v4257_v48 = vld [vmem:[#allocation4_spill] sm:$0xff] }
 0x1b3   : > { %2310 = vmatpush3.bf16.msra.mxu1 %v2445_v38 }
 0x1b4   : > { %v1176_v33 = vpop.permute.xlu1 %1175  ;;  %v728_v5 = vpop.permute.xlu0 %727  ;;  %v600_v42 = vadd.f32 %v571_v19, %v500_v9  ;;  %2311 = vmatprep.subr.bf16.mxu1 %v2446_v40  ;;  %v372_v35 = vadd.f32 %v348_v50, %v243_v53 }
 0x1b5   : > { %v748_v41 = vsel %vm340_vm4, %v728_v5, %v3752_v3  ;;  %v4255_v3 = vrot.slane %v3824_v46, 2 }
 0x1b6   : > { %v501_v24 = vadd.f32 %v477_v10, %v372_v35 }
 0x1b7   : > { %2312 = vmatpush3.bf16.msra.mxu1 %v2446_v40  ;;  %v1015_v29 = vsel %vm996_vm0, %v4255_v3, %v1014_v43 }
 0x1b8   : > { %v1349_v37 = vpop.permute.xlu1 %1348  ;;  %v726_v2 = vpop.permute.xlu0 %725  ;;  %2313 = vmatprep.subr.bf16.mxu1 %v2447_v25 }
 0x1b9   : > { %v1364_v11 = vsel %vm469_vm5, %v1349_v37, %v3930_v18  ;;  %v747_v36 = vsel %vm340_vm4, %v726_v2, %v728_v5  ;;  %v573_v18 = vsel %vm554_vm3, %v4253_v0, %v572_v45 }
 0x1ba   : > { %v1388_v61 = vadd.f32 %v1364_v11, %v1217_v32  ;;  %v771_v62 = vadd.f32 %v747_v36, %v600_v42  ;;  %v601_v51 = vadd.f32 %v573_v18, %v501_v24 }
 0x1bb   : > { %2314 = vmatpush3.bf16.msra.mxu1 %v2447_v25  ;;  %v1492_v25 = vld [vmem:[%s4122_s3] sm:$0x7] }
 0x1bc   : > { %v899_v54 = vpop.permute.xlu0 %898  ;;  %2315 = vmatprep.subr.bf16.mxu1 %v2448_v59  ;;  %v772_v45 = vadd.f32 %v748_v41, %v601_v51  ;;  %v1347_v28 = vpop.permute.xlu1 %1346  ;;  %v1497_v53 = vrot.slane %v1492_v25, %v4257_v48 }
 0x1bd   : > { %v919_v14 = vsel %vm469_vm5, %v899_v54, %v3780_v44  ;;  %v1192_v44 = vsel %vm340_vm4, %v1176_v33, %v1178_v63  ;;  %v1363_v46 = vsel %vm469_vm5, %v1347_v28, %v1349_v37  ;;  %v4256_v63 = vld [vmem:[#allocation11_spill] sm:$0xff]  ;;  %v4258_v37 = vld [vmem:[#allocation2_spill] sm:$0xff] }
 0x1be   : > { %v943_v38 = vadd.f32 %v919_v14, %v772_v45  ;;  %v1216_v57 = vadd.f32 %v1192_v44, %v1045_v23  ;;  %v1501_v2 = vrot.slane %v1492_v25, %v4258_v37 }
 0x1bf   : > { %2316 = vmatpush3.bf16.msra.mxu1 %v2448_v59 }
 0x1c0   : > { %v897_v4 = vpop.permute.xlu0 %896  ;;  %2317 = vmatprep.subr.bf16.mxu1 %v2449_v8  ;;  %v1043_v56 = vadd.f32 %v1015_v29, %v943_v38  ;;  %v1387_v52 = vadd.f32 %v1363_v46, %v1216_v57 }
 0x1c1   : > { %v918_v7 = vsel %vm469_vm5, %v897_v4, %v899_v54 }
 0x1c2   : > { %v942_v34 = vadd.f32 %v918_v7, %v771_v62 }
 0x1c3   : > { %2318 = vmatpush3.bf16.msra.mxu1 %v2449_v8 }
 0x1c4   : > { %v1170_v60 = vpop.permute.xlu0 %1169  ;;  %v1042_v20 = vadd.f32 %v1013_v22, %v942_v34 }
 0x1c5   : > { %v1190_v13 = vsel %vm340_vm4, %v1170_v60, %v3817_v47 }
 0x1c6   : > { %v1214_v15 = vadd.f32 %v1190_v13, %v1043_v56 }
 0x1c8   : > { %v1168_v16 = vpop.permute.xlu0 %1167 }
 0x1c9   : > { %v1189_v6 = vsel %vm340_vm4, %v1168_v16, %v1170_v60 }
 0x1ca   : > { %v1213_v43 = vadd.f32 %v1189_v6, %v1042_v20  ;;  %v4259_v6 = vld [vmem:[#allocation3_spill] sm:$0xff] }
 0x1cc   : > { %v1341_v49 = vpop.permute.xlu0 %1340 }
 0x1cd   : > { %v1361_v21 = vsel %vm469_vm5, %v1341_v49, %v3918_v1 }
 0x1ce   : > { %v1385_v17 = vadd.f32 %v1361_v21, %v1214_v15  ;;  %v1505_v21 = vrot.slane %v1492_v25, %v4259_v6 }
 0x1d0   : > { %v1339_v40 = vpop.permute.xlu0 %1338  ;;  %v1394_v58 = vpack.c.bf16 %v1388_v61, %v1385_v17 }
 0x1d1   : > { %v1360_v47 = vsel %vm469_vm5, %v1339_v40, %v1341_v49 }
 0x1d2   : > { %v1384_v26 = vadd.f32 %v1360_v47, %v1213_v43  ;;  %1935 = vmatprep.mubr.bf16.mxu0 %v1394_v58  ;;  %2039 = vmatprep.mubr.bf16.mxu1 %v1394_v58 }
 0x1d4   : > { %v1393_v31 = vpack.c.bf16 %v1387_v52, %v1384_v26 }
 0x1d6   : > { %1936 = vmatmul.mubr.bf16.gmra.mrb[4].mxu0 %v1393_v31  ;;  %2040 = vmatmul.mubr.bf16.gmra.mrb[12].mxu1 %v1393_v31 }
 0x1d7   : > { %2319 = vmatprep.mubr.bf16.mxu1 %v4256_v63 }
 0x1de   : > { %2320 = vmatmul.mubr.bf16.vlgmr.msra.gmra.mrb[16].mxu1 %v3939_v55 }
 0x239   : > { %v1980_v1 = vpop.f32.mrb[0].mxu1 }
 0x23a   : > { %v1982_v19 = vpop.f32.mrb[1].mxu1 }
 0x23b   : > { %v1984_v23 = vpop.f32.mrb[2].mxu1 }
 0x23c   : > { %v1986_v32 = vpop.f32.mrb[3].mxu1 }
 0x261   : > { %v1990_v9 = vpop.f32.mrb[4].mxu1 }
 0x262   : > { %v1992_v33 = vpop.f32.mrb[5].mxu1 }
 0x263   : > { %v1994_v5 = vpop.f32.mrb[6].mxu1 }
 0x264   : > { %v1996_v42 = vpop.f32.mrb[7].mxu1 }
 0x279   : > { %v1927_v59 = vpop.f32.mrb[0].mxu0  ;;  %v2281_v39 = vpop.f32.mrb[8].mxu1 }
 0x27a   : > { %v1928_v55 = vadd.f32 %v1927_v59, %v1497_v53  ;;  %v1929_v50 = vpop.f32.mrb[1].mxu0  ;;  %v2282_v11 = vpop.f32.mrb[9].mxu1 }
 0x27b   : > { %v1930_v61 = vadd.f32 %v1929_v50, %v1501_v2  ;;  %v2283_v30 = vadd.f32 %v2282_v11, %v2281_v39  ;;  %v1931_v10 = vpop.f32.mrb[2].mxu0  ;;  %v2284_v35 = vpop.f32.mrb[10].mxu1 }
 0x27c   : > { %v1981_v54 = vadd.f32 %v1980_v1, %v1928_v55  ;;  %v1932_v8 = vadd.f32 %v1931_v10, %v1497_v53  ;;  %v1933_v36 = vpop.f32.mrb[3].mxu0  ;;  %v2285_v24 = vpop.f32.mrb[11].mxu1 }
 0x27d   : > { %v1983_v27 = vadd.f32 %v1982_v19, %v1930_v61  ;;  %v1934_v0 = vadd.f32 %v1933_v36, %v1501_v2  ;;  %v2286_v18 = vadd.f32 %v2285_v24, %v2284_v35  ;;  %v2034_v26 = vadd.f32 %v2283_v30, %v1505_v21 }
 0x27e   : > { %v2097_v62 = vmax.f32 %v1981_v54, 0.0  ;;  %v1985_v4 = vadd.f32 %v1984_v23, %v1932_v8 }
 0x27f   : > { %v2098_v41 = vmax.f32 %v1983_v27, 0.0  ;;  %v1987_v7 = vadd.f32 %v1986_v32, %v1934_v0  ;;  %v2037_v32 = vadd.f32 %v2286_v18, %v1505_v21 }
 0x280   : > { %2109 = vst [vmem:[%s4101_s12] sm:$0xff] %v2097_v62  ;;  %v2100_v12 = vmax.f32 %v1985_v4, 0.0 }
 0x281   : > { %2110 = vst [vmem:[%s4101_s12 + $0x8] sm:$0xff] %v2098_v41  ;;  %v2101_v22 = vmax.f32 %v1987_v7, 0.0 }
 0x282   : > { %2112 = vst [vmem:[%s4101_s12 + $0x18] sm:$0xff] %v2100_v12 }
 0x283   : > { %2113 = vst [vmem:[%s4101_s12 + $0x20] sm:$0xff] %v2101_v22 }
 0x2a9   : > { %v1937_v51 = vpop.f32.mrb[4].mxu0  ;;  %v2287_v34 = vpop.f32.mrb[12].mxu1 }
 0x2aa   : > { %v1938_v14 = vadd.f32 %v1937_v51, %v1497_v53  ;;  %v1939_v45 = vpop.f32.mrb[5].mxu0  ;;  %v2288_v60 = vpop.f32.mrb[13].mxu1 }
 0x2ab   : > { %v1940_v20 = vadd.f32 %v1939_v45, %v1501_v2  ;;  %v2289_v38 = vadd.f32 %v2288_v60, %v2287_v34  ;;  %v1941_v3 = vpop.f32.mrb[6].mxu0  ;;  %v2290_v29 = vpop.f32.mrb[14].mxu1 }
 0x2ac   : > { %v1991_v16 = vadd.f32 %v1990_v9, %v1938_v14  ;;  %v1942_v13 = vadd.f32 %v1941_v3, %v1497_v53  ;;  %v1943_v56 = vpop.f32.mrb[7].mxu0  ;;  %v2291_v28 = vpop.f32.mrb[15].mxu1 }
 0x2ad   : > { %v1993_v15 = vadd.f32 %v1992_v33, %v1940_v20  ;;  %v1944_v49 = vadd.f32 %v1943_v56, %v1501_v2  ;;  %v2292_v44 = vadd.f32 %v2291_v28, %v2290_v29  ;;  %v2042_v58 = vadd.f32 %v2289_v38, %v1505_v21 }
 0x2ae   : > { %v2103_v17 = vmax.f32 %v1991_v16, 0.0  ;;  %v1995_v46 = vadd.f32 %v1994_v5, %v1942_v13 }
 0x2af   : > { %v2104_v57 = vmax.f32 %v1993_v15, 0.0  ;;  %v1997_v43 = vadd.f32 %v1996_v42, %v1944_v49  ;;  %v2045_v1 = vadd.f32 %v2292_v44, %v1505_v21 }
 0x2b0   : > { %2115 = vst [vmem:[%s4101_s12 + $0x30] sm:$0xff] %v2103_v17  ;;  %v2106_v40 = vmax.f32 %v1995_v46, 0.0 }
 0x2b1   : > { %2116 = vst [vmem:[%s4101_s12 + $0x38] sm:$0xff] %v2104_v57  ;;  %v2107_v47 = vmax.f32 %v1997_v43, 0.0  ;;  %v2321_v52 = vpop.f32.mrb[16].mxu1 }
 0x2b2   : > { %2118 = vst [vmem:[%s4101_s12 + $0x48] sm:$0xff] %v2106_v40  ;;  %v2091_v31 = vadd.f32 %v2321_v52, %v2042_v58  ;;  %v2082_v63 = vpop.f32.mrb[17].mxu1 }
 0x2b3   : > { %2119 = vst [vmem:[%s4101_s12 + $0x50] sm:$0xff] %v2107_v47  ;;  %v2083_v19 = vadd.f32 %v2082_v63, %v2034_v26  ;;  %v2322_v23 = vpop.f32.mrb[18].mxu1 }
 0x2b4   : > { %v2105_v9 = vmax.f32 %v2091_v31, 0.0  ;;  %v2094_v33 = vadd.f32 %v2322_v23, %v2045_v1  ;;  %v2085_v5 = vpop.f32.mrb[19].mxu1 }
 0x2b5   : > { %v2099_v42 = vmax.f32 %v2083_v19, 0.0  ;;  %v2086_v25 = vadd.f32 %v2085_v5, %v2037_v32 }
 0x2b6   : > { %2117 = vst [vmem:[%s4101_s12 + $0x40] sm:$0xff] %v2105_v9  ;;  %v2108_v48 = vmax.f32 %v2094_v33, 0.0 }
 0x2b7   : > { %2111 = vst [vmem:[%s4101_s12 + $0x10] sm:$0xff] %v2099_v42  ;;  %v2102_v53 = vmax.f32 %v2086_v25, 0.0 }
 0x2b8   : > { %2120 = vst [vmem:[%s4101_s12 + $0x58] sm:$0xff] %v2108_v48 }
 0x2b9   : > { %2114 = vst [vmem:[%s4101_s12 + $0x28] sm:$0xff] %v2102_v53 }
 0x2ba PF: > { %s14_s15 = sadd.s32 1, %s2467_s15  }
 0x2bb   : > { %p11_p4 = scmp.ge.s32.totalorder %s14_s15, 4  }
 0x2bd   :  { %13 = sbr.rel (!%p11_p4) target bundleno = 1 (0x1), region = 74 }

// kernel: tile.138
= control target key start
LH: loop header
LB: loop body
LE: loop exit
PB: predicated region body
PF: predicated region fallthrough
CT: control target
= control target key end

     0   :  { %s40_s0 = inlined_call_operand.vmem [shape: f32[48], index: 0, kind: input, shape index: {}]   ;;  %s41_s1 = inlined_call_operand.vmem [shape: f32[32,48], index: 1, kind: output, shape index: {}]  }
   0x1   :  { %v4_v0 = vld [vmem:[%s40_s0] ss:$0 sm:$0xff] }
   0x2   :  { %5 = vst [vmem:[%s41_s1] sm:$0xff] %v4_v0  ;;  %12 = vst [vmem:[%s41_s1 + $0x8] sm:$0xff] %v4_v0 }
   0x3   :  { %13 = vst [vmem:[%s41_s1 + $0x10] sm:$0xff] %v4_v0  ;;  %14 = vst [vmem:[%s41_s1 + $0x18] sm:$0xff] %v4_v0 }

// kernel: tile.139
= control target key start
LH: loop header
LB: loop body
LE: loop exit
PB: predicated region body
PF: predicated region fallthrough
CT: control target
= control target key end

     0   :  { %vm9_vm0 = vcmask 1043459   ;;  %s12_s10 = smov 3  ;;  %s15_s11 = smov 12  ;;  %vm17_vm1 = vcmask 1043458   ;;  %vm19_vm2 = vcmask 130048   ;;  %vm23_vm3 = vcmask 261120   ;;  %s374_s0 = inlined_call_operand.vmem [shape: f32[32,48], index: 0, kind: input, shape index: {}]   ;;  %s375_s1 = inlined_call_operand.vmem [shape: f32[1,1536], index: 1, kind: output, shape index: {}]  }
   0x1   :  { %v213_v0 = vld [vmem:[%s374_s0 + $0x15] ss:$-8 sm:$0x7]   ;;  %v214_v1 = vld [vmem:[%s374_s0 + $0x1a] sm:$0x8]   ;;  %s34_s20 = smov 3 }
   0x2   :  { %v10_v2 = vsel %vm9_vm0, %v214_v1, %v213_v0  ;;  %v222_v3 = vld [vmem:[%s374_s0 + $0x1c] sm:$0x8]   ;;  %v215_v4 = vld [vmem:[%s374_s0 + $0xd] ss:$-8 sm:%s12_s10]   ;;  %s37_s21 = smov 12  ;;  %s42_s26 = smov 3 }
   0x3   :  { %v216_v5 = vld [vmem:[%s374_s0 + $0x2d] ss:$-8 sm:%s15_s11]   ;;  %v221_v7 = vld [vmem:[%s374_s0 + $0x17] ss:$-8 sm:$0x7]   ;;  %s45_s27 = smov 12 }
   0x4   :  { %v18_v6 = vsel %vm17_vm1, %v216_v5, %v215_v4  ;;  %v67_v9 = vsel %vm9_vm0, %v222_v3, %v221_v7  ;;  %v217_v10 = vld [vmem:[%s374_s0 + $0xa] ss:$-8 sm:%s34_s20]   ;;  %s249_s28 = smov 112   ;;  %s250_s29 = smov 80   ;;  %v228_v18 = vld [vmem:[%s374_s0 + $0x1b] sm:$0x8]  }
   0x5   :  { %v20_v8 = vsel %vm19_vm2, %v18_v6, %v10_v2  ;;  %v218_v11 = vld [vmem:[%s374_s0 + $0x2a] ss:$-8 sm:%s37_s21]   ;;  %68 = vrot.lane.b32.xlu1 %v67_v9, %s250_s29  ;;  %s76_s3 = smov 3  ;;  %s79_s8 = smov 12  ;;  %vm3_vm4 = vcmask 392192   ;;  %vm28_vm5 = vcmask 1048448  }
   0x6   :  { %21 = vrot.lane.b32.xlu0 %v20_v8, %s249_s28  ;;  %v40_v12 = vsel %vm17_vm1, %v218_v11, %v217_v10  ;;  %v219_v13 = vld [vmem:[%s374_s0 + $0x2] ss:$24 sm:%s42_s26]   ;;  %s91_s11 = smov 3  ;;  %s94_s12 = smov 12  ;;  %vm70_vm6 = vcmask 1048192   ;;  %vm58_vm7 = vcmask 1048320  }
   0x7   :  { %v220_v14 = vld [vmem:[%s374_s0 + $0x22] ss:$-8 sm:%s45_s27]   ;;  %v223_v15 = vld [vmem:[%s374_s0 + $0xc] ss:$-8 sm:%s76_s3]   ;;  %s251_s19 = smov 96   ;;  %s252_s20 = smov 64  }
   0x8   :  { %v48_v16 = vsel %vm17_vm1, %v220_v14, %v219_v13  ;;  %v224_v17 = vld [vmem:[%s374_s0 + $0x2c] ss:$-8 sm:%s79_s8]   ;;  %v225_v21 = vld [vmem:[%s374_s0 + $0x1] ss:$24 sm:%s91_s11]   ;;  %s118_s23 = smov 3  ;;  %s121_s24 = smov 12 }
   0x9   :  { %v50_v19 = vsel %vm23_vm3, %v48_v16, %v40_v12  ;;  %v82_v20 = vsel %vm17_vm1, %v224_v17, %v223_v15  ;;  %v226_v22 = vld [vmem:[%s374_s0 + $0x21] ss:$-8 sm:%s94_s12]   ;;  %v227_v23 = vld [vmem:[%s374_s0 + $0x16] ss:$-8 sm:$0x7]   ;;  %s254_s2 = smov 32  }
   0xa   :  { %51 = vrot.lane.b32.xlu0 %v50_v19, %s251_s19  ;;  %83 = vrot.lane.b32.xlu1 %v82_v20, %s252_s20  ;;  %v97_v24 = vsel %vm17_vm1, %v226_v22, %v225_v21  ;;  %v109_v25 = vsel %vm9_vm0, %v228_v18, %v227_v23  ;;  %v229_v26 = vld [vmem:[%s374_s0 + $0xb] ss:$-8 sm:%s118_s23]   ;;  %s255_s3 = smov 16   ;;  %vm85_vm8 = vcmask 916992   ;;  %vm100_vm9 = vcmask 785792  }
   0xb   :  { %v230_v27 = vld [vmem:[%s374_s0 + $0x2b] ss:$-8 sm:%s121_s24]   ;;  %v2_v28 = vld [vmem:[%s374_s0] ss:$8 sm:$0xf]   ;;  %s253_s0 = smov 48  }
   0xc   :  { %4 = vst.msk [vmem:[#allocation0] ss:$24 sm:$0xf] %vm3_vm4, %v2_v28   ;;  %v124_v29 = vsel %vm17_vm1, %v230_v27, %v229_v26  ;;  %vm112_vm10 = vcmask 654592   ;;  %vm127_vm11 = vcmask 523392  }
   0xe   :  { %98 = vrot.lane.b32.xlu0 %v97_v24, %s253_s0  ;;  %110 = vrot.lane.b32.xlu1 %v109_v25, %s254_s2 }
  0x12   :  { %125 = vrot.lane.b32.xlu0 %v124_v29, %s255_s3 }
  0x77   :  { %v69_v31 = vpop.permute.xlu1 %68  }
  0x78   :  { %v22_v30 = vpop.permute.xlu0 %21  }
  0x79   :  { %30 = vst.msk [vmem:[#allocation0 + $0x20] ss:$-24 sm:$0x3] %vm28_vm5, %v22_v30   ;;  %32 = vst.msk [vmem:[#allocation0 + $0x80] ss:$-24 sm:$0xc] %vm28_vm5, %v22_v30  }
  0x7a   :  { %25 = vst.msk [vmem:[#allocation0 + $0x40] ss:$-24 sm:$0x7] %vm23_vm3, %v22_v30   ;;  %27 = vst.msk [vmem:[#allocation0 + $0x55] sm:$0x8] %vm23_vm3, %v22_v30  }
  0x7b   :  { %72 = vst.msk [vmem:[#allocation0 + $0x40] ss:$-24 sm:$0x7] %vm70_vm6, %v69_v31   ;;  %74 = vst.msk [vmem:[#allocation0 + $0x55] sm:$0x8] %vm70_vm6, %v69_v31  }
  0x7c   :  { %v52_v32 = vpop.permute.xlu0 %51   ;;  %v84_v33 = vpop.permute.xlu1 %83  }
  0x7d   :  { %55 = vst.msk [vmem:[#allocation0 + $0x20] ss:$-24 sm:$0x3] %vm19_vm2, %v52_v32   ;;  %57 = vst.msk [vmem:[#allocation0 + $0x80] ss:$-24 sm:$0xc] %vm19_vm2, %v52_v32  }
  0x7e   :  { %59 = vst.msk [vmem:[#allocation0] ss:$72 sm:$0x3] %vm58_vm7, %v52_v32   ;;  %61 = vst.msk [vmem:[#allocation0 + $0x60] ss:$-24 sm:$0xc] %vm58_vm7, %v52_v32  }
  0x7f   :  { %87 = vst.msk [vmem:[#allocation0 + $0x20] ss:$-24 sm:$0x3] %vm85_vm8, %v84_v33   ;;  %89 = vst.msk [vmem:[#allocation0 + $0x80] ss:$-24 sm:$0xc] %vm85_vm8, %v84_v33  }
  0x80   :  { %v99_v34 = vpop.permute.xlu0 %98   ;;  %v111_v35 = vpop.permute.xlu1 %110  }
  0x81   :  { %101 = vst.msk [vmem:[#allocation0] ss:$72 sm:$0x3] %vm100_vm9, %v99_v34   ;;  %103 = vst.msk [vmem:[#allocation0 + $0x60] ss:$-24 sm:$0xc] %vm100_vm9, %v99_v34  }
  0x82   :  { %114 = vst.msk [vmem:[#allocation0 + $0x40] ss:$-24 sm:$0x7] %vm112_vm10, %v111_v35   ;;  %116 = vst.msk [vmem:[#allocation0 + $0x55] sm:$0x8] %vm112_vm10, %v111_v35  }
  0x84   :  { %v126_v36 = vpop.permute.xlu0 %125  }
  0x85   :  { %129 = vst.msk [vmem:[#allocation0 + $0x20] ss:$-24 sm:$0x3] %vm127_vm11, %v126_v36   ;;  %131 = vst.msk [vmem:[#allocation0 + $0x80] ss:$-24 sm:$0xc] %vm127_vm11, %v126_v36  }
  0x88   :  { %v135_v37 = vld [vmem:[#allocation0] sm:$0x1]  ;;  %v150_v38 = vld [vmem:[#allocation0 + $0x18] sm:$0x1]  ;;  %v168_v39 = vld [vmem:[#allocation0 + $0x30] sm:$0x1] }
  0x89   :  { %137 = vst [vmem:[%s375_s1] sm:$0x1] %v135_v37  ;;  %233 = vst [vmem:[%s375_s1 + $0x3] sm:$0x1] %v150_v38  ;;  %v186_v40 = vld [vmem:[#allocation0 + $0x48] sm:$0x1] }
  0x8a   :  { %236 = vst [vmem:[%s375_s1 + $0x6] sm:$0x1] %v168_v39  ;;  %v144_v41 = vld [vmem:[#allocation0 + $0x10] sm:$0x1]  ;;  %v162_v42 = vld [vmem:[#allocation0 + $0x28] sm:$0x1] }
  0x8b   :  { %239 = vst [vmem:[%s375_s1 + $0x9] sm:$0x1] %v186_v40  ;;  %232 = vst [vmem:[%s375_s1 + $0x2] sm:$0x1] %v144_v41  ;;  %v180_v43 = vld [vmem:[#allocation0 + $0x40] sm:$0x1] }
  0x8c   :  { %235 = vst [vmem:[%s375_s1 + $0x5] sm:$0x1] %v162_v42  ;;  %v198_v44 = vld [vmem:[#allocation0 + $0x58] sm:$0x1]  ;;  %238 = vst [vmem:[%s375_s1 + $0x8] sm:$0x1] %v180_v43 }
  0x8d   :  { %241 = vst [vmem:[%s375_s1 + $0xb] sm:$0x1] %v198_v44  ;;  %v139_v45 = vld [vmem:[#allocation0 + $0x8] sm:$0x1]  ;;  %v156_v46 = vld [vmem:[#allocation0 + $0x20] sm:$0x1] }
  0x8e   :  { %v174_v47 = vld [vmem:[#allocation0 + $0x38] sm:$0x1]  ;;  %231 = vst [vmem:[%s375_s1 + $0x1] sm:$0x1] %v139_v45  ;;  %234 = vst [vmem:[%s375_s1 + $0x4] sm:$0x1] %v156_v46 }
  0x8f   :  { %237 = vst [vmem:[%s375_s1 + $0x7] sm:$0x1] %v174_v47  ;;  %v192_v48 = vld [vmem:[#allocation0 + $0x50] sm:$0x1] }
  0x90   :  { %240 = vst [vmem:[%s375_s1 + $0xa] sm:$0x1] %v192_v48 }

// kernel: enc_forward.15
= control target key start
LH: loop header
LB: loop body
LE: loop exit
PB: predicated region body
PF: predicated region fallthrough
CT: control target
= control target key end

     0   :  { %s4826_s15 = smov 0   ;;  %s7024_s0 = inlined_call_operand.vmem [shape: f32[2,34,408], index: 0, kind: input, shape index: {}]   ;;  %s7025_s1 = inlined_call_operand.vmem [shape: f32[9,1,384], index: 1, kind: input, shape index: {}]   ;;  %s7026_s2 = inlined_call_operand.vmem [shape: bf16[384,1536], index: 2, kind: input, shape index: {}]   ;;  %s7027_s3 = inlined_call_operand.vmem [shape: f32[1,1536], index: 3, kind: input, shape index: {}]   ;;  %s7028_s4 = inlined_call_operand.vmem [shape: f32[2,32,1536], index: 4, kind: output, shape index: {}]  }
   0x1 LB: > { %s3927_s16 = sadd.s32 4294967295, %s4794_s15   ;;  %p3931_p0 = scmp.ge.s32.totalorder %s4794_s15, 1  ;;  %s4794_s15 = sphi %s4826_s15, %s14_s15  }
   0x2   : > { %p162_p1 = scmp.lt.s32.totalorder %s4794_s15, 3 }
   0x4   : > { %p163_p2 = pnand %p3931_p0, %p162_p1 }
   0x6   : > { %166 = sbr.rel (%p163_p2) target bundleno = 842 (0x34a), region = 36 }
   0xd   : > { %v221_v0 = vlaneseq  ;;  %v3934_v2 = vld [vmem:[%s7025_s1 + $0x3] sm:$0x7]  ;;  %v3935_v3 = vld [vmem:[%s7025_s1 + $0x6] sm:$0x7]  ;;  %s4796_s21 = smov 12   ;;  %s4797_s22 = smov 24  }
   0xe   : > { %v3937_v13 = vld [vmem:[%s7025_s1 + $0xc] sm:$0x7]  ;;  %v3938_v14 = vld [vmem:[%s7025_s1 + $0xf] sm:$0x7]  ;;  %v3940_v19 = vld [vmem:[%s7025_s1 + $0x15] sm:$0x7] }
   0xf   : > { %v4834_v1 = vshrl.u32 %v221_v0, 7  ;;  %v3941_v22 = vld [vmem:[%s7025_s1 + $0x18] sm:$0x7]  ;;  %p188_p3 = scmp.lt.s32.totalorder %s3927_s16, 1  ;;  %s4798_s9 = smov 116   ;;  %vm269_vm0 = vcmask 97280  }
  0x10   : > { %s4799_s10 = smov 104   ;;  %vm398_vm1 = vcmask 195584   ;;  %v4343_v60 = vld [vmem:[%s7026_s2 + $0x4] ss:$48 sps:$4 sm:$0xff]   ;;  %v4345_v61 = vld [vmem:[%s7026_s2 + $0xc] ss:$48 sps:$4 sm:$0xff]  }
  0x11   : > { %7051 = vst [vmem:[#allocation2_spill] sm:$0xff] %v4834_v1  ;;  %v4843_v4 = vsub.s32 2, %v4834_v1  ;;  %v4846_v5 = vsub.s32 0, %v4834_v1  ;;  %v4849_v6 = vsub.s32 1, %v4834_v1  ;;  %s7085_s16 = smov (!%p188_p3, %s3927_s16), 1  ;;  %3188 = vmatprep.subr.bf16.mxu0 %v4343_v60  ;;  %3294 = vmatprep.subr.bf16.mxu1 %v4345_v61  ;;  %vm554_vm2 = vcmask 1046528  }
  0x12   : > { %s4328_s5 = smul.u32 160, %s7085_s16  ;;  %v4347_v63 = vld [vmem:[%s7026_s2] ss:$48 sps:$4 sm:$0xff]   ;;  %v4348_v0 = vld [vmem:[%s7026_s2 + $0x8] ss:$48 sps:$4 sm:$0xff]   ;;  %vm996_vm3 = vcmask 1045504  }
  0x13   : > { %7052 = vst [vmem:[#allocation3_spill] sm:$0xff] %v4846_v5  ;;  %7053 = vst [vmem:[#allocation4_spill] sm:$0xff] %v4849_v6  ;;  %v262_v7 = vrot.slane %v3934_v2, %v4843_v4  ;;  %v254_v8 = vrot.slane %v3934_v2, %v4846_v5  ;;  %v383_v9 = vrot.slane %v3935_v3, %v4846_v5  ;;  %3189 = vmatpush1.bf16.msra.mxu0 %v4347_v63  ;;  %v4378_v63 = vld [vmem:[%s7026_s2 + $0x1e8] ss:$48 sps:$4 sm:$0xff]   ;;  %vm340_vm4 = vcmask 949248   ;;  %s4329_s18 = smul.u32 384, %s7085_s16 }
  0x14   : > { %v258_v10 = vrot.slane %v3934_v2, %v4849_v6  ;;  %v387_v11 = vrot.slane %v3935_v3, %v4849_v6  ;;  %v391_v12 = vrot.slane %v3935_v3, %v4843_v4  ;;  %v612_v15 = vrot.slane %v3937_v13, %v4846_v5  ;;  %s4909_s8 = scalar_lea.vmem %s7024_s0, %s4328_s5  ;;  %v4349_v3 = vld [vmem:[%s7026_s2 + $0x64] ss:$48 sps:$4 sm:$0xff]   ;;  %3295 = vmatpush1.bf16.msra.mxu1 %v4348_v0 }
  0x15   : > { %267 = vrot.lane.b32.xlu1 %v262_v7, %s4796_s21  ;;  %263 = vrot.lane.b32.xlu0 %v254_v8, %s4796_s21  ;;  %v616_v16 = vrot.slane %v3937_v13, %v4849_v6  ;;  %v620_v17 = vrot.slane %v3937_v13, %v4843_v4  ;;  %v783_v18 = vrot.slane %v3938_v14, %v4846_v5  ;;  %v4912_v29 = vld [vmem:[%s4909_s8 + $0x20] sm:$0xff]  ;;  %v4947_v47 = vld [vmem:[%s4909_s8 + $0x10] sm:$0xff]  ;;  %vm469_vm5 = vcmask 850944  }
  0x16   : > { %v787_v20 = vrot.slane %v3938_v14, %v4849_v6  ;;  %v791_v21 = vrot.slane %v3938_v14, %v4843_v4  ;;  %v1054_v23 = vrot.slane %v3940_v19, %v4846_v5  ;;  %v1058_v24 = vrot.slane %v3940_v19, %v4849_v6  ;;  %v4915_v30 = vld [vmem:[%s4909_s8] sm:$0xff]  ;;  %v4950_v48 = vld [vmem:[%s4909_s8 + $0x8] sm:$0xff]  ;;  %v4961_v52 = vld [vmem:[%s4909_s8 + $0x30] sm:$0xff]  ;;  %3190 = vmatprep.subr.bf16.mxu0 %v4349_v3 }
  0x17   : > { %v1062_v25 = vrot.slane %v3940_v19, %v4843_v4  ;;  %v1225_v26 = vrot.slane %v3941_v22, %v4846_v5  ;;  %v1229_v27 = vrot.slane %v3941_v22, %v4849_v6  ;;  %v1233_v28 = vrot.slane %v3941_v22, %v4843_v4  ;;  %v4926_v38 = vld [vmem:[%s4909_s8 + $0x60] sm:$0xff]  ;;  %v4964_v53 = vld [vmem:[%s4909_s8 + $0x28] sm:$0xff]  ;;  %v5020_v13 = vld [vmem:[%s4909_s8 + $0x50] sm:$0xff] }
  0x18   : > { %v4929_v39 = vld [vmem:[%s4909_s8 + $0x40] sm:$0xff]  ;;  %v4351_v8 = vld [vmem:[%s7026_s2 + $0x6c] ss:$48 sps:$4 sm:$0xff]   ;;  %v5046_v22 = vld [vmem:[%s4909_s8 + $0x70] sm:$0xff] }
  0x19   : > { %392 = vrot.lane.b32.xlu1 %v383_v9, %s4797_s22  ;;  %265 = vrot.lane.b32.xlu0 %v258_v10, %s4796_s21  ;;  %v4353_v9 = vld [vmem:[%s7026_s2 + $0x60] ss:$48 sps:$4 sm:$0xff]   ;;  %v4354_v10 = vld [vmem:[%s7026_s2 + $0x68] ss:$48 sps:$4 sm:$0xff]  }
  0x1a   : > { %v5023_v14 = vld [vmem:[%s4909_s8 + $0x48] sm:$0xff]  ;;  %3296 = vmatprep.subr.bf16.mxu1 %v4351_v8  ;;  %3191 = vmatpush1.bf16.msra.mxu0 %v4353_v9  ;;  %v4379_v9 = vld [vmem:[%s7026_s2 + $0x244] ss:$48 sps:$4 sm:$0xff]  }
  0x1b   : > { %3297 = vmatpush1.bf16.msra.mxu1 %v4354_v10  ;;  %v4381_v10 = vld [vmem:[%s7026_s2 + $0x24c] ss:$48 sps:$4 sm:$0xff]  }
  0x1d   : > { %394 = vrot.lane.b32.xlu0 %v387_v11, %s4797_s22  ;;  %396 = vrot.lane.b32.xlu1 %v391_v12, %s4797_s22 }
  0x21   : > { %621 = vrot.lane.b32.xlu0 %v612_v15, %s4796_s21  ;;  %623 = vrot.lane.b32.xlu1 %v616_v16, %s4796_s21  ;;  %v4355_v16 = vld [vmem:[%s7026_s2 + $0xc4] ss:$48 sps:$4 sm:$0xff]  }
  0x22   : > { %3192 = vmatprep.subr.bf16.mxu0 %v4355_v16 }
  0x25   : > { %625 = vrot.lane.b32.xlu0 %v620_v17, %s4796_s21  ;;  %792 = vrot.lane.b32.xlu1 %v783_v18, %s4797_s22  ;;  %v4357_v17 = vld [vmem:[%s7026_s2 + $0xcc] ss:$48 sps:$4 sm:$0xff]   ;;  %v4359_v18 = vld [vmem:[%s7026_s2 + $0xc0] ss:$48 sps:$4 sm:$0xff]  }
  0x26   : > { %3298 = vmatprep.subr.bf16.mxu1 %v4357_v17  ;;  %3193 = vmatpush1.bf16.msra.mxu0 %v4359_v18  ;;  %v4383_v17 = vld [vmem:[%s7026_s2 + $0x240] ss:$48 sps:$4 sm:$0xff]   ;;  %v4384_v18 = vld [vmem:[%s7026_s2 + $0x248] ss:$48 sps:$4 sm:$0xff]  }
  0x29   : > { %794 = vrot.lane.b32.xlu0 %v787_v20, %s4797_s22  ;;  %796 = vrot.lane.b32.xlu1 %v791_v21, %s4797_s22  ;;  %v4360_v21 = vld [vmem:[%s7026_s2 + $0xc8] ss:$48 sps:$4 sm:$0xff]  }
  0x2a   : > { %3299 = vmatpush1.bf16.msra.mxu1 %v4360_v21 }
  0x2d   : > { %1063 = vrot.lane.b32.xlu0 %v1054_v23, %s4796_s21  ;;  %1065 = vrot.lane.b32.xlu1 %v1058_v24, %s4796_s21  ;;  %v5049_v23 = vld [vmem:[%s4909_s8 + $0x68] sm:$0xff] }
  0x31   : > { %1067 = vrot.lane.b32.xlu0 %v1062_v25, %s4796_s21  ;;  %1234 = vrot.lane.b32.xlu1 %v1225_v26, %s4797_s22  ;;  %v4361_v25 = vld [vmem:[%s7026_s2 + $0x124] ss:$48 sps:$4 sm:$0xff]   ;;  %v4363_v26 = vld [vmem:[%s7026_s2 + $0x12c] ss:$48 sps:$4 sm:$0xff]   ;;  %s6955_s21 = scalar_lea.vmem %s7028_s4, %s4329_s18 }
  0x32   : > { %3194 = vmatprep.subr.bf16.mxu0 %v4361_v25  ;;  %3300 = vmatprep.subr.bf16.mxu1 %v4363_v26 }
  0x35   : > { %1236 = vrot.lane.b32.xlu0 %v1229_v27, %s4797_s22  ;;  %1238 = vrot.lane.b32.xlu1 %v1233_v28, %s4797_s22  ;;  %v4365_v28 = vld [vmem:[%s7026_s2 + $0x120] ss:$48 sps:$4 sm:$0xff]  }
  0x36   : > { %3195 = vmatpush1.bf16.msra.mxu0 %v4365_v28 }
  0x87   : > { %v4917_v31 = vpop.permute.xlu1 %267  ;;  %v264_v32 = vpop.permute.xlu0 %263 }
  0x88   : > { %v280_v33 = vmul.f32 %v264_v32, %v4912_v29  ;;  %v276_v34 = vmul.f32 %v264_v32, %v4915_v30  ;;  %v288_v40 = vmul.f32 %v264_v32, %v4926_v38  ;;  %v284_v41 = vmul.f32 %v264_v32, %v4929_v39 }
  0x8a   : > { %316 = vrot.lane.b32.xlu1 %v280_v33, %s4798_s9  ;;  %308 = vrot.lane.b32.xlu0 %v276_v34, %s4798_s9 }
  0x8b   : > { %v393_v35 = vpop.permute.xlu1 %392  ;;  %v266_v42 = vpop.permute.xlu0 %265 }
  0x8c   : > { %v409_v36 = vmul.f32 %v393_v35, %v4912_v29  ;;  %v405_v37 = vmul.f32 %v393_v35, %v4915_v30  ;;  %v417_v43 = vmul.f32 %v393_v35, %v4926_v38  ;;  %v413_v44 = vmul.f32 %v393_v35, %v4929_v39 }
  0x8d   : > { %v4940_v45 = vsel %vm269_vm0, %v264_v32, %v266_v42  ;;  %v4944_v46 = vsel %vm269_vm0, %v266_v42, %v4917_v31  ;;  %v4366_v32 = vld [vmem:[%s7026_s2 + $0x128] ss:$48 sps:$4 sm:$0xff]  }
  0x8e   : > { %445 = vrot.lane.b32.xlu1 %v409_v36, %s4799_s10  ;;  %437 = vrot.lane.b32.xlu0 %v405_v37, %s4799_s10  ;;  %v278_v49 = vmul.f32 %v4944_v46, %v4947_v47  ;;  %v277_v50 = vmul.f32 %v4940_v45, %v4950_v48  ;;  %v282_v56 = vmul.f32 %v4944_v46, %v4961_v52  ;;  %v4369_v36 = vld [vmem:[%s7026_s2 + $0x18c] ss:$48 sps:$4 sm:$0xff]  }
  0x8f   : > { %v4958_v51 = vpop.permute.xlu1 %396  ;;  %v395_v54 = vpop.permute.xlu0 %394  ;;  %v281_v57 = vmul.f32 %v4940_v45, %v4964_v53  ;;  %v286_v19 = vmul.f32 %v4944_v46, %v5020_v13  ;;  %v285_v20 = vmul.f32 %v4940_v45, %v5023_v14  ;;  %v290_v33 = vmul.f32 %v4944_v46, %v5046_v22  ;;  %3301 = vmatpush1.bf16.msra.mxu1 %v4366_v32 }
  0x90   : > { %v4970_v55 = vsel %vm398_vm1, %v395_v54, %v4958_v51  ;;  %v4977_v58 = vsel %vm398_vm1, %v393_v35, %v395_v54  ;;  %v289_v34 = vmul.f32 %v4940_v45, %v5049_v23  ;;  %v4367_v35 = vld [vmem:[%s7026_s2 + $0x184] ss:$48 sps:$4 sm:$0xff]   ;;  %3302 = vmatprep.subr.bf16.mxu1 %v4369_v36  ;;  %v4375_v54 = vld [vmem:[%s7026_s2 + $0x1ec] ss:$48 sps:$4 sm:$0xff]  }
  0x91   : > { %v407_v59 = vmul.f32 %v4970_v55, %v4947_v47  ;;  %v406_v2 = vmul.f32 %v4977_v58, %v4950_v48  ;;  %v411_v11 = vmul.f32 %v4970_v55, %v4961_v52  ;;  %v410_v12 = vmul.f32 %v4977_v58, %v4964_v53  ;;  %3196 = vmatprep.subr.bf16.mxu0 %v4367_v35  ;;  %v4385_v35 = vld [vmem:[%s7026_s2 + $0x2a4] ss:$48 sps:$4 sm:$0xff]   ;;  %v4387_v36 = vld [vmem:[%s7026_s2 + $0x2ac] ss:$48 sps:$4 sm:$0xff]  }
  0x92   : > { %332 = vrot.lane.b32.xlu1 %v288_v40, %s4798_s9  ;;  %324 = vrot.lane.b32.xlu0 %v284_v41, %s4798_s9  ;;  %v4371_v40 = vld [vmem:[%s7026_s2 + $0x180] ss:$48 sps:$4 sm:$0xff]   ;;  %v4372_v41 = vld [vmem:[%s7026_s2 + $0x188] ss:$48 sps:$4 sm:$0xff]   ;;  %v415_v42 = vmul.f32 %v4970_v55, %v5020_v13 }
  0x93   : > { %v4989_v62 = vpop.permute.xlu1 %623  ;;  %v5004_v7 = vpop.permute.xlu0 %621  ;;  %3197 = vmatpush1.bf16.msra.mxu0 %v4371_v40  ;;  %3303 = vmatpush1.bf16.msra.mxu1 %v4372_v41 }
  0x94   : > { %v5097_v45 = vmul.f32 %v5004_v7, %v4929_v39  ;;  %v633_v46 = vmul.f32 %v5004_v7, %v4915_v30  ;;  %3304 = vmatprep.subr.bf16.mxu1 %v4375_v54 }
  0x96   : > { %461 = vrot.lane.b32.xlu1 %v417_v43, %s4799_s10  ;;  %453 = vrot.lane.b32.xlu0 %v413_v44, %s4799_s10  ;;  %v414_v43 = vmul.f32 %v4977_v58, %v5023_v14  ;;  %v637_v44 = vmul.f32 %v5004_v7, %v4912_v29  ;;  %v685_v61 = vrot.slane %v5097_v45, 1 }
  0x97   : > { %v5025_v15 = vpop.permute.xlu1 %792  ;;  %v5051_v24 = vpop.permute.xlu0 %625  ;;  %3305 = vmatpush1.bf16.msra.mxu1 %v4378_v63 }
  0x98   : > { %v674_v60 = vrot.slane %v637_v44, 1  ;;  %v808_v3 = vmul.f32 %v5025_v15, %v4912_v29  ;;  %3306 = vmatprep.subr.bf16.mxu1 %v4381_v10  ;;  %v5187_v44 = vsel %vm269_vm0, %v5004_v7, %v4989_v62 }
  0x9a   : > { %312 = vrot.lane.b32.xlu1 %v278_v49, %s4798_s9  ;;  %310 = vrot.lane.b32.xlu0 %v277_v50, %s4798_s9  ;;  %v4373_v50 = vld [vmem:[%s7026_s2 + $0x1e4] ss:$48 sps:$4 sm:$0xff]   ;;  %v845_v21 = vrot.slane %v808_v3, 1  ;;  %v4393_v3 = vld [vmem:[%s7026_s2 + $0x30c] ss:$48 sps:$4 sm:$0xff]  }
  0x9b   : > { %v5061_v27 = vpop.permute.xlu1 %796  ;;  %v5081_v37 = vpop.permute.xlu0 %794  ;;  %3198 = vmatprep.subr.bf16.mxu0 %v4373_v50  ;;  %3307 = vmatpush1.bf16.msra.mxu1 %v4384_v18  ;;  %v4399_v18 = vld [vmem:[%s7026_s2 + $0x36c] ss:$48 sps:$4 sm:$0xff]  }
  0x9c   : > { %3308 = vmatprep.subr.bf16.mxu1 %v4387_v36  ;;  %v5254_v36 = vsel %vm398_vm1, %v5025_v15, %v5081_v37 }
  0x9e   : > { %320 = vrot.lane.b32.xlu1 %v282_v56, %s4798_s9  ;;  %318 = vrot.lane.b32.xlu0 %v281_v57, %s4798_s9  ;;  %v4377_v56 = vld [vmem:[%s7026_s2 + $0x1e0] ss:$48 sps:$4 sm:$0xff]   ;;  %v419_v57 = vmul.f32 %v4970_v55, %v5046_v22  ;;  %v5128_v55 = vmul.f32 %v5025_v15, %v4929_v39 }
  0x9f   : > { %v5101_v49 = vpop.permute.xlu1 %1065  ;;  %v5122_v0 = vpop.permute.xlu0 %1063  ;;  %3199 = vmatpush1.bf16.msra.mxu0 %v4377_v56 }
  0xa0   : > { %v1079_v8 = vmul.f32 %v5122_v0, %v4912_v29  ;;  %v1075_v16 = vmul.f32 %v5122_v0, %v4915_v30  ;;  %3200 = vmatprep.subr.bf16.mxu0 %v4379_v9  ;;  %v856_v25 = vrot.slane %v5128_v55, 1  ;;  %v638_v9 = vmul.f32 %v5187_v44, %v4964_v53 }
  0xa2   : > { %441 = vrot.lane.b32.xlu1 %v407_v59, %s4799_s10  ;;  %439 = vrot.lane.b32.xlu0 %v406_v2, %s4799_s10  ;;  %v418_v59 = vmul.f32 %v4977_v58, %v5049_v23  ;;  %v673_v2 = vrot.slane %v633_v46, 1  ;;  %v804_v58 = vmul.f32 %v5025_v15, %v4915_v30  ;;  %v1116_v28 = vrot.slane %v1079_v8, 2 }
  0xa3   : > { %3201 = vmatpush1.bf16.msra.mxu0 %v4383_v17  ;;  %v1115_v41 = vrot.slane %v1075_v16, 2  ;;  %v857_v46 = vsel %vm554_vm2, %v845_v21, %v856_v25  ;;  %v634_v8 = vmul.f32 %v5187_v44, %v4950_v48  ;;  %v4397_v17 = vld [vmem:[%s7026_s2 + $0x364] ss:$48 sps:$4 sm:$0xff]  }
  0xa4   : > { %v844_v26 = vrot.slane %v804_v58, 1  ;;  %3202 = vmatprep.subr.bf16.mxu0 %v4385_v35  ;;  %v4396_v58 = vld [vmem:[%s7026_s2 + $0x308] ss:$48 sps:$4 sm:$0xff]   ;;  %v677_v35 = vrot.slane %v638_v9, 1  ;;  %v5287_v9 = vpop.permute.xlu0 %1067 }
  0xa6   : > { %449 = vrot.lane.b32.xlu1 %v411_v11, %s4799_s10  ;;  %447 = vrot.lane.b32.xlu0 %v410_v12, %s4799_s10  ;;  %v5142_v11 = vpop.permute.xlu1 %1234  ;;  %v5146_v12 = vmul.f32 %v5122_v0, %v4929_v39  ;;  %v846_v50 = vsel %vm554_vm2, %v844_v26, %v845_v21  ;;  %v5243_v26 = vmul.f32 %v5187_v44, %v5023_v14 }
  0xa7   : > { %v1250_v32 = vmul.f32 %v5142_v11, %v4912_v29 }
  0xa8   : > { %v7030_v40 = vrot.slane %v5146_v12, 2 }
  0xa9   : > { %v1287_v54 = vrot.slane %v1250_v32, 2  ;;  %v4402_v32 = vld [vmem:[%s7026_s2 + $0x368] ss:$48 sps:$4 sm:$0xff]  }
  0xaa   : > { %328 = vrot.lane.b32.xlu1 %v286_v19, %s4798_s9  ;;  %326 = vrot.lane.b32.xlu0 %v285_v20, %s4798_s9  ;;  %v686_v19 = vsel %vm554_vm2, %v674_v60, %v685_v61  ;;  %v675_v20 = vsel %vm554_vm2, %v673_v2, %v674_v60  ;;  %v4391_v60 = vld [vmem:[%s7026_s2 + $0x304] ss:$48 sps:$4 sm:$0xff]   ;;  %v1128_v63 = vsel %vm996_vm3, %v1116_v28, %v7030_v40  ;;  %v4432_v40 = vld [vmem:[%s7026_s2 + $0x548] ss:$48 sps:$4 sm:$0xff]  }
  0xab   : > { %v1117_v2 = vsel %vm996_vm3, %v1115_v41, %v1116_v28  ;;  %v4401_v28 = vld [vmem:[%s7026_s2 + $0x360] ss:$48 sps:$4 sm:$0xff]  }
  0xae   : > { %336 = vrot.lane.b32.xlu1 %v290_v33, %s4798_s9  ;;  %334 = vrot.lane.b32.xlu0 %v289_v34, %s4798_s9  ;;  %v5167_v33 = vmul.f32 %v5142_v11, %v4929_v39  ;;  %v1246_v34 = vmul.f32 %v5142_v11, %v4915_v30 }
  0xb0   : > { %v7029_v56 = vrot.slane %v5167_v33, 2 }
  0xb2   : > { %457 = vrot.lane.b32.xlu1 %v415_v42, %s4799_s10  ;;  %455 = vrot.lane.b32.xlu0 %v414_v43, %s4799_s10  ;;  %v4389_v42 = vld [vmem:[%s7026_s2 + $0x2a0] ss:$48 sps:$4 sm:$0xff]   ;;  %v4390_v43 = vld [vmem:[%s7026_s2 + $0x2a8] ss:$48 sps:$4 sm:$0xff]  }
  0xb3   : > { %3203 = vmatpush1.bf16.msra.mxu0 %v4389_v42  ;;  %3309 = vmatpush1.bf16.msra.mxu1 %v4390_v43  ;;  %v5259_v43 = vsel %vm398_vm1, %v5081_v37, %v5061_v27  ;;  %v4407_v37 = vld [vmem:[%s7026_s2 + $0x3c0] ss:$48 sps:$4 sm:$0xff]  }
  0xb4   : > { %3204 = vmatprep.subr.bf16.mxu0 %v4391_v60  ;;  %3310 = vmatprep.subr.bf16.mxu1 %v4393_v3  ;;  %v4408_v60 = vld [vmem:[%s7026_s2 + $0x3c8] ss:$48 sps:$4 sm:$0xff]  }
  0xb6   : > { %465 = vrot.lane.b32.xlu1 %v419_v57, %s4799_s10  ;;  %463 = vrot.lane.b32.xlu0 %v418_v59, %s4799_s10  ;;  %v1286_v57 = vrot.slane %v1246_v34, 2  ;;  %v5199_v59 = vsel %vm269_vm0, %v4989_v62, %v5051_v24  ;;  %v4395_v62 = vld [vmem:[%s7026_s2 + $0x300] ss:$48 sps:$4 sm:$0xff]   ;;  %v676_v34 = vrot.slane %v634_v8, 1  ;;  %v809_v8 = vmul.f32 %v5254_v36, %v4964_v53 }
  0xb7   : > { %v635_v10 = vmul.f32 %v5199_v59, %v4947_v47  ;;  %v639_v16 = vmul.f32 %v5199_v59, %v4961_v52  ;;  %3205 = vmatpush1.bf16.msra.mxu0 %v4395_v62  ;;  %v5239_v21 = vmul.f32 %v5199_v59, %v5020_v13  ;;  %3311 = vmatpush1.bf16.msra.mxu1 %v4396_v58 }
  0xb8   : > { %3206 = vmatprep.subr.bf16.mxu0 %v4397_v17  ;;  %3312 = vmatprep.subr.bf16.mxu1 %v4399_v18  ;;  %v678_v62 = vsel %vm554_vm2, %v676_v34, %v677_v35  ;;  %v810_v58 = vmul.f32 %v5259_v43, %v4961_v52 }
  0xb9   : > { %v679_v41 = vrot.slane %v635_v10, 1  ;;  %v680_v42 = vrot.slane %v639_v16, 1  ;;  %v4409_v10 = vld [vmem:[%s7026_s2 + $0x424] ss:$48 sps:$4 sm:$0xff]   ;;  %v4411_v16 = vld [vmem:[%s7026_s2 + $0x42c] ss:$48 sps:$4 sm:$0xff]  }
  0xba   : > { %717 = vrot.lane.b32.xlu1 %v686_v19, %s4798_s9  ;;  %709 = vrot.lane.b32.xlu0 %v675_v20, %s4798_s9  ;;  %v1299_v19 = vsel %vm996_vm3, %v1287_v54, %v7029_v56  ;;  %v1288_v20 = vsel %vm996_vm3, %v1286_v57, %v1287_v54  ;;  %v689_v54 = vrot.slane %v5239_v21, 1  ;;  %v687_v57 = vrot.slane %v5243_v26, 1 }
  0xbb   : > { %3207 = vmatpush1.bf16.msra.mxu0 %v4401_v28  ;;  %3313 = vmatpush1.bf16.msra.mxu1 %v4402_v32  ;;  %v681_v3 = vsel %vm554_vm2, %v679_v41, %v680_v42  ;;  %v5312_v28 = vsel %vm269_vm0, %v5122_v0, %v5101_v49  ;;  %v5316_v41 = vmul.f32 %v5259_v43, %v5020_v13 }
  0xbc   : > { %v690_v17 = vsel %vm554_vm2, %v680_v42, %v689_v54  ;;  %v688_v18 = vsel %vm554_vm2, %v677_v35, %v687_v57  ;;  %v851_v35 = vrot.slane %v810_v58, 1  ;;  %v848_v42 = vrot.slane %v809_v8, 1  ;;  %v4420_v58 = vld [vmem:[%s7026_s2 + $0x488] ss:$48 sps:$4 sm:$0xff]  }
  0xbe   : > { %888 = vrot.lane.b32.xlu1 %v857_v46, %s4799_s10  ;;  %880 = vrot.lane.b32.xlu0 %v846_v50, %s4799_s10  ;;  %v4403_v46 = vld [vmem:[%s7026_s2 + $0x3c4] ss:$48 sps:$4 sm:$0xff]   ;;  %v4405_v50 = vld [vmem:[%s7026_s2 + $0x3cc] ss:$48 sps:$4 sm:$0xff]  }
  0xbf   : > { %3208 = vmatprep.subr.bf16.mxu0 %v4403_v46  ;;  %3314 = vmatprep.subr.bf16.mxu1 %v4405_v50  ;;  %v5320_v46 = vmul.f32 %v5254_v36, %v5023_v14  ;;  %v5325_v50 = vsel %vm269_vm0, %v5101_v49, %v5287_v9  ;;  %v4419_v49 = vld [vmem:[%s7026_s2 + $0x480] ss:$48 sps:$4 sm:$0xff]  }
  0xc0   : > { %3209 = vmatpush1.bf16.msra.mxu0 %v4407_v37  ;;  %3315 = vmatpush1.bf16.msra.mxu1 %v4408_v60  ;;  %v4415_v37 = vld [vmem:[%s7026_s2 + $0x484] ss:$48 sps:$4 sm:$0xff]   ;;  %v1076_v60 = vmul.f32 %v5312_v28, %v4950_v48 }
  0xc1   : > { %3210 = vmatprep.subr.bf16.mxu0 %v4409_v10  ;;  %3316 = vmatprep.subr.bf16.mxu1 %v4411_v16  ;;  %v860_v16 = vrot.slane %v5316_v41, 1  ;;  %v816_v41 = vmul.f32 %v5025_v15, %v4926_v38 }
  0xc2   : > { %1159 = vrot.lane.b32.xlu1 %v1128_v63, %s4798_s9  ;;  %1151 = vrot.lane.b32.xlu0 %v1117_v2, %s4798_s9  ;;  %v806_v63 = vmul.f32 %v5259_v43, %v4947_v47  ;;  %v805_v2 = vmul.f32 %v5254_v36, %v4950_v48 }
  0xc4   : > { %v850_v32 = vrot.slane %v806_v63, 1  ;;  %v847_v34 = vrot.slane %v805_v2, 1  ;;  %v4417_v63 = vld [vmem:[%s7026_s2 + $0x48c] ss:$48 sps:$4 sm:$0xff]   ;;  %v1077_v2 = vmul.f32 %v5325_v50, %v4947_v47 }
  0xc6   : > { %1330 = vrot.lane.b32.xlu1 %v1299_v19, %s4799_s10  ;;  %1322 = vrot.lane.b32.xlu0 %v1288_v20, %s4799_s10  ;;  %v4413_v19 = vld [vmem:[%s7026_s2 + $0x420] ss:$48 sps:$4 sm:$0xff]   ;;  %v4414_v20 = vld [vmem:[%s7026_s2 + $0x428] ss:$48 sps:$4 sm:$0xff]   ;;  %v852_v8 = vsel %vm554_vm2, %v850_v32, %v851_v35  ;;  %v849_v10 = vsel %vm554_vm2, %v847_v34, %v848_v42  ;;  %v1118_v32 = vrot.slane %v1076_v60, 2 }
  0xc7   : > { %3211 = vmatpush1.bf16.msra.mxu0 %v4413_v19  ;;  %3317 = vmatpush1.bf16.msra.mxu1 %v4414_v20  ;;  %v4421_v19 = vld [vmem:[%s7026_s2 + $0x4e4] ss:$48 sps:$4 sm:$0xff]   ;;  %v1237_v20 = vpop.permute.xlu0 %1236  ;;  %v4423_v34 = vld [vmem:[%s7026_s2 + $0x4ec] ss:$48 sps:$4 sm:$0xff]   ;;  %v4426_v60 = vld [vmem:[%s7026_s2 + $0x4e8] ss:$48 sps:$4 sm:$0xff]  }
  0xc8   : > { %3212 = vmatprep.subr.bf16.mxu0 %v4415_v37  ;;  %3318 = vmatprep.subr.bf16.mxu1 %v4417_v63  ;;  %v4425_v37 = vld [vmem:[%s7026_s2 + $0x4e0] ss:$48 sps:$4 sm:$0xff]   ;;  %v1121_v63 = vrot.slane %v1077_v2, 2  ;;  %v5381_v2 = vmul.f32 %v5325_v50, %v5020_v13 }
  0xca   : > { %713 = vrot.lane.b32.xlu1 %v681_v3, %s4798_s9  ;;  %711 = vrot.lane.b32.xlu0 %v678_v62, %s4798_s9  ;;  %v1081_v3 = vmul.f32 %v5325_v50, %v4961_v52  ;;  %v1080_v62 = vmul.f32 %v5312_v28, %v4964_v53 }
  0xcb   : > { %3213 = vmatpush1.bf16.msra.mxu0 %v4419_v49  ;;  %3319 = vmatpush1.bf16.msra.mxu1 %v4420_v58  ;;  %v861_v58 = vsel %vm554_vm2, %v851_v35, %v860_v16  ;;  %v4427_v35 = vld [vmem:[%s7026_s2 + $0x544] ss:$48 sps:$4 sm:$0xff]  }
  0xcc   : > { %v1122_v49 = vrot.slane %v1081_v3, 2  ;;  %3214 = vmatprep.subr.bf16.mxu0 %v4421_v19  ;;  %v5385_v3 = vmul.f32 %v5312_v28, %v5023_v14  ;;  %3320 = vmatprep.subr.bf16.mxu1 %v4423_v34 }
  0xce   : > { %721 = vrot.lane.b32.xlu1 %v690_v17, %s4798_s9  ;;  %719 = vrot.lane.b32.xlu0 %v688_v18, %s4798_s9  ;;  %v858_v17 = vrot.slane %v5320_v46, 1  ;;  %v5353_v18 = vpop.permute.xlu1 %1238 }
  0xcf   : > { %3215 = vmatpush1.bf16.msra.mxu0 %v4425_v37  ;;  %3321 = vmatpush1.bf16.msra.mxu1 %v4426_v60 }
  0xd0   : > { %v859_v56 = vsel %vm554_vm2, %v848_v42, %v858_v17  ;;  %v4429_v42 = vld [vmem:[%s7026_s2 + $0x54c] ss:$48 sps:$4 sm:$0xff]   ;;  %3216 = vmatprep.subr.bf16.mxu0 %v4427_v35 }
  0xd1   : > { %3322 = vmatprep.subr.bf16.mxu1 %v4429_v42 }
  0xd2   : > { %884 = vrot.lane.b32.xlu1 %v852_v8, %s4799_s10  ;;  %882 = vrot.lane.b32.xlu0 %v849_v10, %s4799_s10  ;;  %v1119_v8 = vrot.slane %v1080_v62, 2  ;;  %v5368_v10 = vsel %vm398_vm1, %v1237_v20, %v5353_v18  ;;  %v5389_v62 = vsel %vm398_vm1, %v5142_v11, %v1237_v20  ;;  %v1123_v20 = vsel %vm996_vm3, %v1121_v63, %v1122_v49 }
  0xd3   : > { %v1248_v19 = vmul.f32 %v5368_v10, %v4947_v47  ;;  %v1252_v34 = vmul.f32 %v5368_v10, %v4961_v52  ;;  %v1131_v47 = vrot.slane %v5381_v2, 2  ;;  %v1129_v52 = vrot.slane %v5385_v3, 2  ;;  %3323 = vmatpush1.bf16.msra.mxu1 %v4432_v40  ;;  %v4437_v40 = vld [vmem:[%s7026_s2 + $0x5a0] ss:$48 sps:$4 sm:$0xff]  }
  0xd4   : > { %v1247_v37 = vmul.f32 %v5389_v62, %v4950_v48  ;;  %v1251_v60 = vmul.f32 %v5389_v62, %v4964_v53  ;;  %v5421_v35 = vmul.f32 %v5368_v10, %v5020_v13  ;;  %v5425_v42 = vmul.f32 %v5389_v62, %v5023_v14  ;;  %v4433_v48 = vld [vmem:[%s7026_s2 + $0x5a4] ss:$48 sps:$4 sm:$0xff]   ;;  %v4435_v53 = vld [vmem:[%s7026_s2 + $0x5ac] ss:$48 sps:$4 sm:$0xff]  }
  0xd5   : > { %v1293_v63 = vrot.slane %v1252_v34, 2  ;;  %v1132_v13 = vsel %vm996_vm3, %v1122_v49, %v1131_v47  ;;  %3324 = vmatprep.subr.bf16.mxu1 %v4435_v53  ;;  %v646_v49 = vmul.f32 %v5187_v44, %v5049_v23  ;;  %v1260_v2 = vmul.f32 %v5368_v10, %v5046_v22 }
  0xd6   : > { %892 = vrot.lane.b32.xlu1 %v861_v58, %s4799_s10  ;;  %890 = vrot.lane.b32.xlu0 %v859_v56, %s4799_s10  ;;  %v4431_v56 = vld [vmem:[%s7026_s2 + $0x540] ss:$48 sps:$4 sm:$0xff]   ;;  %v1120_v58 = vsel %vm996_vm3, %v1118_v32, %v1119_v8  ;;  %v1292_v32 = vrot.slane %v1248_v19, 2  ;;  %v1130_v19 = vsel %vm996_vm3, %v1119_v8, %v1129_v52  ;;  %v1289_v34 = vrot.slane %v1247_v37, 2 }
  0xd7   : > { %3217 = vmatpush1.bf16.msra.mxu0 %v4431_v56  ;;  %v1290_v56 = vrot.slane %v1251_v60, 2  ;;  %v1302_v37 = vrot.slane %v5421_v35, 2  ;;  %v1300_v60 = vrot.slane %v5425_v42, 2 }
  0xd8   : > { %3218 = vmatprep.subr.bf16.mxu0 %v4433_v48  ;;  %v695_v48 = vrot.slane %v646_v49, 1  ;;  %v5476_v49 = vld [vmem:[%s4909_s8 + $0x80] sm:$0x3] }
  0xd9   : > { %v1291_v8 = vsel %vm996_vm3, %v1289_v34, %v1290_v56  ;;  %v1301_v34 = vsel %vm996_vm3, %v1290_v56, %v1300_v60  ;;  %v820_v46 = vmul.f32 %v5025_v15, %v5476_v49 }
  0xda   : > { %1155 = vrot.lane.b32.xlu1 %v1123_v20, %s4798_s9  ;;  %1153 = vrot.lane.b32.xlu0 %v1120_v58, %s4798_s9  ;;  %v4438_v20 = vld [vmem:[%s7026_s2 + $0x5a8] ss:$48 sps:$4 sm:$0xff]   ;;  %v1294_v58 = vsel %vm996_vm3, %v1292_v32, %v1293_v63  ;;  %v5461_v32 = vld [vmem:[%s4909_s8 + $0x90] sm:$0x3] }
  0xdb   : > { %3219 = vmatpush1.bf16.msra.mxu0 %v4437_v40  ;;  %3325 = vmatpush1.bf16.msra.mxu1 %v4438_v20  ;;  %v1303_v40 = vsel %vm996_vm3, %v1293_v63, %v1302_v37 }
  0xde   : > { %1163 = vrot.lane.b32.xlu1 %v1132_v13, %s4798_s9  ;;  %1161 = vrot.lane.b32.xlu0 %v1130_v19, %s4798_s9  ;;  %v647_v13 = vmul.f32 %v5199_v59, %v5046_v22  ;;  %v5456_v19 = vld [vmem:[%s4909_s8 + $0x88] sm:$0x3] }
  0xdf   : > { %v650_v53 = vmul.f32 %v5187_v44, %v5456_v19  ;;  %v696_v44 = vsel %vm554_vm2, %v687_v57, %v695_v48  ;;  %v818_v57 = vmul.f32 %v5259_v43, %v5046_v22 }
  0xe0   : > { %v697_v20 = vrot.slane %v647_v13, 1  ;;  %v645_v13 = vmul.f32 %v5004_v7, %v4926_v38 }
  0xe2   : > { %1326 = vrot.lane.b32.xlu1 %v1294_v58, %s4799_s10  ;;  %1324 = vrot.lane.b32.xlu0 %v1291_v8, %s4799_s10  ;;  %v651_v58 = vmul.f32 %v5199_v59, %v5461_v32  ;;  %v703_v8 = vrot.slane %v650_v53, 1  ;;  %v698_v63 = vsel %vm554_vm2, %v689_v54, %v697_v20  ;;  %v649_v59 = vmul.f32 %v5004_v7, %v5476_v49 }
  0xe3   : > { %v693_v53 = vrot.slane %v645_v13, 1  ;;  %v822_v7 = vmul.f32 %v5259_v43, %v5461_v32  ;;  %v5522_v13 = vld [vmem:[%s4909_s8 + $0x18] sm:$0xff] }
  0xe4   : > { %v705_v56 = vrot.slane %v651_v58, 1  ;;  %v704_v26 = vsel %vm554_vm2, %v695_v48, %v703_v8  ;;  %v701_v54 = vrot.slane %v649_v59, 1  ;;  %v821_v48 = vmul.f32 %v5254_v36, %v5456_v19 }
  0xe5   : > { %v868_v58 = vrot.slane %v818_v57, 1  ;;  %v876_v8 = vrot.slane %v822_v7, 1  ;;  %v864_v57 = vrot.slane %v816_v41, 1  ;;  %v1089_v7 = vmul.f32 %v5325_v50, %v5046_v22 }
  0xe6   : > { %1334 = vrot.lane.b32.xlu1 %v1303_v40, %s4799_s10  ;;  %1332 = vrot.lane.b32.xlu0 %v1301_v34, %s4799_s10  ;;  %v706_v21 = vsel %vm554_vm2, %v697_v20, %v705_v56  ;;  %v817_v40 = vmul.f32 %v5254_v36, %v5049_v23  ;;  %v702_v34 = vsel %vm554_vm2, %v693_v53, %v701_v54  ;;  %v5519_v56 = vld [vmem:[%s4909_s8 + $0x38] sm:$0xff]  ;;  %v1310_v22 = vrot.slane %v1260_v2, 2 }
  0xe7   : > { %v694_v20 = vsel %vm554_vm2, %v685_v61, %v693_v53  ;;  %v869_v43 = vsel %vm554_vm2, %v860_v16, %v868_v58  ;;  %v877_v45 = vsel %vm554_vm2, %v868_v58, %v876_v8  ;;  %v283_v59 = vmul.f32 %v4917_v31, %v5519_v56  ;;  %v4441_v8 = vld [vmem:[%s7026_s2 + $0x604] ss:$48 sps:$4 sm:$0xff]  }
  0xe8   : > { %v412_v58 = vmul.f32 %v4958_v51, %v5519_v56  ;;  %v408_v55 = vmul.f32 %v4958_v51, %v5522_v13  ;;  %3241 = vmatprep.subr.bf16.mxu0 %v4441_v8  ;;  %v7054_v8 = vrot.slane %v5146_v12, 2 }
  0xea   : > { %729 = vrot.lane.b32.xlu1 %v698_v63, %s4798_s9  ;;  %727 = vrot.lane.b32.xlu0 %v696_v44, %s4798_s9  ;;  %v866_v44 = vrot.slane %v817_v40, 1  ;;  %v874_v63 = vrot.slane %v821_v48, 1  ;;  %v865_v40 = vsel %vm554_vm2, %v856_v25, %v864_v57  ;;  %v1088_v48 = vmul.f32 %v5312_v28, %v5049_v23 }
  0xeb   : > { %v1093_v25 = vmul.f32 %v5325_v50, %v5461_v32 }
  0xec   : > { %v867_v36 = vsel %vm554_vm2, %v858_v17, %v866_v44  ;;  %v875_v61 = vsel %vm554_vm2, %v866_v44, %v874_v63  ;;  %v1092_v44 = vmul.f32 %v5312_v28, %v5456_v19  ;;  %v4444_v63 = vld [vmem:[%s7026_s2 + $0x60c] ss:$48 sps:$4 sm:$0xff]  }
  0xed   : > { %3347 = vmatprep.subr.bf16.mxu1 %v4444_v63 }
  0xee   : > { %737 = vrot.lane.b32.xlu1 %v706_v21, %s4798_s9  ;;  %735 = vrot.lane.b32.xlu0 %v704_v26, %s4798_s9  ;;  %v279_v26 = vmul.f32 %v4917_v31, %v5522_v13  ;;  %v872_v21 = vrot.slane %v820_v46, 1  ;;  %v1145_v28 = vrot.slane %v1092_v44, 2  ;;  %v1263_v44 = vmul.f32 %v5389_v62, %v5456_v19 }
  0xf0   : > { %v873_v54 = vsel %vm554_vm2, %v864_v57, %v872_v21  ;;  %v1091_v57 = vmul.f32 %v5122_v0, %v5476_v49 }
  0xf2   : > { %733 = vrot.lane.b32.xlu1 %v702_v34, %s4798_s9  ;;  %725 = vrot.lane.b32.xlu0 %v694_v20, %s4798_s9 }
  0xf6   : > { %900 = vrot.lane.b32.xlu1 %v869_v43, %s4799_s10  ;;  %898 = vrot.lane.b32.xlu0 %v867_v36, %s4799_s10  ;;  %v1139_v43 = vrot.slane %v1089_v7, 2  ;;  %v1137_v36 = vrot.slane %v1088_v48, 2  ;;  %v1259_v7 = vmul.f32 %v5389_v62, %v5049_v23  ;;  %v1264_v48 = vmul.f32 %v5368_v10, %v5461_v32 }
  0xf7   : > { %v1311_v62 = vsel %vm996_vm3, %v1302_v37, %v1310_v22 }
  0xf8   : > { %v1140_v41 = vsel %vm996_vm3, %v1131_v47, %v1139_v43  ;;  %v1138_v46 = vsel %vm996_vm3, %v1129_v52, %v1137_v36  ;;  %v1308_v10 = vrot.slane %v1259_v7, 2  ;;  %v1318_v32 = vrot.slane %v1264_v48, 2 }
  0xf9   : > { %v1258_v48 = vmul.f32 %v5142_v11, %v4926_v38 }
  0xfa   : > { %908 = vrot.lane.b32.xlu1 %v877_v45, %s4799_s10  ;;  %906 = vrot.lane.b32.xlu0 %v875_v61, %s4799_s10  ;;  %v1147_v61 = vrot.slane %v1093_v25, 2  ;;  %v1309_v37 = vsel %vm996_vm3, %v1300_v60, %v1308_v10 }
  0xfc   : > { %v5530_v16 = vpop.permute.xlu1 %316  ;;  %v309_v17 = vpop.permute.xlu0 %308  ;;  %v1148_v21 = vsel %vm996_vm3, %v1139_v43, %v1147_v61 }
  0xfe   : > { %322 = vrot.lane.b32.xlu1 %v283_v59, %s4798_s9  ;;  %314 = vrot.lane.b32.xlu0 %v279_v26, %s4798_s9  ;;  %v5585_v59 = vld [vmem:[%s7025_s1] sm:$0x7]  ;;  %v1087_v26 = vmul.f32 %v5122_v0, %v4926_v38  ;;  %v1146_v0 = vsel %vm996_vm3, %v1137_v36, %v1145_v28 }
  0xff   : > { %v5599_v47 = vrot.slane %v5585_v59, %v4846_v5 }
 0x100   : > { %v5538_v15 = vpop.permute.xlu1 %445  ;;  %v5540_v53 = vpop.permute.xlu0 %437 }
 0x102   : > { %904 = vrot.lane.b32.xlu1 %v873_v54, %s4799_s10  ;;  %896 = vrot.lane.b32.xlu0 %v865_v40, %s4799_s10  ;;  %v1135_v54 = vrot.slane %v1087_v26, 2  ;;  %v1143_v40 = vrot.slane %v1091_v57, 2  ;;  %v636_v57 = vmul.f32 %v5051_v24, %v5522_v13 }
 0x104   : > { %v5552_v34 = vpop.permute.xlu1 %332  ;;  %v5554_v20 = vpop.permute.xlu0 %324  ;;  %v1144_v36 = vsel %vm996_vm3, %v1135_v54, %v1143_v40  ;;  %v1136_v63 = vsel %vm996_vm3, %v7054_v8, %v1135_v54  ;;  %v682_v7 = vrot.slane %v636_v57, 1 }
 0x106   : > { %451 = vrot.lane.b32.xlu1 %v412_v58, %s4799_s10  ;;  %443 = vrot.lane.b32.xlu0 %v408_v55, %s4799_s10  ;;  %v236_v58 = vmul.f32 %v5599_v47, %v4915_v30  ;;  %v239_v30 = vmul.f32 %v5599_v47, %v4912_v29 }
 0x108   : > { %v5572_v45 = vpop.permute.xlu1 %461  ;;  %v5574_v50 = vpop.permute.xlu0 %453 }
 0x10a   : > { %1171 = vrot.lane.b32.xlu1 %v1140_v41, %s4798_s9  ;;  %1169 = vrot.lane.b32.xlu0 %v1138_v46, %s4798_s9  ;;  %v1316_v41 = vrot.slane %v1263_v44, 2  ;;  %v640_v46 = vmul.f32 %v5051_v24, %v5519_v56  ;;  %v811_v44 = vmul.f32 %v5061_v27, %v5519_v56 }
 0x10c   : > { %v5595_v3 = vpop.permute.xlu1 %312  ;;  %v5601_v52 = vpop.permute.xlu0 %310  ;;  %v1317_v42 = vsel %vm996_vm3, %v1308_v10, %v1316_v41 }
 0x10d   : > { %v341_v43 = vsel %vm340_vm4, %v309_v17, %v5601_v52  ;;  %v5633_v17 = vld [vmem:[%s4909_s8 + $0x58] sm:$0xff] }
 0x10e   : > { %1179 = vrot.lane.b32.xlu1 %v1148_v21, %s4798_s9  ;;  %1177 = vrot.lane.b32.xlu0 %v1146_v0, %s4798_s9  ;;  %v365_v61 = vadd.f32 %v341_v43, %v236_v58  ;;  %v5643_v26 = vmul.f32 %v5051_v24, %v5633_v17  ;;  %v1319_v21 = vsel %vm996_vm3, %v1310_v22, %v1318_v32 }
 0x10f   : > { %v1262_v22 = vmul.f32 %v5142_v11, %v5476_v49  ;;  %v5682_v43 = vmul.f32 %v5061_v27, %v5633_v17  ;;  %v5696_v32 = vrot.slane %v5585_v59, %v4849_v6 }
 0x110   : > { %v5613_v55 = vpop.permute.xlu1 %320  ;;  %v5615_v25 = vpop.permute.xlu0 %318  ;;  %v691_v60 = vrot.slane %v5643_v26, 1 }
 0x111   : > { %v344_v29 = vsel %vm340_vm4, %v5530_v16, %v5615_v25  ;;  %v862_v41 = vrot.slane %v5682_v43, 1  ;;  %v5849_v43 = vld [vmem:[%s7025_s1 + $0x12] sm:$0x7] }
 0x112   : > { %1175 = vrot.lane.b32.xlu1 %v1144_v36, %s4798_s9  ;;  %1167 = vrot.lane.b32.xlu0 %v1136_v63, %s4798_s9  ;;  %v368_v16 = vadd.f32 %v344_v29, %v239_v30  ;;  %v1306_v30 = vrot.slane %v1258_v48, 2  ;;  %v1082_v29 = vmul.f32 %v5287_v9, %v5519_v56  ;;  %v246_v48 = vmul.f32 %v5696_v32, %v5049_v23 }
 0x114   : > { %v5635_v12 = vpop.permute.xlu1 %441  ;;  %v5637_v28 = vpop.permute.xlu0 %439 }
 0x115   : > { %7055 = vst [vmem:[#allocation5_spill] sm:$0xff] %v5635_v12  ;;  %v470_v35 = vsel %vm469_vm5, %v5540_v53, %v5637_v28  ;;  %v683_v53 = vrot.slane %v640_v46, 1 }
 0x116   : > { %v5656_v2 = vadd.f32 %v470_v35, %v365_v61  ;;  %1342 = vrot.lane.b32.xlu1 %v1311_v62, %s4799_s10  ;;  %1340 = vrot.lane.b32.xlu0 %v1309_v37, %s4799_s10  ;;  %v1314_v62 = vrot.slane %v1262_v22, 2  ;;  %v854_v61 = vrot.slane %v811_v44, 1  ;;  %v242_v35 = vmul.f32 %v5599_v47, %v4929_v39 }
 0x117   : > { %v692_v11 = vsel %vm554_vm2, %v683_v53, %v691_v60  ;;  %v684_v10 = vsel %vm554_vm2, %v682_v7, %v683_v53  ;;  %v243_v37 = vmul.f32 %v5696_v32, %v5023_v14  ;;  %v7058_v7 = vrot.slane %v5167_v33, 2 }
 0x118   : > { %v5661_v0 = vpop.permute.xlu1 %449  ;;  %v5663_v54 = vpop.permute.xlu0 %447  ;;  %v245_v14 = vmul.f32 %v5599_v47, %v4926_v38  ;;  %v1125_v44 = vrot.slane %v1082_v29, 2 }
 0x119   : > { %v473_v40 = vsel %vm469_vm5, %v5538_v15, %v5663_v54  ;;  %v807_v15 = vmul.f32 %v5061_v27, %v5522_v13  ;;  %v1307_v39 = vsel %vm996_vm3, %v7058_v7, %v1306_v30 }
 0x11a   : > { %v5674_v58 = vadd.f32 %v473_v40, %v368_v16  ;;  %1350 = vrot.lane.b32.xlu1 %v1319_v21, %s4799_s10  ;;  %1348 = vrot.lane.b32.xlu0 %v1317_v42, %s4799_s10  ;;  %v1078_v16 = vmul.f32 %v5287_v9, %v5522_v13  ;;  %v1315_v40 = vsel %vm996_vm3, %v1306_v30, %v1314_v62 }
 0x11b   : > { %v853_v46 = vrot.slane %v807_v15, 1  ;;  %v1253_v15 = vmul.f32 %v5353_v18, %v5519_v56  ;;  %v1249_v56 = vmul.f32 %v5353_v18, %v5522_v13 }
 0x11c   : > { %v5686_v36 = vpop.permute.xlu1 %328  ;;  %v327_v8 = vpop.permute.xlu0 %326 }
 0x11d   : > { %7056 = vst [vmem:[#allocation6_spill] sm:$0xff] %v5686_v36  ;;  %v347_v63 = vsel %vm340_vm4, %v5554_v20, %v327_v8  ;;  %v5705_v20 = vmul.f32 %v5287_v9, %v5633_v17  ;;  %v348_v42 = vsel %vm340_vm4, %v327_v8, %v5686_v36  ;;  %v855_v22 = vsel %vm554_vm2, %v853_v46, %v854_v61 }
 0x11e   : > { %723 = vrot.lane.b32.xlu1 %v692_v11, %s4798_s9  ;;  %715 = vrot.lane.b32.xlu0 %v684_v10, %s4798_s9  ;;  %v371_v38 = vadd.f32 %v347_v63, %v242_v35  ;;  %v372_v47 = vadd.f32 %v348_v42, %v243_v37  ;;  %v1124_v11 = vrot.slane %v1078_v16, 2  ;;  %v5740_v10 = vmul.f32 %v5353_v18, %v5633_v17 }
 0x11f   : > { %v1133_v33 = vrot.slane %v5705_v20, 2  ;;  %v1296_v29 = vrot.slane %v1253_v15, 2  ;;  %v1295_v7 = vrot.slane %v1249_v56, 2  ;;  %v218_v15 = vld [vmem:[%s4909_s8 + $0x98] sm:$0x3] }
 0x120   : > { %v5711_v57 = vpop.permute.xlu1 %336  ;;  %v335_v21 = vpop.permute.xlu0 %334  ;;  %v1126_v13 = vsel %vm996_vm3, %v1124_v11, %v1125_v44  ;;  %v287_v11 = vmul.f32 %v4917_v31, %v5633_v17 }
 0x121   : > { %7057 = vst [vmem:[#allocation7_spill] sm:$0xff] %v5711_v57  ;;  %v350_v53 = vsel %vm340_vm4, %v5552_v34, %v335_v21  ;;  %v863_v34 = vsel %vm554_vm2, %v854_v61, %v862_v41  ;;  %v351_v30 = vsel %vm340_vm4, %v335_v21, %v5711_v57  ;;  %v1134_v16 = vsel %vm996_vm3, %v1125_v44, %v1133_v33  ;;  %v214_v44 = vld [vmem:[%s4909_s8 + $0x78] sm:$0xff] }
 0x122   : > { %1346 = vrot.lane.b32.xlu1 %v1315_v40, %s4799_s10  ;;  %1338 = vrot.lane.b32.xlu0 %v1307_v39, %s4799_s10  ;;  %v374_v35 = vadd.f32 %v350_v53, %v245_v14  ;;  %v375_v37 = vadd.f32 %v351_v30, %v246_v48  ;;  %v7031_v53 = vrot.slane %v5740_v10, 2  ;;  %v648_v30 = vmul.f32 %v5051_v24, %v214_v44 }
 0x123   : > { %v7061_v57 = vrot.slane %v5740_v10, 2 }
 0x124   : > { %v5736_v8 = vpop.permute.xlu1 %457  ;;  %v456_v23 = vpop.permute.xlu0 %455 }
 0x125   : > { %7059 = vst [vmem:[#allocation8_spill] sm:$0xff] %v5736_v8  ;;  %v476_v62 = vsel %vm469_vm5, %v5574_v50, %v456_v23  ;;  %v477_v61 = vsel %vm469_vm5, %v456_v23, %v5736_v8  ;;  %v291_v23 = vmul.f32 %v4917_v31, %v214_v44  ;;  %v823_v31 = vmul.f32 %v5061_v27, %v218_v15 }
 0x126   : > { %v5750_v63 = vadd.f32 %v476_v62, %v371_v38  ;;  %v5752_v46 = vadd.f32 %v477_v61, %v372_v47  ;;  %894 = vrot.lane.b32.xlu1 %v863_v34, %s4799_s10  ;;  %886 = vrot.lane.b32.xlu0 %v855_v22, %s4799_s10  ;;  %v1297_v22 = vsel %vm996_vm3, %v1295_v7, %v1296_v29 }
 0x127   : > { %v652_v62 = vmul.f32 %v5051_v24, %v218_v15  ;;  %v1090_v7 = vmul.f32 %v5287_v9, %v214_v44  ;;  %v5875_v8 = vrot.slane %v5849_v43, %v4846_v5 }
 0x128   : > { %v5756_v21 = vpop.permute.xlu1 %465  ;;  %v464_v50 = vpop.permute.xlu0 %463 }
 0x129   : > { %7060 = vst [vmem:[#allocation9_spill] sm:$0xff] %v5756_v21  ;;  %v479_v42 = vsel %vm469_vm5, %v5572_v45, %v464_v50  ;;  %v480_v40 = vsel %vm469_vm5, %v464_v50, %v5756_v21  ;;  %v1305_v45 = vsel %vm996_vm3, %v1296_v29, %v7031_v53  ;;  %v420_v29 = vmul.f32 %v4958_v51, %v214_v44  ;;  %v4780_v53 = vld [vmem:[%s4909_s8 + $0x48] sm:$0xff] }
 0x12a   : > { %v5767_v39 = vadd.f32 %v479_v42, %v374_v35  ;;  %v5769_v14 = vadd.f32 %v480_v40, %v375_v37  ;;  %1165 = vrot.lane.b32.xlu1 %v1134_v16, %s4798_s9  ;;  %1157 = vrot.lane.b32.xlu0 %v1126_v13, %s4798_s9  ;;  %v416_v35 = vmul.f32 %v4958_v51, %v5633_v17  ;;  %v699_v50 = vrot.slane %v648_v30, 1  ;;  %v5814_v42 = vld [vmem:[%s7025_s1 + $0x9] sm:$0x7] }
 0x12b   : > { %v819_v37 = vmul.f32 %v5061_v27, %v214_v44  ;;  %v707_v16 = vrot.slane %v652_v62, 1  ;;  %v878_v17 = vrot.slane %v823_v31, 1  ;;  %v5832_v26 = vrot.slane %v5814_v42, %v4849_v6 }
 0x12c   : > { %v5773_v48 = vpop.permute.xlu1 %717  ;;  %v5775_v34 = vpop.permute.xlu0 %709  ;;  %v700_v27 = vsel %vm554_vm2, %v691_v60, %v699_v50  ;;  %v1141_v30 = vrot.slane %v1090_v7, 2 }
 0x12d   : > { %v870_v51 = vrot.slane %v819_v37, 1  ;;  %v708_v40 = vsel %vm554_vm2, %v699_v50, %v707_v16  ;;  %v4775_v37 = vld [vmem:[%s4909_s8] sm:$0xff]  ;;  %v5869_v1 = vmul.f32 %v4780_v53, %v5832_v26 }
 0x12e   : > { %1336 = vrot.lane.b32.xlu1 %v1305_v45, %s4799_s10  ;;  %1328 = vrot.lane.b32.xlu0 %v1297_v22, %s4799_s10  ;;  %v1094_v45 = vmul.f32 %v5287_v9, %v218_v15  ;;  %v5826_v22 = vrot.slane %v5814_v42, %v4846_v5  ;;  %v4777_v16 = vld [vmem:[%s4909_s8 + $0x20] sm:$0xff] }
 0x12f   : > { %v879_v9 = vsel %vm554_vm2, %v870_v51, %v878_v17  ;;  %v4779_v17 = vld [vmem:[%s4909_s8 + $0x40] sm:$0xff]  ;;  %v969_v10 = vmul.f32 %v4777_v16, %v5875_v8 }
 0x130   : > { %v5785_v38 = vpop.permute.xlu1 %888  ;;  %v5787_v47 = vpop.permute.xlu0 %880  ;;  %v1149_v62 = vrot.slane %v1094_v45, 2  ;;  %v524_v31 = vmul.f32 %v4775_v37, %v5826_v22  ;;  %v1142_v45 = vsel %vm996_vm3, %v1133_v33, %v1141_v30 }
 0x132   : > { %338 = vrot.lane.b32.xlu1 %v291_v23, %s4798_s9  ;;  %330 = vrot.lane.b32.xlu0 %v287_v11, %s4798_s9  ;;  %v871_v11 = vsel %vm554_vm2, %v862_v41, %v870_v51  ;;  %v4776_v41 = vld [vmem:[%s4909_s8 + $0x8] sm:$0xff]  ;;  %v1150_v7 = vsel %vm996_vm3, %v1141_v30, %v1149_v62  ;;  %v5879_v62 = vrot.slane %v5849_v43, %v4849_v6  ;;  %v555_v30 = vrot.slane %v524_v31, 1 }
 0x133   : > { %v525_v50 = vmul.f32 %v4776_v41, %v5832_v26  ;;  %v237_v20 = vmul.f32 %v4776_v41, %v5696_v32  ;;  %v345_v6 = vsel %vm340_vm4, %v5615_v25, %v5613_v55  ;;  %v471_v25 = vsel %vm469_vm5, %v5637_v28, %v5635_v12 }
 0x134   : > { %v5796_v61 = vpop.permute.xlu1 %1159  ;;  %v5798_v56 = vpop.permute.xlu0 %1151 }
 0x136   : > { %467 = vrot.lane.b32.xlu1 %v420_v29, %s4799_s10  ;;  %459 = vrot.lane.b32.xlu0 %v416_v35, %s4799_s10  ;;  %v1261_v29 = vmul.f32 %v5353_v18, %v214_v44  ;;  %v1265_v35 = vmul.f32 %v5353_v18, %v218_v15  ;;  %v527_v44 = vmul.f32 %v4777_v16, %v5826_v22  ;;  %v4778_v18 = vld [vmem:[%s4909_s8 + $0x28] sm:$0xff] }
 0x137   : > { %v528_v15 = vmul.f32 %v4778_v18, %v5832_v26  ;;  %v240_v33 = vmul.f32 %v4778_v18, %v5696_v32 }
 0x138   : > { %v5807_v24 = vpop.permute.xlu1 %1330  ;;  %v5809_v13 = vpop.permute.xlu0 %1322 }
 0x139   : > { %v559_v21 = vrot.slane %v528_v15, 1  ;;  %v970_v15 = vmul.f32 %v4778_v18, %v5879_v62 }
 0x13a   : > { %739 = vrot.lane.b32.xlu1 %v708_v40, %s4798_s9  ;;  %731 = vrot.lane.b32.xlu0 %v700_v27, %s4798_s9  ;;  %v5861_v40 = vmul.f32 %v4779_v17, %v5826_v22 }
 0x13b   : > { %v1001_v12 = vrot.slane %v970_v15, 2 }
 0x13c   : > { %v5828_v23 = vpop.permute.xlu1 %713  ;;  %v5834_v60 = vpop.permute.xlu0 %711  ;;  %v7062_v16 = vrot.slane %v5861_v40, 1 }
 0x13e   : > { %910 = vrot.lane.b32.xlu1 %v879_v9, %s4799_s10  ;;  %902 = vrot.lane.b32.xlu0 %v871_v11, %s4799_s10  ;;  %v1312_v9 = vrot.slane %v1261_v29, 2  ;;  %v1320_v11 = vrot.slane %v1265_v35, 2  ;;  %v556_v29 = vrot.slane %v527_v44, 1  ;;  %v558_v35 = vrot.slane %v525_v50, 1 }
 0x13f   : > { %v967_v44 = vmul.f32 %v4776_v41, %v5879_v62  ;;  %v5915_v41 = vmul.f32 %v4780_v53, %v5879_v62 }
 0x140   : > { %v5857_v51 = vpop.permute.xlu1 %721  ;;  %v720_v27 = vpop.permute.xlu0 %719  ;;  %v1321_v5 = vsel %vm996_vm3, %v1312_v9, %v1320_v11  ;;  %v1313_v32 = vsel %vm996_vm3, %v7061_v57, %v1312_v9  ;;  %v474_v57 = vsel %vm469_vm5, %v5663_v54, %v5661_v0  ;;  %v557_v31 = vsel %vm554_vm2, %v555_v30, %v556_v29 }
 0x141   : > { %v560_v54 = vsel %vm554_vm2, %v558_v35, %v559_v21  ;;  %v565_v18 = vsel %vm554_vm2, %v556_v29, %v7062_v16  ;;  %v1000_v53 = vrot.slane %v967_v44, 2  ;;  %v7044_v30 = vrot.slane %v5915_v41, 2 }
 0x142   : > { %1181 = vrot.lane.b32.xlu1 %v1150_v7, %s4798_s9  ;;  %1173 = vrot.lane.b32.xlu0 %v1142_v45, %s4798_s9  ;;  %v342_v45 = vsel %vm340_vm4, %v5601_v52, %v5595_v3  ;;  %v966_v52 = vmul.f32 %v4775_v37, %v5875_v8  ;;  %v5912_v37 = vmul.f32 %v4779_v17, %v5875_v8  ;;  %v998_v17 = vrot.slane %v969_v10, 2 }
 0x143   : > { %v366_v9 = vadd.f32 %v342_v45, %v237_v20  ;;  %v741_v35 = vsel %vm340_vm4, %v5775_v34, %v5834_v60  ;;  %v742_v29 = vsel %vm340_vm4, %v5834_v60, %v5828_v23  ;;  %v594_v10 = vadd.f32 %v557_v31, %v5656_v2 }
 0x144   : > { %v5883_v36 = vpop.permute.xlu1 %884  ;;  %v883_v7 = vpop.permute.xlu0 %882  ;;  %v597_v15 = vadd.f32 %v565_v18, %v5674_v58 }
 0x145   : > { %v495_v28 = vadd.f32 %v471_v25, %v366_v9  ;;  %v913_v34 = vsel %vm469_vm5, %v883_v7, %v5883_v36  ;;  %v765_v16 = vadd.f32 %v741_v35, %v594_v10 }
 0x146   : > { %1352 = vrot.lane.b32.xlu1 %v1321_v5, %s4799_s10  ;;  %1344 = vrot.lane.b32.xlu0 %v1313_v32, %s4799_s10  ;;  %v369_v5 = vadd.f32 %v345_v6, %v240_v33  ;;  %v7063_v6 = vrot.slane %v5869_v1, 1  ;;  %v997_v33 = vrot.slane %v966_v52, 2  ;;  %v745_v52 = vsel %vm340_vm4, %v720_v27, %v5857_v51 }
 0x147   : > { %v595_v44 = vadd.f32 %v560_v54, %v495_v28 }
 0x148   : > { %v5909_v11 = vpop.permute.xlu1 %892  ;;  %v891_v32 = vpop.permute.xlu0 %890  ;;  %v498_v50 = vadd.f32 %v474_v57, %v369_v5  ;;  %v567_v20 = vsel %vm554_vm2, %v559_v21, %v7063_v6  ;;  %v7043_v57 = vrot.slane %v5912_v37, 2  ;;  %v744_v21 = vsel %vm340_vm4, %v5773_v48, %v720_v27 }
 0x149   : > { %v912_v5 = vsel %vm469_vm5, %v5787_v47, %v883_v7  ;;  %v915_v60 = vsel %vm469_vm5, %v5785_v38, %v891_v32  ;;  %v916_v48 = vsel %vm469_vm5, %v891_v32, %v5909_v11  ;;  %v766_v27 = vadd.f32 %v742_v29, %v595_v44 }
 0x14a   : > { %v598_v9 = vadd.f32 %v567_v20, %v498_v50  ;;  %v768_v28 = vadd.f32 %v744_v21, %v597_v15  ;;  %v936_v31 = vadd.f32 %v912_v5, %v765_v16  ;;  %v999_v6 = vsel %vm996_vm3, %v997_v33, %v998_v17 }
 0x14b   : > { %v937_v50 = vadd.f32 %v913_v34, %v766_v27  ;;  %v1002_v7 = vsel %vm996_vm3, %v1000_v53, %v1001_v12  ;;  %v1007_v38 = vsel %vm996_vm3, %v998_v17, %v7043_v57  ;;  %v1009_v32 = vsel %vm996_vm3, %v1001_v12, %v7044_v30 }
 0x14c   : > { %v5925_v45 = vpop.permute.xlu1 %1155  ;;  %v1154_v25 = vpop.permute.xlu0 %1153  ;;  %v769_v54 = vadd.f32 %v745_v52, %v598_v9  ;;  %v939_v18 = vadd.f32 %v915_v60, %v768_v28  ;;  %v1036_v52 = vadd.f32 %v999_v6, %v936_v31  ;;  %v4450_v6 = vld [vmem:[%s7026_s2 + $0x66c] ss:$48 sps:$4 sm:$0xff]  }
 0x14d   : > { %v1183_v29 = vsel %vm340_vm4, %v5798_v56, %v1154_v25  ;;  %v1184_v21 = vsel %vm340_vm4, %v1154_v25, %v5925_v45  ;;  %v1037_v17 = vadd.f32 %v1002_v7, %v937_v50 }
 0x14e   : > { %v940_v47 = vadd.f32 %v916_v48, %v769_v54  ;;  %v1039_v44 = vadd.f32 %v1007_v38, %v939_v18  ;;  %v1207_v56 = vadd.f32 %v1183_v29, %v1036_v52  ;;  %v4439_v18 = vld [vmem:[%s7026_s2 + $0x600] ss:$48 sps:$4 sm:$0xff]   ;;  %v4453_v29 = vld [vmem:[%s7026_s2 + $0x6c4] ss:$48 sps:$4 sm:$0xff]   ;;  %v4454_v52 = vld [vmem:[%s7026_s2 + $0x6c8] ss:$48 sps:$4 sm:$0xff]  }
 0x14f   : > { %v1208_v9 = vadd.f32 %v1184_v21, %v1037_v17  ;;  %v4456_v21 = vld [vmem:[%s7026_s2 + $0x6cc] ss:$48 sps:$4 sm:$0xff]   ;;  %v4451_v17 = vld [vmem:[%s7026_s2 + $0x6c0] ss:$48 sps:$4 sm:$0xff]  }
 0x150   : > { %v5949_v2 = vpop.permute.xlu1 %1163  ;;  %v1162_v58 = vpop.permute.xlu0 %1161  ;;  %v1040_v10 = vadd.f32 %v1009_v32, %v940_v47  ;;  %v4447_v47 = vld [vmem:[%s7026_s2 + $0x664] ss:$48 sps:$4 sm:$0xff]   ;;  %v4445_v32 = vld [vmem:[%s7026_s2 + $0x660] ss:$48 sps:$4 sm:$0xff]  }
 0x151   : > { %v1186_v33 = vsel %vm340_vm4, %v5796_v61, %v1162_v58  ;;  %v1187_v53 = vsel %vm340_vm4, %v1162_v58, %v5949_v2 }
 0x152   : > { %v1210_v5 = vadd.f32 %v1186_v33, %v1039_v44  ;;  %v1211_v25 = vadd.f32 %v1187_v53, %v1040_v10  ;;  %v4459_v44 = vld [vmem:[%s7026_s2 + $0x724] ss:$48 sps:$4 sm:$0xff]   ;;  %v4462_v10 = vld [vmem:[%s7026_s2 + $0x72c] ss:$48 sps:$4 sm:$0xff]  }
 0x154   : > { %v5959_v20 = vpop.permute.xlu1 %1326  ;;  %v1325_v35 = vpop.permute.xlu0 %1324 }
 0x155   : > { %v1354_v12 = vsel %vm469_vm5, %v5809_v13, %v1325_v35  ;;  %v1355_v15 = vsel %vm469_vm5, %v1325_v35, %v5959_v20  ;;  %v4448_v35 = vld [vmem:[%s7026_s2 + $0x668] ss:$48 sps:$4 sm:$0xff]  }
 0x156   : > { %v1378_v16 = vadd.f32 %v1354_v12, %v1207_v56  ;;  %v1379_v27 = vadd.f32 %v1355_v15, %v1208_v9  ;;  %v4457_v56 = vld [vmem:[%s7026_s2 + $0x720] ss:$48 sps:$4 sm:$0xff]   ;;  %v4460_v9 = vld [vmem:[%s7026_s2 + $0x728] ss:$48 sps:$4 sm:$0xff]  }
 0x158   : > { %v5973_v34 = vpop.permute.xlu1 %1334  ;;  %v1333_v61 = vpop.permute.xlu0 %1332 }
 0x159   : > { %v1357_v60 = vsel %vm469_vm5, %v5807_v24, %v1333_v61  ;;  %v1358_v48 = vsel %vm469_vm5, %v1333_v61, %v5973_v34  ;;  %v4442_v24 = vld [vmem:[%s7026_s2 + $0x608] ss:$48 sps:$4 sm:$0xff]  }
 0x15a   : > { %v1381_v28 = vadd.f32 %v1357_v60, %v1210_v5  ;;  %v1382_v13 = vadd.f32 %v1358_v48, %v1211_v25  ;;  %v4465_v5 = vld [vmem:[%s7026_s2 + $0x784] ss:$48 sps:$4 sm:$0xff]   ;;  %v4468_v25 = vld [vmem:[%s7026_s2 + $0x78c] ss:$48 sps:$4 sm:$0xff]   ;;  %v4463_v48 = vld [vmem:[%s7026_s2 + $0x780] ss:$48 sps:$4 sm:$0xff]  }
 0x15c   : > { %v5979_v54 = vpack.c.bf16 %v1381_v28, %v1378_v16  ;;  %v5981_v58 = vpack.c.bf16 %v1382_v13, %v1379_v27  ;;  %v5983_v31 = vpop.permute.xlu1 %729  ;;  %v5985_v50 = vpop.permute.xlu0 %727  ;;  %v4466_v16 = vld [vmem:[%s7026_s2 + $0x788] ss:$48 sps:$4 sm:$0xff]   ;;  %v4471_v27 = vld [vmem:[%s7026_s2 + $0x7e4] ss:$48 sps:$4 sm:$0xff]   ;;  %v4474_v28 = vld [vmem:[%s7026_s2 + $0x7ec] ss:$48 sps:$4 sm:$0xff]  }
 0x15e   : > { %7064 = vst [vmem:[#allocation10_spill] sm:$0xff] %v5979_v54  ;;  %7065 = vst [vmem:[#allocation11_spill] sm:$0xff] %v5981_v58  ;;  %3220 = vmatprep.mubr.bf16.mxu0 %v5981_v58  ;;  %3326 = vmatprep.mubr.bf16.mxu1 %v5981_v58 }
 0x15f   : > { %3221 = vmatmul.mubr.bf16.vlgmr.msra.gmra.mrb[0].mxu0 %v5979_v54  ;;  %3327 = vmatmul.mubr.bf16.vlgmr.msra.gmra.mrb[0].mxu1 %v5979_v54 }
 0x160   : > { %v6003_v7 = vpop.permute.xlu1 %737  ;;  %v6005_v38 = vpop.permute.xlu0 %735  ;;  %3242 = vmatpush1.bf16.msra.mxu0 %v4439_v18  ;;  %3348 = vmatpush1.bf16.msra.mxu1 %v4442_v24  ;;  %v4469_v24 = vld [vmem:[%s7026_s2 + $0x7e0] ss:$48 sps:$4 sm:$0xff]  }
 0x161   : > { %3243 = vmatprep.subr.bf16.mxu0 %v4447_v47  ;;  %3349 = vmatprep.subr.bf16.mxu1 %v4450_v6  ;;  %v4472_v47 = vld [vmem:[%s7026_s2 + $0x7e8] ss:$48 sps:$4 sm:$0xff]   ;;  %v4477_v6 = vld [vmem:[%s7026_s2 + $0x844] ss:$48 sps:$4 sm:$0xff]  }
 0x164   : > { %v6019_v33 = vpop.permute.xlu1 %733  ;;  %v6021_v53 = vpop.permute.xlu0 %725  ;;  %3244 = vmatpush1.bf16.msra.mxu0 %v4445_v32  ;;  %3350 = vmatpush1.bf16.msra.mxu1 %v4448_v35  ;;  %v4480_v32 = vld [vmem:[%s7026_s2 + $0x84c] ss:$48 sps:$4 sm:$0xff]  }
 0x165   : > { %3245 = vmatprep.subr.bf16.mxu0 %v4453_v29  ;;  %3351 = vmatprep.subr.bf16.mxu1 %v4456_v21  ;;  %v4475_v21 = vld [vmem:[%s7026_s2 + $0x840] ss:$48 sps:$4 sm:$0xff]  }
 0x168   : > { %v6035_v12 = vpop.permute.xlu1 %900  ;;  %v6037_v15 = vpop.permute.xlu0 %898  ;;  %3246 = vmatpush1.bf16.msra.mxu0 %v4451_v17  ;;  %3352 = vmatpush1.bf16.msra.mxu1 %v4454_v52  ;;  %v4478_v17 = vld [vmem:[%s7026_s2 + $0x848] ss:$48 sps:$4 sm:$0xff]   ;;  %v4483_v52 = vld [vmem:[%s7026_s2 + $0x8a4] ss:$48 sps:$4 sm:$0xff]  }
 0x169   : > { %7066 = vst [vmem:[#allocation12_spill] sm:$0xff] %v6035_v12  ;;  %3247 = vmatprep.subr.bf16.mxu0 %v4459_v44  ;;  %3353 = vmatprep.subr.bf16.mxu1 %v4462_v10  ;;  %v4486_v44 = vld [vmem:[%s7026_s2 + $0x8ac] ss:$48 sps:$4 sm:$0xff]  }
 0x16a   : > { %v4781_v10 = vld [vmem:[%s4909_s8 + $0x68] sm:$0xff] }
 0x16c   : > { %v6051_v61 = vpop.permute.xlu1 %908  ;;  %v6053_v60 = vpop.permute.xlu0 %906  ;;  %3248 = vmatpush1.bf16.msra.mxu0 %v4457_v56  ;;  %3354 = vmatpush1.bf16.msra.mxu1 %v4460_v9  ;;  %v534_v56 = vmul.f32 %v4781_v10, %v5832_v26  ;;  %v537_v9 = vmul.f32 %v5832_v26, %v5456_v19  ;;  %v4489_v26 = vld [vmem:[%s7026_s2 + $0x14] ss:$48 sps:$4 sm:$0xff]  }
 0x16d   : > { %7067 = vst [vmem:[#allocation13_spill] sm:$0xff] %v6051_v61  ;;  %3249 = vmatprep.subr.bf16.mxu0 %v4465_v5  ;;  %3355 = vmatprep.subr.bf16.mxu1 %v4468_v25 }
 0x170   : > { %v6067_v13 = vpop.permute.xlu1 %322  ;;  %v6069_v18 = vpop.permute.xlu0 %314  ;;  %3250 = vmatpush1.bf16.msra.mxu0 %v4463_v48  ;;  %3356 = vmatpush1.bf16.msra.mxu1 %v4466_v16  ;;  %v4481_v48 = vld [vmem:[%s7026_s2 + $0x8a0] ss:$48 sps:$4 sm:$0xff]   ;;  %v4484_v16 = vld [vmem:[%s7026_s2 + $0x8a8] ss:$48 sps:$4 sm:$0xff]  }
 0x171   : > { %3251 = vmatprep.subr.bf16.mxu0 %v4471_v27  ;;  %3357 = vmatprep.subr.bf16.mxu1 %v4474_v28  ;;  %v4492_v27 = vld [vmem:[%s7026_s2 + $0x1c] ss:$48 sps:$4 sm:$0xff]   ;;  %v572_v28 = vrot.slane %v534_v56, 1  ;;  %v7068_v56 = vrot.slane %v5869_v1, 1  ;;  %v748_v1 = vsel %vm340_vm4, %v5985_v50, %v5983_v31 }
 0x174   : > { %v6083_v35 = vpop.permute.xlu1 %904  ;;  %v6085_v29 = vpop.permute.xlu0 %896  ;;  %3252 = vmatpush1.bf16.msra.mxu0 %v4469_v24  ;;  %3358 = vmatpush1.bf16.msra.mxu1 %v4472_v47  ;;  %v578_v24 = vrot.slane %v537_v9, 1  ;;  %v4782_v47 = vld [vmem:[%s4909_s8 + $0x60] sm:$0xff]  ;;  %v573_v9 = vsel %vm554_vm2, %v7068_v56, %v572_v28 }
 0x175   : > { %3253 = vmatprep.subr.bf16.mxu0 %v4477_v6  ;;  %3359 = vmatprep.subr.bf16.mxu1 %v4480_v32  ;;  %v533_v6 = vmul.f32 %v4782_v47, %v5826_v22  ;;  %v975_v30 = vmul.f32 %v4782_v47, %v5875_v8  ;;  %v922_v47 = vsel %vm469_vm5, %v6053_v60, %v6051_v61 }
 0x176   : > { %v579_v57 = vsel %vm554_vm2, %v572_v28, %v578_v24  ;;  %v919_v24 = vsel %vm469_vm5, %v6037_v15, %v6035_v12 }
 0x178   : > { %v6103_v5 = vpop.permute.xlu1 %451  ;;  %v6105_v25 = vpop.permute.xlu0 %443  ;;  %3254 = vmatpush1.bf16.msra.mxu0 %v4475_v21  ;;  %3360 = vmatpush1.bf16.msra.mxu1 %v4478_v17  ;;  %v536_v17 = vmul.f32 %v5826_v22, %v5476_v49 }
 0x179   : > { %3255 = vmatprep.subr.bf16.mxu0 %v4483_v52  ;;  %3361 = vmatprep.subr.bf16.mxu1 %v4486_v44  ;;  %v976_v52 = vmul.f32 %v4781_v10, %v5879_v62  ;;  %v979_v44 = vmul.f32 %v5879_v62, %v5456_v19  ;;  %v6143_v10 = vrot.slane %v5814_v42, %v4843_v4 }
 0x17a   : > { %v751_v19 = vsel %vm340_vm4, %v6005_v38, %v6003_v7  ;;  %v576_v62 = vrot.slane %v536_v17, 1 }
 0x17b   : > { %v1014_v42 = vrot.slane %v976_v52, 2  ;;  %v1020_v28 = vrot.slane %v979_v44, 2  ;;  %v7069_v52 = vrot.slane %v5861_v40, 1 }
 0x17c   : > { %v6121_v32 = vpop.permute.xlu1 %1171  ;;  %v6123_v21 = vpop.permute.xlu0 %1169  ;;  %3256 = vmatpush1.bf16.msra.mxu0 %v4481_v48  ;;  %3362 = vmatpush1.bf16.msra.mxu1 %v4484_v16  ;;  %v978_v48 = vmul.f32 %v5875_v8, %v5476_v49  ;;  %v570_v16 = vrot.slane %v533_v6, 1  ;;  %v6153_v49 = vrot.slane %v5585_v59, %v4843_v4  ;;  %v601_v8 = vadd.f32 %v573_v9, %v5752_v46  ;;  %v4783_v46 = vld [vmem:[%s4909_s8 + $0x30] sm:$0xff] }
 0x17d   : > { %3400 = vmatprep.subr.bf16.mxu0 %v4489_v26  ;;  %3506 = vmatprep.subr.bf16.mxu1 %v4492_v27  ;;  %v604_v27 = vadd.f32 %v579_v57, %v5769_v14  ;;  %v1012_v6 = vrot.slane %v975_v30, 2  ;;  %v6165_v14 = vmul.f32 %v4783_v46, %v6143_v10 }
 0x17e   : > { %v1018_v17 = vrot.slane %v978_v48, 2  ;;  %v772_v56 = vadd.f32 %v748_v1, %v601_v8  ;;  %v577_v57 = vsel %vm554_vm2, %v570_v16, %v576_v62  ;;  %v571_v44 = vsel %vm554_vm2, %v7069_v52, %v570_v16  ;;  %v4784_v48 = vld [vmem:[%s4909_s8 + $0x10] sm:$0xff] }
 0x17f   : > { %v775_v59 = vadd.f32 %v751_v19, %v604_v27  ;;  %v241_v30 = vmul.f32 %v4783_v46, %v6153_v49  ;;  %v238_v1 = vmul.f32 %v4784_v48, %v6153_v49  ;;  %v7070_v19 = vrot.slane %v5915_v41, 2 }
 0x180   : > { %v6137_v22 = vpop.permute.xlu1 %1179  ;;  %v6139_v26 = vpop.permute.xlu0 %1177  ;;  %v943_v9 = vadd.f32 %v919_v24, %v772_v56  ;;  %v1021_v27 = vsel %vm996_vm3, %v1014_v42, %v1020_v28  ;;  %v1019_v61 = vsel %vm996_vm3, %v1012_v6, %v1018_v17  ;;  %v7071_v62 = vrot.slane %v5912_v37, 2  ;;  %v6188_v56 = vld [vmem:[%s4909_s8 + $0x50] sm:$0xff] }
 0x181   : > { %v946_v12 = vadd.f32 %v922_v47, %v775_v59  ;;  %v1015_v8 = vsel %vm996_vm3, %v7070_v19, %v1014_v42  ;;  %v750_v16 = vsel %vm340_vm4, %v6019_v33, %v6005_v38  ;;  %v6192_v41 = vmul.f32 %v6188_v56, %v6143_v10 }
 0x182   : > { %v1013_v40 = vsel %vm996_vm3, %v7071_v62, %v1012_v6  ;;  %v562_v42 = vrot.slane %v6165_v14, 1  ;;  %v526_v28 = vmul.f32 %v4784_v48, %v6143_v10  ;;  %v603_v37 = vadd.f32 %v577_v57, %v5767_v39 }
 0x183   : > { %v747_v6 = vsel %vm340_vm4, %v6021_v53, %v5985_v50  ;;  %v1190_v38 = vsel %vm340_vm4, %v6123_v21, %v6121_v32  ;;  %v1193_v33 = vsel %vm340_vm4, %v6139_v26, %v6137_v22  ;;  %v600_v17 = vadd.f32 %v571_v44, %v5750_v63 }
 0x184   : > { %v1176_v54 = vpop.permute.xlu1 %1175  ;;  %v1168_v58 = vpop.permute.xlu0 %1167  ;;  %v921_v59 = vsel %vm469_vm5, %v6083_v35, %v6053_v60  ;;  %v1043_v14 = vadd.f32 %v1015_v8, %v943_v9  ;;  %v1046_v39 = vadd.f32 %v1021_v27, %v946_v12  ;;  %v774_v57 = vadd.f32 %v750_v16, %v603_v37 }
 0x185   : > { %v918_v50 = vsel %vm469_vm5, %v6085_v29, %v6037_v15  ;;  %v6217_v52 = vrot.slane %v5849_v43, %v4843_v4  ;;  %v771_v19 = vadd.f32 %v747_v6, %v600_v17  ;;  %v568_v12 = vrot.slane %v6192_v41, 1  ;;  %v7072_v6 = vld [vmem:[#allocation5_spill] sm:$0xff] }
 0x186   : > { %v1214_v63 = vadd.f32 %v1190_v38, %v1043_v14  ;;  %v1217_v44 = vadd.f32 %v1193_v33, %v1046_v39  ;;  %v346_v35 = vsel %vm340_vm4, %v5613_v55, %v6067_v13  ;;  %v343_v15 = vsel %vm340_vm4, %v5595_v3, %v6069_v18 }
 0x187   : > { %v945_v29 = vadd.f32 %v921_v59, %v774_v57  ;;  %v942_v9 = vadd.f32 %v918_v50, %v771_v19  ;;  %v561_v16 = vrot.slane %v526_v28, 1  ;;  %v475_v37 = vsel %vm469_vm5, %v5661_v0, %v6103_v5 }
 0x188   : > { %v6185_v24 = vpop.permute.xlu1 %1342  ;;  %v1341_v47 = vpop.permute.xlu0 %1340  ;;  %v472_v55 = vsel %vm469_vm5, %v7072_v6, %v6105_v25  ;;  %v971_v13 = vmul.f32 %v4783_v46, %v6217_v52  ;;  %v6239_v3 = vmul.f32 %v6188_v56, %v6217_v52  ;;  %v370_v18 = vadd.f32 %v346_v35, %v241_v30 }
 0x189   : > { %v1361_v53 = vsel %vm469_vm5, %v1341_v47, %v6185_v24  ;;  %v367_v38 = vadd.f32 %v343_v15, %v238_v1  ;;  %v968_v59 = vmul.f32 %v4784_v48, %v6217_v52  ;;  %v1045_v14 = vadd.f32 %v1019_v61, %v945_v29 }
 0x18a   : > { %v1385_v8 = vadd.f32 %v1361_v53, %v1214_v63  ;;  %v1192_v0 = vsel %vm340_vm4, %v1176_v54, %v6139_v26  ;;  %v1189_v5 = vsel %vm340_vm4, %v1168_v58, %v6123_v21  ;;  %v499_v25 = vadd.f32 %v475_v37, %v370_v18 }
 0x18b   : > { %v496_v46 = vadd.f32 %v472_v55, %v367_v38  ;;  %v1042_v39 = vadd.f32 %v1013_v40, %v942_v9  ;;  %v569_v30 = vsel %vm554_vm2, %v562_v42, %v568_v12  ;;  %v563_v48 = vsel %vm554_vm2, %v561_v16, %v562_v42  ;;  %v4786_v38 = vld [vmem:[%s4909_s8 + $0x70] sm:$0xff] }
 0x18c   : > { %v6219_v62 = vpop.permute.xlu1 %1350  ;;  %v1349_v60 = vpop.permute.xlu0 %1348  ;;  %v1004_v61 = vrot.slane %v971_v13, 2  ;;  %v1216_v1 = vadd.f32 %v1192_v0, %v1045_v14  ;;  %v1010_v58 = vrot.slane %v6239_v3, 2  ;;  %v1003_v21 = vrot.slane %v968_v59, 2  ;;  %v4519_v3 = vld [vmem:[%s7026_s2 + $0x1f4] ss:$48 sps:$4 sm:$0xff]  }
 0x18d   : > { %v1364_v43 = vsel %vm469_vm5, %v1349_v60, %v6219_v62  ;;  %v1213_v57 = vadd.f32 %v1189_v5, %v1042_v39  ;;  %v599_v63 = vadd.f32 %v569_v30, %v499_v25  ;;  %v596_v42 = vadd.f32 %v563_v48, %v496_v46 }
 0x18e   : > { %v1388_v27 = vadd.f32 %v1364_v43, %v1217_v44  ;;  %v4800_v37 = vmov 0  }
 0x190   : > { %v6241_v33 = vpack.c.bf16 %v1388_v27, %v1385_v8  ;;  %v724_v17 = vpop.permute.xlu1 %723  ;;  %v716_v28 = vpop.permute.xlu0 %715 }
 0x191   : > { %v746_v40 = vsel %vm340_vm4, %v5857_v51, %v724_v17  ;;  %v743_v50 = vsel %vm340_vm4, %v5828_v23, %v716_v28  ;;  %v535_v17 = vmul.f32 %v4786_v38, %v6143_v10  ;;  %v4787_v28 = vld [vmem:[%s4909_s8 + $0x90] sm:$0x3] }
 0x192   : > { %3230 = vmatprep.mubr.bf16.mxu0 %v6241_v33  ;;  %3336 = vmatprep.mubr.bf16.mxu1 %v6241_v33  ;;  %v770_v15 = vadd.f32 %v746_v40, %v599_v63  ;;  %v767_v29 = vadd.f32 %v743_v50, %v596_v42  ;;  %v538_v59 = vmul.f32 %v4787_v28, %v6143_v10  ;;  %v4490_v10 = vld [vmem:[%s7026_s2 + $0x18] ss:$48 sps:$4 sm:$0xff]  }
 0x193   : > { %v574_v48 = vrot.slane %v535_v17, 1  ;;  %v7073_v40 = vld [vmem:[#allocation7_spill] sm:$0xff] }
 0x194   : > { %v1347_v54 = vpop.permute.xlu1 %1346  ;;  %v1339_v26 = vpop.permute.xlu0 %1338 }
 0x195   : > { %v1363_v53 = vsel %vm469_vm5, %v1347_v54, %v1349_v60  ;;  %v1360_v19 = vsel %vm469_vm5, %v1339_v26, %v1341_v47  ;;  %v1011_v47 = vsel %vm996_vm3, %v1004_v61, %v1010_v58  ;;  %v1005_v60 = vsel %vm996_vm3, %v1003_v21, %v1004_v61  ;;  %v4495_v26 = vld [vmem:[%s7026_s2 + $0x74] ss:$48 sps:$4 sm:$0xff]   ;;  %v4498_v21 = vld [vmem:[%s7026_s2 + $0x7c] ss:$48 sps:$4 sm:$0xff]  }
 0x196   : > { %v1387_v44 = vadd.f32 %v1363_v53, %v1216_v1  ;;  %v1384_v35 = vadd.f32 %v1360_v19, %v1213_v57  ;;  %v580_v61 = vrot.slane %v538_v59, 1  ;;  %v247_v57 = vmul.f32 %v4786_v38, %v6153_v49  ;;  %v7074_v53 = vld [vmem:[#allocation6_spill] sm:$0xff] }
 0x197   : > { %v575_v42 = vsel %vm554_vm2, %v568_v12, %v574_v48  ;;  %v7076_v12 = vld [vmem:[#allocation8_spill] sm:$0xff] }
 0x198   : > { %v6261_v43 = vpack.c.bf16 %v1387_v44, %v1384_v35  ;;  %v895_v9 = vpop.permute.xlu1 %894  ;;  %v887_v8 = vpop.permute.xlu0 %886  ;;  %v581_v63 = vsel %vm554_vm2, %v574_v48, %v580_v61 }
 0x199   : > { %v917_v51 = vsel %vm469_vm5, %v5909_v11, %v895_v9  ;;  %v914_v23 = vsel %vm469_vm5, %v5883_v36, %v887_v8  ;;  %v4501_v9 = vld [vmem:[%s7026_s2 + $0xd4] ss:$48 sps:$4 sm:$0xff]   ;;  %v4504_v8 = vld [vmem:[%s7026_s2 + $0xdc] ss:$48 sps:$4 sm:$0xff]  }
 0x19a   : > { %v941_v27 = vadd.f32 %v917_v51, %v770_v15  ;;  %v938_v16 = vadd.f32 %v914_v23, %v767_v29  ;;  %3231 = vmatmul.mubr.bf16.gmra.mrb[4].mxu0 %v6261_v43  ;;  %3337 = vmatmul.mubr.bf16.gmra.mrb[4].mxu1 %v6261_v43  ;;  %v977_v51 = vmul.f32 %v4786_v38, %v6217_v52  ;;  %v7075_v23 = vld [vmem:[#allocation9_spill] sm:$0xff] }
 0x19b   : > { %3273 = vmatprep.mubr.bf16.mxu0 %v4800_v37  ;;  %3379 = vmatprep.mubr.bf16.mxu1 %v4800_v37  ;;  %v4510_v38 = vld [vmem:[%s7026_s2 + $0x13c] ss:$48 sps:$4 sm:$0xff]  }
 0x19c   : > { %v1041_v36 = vadd.f32 %v1011_v47, %v941_v27  ;;  %v1166_v11 = vpop.permute.xlu1 %1165  ;;  %v1038_v6 = vadd.f32 %v1005_v60, %v938_v16  ;;  %v1158_v55 = vpop.permute.xlu0 %1157  ;;  %v980_v60 = vmul.f32 %v4787_v28, %v6217_v52  ;;  %v1016_v59 = vrot.slane %v977_v51, 2 }
 0x19d   : > { %v1188_v13 = vsel %vm340_vm4, %v5949_v2, %v1166_v11  ;;  %v1185_v18 = vsel %vm340_vm4, %v5925_v45, %v1158_v55  ;;  %v4487_v45 = vld [vmem:[%s7026_s2 + $0x10] ss:$48 sps:$4 sm:$0xff]   ;;  %v4502_v11 = vld [vmem:[%s7026_s2 + $0xd8] ss:$48 sps:$4 sm:$0xff]  }
 0x19e   : > { %v1212_v14 = vadd.f32 %v1188_v13, %v1041_v36  ;;  %v1209_v0 = vadd.f32 %v1185_v18, %v1038_v6  ;;  %v4499_v36 = vld [vmem:[%s7026_s2 + $0xd0] ss:$48 sps:$4 sm:$0xff]   ;;  %v4507_v18 = vld [vmem:[%s7026_s2 + $0x134] ss:$48 sps:$4 sm:$0xff]  }
 0x1a0   : > { %v1337_v5 = vpop.permute.xlu1 %1336  ;;  %v1329_v25 = vpop.permute.xlu0 %1328 }
 0x1a1   : > { %v1359_v46 = vsel %vm469_vm5, %v5973_v34, %v1337_v5  ;;  %v1356_v39 = vsel %vm469_vm5, %v5959_v20, %v1329_v25  ;;  %v244_v20 = vmul.f32 %v6188_v56, %v6153_v49  ;;  %v4493_v49 = vld [vmem:[%s7026_s2 + $0x70] ss:$48 sps:$4 sm:$0xff]   ;;  %v4496_v56 = vld [vmem:[%s7026_s2 + $0x78] ss:$48 sps:$4 sm:$0xff]  }
 0x1a2   : > { %v1383_v2 = vadd.f32 %v1359_v46, %v1212_v14  ;;  %v1380_v30 = vadd.f32 %v1356_v39, %v1209_v0  ;;  %v1022_v14 = vrot.slane %v980_v60, 2  ;;  %v4505_v0 = vld [vmem:[%s7026_s2 + $0x130] ss:$48 sps:$4 sm:$0xff]   ;;  %v4508_v5 = vld [vmem:[%s7026_s2 + $0x138] ss:$48 sps:$4 sm:$0xff]  }
 0x1a3   : > { %v4532_v60 = vld [vmem:[%s7026_s2 + $0x2b8] ss:$48 sps:$4 sm:$0xff]  }
 0x1a4   : > { %v6293_v1 = vpack.c.bf16 %v1383_v2, %v1380_v30  ;;  %v339_v34 = vpop.permute.xlu1 %338  ;;  %v331_v54 = vpop.permute.xlu0 %330  ;;  %v7077_v30 = vld [vmem:[#allocation13_spill] sm:$0xff]  ;;  %v1023_v61 = vsel %vm996_vm3, %v1016_v59, %v1022_v14  ;;  %v4555_v14 = vld [vmem:[%s7026_s2 + $0x434] ss:$48 sps:$4 sm:$0xff]  }
 0x1a5   : > { %v352_v50 = vsel %vm340_vm4, %v7073_v40, %v339_v34  ;;  %v349_v19 = vsel %vm340_vm4, %v7074_v53, %v331_v54  ;;  %v4511_v54 = vld [vmem:[%s7026_s2 + $0x190] ss:$48 sps:$4 sm:$0xff]  }
 0x1a6   : > { %3274 = vmatmul.mubr.bf16.vlgmr.msra.gmra.mrb[0].mxu0 %v6293_v1  ;;  %3380 = vmatmul.mubr.bf16.vlgmr.msra.gmra.mrb[0].mxu1 %v6293_v1  ;;  %v376_v44 = vadd.f32 %v352_v50, %v247_v57  ;;  %v373_v35 = vadd.f32 %v349_v19, %v244_v20  ;;  %v1017_v57 = vsel %vm996_vm3, %v1010_v58, %v1016_v59  ;;  %v4522_v58 = vld [vmem:[%s7026_s2 + $0x1fc] ss:$48 sps:$4 sm:$0xff]   ;;  %v4550_v59 = vld [vmem:[%s7026_s2 + $0x3d8] ss:$48 sps:$4 sm:$0xff]  }
 0x1a7   : > { %3401 = vmatpush1.bf16.msra.mxu0 %v4487_v45  ;;  %3507 = vmatpush1.bf16.msra.mxu1 %v4490_v10  ;;  %v7078_v10 = vld [vmem:[#allocation12_spill] sm:$0xff] }
 0x1a8   : > { %v468_v15 = vpop.permute.xlu1 %467  ;;  %v460_v29 = vpop.permute.xlu0 %459  ;;  %3402 = vmatprep.subr.bf16.mxu0 %v4495_v26  ;;  %3508 = vmatprep.subr.bf16.mxu1 %v4498_v21  ;;  %v4514_v26 = vld [vmem:[%s7026_s2 + $0x198] ss:$48 sps:$4 sm:$0xff]  }
 0x1a9   : > { %v481_v41 = vsel %vm469_vm5, %v7075_v23, %v468_v15  ;;  %v478_v47 = vsel %vm469_vm5, %v7076_v12, %v460_v29  ;;  %3283 = vmatprep.mubr.bf16.mxu0 %v4800_v37  ;;  %3389 = vmatprep.mubr.bf16.mxu1 %v4800_v37  ;;  %v4523_v23 = vld [vmem:[%s7026_s2 + $0x250] ss:$48 sps:$4 sm:$0xff]  }
 0x1aa   : > { %v505_v27 = vadd.f32 %v481_v41, %v376_v44  ;;  %v502_v16 = vadd.f32 %v478_v47, %v373_v35  ;;  %v4526_v41 = vld [vmem:[%s7026_s2 + $0x258] ss:$48 sps:$4 sm:$0xff]   ;;  %v4529_v47 = vld [vmem:[%s7026_s2 + $0x2b0] ss:$48 sps:$4 sm:$0xff]  }
 0x1ab   : > { %3403 = vmatpush1.bf16.msra.mxu0 %v4493_v49  ;;  %3509 = vmatpush1.bf16.msra.mxu1 %v4496_v56  ;;  %v4517_v56 = vld [vmem:[%s7026_s2 + $0x1f0] ss:$48 sps:$4 sm:$0xff]  }
 0x1ac   : > { %v605_v6 = vadd.f32 %v581_v63, %v505_v27  ;;  %v740_v55 = vpop.permute.xlu1 %739  ;;  %v602_v13 = vadd.f32 %v575_v42, %v502_v16  ;;  %v732_v52 = vpop.permute.xlu0 %731  ;;  %3404 = vmatprep.subr.bf16.mxu0 %v4501_v9  ;;  %3510 = vmatprep.subr.bf16.mxu1 %v4504_v8  ;;  %v4520_v63 = vld [vmem:[%s7026_s2 + $0x1f8] ss:$48 sps:$4 sm:$0xff]   ;;  %v4537_v16 = vld [vmem:[%s7026_s2 + $0x314] ss:$48 sps:$4 sm:$0xff]  }
 0x1ad   : > { %v752_v17 = vsel %vm340_vm4, %v6003_v7, %v740_v55  ;;  %v749_v28 = vsel %vm340_vm4, %v5983_v31, %v732_v52  ;;  %v4513_v31 = vld [vmem:[%s7026_s2 + $0x194] ss:$48 sps:$4 sm:$0xff]   ;;  %v4516_v7 = vld [vmem:[%s7026_s2 + $0x19c] ss:$48 sps:$4 sm:$0xff]   ;;  %v4541_v52 = vld [vmem:[%s7026_s2 + $0x370] ss:$48 sps:$4 sm:$0xff]  }
 0x1ae   : > { %v776_v25 = vadd.f32 %v752_v17, %v605_v6  ;;  %v773_v46 = vadd.f32 %v749_v28, %v602_v13  ;;  %v7079_v27 = vld [vmem:[#allocation11_spill] sm:$0xff]  ;;  %v4543_v55 = vld [vmem:[%s7026_s2 + $0x374] ss:$48 sps:$4 sm:$0xff]   ;;  %v4547_v28 = vld [vmem:[%s7026_s2 + $0x3d0] ss:$48 sps:$4 sm:$0xff]  }
 0x1af   : > { %3405 = vmatpush1.bf16.msra.mxu0 %v4499_v36  ;;  %3511 = vmatpush1.bf16.msra.mxu1 %v4502_v11  ;;  %v4540_v36 = vld [vmem:[%s7026_s2 + $0x31c] ss:$48 sps:$4 sm:$0xff]   ;;  %v4535_v11 = vld [vmem:[%s7026_s2 + $0x310] ss:$48 sps:$4 sm:$0xff]   ;;  %v4538_v6 = vld [vmem:[%s7026_s2 + $0x318] ss:$48 sps:$4 sm:$0xff]  }
 0x1b0   : > { %v911_v39 = vpop.permute.xlu1 %910  ;;  %v903_v2 = vpop.permute.xlu0 %902  ;;  %3406 = vmatprep.subr.bf16.mxu0 %v4507_v18  ;;  %3512 = vmatprep.subr.bf16.mxu1 %v4510_v38  ;;  %v4546_v13 = vld [vmem:[%s7026_s2 + $0x37c] ss:$48 sps:$4 sm:$0xff]   ;;  %v4544_v18 = vld [vmem:[%s7026_s2 + $0x378] ss:$48 sps:$4 sm:$0xff]   ;;  %v4549_v38 = vld [vmem:[%s7026_s2 + $0x3d4] ss:$48 sps:$4 sm:$0xff]  }
 0x1b1   : > { %v923_v45 = vsel %vm469_vm5, %v7077_v30, %v911_v39  ;;  %v920_v48 = vsel %vm469_vm5, %v7078_v10, %v903_v2  ;;  %v4552_v17 = vld [vmem:[%s7026_s2 + $0x3dc] ss:$48 sps:$4 sm:$0xff]   ;;  %v4559_v2 = vld [vmem:[%s7026_s2 + $0x490] ss:$48 sps:$4 sm:$0xff]   ;;  %v4568_v10 = vld [vmem:[%s7026_s2 + $0x4f8] ss:$48 sps:$4 sm:$0xff]  }
 0x1b2   : > { %v947_v34 = vadd.f32 %v923_v45, %v776_v25  ;;  %v944_v20 = vadd.f32 %v920_v48, %v773_v46  ;;  %v4556_v25 = vld [vmem:[%s7026_s2 + $0x438] ss:$48 sps:$4 sm:$0xff]   ;;  %v4561_v46 = vld [vmem:[%s7026_s2 + $0x494] ss:$48 sps:$4 sm:$0xff]   ;;  %v4564_v39 = vld [vmem:[%s7026_s2 + $0x49c] ss:$48 sps:$4 sm:$0xff]  }
 0x1b3   : > { %3407 = vmatpush1.bf16.msra.mxu0 %v4505_v0  ;;  %3513 = vmatpush1.bf16.msra.mxu1 %v4508_v5  ;;  %v4558_v0 = vld [vmem:[%s7026_s2 + $0x43c] ss:$48 sps:$4 sm:$0xff]   ;;  %v4553_v5 = vld [vmem:[%s7026_s2 + $0x430] ss:$48 sps:$4 sm:$0xff]   ;;  %v4573_v48 = vld [vmem:[%s7026_s2 + $0x554] ss:$48 sps:$4 sm:$0xff]  }
 0x1b4   : > { %v1047_v21 = vadd.f32 %v1023_v61, %v947_v34  ;;  %v1182_v40 = vpop.permute.xlu1 %1181  ;;  %v1044_v50 = vadd.f32 %v1017_v57, %v944_v20  ;;  %v1174_v53 = vpop.permute.xlu0 %1173  ;;  %3408 = vmatprep.subr.bf16.mxu0 %v4513_v31  ;;  %3514 = vmatprep.subr.bf16.mxu1 %v4516_v7  ;;  %v4562_v31 = vld [vmem:[%s7026_s2 + $0x498] ss:$48 sps:$4 sm:$0xff]   ;;  %v4567_v7 = vld [vmem:[%s7026_s2 + $0x4f4] ss:$48 sps:$4 sm:$0xff]   ;;  %v4570_v30 = vld [vmem:[%s7026_s2 + $0x4fc] ss:$48 sps:$4 sm:$0xff]  }
 0x1b5   : > { %v1194_v19 = vsel %vm340_vm4, %v6137_v22, %v1182_v40  ;;  %v1191_v49 = vsel %vm340_vm4, %v6121_v32, %v1174_v53  ;;  %v4525_v32 = vld [vmem:[%s7026_s2 + $0x254] ss:$48 sps:$4 sm:$0xff]   ;;  %v4528_v22 = vld [vmem:[%s7026_s2 + $0x25c] ss:$48 sps:$4 sm:$0xff]   ;;  %v4565_v45 = vld [vmem:[%s7026_s2 + $0x4f0] ss:$48 sps:$4 sm:$0xff]  }
 0x1b6   : > { %v1218_v42 = vadd.f32 %v1194_v19, %v1047_v21  ;;  %v1215_v44 = vadd.f32 %v1191_v49, %v1044_v50  ;;  %v4576_v61 = vld [vmem:[%s7026_s2 + $0x55c] ss:$48 sps:$4 sm:$0xff]   ;;  %v4571_v57 = vld [vmem:[%s7026_s2 + $0x550] ss:$48 sps:$4 sm:$0xff]   ;;  %v4574_v34 = vld [vmem:[%s7026_s2 + $0x558] ss:$48 sps:$4 sm:$0xff]  }
 0x1b7   : > { %3409 = vmatpush1.bf16.msra.mxu0 %v4511_v54  ;;  %3515 = vmatpush1.bf16.msra.mxu1 %v4514_v26  ;;  %v4579_v20 = vld [vmem:[%s7026_s2 + $0x5b4] ss:$48 sps:$4 sm:$0xff]   ;;  %v4582_v54 = vld [vmem:[%s7026_s2 + $0x5bc] ss:$48 sps:$4 sm:$0xff]   ;;  %v4577_v26 = vld [vmem:[%s7026_s2 + $0x5b0] ss:$48 sps:$4 sm:$0xff]  }
 0x1b8   : > { %v1353_v35 = vpop.permute.xlu1 %1352  ;;  %v1345_v15 = vpop.permute.xlu0 %1344  ;;  %3410 = vmatprep.subr.bf16.mxu0 %v4519_v3  ;;  %3516 = vmatprep.subr.bf16.mxu1 %v4522_v58  ;;  %v4580_v21 = vld [vmem:[%s7026_s2 + $0x5b8] ss:$48 sps:$4 sm:$0xff]   ;;  %v4585_v40 = vld [vmem:[%s7026_s2 + $0x614] ss:$48 sps:$4 sm:$0xff]   ;;  %v4588_v50 = vld [vmem:[%s7026_s2 + $0x61c] ss:$48 sps:$4 sm:$0xff]  }
 0x1b9   : > { %v1365_v29 = vsel %vm469_vm5, %v6219_v62, %v1353_v35  ;;  %v1362_v9 = vsel %vm469_vm5, %v6185_v24, %v1345_v15  ;;  %v4531_v24 = vld [vmem:[%s7026_s2 + $0x2b4] ss:$48 sps:$4 sm:$0xff]   ;;  %v4534_v62 = vld [vmem:[%s7026_s2 + $0x2bc] ss:$48 sps:$4 sm:$0xff]   ;;  %v4583_v53 = vld [vmem:[%s7026_s2 + $0x610] ss:$48 sps:$4 sm:$0xff]  }
 0x1ba   : > { %v1389_v8 = vadd.f32 %v1365_v29, %v1218_v42  ;;  %v1386_v51 = vadd.f32 %v1362_v9, %v1215_v44  ;;  %v4586_v3 = vld [vmem:[%s7026_s2 + $0x618] ss:$48 sps:$4 sm:$0xff]   ;;  %v4591_v58 = vld [vmem:[%s7026_s2 + $0x674] ss:$48 sps:$4 sm:$0xff]   ;;  %v4594_v19 = vld [vmem:[%s7026_s2 + $0x67c] ss:$48 sps:$4 sm:$0xff]  }
 0x1bb   : > { %3411 = vmatpush1.bf16.msra.mxu0 %v4517_v56  ;;  %3517 = vmatpush1.bf16.msra.mxu1 %v4520_v63  ;;  %v7080_v49 = vld [vmem:[#allocation10_spill] sm:$0xff]  ;;  %v4592_v63 = vld [vmem:[%s7026_s2 + $0x678] ss:$48 sps:$4 sm:$0xff]   ;;  %v4600_v44 = vld [vmem:[%s7026_s2 + $0x6dc] ss:$48 sps:$4 sm:$0xff]  }
 0x1bc   : > { %v6408_v12 = vpack.c.bf16 %v1389_v8, %v1386_v51  ;;  %3412 = vmatprep.subr.bf16.mxu0 %v4525_v32  ;;  %3518 = vmatprep.subr.bf16.mxu1 %v4528_v22  ;;  %v4589_v56 = vld [vmem:[%s7026_s2 + $0x670] ss:$48 sps:$4 sm:$0xff]   ;;  %v4597_v42 = vld [vmem:[%s7026_s2 + $0x6d4] ss:$48 sps:$4 sm:$0xff]   ;;  %v4598_v15 = vld [vmem:[%s7026_s2 + $0x6d8] ss:$48 sps:$4 sm:$0xff]  }
 0x1bd   : > { %v4595_v35 = vld [vmem:[%s7026_s2 + $0x6d0] ss:$48 sps:$4 sm:$0xff]   ;;  %v4603_v32 = vld [vmem:[%s7026_s2 + $0x734] ss:$48 sps:$4 sm:$0xff]   ;;  %v4606_v22 = vld [vmem:[%s7026_s2 + $0x73c] ss:$48 sps:$4 sm:$0xff]  }
 0x1be   : > { %3284 = vmatmul.mubr.bf16.gmra.mrb[4].mxu0 %v6408_v12  ;;  %3390 = vmatmul.mubr.bf16.gmra.mrb[4].mxu1 %v6408_v12  ;;  %v4601_v29 = vld [vmem:[%s7026_s2 + $0x730] ss:$48 sps:$4 sm:$0xff]   ;;  %v4604_v9 = vld [vmem:[%s7026_s2 + $0x738] ss:$48 sps:$4 sm:$0xff]   ;;  %v4609_v8 = vld [vmem:[%s7026_s2 + $0x794] ss:$48 sps:$4 sm:$0xff]  }
 0x1bf   : > { %3413 = vmatpush1.bf16.msra.mxu0 %v4523_v23  ;;  %3519 = vmatpush1.bf16.msra.mxu1 %v4526_v41  ;;  %v4612_v51 = vld [vmem:[%s7026_s2 + $0x79c] ss:$48 sps:$4 sm:$0xff]   ;;  %v4607_v23 = vld [vmem:[%s7026_s2 + $0x790] ss:$48 sps:$4 sm:$0xff]   ;;  %v4610_v41 = vld [vmem:[%s7026_s2 + $0x798] ss:$48 sps:$4 sm:$0xff]  }
 0x1c0   : > { %3432 = vmatprep.mubr.bf16.mxu0 %v7079_v27  ;;  %3538 = vmatprep.mubr.bf16.mxu1 %v7079_v27 }
 0x1c1   : > { %3414 = vmatprep.subr.bf16.mxu0 %v4531_v24  ;;  %3520 = vmatprep.subr.bf16.mxu1 %v4534_v62  ;;  %v4615_v24 = vld [vmem:[%s7026_s2 + $0x7f4] ss:$48 sps:$4 sm:$0xff]   ;;  %v4618_v62 = vld [vmem:[%s7026_s2 + $0x7fc] ss:$48 sps:$4 sm:$0xff]  }
 0x1c3   : > { %3415 = vmatpush1.bf16.msra.mxu0 %v4529_v47  ;;  %3521 = vmatpush1.bf16.msra.mxu1 %v4532_v60  ;;  %v4613_v47 = vld [vmem:[%s7026_s2 + $0x7f0] ss:$48 sps:$4 sm:$0xff]   ;;  %v4616_v60 = vld [vmem:[%s7026_s2 + $0x7f8] ss:$48 sps:$4 sm:$0xff]  }
 0x1c4   : > { %3416 = vmatprep.subr.bf16.mxu0 %v4537_v16  ;;  %3522 = vmatprep.subr.bf16.mxu1 %v4540_v36  ;;  %v4621_v16 = vld [vmem:[%s7026_s2 + $0x854] ss:$48 sps:$4 sm:$0xff]   ;;  %v4624_v36 = vld [vmem:[%s7026_s2 + $0x85c] ss:$48 sps:$4 sm:$0xff]  }
 0x1c7   : > { %3417 = vmatpush1.bf16.msra.mxu0 %v4535_v11  ;;  %3523 = vmatpush1.bf16.msra.mxu1 %v4538_v6  ;;  %v4619_v11 = vld [vmem:[%s7026_s2 + $0x850] ss:$48 sps:$4 sm:$0xff]   ;;  %v4622_v6 = vld [vmem:[%s7026_s2 + $0x858] ss:$48 sps:$4 sm:$0xff]  }
 0x1c8   : > { %3418 = vmatprep.subr.bf16.mxu0 %v4543_v55  ;;  %3524 = vmatprep.subr.bf16.mxu1 %v4546_v13  ;;  %v4627_v55 = vld [vmem:[%s7026_s2 + $0x8b4] ss:$48 sps:$4 sm:$0xff]   ;;  %v4630_v13 = vld [vmem:[%s7026_s2 + $0x8bc] ss:$48 sps:$4 sm:$0xff]  }
 0x1cb   : > { %3419 = vmatpush1.bf16.msra.mxu0 %v4541_v52  ;;  %3525 = vmatpush1.bf16.msra.mxu1 %v4544_v18  ;;  %v4625_v52 = vld [vmem:[%s7026_s2 + $0x8b0] ss:$48 sps:$4 sm:$0xff]   ;;  %v4628_v18 = vld [vmem:[%s7026_s2 + $0x8b8] ss:$48 sps:$4 sm:$0xff]  }
 0x1cc   : > { %3420 = vmatprep.subr.bf16.mxu0 %v4549_v38  ;;  %3526 = vmatprep.subr.bf16.mxu1 %v4552_v17  ;;  %v4633_v38 = vld [vmem:[%s7026_s2 + $0x24] ss:$48 sps:$4 sm:$0xff]   ;;  %v4636_v17 = vld [vmem:[%s7026_s2 + $0x2c] ss:$48 sps:$4 sm:$0xff]  }
 0x1cf   : > { %3421 = vmatpush1.bf16.msra.mxu0 %v4547_v28  ;;  %3527 = vmatpush1.bf16.msra.mxu1 %v4550_v59  ;;  %v4631_v28 = vld [vmem:[%s7026_s2 + $0x20] ss:$48 sps:$4 sm:$0xff]   ;;  %v4634_v59 = vld [vmem:[%s7026_s2 + $0x28] ss:$48 sps:$4 sm:$0xff]  }
 0x1d0   : > { %3422 = vmatprep.subr.bf16.mxu0 %v4555_v14  ;;  %3528 = vmatprep.subr.bf16.mxu1 %v4558_v0  ;;  %v4639_v14 = vld [vmem:[%s7026_s2 + $0x84] ss:$48 sps:$4 sm:$0xff]   ;;  %v4642_v0 = vld [vmem:[%s7026_s2 + $0x8c] ss:$48 sps:$4 sm:$0xff]  }
 0x1d3   : > { %3423 = vmatpush1.bf16.msra.mxu0 %v4553_v5  ;;  %3529 = vmatpush1.bf16.msra.mxu1 %v4556_v25  ;;  %v4637_v5 = vld [vmem:[%s7026_s2 + $0x80] ss:$48 sps:$4 sm:$0xff]   ;;  %v4640_v25 = vld [vmem:[%s7026_s2 + $0x88] ss:$48 sps:$4 sm:$0xff]  }
 0x1d4   : > { %3424 = vmatprep.subr.bf16.mxu0 %v4561_v46  ;;  %3530 = vmatprep.subr.bf16.mxu1 %v4564_v39  ;;  %v4645_v46 = vld [vmem:[%s7026_s2 + $0xe4] ss:$48 sps:$4 sm:$0xff]   ;;  %v4648_v39 = vld [vmem:[%s7026_s2 + $0xec] ss:$48 sps:$4 sm:$0xff]  }
 0x1d7   : > { %3425 = vmatpush1.bf16.msra.mxu0 %v4559_v2  ;;  %3531 = vmatpush1.bf16.msra.mxu1 %v4562_v31  ;;  %v4643_v2 = vld [vmem:[%s7026_s2 + $0xe0] ss:$48 sps:$4 sm:$0xff]   ;;  %v4646_v31 = vld [vmem:[%s7026_s2 + $0xe8] ss:$48 sps:$4 sm:$0xff]  }
 0x1d8   : > { %3426 = vmatprep.subr.bf16.mxu0 %v4567_v7  ;;  %3532 = vmatprep.subr.bf16.mxu1 %v4570_v30  ;;  %v4651_v7 = vld [vmem:[%s7026_s2 + $0x144] ss:$48 sps:$4 sm:$0xff]   ;;  %v4654_v30 = vld [vmem:[%s7026_s2 + $0x14c] ss:$48 sps:$4 sm:$0xff]  }
 0x1db   : > { %3427 = vmatpush1.bf16.msra.mxu0 %v4565_v45  ;;  %3533 = vmatpush1.bf16.msra.mxu1 %v4568_v10  ;;  %v4649_v45 = vld [vmem:[%s7026_s2 + $0x140] ss:$48 sps:$4 sm:$0xff]   ;;  %v4652_v10 = vld [vmem:[%s7026_s2 + $0x148] ss:$48 sps:$4 sm:$0xff]  }
 0x1dc   : > { %3428 = vmatprep.subr.bf16.mxu0 %v4573_v48  ;;  %3534 = vmatprep.subr.bf16.mxu1 %v4576_v61  ;;  %v4657_v48 = vld [vmem:[%s7026_s2 + $0x1a4] ss:$48 sps:$4 sm:$0xff]   ;;  %v4660_v61 = vld [vmem:[%s7026_s2 + $0x1ac] ss:$48 sps:$4 sm:$0xff]  }
 0x1df   : > { %3429 = vmatpush1.bf16.msra.mxu0 %v4571_v57  ;;  %3535 = vmatpush1.bf16.msra.mxu1 %v4574_v34  ;;  %v4655_v57 = vld [vmem:[%s7026_s2 + $0x1a0] ss:$48 sps:$4 sm:$0xff]   ;;  %v4658_v34 = vld [vmem:[%s7026_s2 + $0x1a8] ss:$48 sps:$4 sm:$0xff]  }
 0x1e0   : > { %3430 = vmatprep.subr.bf16.mxu0 %v4579_v20  ;;  %3536 = vmatprep.subr.bf16.mxu1 %v4582_v54  ;;  %v4666_v20 = vld [vmem:[%s7026_s2 + $0x20c] ss:$48 sps:$4 sm:$0xff]   ;;  %v4661_v54 = vld [vmem:[%s7026_s2 + $0x200] ss:$48 sps:$4 sm:$0xff]  }
 0x1e3   : > { %3431 = vmatpush1.bf16.msra.mxu0 %v4577_v26  ;;  %3537 = vmatpush1.bf16.msra.mxu1 %v4580_v21  ;;  %v4664_v26 = vld [vmem:[%s7026_s2 + $0x208] ss:$48 sps:$4 sm:$0xff]   ;;  %v4669_v21 = vld [vmem:[%s7026_s2 + $0x264] ss:$48 sps:$4 sm:$0xff]  }
 0x1e4   : > { %3453 = vmatprep.subr.bf16.mxu0 %v4585_v40  ;;  %3559 = vmatprep.subr.bf16.mxu1 %v4588_v50  ;;  %v4672_v40 = vld [vmem:[%s7026_s2 + $0x26c] ss:$48 sps:$4 sm:$0xff]   ;;  %v4667_v50 = vld [vmem:[%s7026_s2 + $0x260] ss:$48 sps:$4 sm:$0xff]  }
 0x1e6   : > { %3433 = vmatmul.mubr.bf16.vlgmr.msra.gmra.mrb[8].mxu0 %v7080_v49  ;;  %3539 = vmatmul.mubr.bf16.vlgmr.msra.gmra.mrb[8].mxu1 %v7080_v49 }
 0x1e7   : > { %3442 = vmatprep.mubr.bf16.mxu0 %v6241_v33  ;;  %3454 = vmatpush1.bf16.msra.mxu0 %v4583_v53  ;;  %v4670_v53 = vld [vmem:[%s7026_s2 + $0x268] ss:$48 sps:$4 sm:$0xff]  }
 0x1e8   : > { %3548 = vmatprep.mubr.bf16.mxu1 %v6241_v33  ;;  %3560 = vmatpush1.bf16.msra.mxu1 %v4586_v3  ;;  %v4675_v3 = vld [vmem:[%s7026_s2 + $0x2c4] ss:$48 sps:$4 sm:$0xff]  }
 0x1e9   : > { %3455 = vmatprep.subr.bf16.mxu0 %v4591_v58  ;;  %3561 = vmatprep.subr.bf16.mxu1 %v4594_v19  ;;  %v4678_v58 = vld [vmem:[%s7026_s2 + $0x2cc] ss:$48 sps:$4 sm:$0xff]   ;;  %v4673_v19 = vld [vmem:[%s7026_s2 + $0x2c0] ss:$48 sps:$4 sm:$0xff]  }
 0x1eb   : > { %3456 = vmatpush1.bf16.msra.mxu0 %v4589_v56  ;;  %v4676_v56 = vld [vmem:[%s7026_s2 + $0x2c8] ss:$48 sps:$4 sm:$0xff]  }
 0x1ec   : > { %3562 = vmatpush1.bf16.msra.mxu1 %v4592_v63  ;;  %3457 = vmatprep.subr.bf16.mxu0 %v4597_v42  ;;  %v4681_v63 = vld [vmem:[%s7026_s2 + $0x324] ss:$48 sps:$4 sm:$0xff]   ;;  %v4684_v42 = vld [vmem:[%s7026_s2 + $0x32c] ss:$48 sps:$4 sm:$0xff]  }
 0x1ed   : > { %3563 = vmatprep.subr.bf16.mxu1 %v4600_v44  ;;  %v4679_v44 = vld [vmem:[%s7026_s2 + $0x320] ss:$48 sps:$4 sm:$0xff]  }
 0x1ee   : > { %3443 = vmatmul.mubr.bf16.gmra.mrb[12].mxu0 %v6261_v43  ;;  %3549 = vmatmul.mubr.bf16.gmra.mrb[12].mxu1 %v6261_v43 }
 0x1ef   : > { %3458 = vmatpush1.bf16.msra.mxu0 %v4595_v35  ;;  %3485 = vmatprep.mubr.bf16.mxu0 %v4800_v37  ;;  %v4682_v35 = vld [vmem:[%s7026_s2 + $0x328] ss:$48 sps:$4 sm:$0xff]  }
 0x1f0   : > { %3564 = vmatpush1.bf16.msra.mxu1 %v4598_v15  ;;  %3459 = vmatprep.subr.bf16.mxu0 %v4603_v32  ;;  %v4687_v15 = vld [vmem:[%s7026_s2 + $0x384] ss:$48 sps:$4 sm:$0xff]   ;;  %v4690_v32 = vld [vmem:[%s7026_s2 + $0x38c] ss:$48 sps:$4 sm:$0xff]  }
 0x1f1   : > { %3565 = vmatprep.subr.bf16.mxu1 %v4606_v22  ;;  %3591 = vmatprep.mubr.bf16.mxu1 %v4800_v37  ;;  %v4685_v22 = vld [vmem:[%s7026_s2 + $0x380] ss:$48 sps:$4 sm:$0xff]  }
 0x1f3   : > { %3460 = vmatpush1.bf16.msra.mxu0 %v4601_v29  ;;  %v4688_v29 = vld [vmem:[%s7026_s2 + $0x388] ss:$48 sps:$4 sm:$0xff]  }
 0x1f4   : > { %3566 = vmatpush1.bf16.msra.mxu1 %v4604_v9  ;;  %3461 = vmatprep.subr.bf16.mxu0 %v4609_v8  ;;  %v4693_v9 = vld [vmem:[%s7026_s2 + $0x3e4] ss:$48 sps:$4 sm:$0xff]   ;;  %v4696_v8 = vld [vmem:[%s7026_s2 + $0x3ec] ss:$48 sps:$4 sm:$0xff]  }
 0x1f5   : > { %3567 = vmatprep.subr.bf16.mxu1 %v4612_v51  ;;  %v4691_v51 = vld [vmem:[%s7026_s2 + $0x3e0] ss:$48 sps:$4 sm:$0xff]  }
 0x1f7   : > { %3462 = vmatpush1.bf16.msra.mxu0 %v4607_v23  ;;  %v4694_v23 = vld [vmem:[%s7026_s2 + $0x3e8] ss:$48 sps:$4 sm:$0xff]  }
 0x1f8   : > { %3568 = vmatpush1.bf16.msra.mxu1 %v4610_v41  ;;  %3463 = vmatprep.subr.bf16.mxu0 %v4615_v24  ;;  %v4699_v41 = vld [vmem:[%s7026_s2 + $0x444] ss:$48 sps:$4 sm:$0xff]   ;;  %v4702_v24 = vld [vmem:[%s7026_s2 + $0x44c] ss:$48 sps:$4 sm:$0xff]  }
 0x1f9   : > { %3569 = vmatprep.subr.bf16.mxu1 %v4618_v62  ;;  %v4697_v62 = vld [vmem:[%s7026_s2 + $0x440] ss:$48 sps:$4 sm:$0xff]  }
 0x1fb   : > { %3464 = vmatpush1.bf16.msra.mxu0 %v4613_v47  ;;  %v4700_v47 = vld [vmem:[%s7026_s2 + $0x448] ss:$48 sps:$4 sm:$0xff]  }
 0x1fc   : > { %3570 = vmatpush1.bf16.msra.mxu1 %v4616_v60  ;;  %3465 = vmatprep.subr.bf16.mxu0 %v4621_v16  ;;  %v4705_v60 = vld [vmem:[%s7026_s2 + $0x4a4] ss:$48 sps:$4 sm:$0xff]   ;;  %v4708_v16 = vld [vmem:[%s7026_s2 + $0x4ac] ss:$48 sps:$4 sm:$0xff]  }
 0x1fd   : > { %3571 = vmatprep.subr.bf16.mxu1 %v4624_v36  ;;  %v4703_v36 = vld [vmem:[%s7026_s2 + $0x4a0] ss:$48 sps:$4 sm:$0xff]  }
 0x1ff   : > { %3466 = vmatpush1.bf16.msra.mxu0 %v4619_v11  ;;  %v4706_v11 = vld [vmem:[%s7026_s2 + $0x4a8] ss:$48 sps:$4 sm:$0xff]  }
 0x200   : > { %3572 = vmatpush1.bf16.msra.mxu1 %v4622_v6  ;;  %3467 = vmatprep.subr.bf16.mxu0 %v4627_v55  ;;  %v4711_v6 = vld [vmem:[%s7026_s2 + $0x504] ss:$48 sps:$4 sm:$0xff]   ;;  %v4714_v55 = vld [vmem:[%s7026_s2 + $0x50c] ss:$48 sps:$4 sm:$0xff]  }
 0x201   : > { %3573 = vmatprep.subr.bf16.mxu1 %v4630_v13  ;;  %v4709_v13 = vld [vmem:[%s7026_s2 + $0x500] ss:$48 sps:$4 sm:$0xff]  }
 0x203   : > { %3468 = vmatpush1.bf16.msra.mxu0 %v4625_v52  ;;  %v4712_v52 = vld [vmem:[%s7026_s2 + $0x508] ss:$48 sps:$4 sm:$0xff]  }
 0x204   : > { %3574 = vmatpush1.bf16.msra.mxu1 %v4628_v18  ;;  %3612 = vmatprep.subr.bf16.mxu0 %v4633_v38  ;;  %v4717_v18 = vld [vmem:[%s7026_s2 + $0x564] ss:$48 sps:$4 sm:$0xff]   ;;  %v4720_v38 = vld [vmem:[%s7026_s2 + $0x56c] ss:$48 sps:$4 sm:$0xff]  }
 0x205   : > { %3718 = vmatprep.subr.bf16.mxu1 %v4636_v17  ;;  %v4715_v17 = vld [vmem:[%s7026_s2 + $0x560] ss:$48 sps:$4 sm:$0xff]  }
 0x206   : > { %3486 = vmatmul.mubr.bf16.vlgmr.msra.gmra.mrb[8].mxu0 %v6293_v1 }
 0x207   : > { %3592 = vmatmul.mubr.bf16.vlgmr.msra.gmra.mrb[8].mxu1 %v6293_v1  ;;  %3613 = vmatpush1.bf16.msra.mxu0 %v4631_v28  ;;  %v4718_v28 = vld [vmem:[%s7026_s2 + $0x568] ss:$48 sps:$4 sm:$0xff]  }
 0x208   : > { %3719 = vmatpush1.bf16.msra.mxu1 %v4634_v59  ;;  %3614 = vmatprep.subr.bf16.mxu0 %v4639_v14  ;;  %v4723_v59 = vld [vmem:[%s7026_s2 + $0x5c4] ss:$48 sps:$4 sm:$0xff]   ;;  %v4726_v14 = vld [vmem:[%s7026_s2 + $0x5cc] ss:$48 sps:$4 sm:$0xff]  }
 0x209   : > { %3720 = vmatprep.subr.bf16.mxu1 %v4642_v0  ;;  %3495 = vmatprep.mubr.bf16.mxu0 %v4800_v37  ;;  %v4721_v0 = vld [vmem:[%s7026_s2 + $0x5c0] ss:$48 sps:$4 sm:$0xff]  }
 0x20a   : > { %3601 = vmatprep.mubr.bf16.mxu1 %v4800_v37 }
 0x20b   : > { %3615 = vmatpush1.bf16.msra.mxu0 %v4637_v5  ;;  %v4724_v5 = vld [vmem:[%s7026_s2 + $0x5c8] ss:$48 sps:$4 sm:$0xff]  }
 0x20c   : > { %3721 = vmatpush1.bf16.msra.mxu1 %v4640_v25  ;;  %3616 = vmatprep.subr.bf16.mxu0 %v4645_v46  ;;  %v4729_v25 = vld [vmem:[%s7026_s2 + $0x624] ss:$48 sps:$4 sm:$0xff]   ;;  %v4732_v46 = vld [vmem:[%s7026_s2 + $0x62c] ss:$48 sps:$4 sm:$0xff]  }
 0x20d   : > { %3722 = vmatprep.subr.bf16.mxu1 %v4648_v39  ;;  %v4727_v39 = vld [vmem:[%s7026_s2 + $0x620] ss:$48 sps:$4 sm:$0xff]  }
 0x20e   : > { %3496 = vmatmul.mubr.bf16.gmra.mrb[12].mxu0 %v6408_v12 }
 0x20f   : > { %3602 = vmatmul.mubr.bf16.gmra.mrb[12].mxu1 %v6408_v12  ;;  %3617 = vmatpush1.bf16.msra.mxu0 %v4643_v2  ;;  %v4730_v2 = vld [vmem:[%s7026_s2 + $0x628] ss:$48 sps:$4 sm:$0xff]  }
 0x210   : > { %3644 = vmatprep.mubr.bf16.mxu0 %v7079_v27  ;;  %3723 = vmatpush1.bf16.msra.mxu1 %v4646_v31  ;;  %v4735_v31 = vld [vmem:[%s7026_s2 + $0x684] ss:$48 sps:$4 sm:$0xff]  }
 0x211   : > { %3750 = vmatprep.mubr.bf16.mxu1 %v7079_v27  ;;  %3618 = vmatprep.subr.bf16.mxu0 %v4651_v7  ;;  %v4663_v27 = vld [vmem:[%s7026_s2 + $0x204] ss:$48 sps:$4 sm:$0xff]   ;;  %v4738_v7 = vld [vmem:[%s7026_s2 + $0x68c] ss:$48 sps:$4 sm:$0xff]  }
 0x212   : > { %3724 = vmatprep.subr.bf16.mxu1 %v4654_v30  ;;  %v4733_v30 = vld [vmem:[%s7026_s2 + $0x680] ss:$48 sps:$4 sm:$0xff]  }
 0x213   : > { %3619 = vmatpush1.bf16.msra.mxu0 %v4649_v45  ;;  %v4736_v45 = vld [vmem:[%s7026_s2 + $0x688] ss:$48 sps:$4 sm:$0xff]  }
 0x214   : > { %3725 = vmatpush1.bf16.msra.mxu1 %v4652_v10  ;;  %3620 = vmatprep.subr.bf16.mxu0 %v4657_v48  ;;  %v4741_v10 = vld [vmem:[%s7026_s2 + $0x6e4] ss:$48 sps:$4 sm:$0xff]   ;;  %v4742_v48 = vld [vmem:[%s7026_s2 + $0x6e8] ss:$48 sps:$4 sm:$0xff]  }
 0x215   : > { %3726 = vmatprep.subr.bf16.mxu1 %v4660_v61  ;;  %v4747_v61 = vld [vmem:[%s7026_s2 + $0x744] ss:$48 sps:$4 sm:$0xff]  }
 0x217   : > { %3621 = vmatpush1.bf16.msra.mxu0 %v4655_v57  ;;  %v4750_v57 = vld [vmem:[%s7026_s2 + $0x74c] ss:$48 sps:$4 sm:$0xff]  }
 0x218   : > { %3727 = vmatpush1.bf16.msra.mxu1 %v4658_v34  ;;  %3622 = vmatprep.subr.bf16.mxu0 %v4663_v27  ;;  %v4745_v34 = vld [vmem:[%s7026_s2 + $0x740] ss:$48 sps:$4 sm:$0xff]   ;;  %v4748_v27 = vld [vmem:[%s7026_s2 + $0x748] ss:$48 sps:$4 sm:$0xff]  }
 0x219   : > { %3728 = vmatprep.subr.bf16.mxu1 %v4666_v20  ;;  %v4753_v20 = vld [vmem:[%s7026_s2 + $0x7a4] ss:$48 sps:$4 sm:$0xff]  }
 0x21b   : > { %3623 = vmatpush1.bf16.msra.mxu0 %v4661_v54  ;;  %v4751_v54 = vld [vmem:[%s7026_s2 + $0x7a0] ss:$48 sps:$4 sm:$0xff]  }
 0x21c   : > { %3729 = vmatpush1.bf16.msra.mxu1 %v4664_v26  ;;  %3624 = vmatprep.subr.bf16.mxu0 %v4669_v21  ;;  %v4754_v26 = vld [vmem:[%s7026_s2 + $0x7a8] ss:$48 sps:$4 sm:$0xff]   ;;  %v4759_v21 = vld [vmem:[%s7026_s2 + $0x804] ss:$48 sps:$4 sm:$0xff]  }
 0x21d   : > { %3730 = vmatprep.subr.bf16.mxu1 %v4672_v40  ;;  %v4762_v40 = vld [vmem:[%s7026_s2 + $0x80c] ss:$48 sps:$4 sm:$0xff]  }
 0x21f   : > { %3625 = vmatpush1.bf16.msra.mxu0 %v4667_v50  ;;  %v4757_v50 = vld [vmem:[%s7026_s2 + $0x800] ss:$48 sps:$4 sm:$0xff]  }
 0x220   : > { %3731 = vmatpush1.bf16.msra.mxu1 %v4670_v53  ;;  %3626 = vmatprep.subr.bf16.mxu0 %v4675_v3  ;;  %v4760_v53 = vld [vmem:[%s7026_s2 + $0x808] ss:$48 sps:$4 sm:$0xff]   ;;  %v4765_v3 = vld [vmem:[%s7026_s2 + $0x864] ss:$48 sps:$4 sm:$0xff]  }
 0x221   : > { %3732 = vmatprep.subr.bf16.mxu1 %v4678_v58  ;;  %v4768_v58 = vld [vmem:[%s7026_s2 + $0x86c] ss:$48 sps:$4 sm:$0xff]  }
 0x223   : > { %3627 = vmatpush1.bf16.msra.mxu0 %v4673_v19  ;;  %v4763_v19 = vld [vmem:[%s7026_s2 + $0x860] ss:$48 sps:$4 sm:$0xff]  }
 0x224   : > { %3733 = vmatpush1.bf16.msra.mxu1 %v4676_v56  ;;  %3628 = vmatprep.subr.bf16.mxu0 %v4681_v63  ;;  %v4766_v56 = vld [vmem:[%s7026_s2 + $0x868] ss:$48 sps:$4 sm:$0xff]   ;;  %v4771_v63 = vld [vmem:[%s7026_s2 + $0x8c4] ss:$48 sps:$4 sm:$0xff]  }
 0x225   : > { %3734 = vmatprep.subr.bf16.mxu1 %v4684_v42  ;;  %v4774_v42 = vld [vmem:[%s7026_s2 + $0x8cc] ss:$48 sps:$4 sm:$0xff]  }
 0x227   : > { %3629 = vmatpush1.bf16.msra.mxu0 %v4679_v44  ;;  %v4769_v44 = vld [vmem:[%s7026_s2 + $0x8c0] ss:$48 sps:$4 sm:$0xff]  }
 0x228   : > { %3735 = vmatpush1.bf16.msra.mxu1 %v4682_v35  ;;  %3630 = vmatprep.subr.bf16.mxu0 %v4687_v15  ;;  %v4772_v35 = vld [vmem:[%s7026_s2 + $0x8c8] ss:$48 sps:$4 sm:$0xff]   ;;  %v6939_v15 = vld [vmem:[%s7027_s3] sm:$0xff] }
 0x229   : > { %3736 = vmatprep.subr.bf16.mxu1 %v4690_v32  ;;  %v7081_v32 = vld [vmem:[#allocation2_spill] sm:$0xff] }
 0x22b   : > { %3631 = vmatpush1.bf16.msra.mxu0 %v4685_v22  ;;  %v1702_v22 = vsub.s32 3, %v7081_v32 }
 0x22c   : > { %3737 = vmatpush1.bf16.msra.mxu1 %v4688_v29  ;;  %3632 = vmatprep.subr.bf16.mxu0 %v4693_v9  ;;  %v7082_v29 = vld [vmem:[#allocation3_spill] sm:$0xff] }
 0x22d   : > { %3738 = vmatprep.subr.bf16.mxu1 %v4696_v8  ;;  %v1691_v9 = vrot.slane %v6939_v15, %v7082_v29  ;;  %v7083_v8 = vld [vmem:[#allocation4_spill] sm:$0xff] }
 0x22f   : > { %3633 = vmatpush1.bf16.msra.mxu0 %v4691_v51 }
 0x230   : > { %3739 = vmatpush1.bf16.msra.mxu1 %v4694_v23  ;;  %3634 = vmatprep.subr.bf16.mxu0 %v4699_v41 }
 0x231   : > { %3740 = vmatprep.subr.bf16.mxu1 %v4702_v24 }
 0x233   : > { %3635 = vmatpush1.bf16.msra.mxu0 %v4697_v62 }
 0x234   : > { %3741 = vmatpush1.bf16.msra.mxu1 %v4700_v47  ;;  %3636 = vmatprep.subr.bf16.mxu0 %v4705_v60 }
 0x235   : > { %3742 = vmatprep.subr.bf16.mxu1 %v4708_v16 }
 0x237   : > { %3637 = vmatpush1.bf16.msra.mxu0 %v4703_v36 }
 0x238   : > { %3743 = vmatpush1.bf16.msra.mxu1 %v4706_v11  ;;  %3638 = vmatprep.subr.bf16.mxu0 %v4711_v6 }
 0x239   : > { %3744 = vmatprep.subr.bf16.mxu1 %v4714_v55 }
 0x23b   : > { %3639 = vmatpush1.bf16.msra.mxu0 %v4709_v13 }
 0x23c   : > { %3745 = vmatpush1.bf16.msra.mxu1 %v4712_v52  ;;  %3640 = vmatprep.subr.bf16.mxu0 %v4717_v18 }
 0x23d   : > { %3746 = vmatprep.subr.bf16.mxu1 %v4720_v38 }
 0x23f   : > { %3641 = vmatpush1.bf16.msra.mxu0 %v4715_v17 }
 0x240   : > { %3747 = vmatpush1.bf16.msra.mxu1 %v4718_v28  ;;  %3642 = vmatprep.subr.bf16.mxu0 %v4723_v59 }
 0x241   : > { %3748 = vmatprep.subr.bf16.mxu1 %v4726_v14 }
 0x243   : > { %3643 = vmatpush1.bf16.msra.mxu0 %v4721_v0 }
 0x244   : > { %3749 = vmatpush1.bf16.msra.mxu1 %v4724_v5  ;;  %3665 = vmatprep.subr.bf16.mxu0 %v4729_v25 }
 0x245   : > { %3771 = vmatprep.subr.bf16.mxu1 %v4732_v46 }
 0x246   : > { %3645 = vmatmul.mubr.bf16.vlgmr.msra.gmra.mrb[16].mxu0 %v7080_v49 }
 0x247   : > { %3751 = vmatmul.mubr.bf16.vlgmr.msra.gmra.mrb[16].mxu1 %v7080_v49  ;;  %3654 = vmatprep.mubr.bf16.mxu0 %v6241_v33  ;;  %v4744_v49 = vld [vmem:[%s7026_s2 + $0x6ec] ss:$48 sps:$4 sm:$0xff]  }
 0x248   : > { %3666 = vmatpush1.bf16.msra.mxu0 %v4727_v39  ;;  %3760 = vmatprep.mubr.bf16.mxu1 %v6241_v33  ;;  %v4739_v33 = vld [vmem:[%s7026_s2 + $0x6e0] ss:$48 sps:$4 sm:$0xff]  }
 0x249   : > { %3772 = vmatpush1.bf16.msra.mxu1 %v4730_v2  ;;  %3667 = vmatprep.subr.bf16.mxu0 %v4735_v31 }
 0x24a   : > { %3773 = vmatprep.subr.bf16.mxu1 %v4738_v7 }
 0x24c   : > { %3668 = vmatpush1.bf16.msra.mxu0 %v4733_v30 }
 0x24d   : > { %3774 = vmatpush1.bf16.msra.mxu1 %v4736_v45  ;;  %3669 = vmatprep.subr.bf16.mxu0 %v4741_v10 }
 0x24e   : > { %3655 = vmatmul.mubr.bf16.gmra.mrb[20].mxu0 %v6261_v43  ;;  %3775 = vmatprep.subr.bf16.mxu1 %v4744_v49 }
 0x24f   : > { %3761 = vmatmul.mubr.bf16.gmra.mrb[20].mxu1 %v6261_v43  ;;  %3697 = vmatprep.mubr.bf16.mxu0 %v4800_v37  ;;  %v4756_v43 = vld [vmem:[%s7026_s2 + $0x7ac] ss:$48 sps:$4 sm:$0xff]  }
 0x250   : > { %3670 = vmatpush1.bf16.msra.mxu0 %v4739_v33  ;;  %3803 = vmatprep.mubr.bf16.mxu1 %v4800_v37  ;;  %v1706_v33 = vsub.s32 4, %v7081_v32 }
 0x251   : > { %3776 = vmatpush1.bf16.msra.mxu1 %v4742_v48  ;;  %3671 = vmatprep.subr.bf16.mxu0 %v4747_v61  ;;  %v1714_v48 = vsub.s32 6, %v7081_v32  ;;  %v1710_v61 = vsub.s32 5, %v7081_v32 }
 0x252   : > { %3777 = vmatprep.subr.bf16.mxu1 %v4750_v57  ;;  %v1718_v57 = vsub.s32 7, %v7081_v32 }
 0x254   : > { %3672 = vmatpush1.bf16.msra.mxu0 %v4745_v34  ;;  %v1707_v34 = vrot.slane %v6939_v15, %v1706_v33 }
 0x255   : > { %3778 = vmatpush1.bf16.msra.mxu1 %v4748_v27  ;;  %3673 = vmatprep.subr.bf16.mxu0 %v4753_v20  ;;  %v1715_v27 = vrot.slane %v6939_v15, %v1714_v48  ;;  %v1711_v20 = vrot.slane %v6939_v15, %v1710_v61 }
 0x256   : > { %3779 = vmatprep.subr.bf16.mxu1 %v4756_v43  ;;  %v1719_v43 = vrot.slane %v6939_v15, %v1718_v57 }
 0x258   : > { %3674 = vmatpush1.bf16.msra.mxu0 %v4751_v54 }
 0x259   : > { %3780 = vmatpush1.bf16.msra.mxu1 %v4754_v26  ;;  %3675 = vmatprep.subr.bf16.mxu0 %v4759_v21 }
 0x25a   : > { %3781 = vmatprep.subr.bf16.mxu1 %v4762_v40 }
 0x25c   : > { %3676 = vmatpush1.bf16.msra.mxu0 %v4757_v50 }
 0x25d   : > { %3782 = vmatpush1.bf16.msra.mxu1 %v4760_v53  ;;  %3677 = vmatprep.subr.bf16.mxu0 %v4765_v3 }
 0x25e   : > { %3783 = vmatprep.subr.bf16.mxu1 %v4768_v58 }
 0x260   : > { %3678 = vmatpush1.bf16.msra.mxu0 %v4763_v19 }
 0x261   : > { %3784 = vmatpush1.bf16.msra.mxu1 %v4766_v56  ;;  %3679 = vmatprep.subr.bf16.mxu0 %v4771_v63 }
 0x262   : > { %3785 = vmatprep.subr.bf16.mxu1 %v4774_v42 }
 0x264   : > { %3680 = vmatpush1.bf16.msra.mxu0 %v4769_v44 }
 0x265   : > { %3786 = vmatpush1.bf16.msra.mxu1 %v4772_v35 }
 0x267   : > { %3698 = vmatmul.mubr.bf16.vlgmr.msra.gmra.mrb[16].mxu0 %v6293_v1 }
 0x268   : > { %3804 = vmatmul.mubr.bf16.vlgmr.msra.gmra.mrb[16].mxu1 %v6293_v1  ;;  %3707 = vmatprep.mubr.bf16.mxu0 %v4800_v37  ;;  %v1699_v1 = vrot.slane %v6939_v15, %v4843_v4 }
 0x269   : > { %3813 = vmatprep.mubr.bf16.mxu1 %v4800_v37  ;;  %v1695_v37 = vrot.slane %v6939_v15, %v7083_v8 }
 0x26f   : > { %3708 = vmatmul.mubr.bf16.gmra.mrb[20].mxu0 %v6408_v12 }
 0x270   : > { %3814 = vmatmul.mubr.bf16.gmra.mrb[20].mxu1 %v6408_v12  ;;  %v1703_v12 = vrot.slane %v6939_v15, %v1702_v22 }
 0x279   : > { %v3275_v51 = vpop.f32.mrb[0].mxu0  ;;  %v3381_v23 = vpop.f32.mrb[0].mxu1 }
 0x27a   : > { %v4232_v41 = vadd.f32 %v3275_v51, %v1691_v9  ;;  %v4240_v24 = vadd.f32 %v3381_v23, %v1699_v1  ;;  %v3277_v62 = vpop.f32.mrb[1].mxu0  ;;  %v3383_v47 = vpop.f32.mrb[1].mxu1 }
 0x27b   : > { %v4233_v60 = vadd.f32 %v3277_v62, %v1695_v37  ;;  %v4241_v16 = vadd.f32 %v3383_v47, %v1703_v12  ;;  %v3279_v36 = vpop.f32.mrb[2].mxu0  ;;  %v3385_v11 = vpop.f32.mrb[2].mxu1 }
 0x27c   : > { %3824 = vst [vmem:[%s6955_s21] sm:$0xff] %v4232_v41  ;;  %3826 = vst [vmem:[%s6955_s21 + $0x10] sm:$0xff] %v4240_v24  ;;  %v4234_v6 = vadd.f32 %v3279_v36, %v1691_v9  ;;  %v4242_v55 = vadd.f32 %v3385_v11, %v1699_v1  ;;  %v3281_v13 = vpop.f32.mrb[3].mxu0  ;;  %v3387_v52 = vpop.f32.mrb[3].mxu1 }
 0x27d   : > { %3825 = vst [vmem:[%s6955_s21 + $0x8] sm:$0xff] %v4233_v60  ;;  %3827 = vst [vmem:[%s6955_s21 + $0x18] sm:$0xff] %v4241_v16  ;;  %v4235_v18 = vadd.f32 %v3281_v13, %v1695_v37  ;;  %v4243_v38 = vadd.f32 %v3387_v52, %v1703_v12  ;;  %v1685_v52 = vld [vmem:[%s7027_s3 + $0x8] sm:$0xf] }
 0x27e   : > { %3836 = vst [vmem:[%s6955_s21 + $0x60] sm:$0xff] %v4234_v6  ;;  %3838 = vst [vmem:[%s6955_s21 + $0x70] sm:$0xff] %v4242_v55 }
 0x27f   : > { %3837 = vst [vmem:[%s6955_s21 + $0x68] sm:$0xff] %v4235_v18  ;;  %3839 = vst [vmem:[%s6955_s21 + $0x78] sm:$0xff] %v4243_v38  ;;  %v1723_v18 = vrot.slane %v1685_v52, %v7082_v29  ;;  %v1731_v38 = vrot.slane %v1685_v52, %v4843_v4 }
 0x291   : > { %v3285_v17 = vpop.f32.mrb[4].mxu0  ;;  %v3391_v28 = vpop.f32.mrb[4].mxu1 }
 0x292   : > { %v4236_v59 = vadd.f32 %v3285_v17, %v1691_v9  ;;  %v4244_v14 = vadd.f32 %v3391_v28, %v1699_v1  ;;  %v3287_v0 = vpop.f32.mrb[5].mxu0  ;;  %v3393_v5 = vpop.f32.mrb[5].mxu1  ;;  %v1727_v17 = vrot.slane %v1685_v52, %v7083_v8  ;;  %v1735_v28 = vrot.slane %v1685_v52, %v1702_v22 }
 0x293   : > { %v4237_v25 = vadd.f32 %v3287_v0, %v1695_v37  ;;  %v4245_v46 = vadd.f32 %v3393_v5, %v1703_v12  ;;  %v3289_v39 = vpop.f32.mrb[6].mxu0  ;;  %v3395_v2 = vpop.f32.mrb[6].mxu1 }
 0x294   : > { %3848 = vst [vmem:[%s6955_s21 + $0xc0] sm:$0xff] %v4236_v59  ;;  %3850 = vst [vmem:[%s6955_s21 + $0xd0] sm:$0xff] %v4244_v14  ;;  %v4238_v31 = vadd.f32 %v3289_v39, %v1691_v9  ;;  %v4246_v7 = vadd.f32 %v3395_v2, %v1699_v1  ;;  %v3291_v30 = vpop.f32.mrb[7].mxu0  ;;  %v3397_v45 = vpop.f32.mrb[7].mxu1 }
 0x295   : > { %3849 = vst [vmem:[%s6955_s21 + $0xc8] sm:$0xff] %v4237_v25  ;;  %3851 = vst [vmem:[%s6955_s21 + $0xd8] sm:$0xff] %v4245_v46  ;;  %v4239_v10 = vadd.f32 %v3291_v30, %v1695_v37  ;;  %v4247_v49 = vadd.f32 %v3397_v45, %v1703_v12 }
 0x296   : > { %3860 = vst [vmem:[%s6955_s21 + $0x120] sm:$0xff] %v4238_v31  ;;  %3862 = vst [vmem:[%s6955_s21 + $0x130] sm:$0xff] %v4246_v7 }
 0x297   : > { %3861 = vst [vmem:[%s6955_s21 + $0x128] sm:$0xff] %v4239_v10  ;;  %3863 = vst [vmem:[%s6955_s21 + $0x138] sm:$0xff] %v4247_v49 }
 0x2d9   : > { %v3487_v54 = vpop.f32.mrb[8].mxu0 }
 0x2da   : > { %v4248_v26 = vadd.f32 %v3487_v54, %v1707_v34  ;;  %v3593_v21 = vpop.f32.mrb[8].mxu1  ;;  %v3489_v40 = vpop.f32.mrb[9].mxu0 }
 0x2db   : > { %v4256_v50 = vadd.f32 %v3593_v21, %v1715_v27  ;;  %v4249_v53 = vadd.f32 %v3489_v40, %v1711_v20  ;;  %v3595_v3 = vpop.f32.mrb[9].mxu1  ;;  %v3491_v58 = vpop.f32.mrb[10].mxu0 }
 0x2dc   : > { %3828 = vst [vmem:[%s6955_s21 + $0x20] sm:$0xff] %v4248_v26  ;;  %v4257_v19 = vadd.f32 %v3595_v3, %v1719_v43  ;;  %v4250_v56 = vadd.f32 %v3491_v58, %v1707_v34  ;;  %v3597_v63 = vpop.f32.mrb[10].mxu1  ;;  %v3493_v42 = vpop.f32.mrb[11].mxu0 }
 0x2dd   : > { %3830 = vst [vmem:[%s6955_s21 + $0x30] sm:$0xff] %v4256_v50  ;;  %3829 = vst [vmem:[%s6955_s21 + $0x28] sm:$0xff] %v4249_v53  ;;  %v4258_v44 = vadd.f32 %v3597_v63, %v1715_v27  ;;  %v4251_v35 = vadd.f32 %v3493_v42, %v1711_v20  ;;  %v3599_v15 = vpop.f32.mrb[11].mxu1 }
 0x2de   : > { %3831 = vst [vmem:[%s6955_s21 + $0x38] sm:$0xff] %v4257_v19  ;;  %3840 = vst [vmem:[%s6955_s21 + $0x80] sm:$0xff] %v4250_v56  ;;  %v4259_v9 = vadd.f32 %v3599_v15, %v1719_v43 }
 0x2df   : > { %3842 = vst [vmem:[%s6955_s21 + $0x90] sm:$0xff] %v4258_v44  ;;  %3841 = vst [vmem:[%s6955_s21 + $0x88] sm:$0xff] %v4251_v35 }
 0x2e0   : > { %3843 = vst [vmem:[%s6955_s21 + $0x98] sm:$0xff] %v4259_v9 }
 0x2e1   : > { %v3497_v1 = vpop.f32.mrb[12].mxu0 }
 0x2e2   : > { %v4252_v37 = vadd.f32 %v3497_v1, %v1707_v34  ;;  %v3603_v12 = vpop.f32.mrb[12].mxu1  ;;  %v3499_v51 = vpop.f32.mrb[13].mxu0 }
 0x2e3   : > { %v4260_v23 = vadd.f32 %v3603_v12, %v1715_v27  ;;  %v4253_v41 = vadd.f32 %v3499_v51, %v1711_v20  ;;  %v3605_v24 = vpop.f32.mrb[13].mxu1  ;;  %v3501_v62 = vpop.f32.mrb[14].mxu0 }
 0x2e4   : > { %3852 = vst [vmem:[%s6955_s21 + $0xe0] sm:$0xff] %v4252_v37  ;;  %v4261_v47 = vadd.f32 %v3605_v24, %v1719_v43  ;;  %v4254_v60 = vadd.f32 %v3501_v62, %v1707_v34  ;;  %v3607_v16 = vpop.f32.mrb[14].mxu1  ;;  %v3503_v36 = vpop.f32.mrb[15].mxu0 }
 0x2e5   : > { %3854 = vst [vmem:[%s6955_s21 + $0xf0] sm:$0xff] %v4260_v23  ;;  %3853 = vst [vmem:[%s6955_s21 + $0xe8] sm:$0xff] %v4253_v41  ;;  %v4262_v11 = vadd.f32 %v3607_v16, %v1715_v27  ;;  %v4255_v6 = vadd.f32 %v3503_v36, %v1711_v20  ;;  %v3609_v55 = vpop.f32.mrb[15].mxu1 }
 0x2e6   : > { %3855 = vst [vmem:[%s6955_s21 + $0xf8] sm:$0xff] %v4261_v47  ;;  %3864 = vst [vmem:[%s6955_s21 + $0x140] sm:$0xff] %v4254_v60  ;;  %v4263_v13 = vadd.f32 %v3609_v55, %v1719_v43 }
 0x2e7   : > { %3866 = vst [vmem:[%s6955_s21 + $0x150] sm:$0xff] %v4262_v11  ;;  %3865 = vst [vmem:[%s6955_s21 + $0x148] sm:$0xff] %v4255_v6 }
 0x2e8   : > { %3867 = vst [vmem:[%s6955_s21 + $0x158] sm:$0xff] %v4263_v13 }
 0x33a   : > { %v3699_v59 = vpop.f32.mrb[16].mxu0 }
 0x33b   : > { %v4264_v14 = vadd.f32 %v3699_v59, %v1723_v18  ;;  %v3805_v0 = vpop.f32.mrb[16].mxu1  ;;  %v3701_v5 = vpop.f32.mrb[17].mxu0 }
 0x33c   : > { %v4272_v25 = vadd.f32 %v3805_v0, %v1731_v38  ;;  %v4265_v46 = vadd.f32 %v3701_v5, %v1727_v17  ;;  %v3807_v39 = vpop.f32.mrb[17].mxu1  ;;  %v3703_v29 = vpop.f32.mrb[18].mxu0 }
 0x33d   : > { %3832 = vst [vmem:[%s6955_s21 + $0x40] sm:$0xff] %v4264_v14  ;;  %v4273_v4 = vadd.f32 %v3807_v39, %v1735_v28  ;;  %v4266_v8 = vadd.f32 %v3703_v29, %v1723_v18  ;;  %v3809_v2 = vpop.f32.mrb[18].mxu1  ;;  %v3705_v32 = vpop.f32.mrb[19].mxu0 }
 0x33e   : > { %3834 = vst [vmem:[%s6955_s21 + $0x50] sm:$0xff] %v4272_v25  ;;  %3833 = vst [vmem:[%s6955_s21 + $0x48] sm:$0xff] %v4265_v46  ;;  %v4274_v22 = vadd.f32 %v3809_v2, %v1731_v38  ;;  %v4267_v31 = vadd.f32 %v3705_v32, %v1727_v17  ;;  %v3811_v7 = vpop.f32.mrb[19].mxu1 }
 0x33f   : > { %3835 = vst [vmem:[%s6955_s21 + $0x58] sm:$0xff] %v4273_v4  ;;  %3844 = vst [vmem:[%s6955_s21 + $0xa0] sm:$0xff] %v4266_v8  ;;  %v4275_v30 = vadd.f32 %v3811_v7, %v1735_v28 }
 0x340   : > { %3846 = vst [vmem:[%s6955_s21 + $0xb0] sm:$0xff] %v4274_v22  ;;  %3845 = vst [vmem:[%s6955_s21 + $0xa8] sm:$0xff] %v4267_v31 }
 0x341   : > { %3847 = vst [vmem:[%s6955_s21 + $0xb8] sm:$0xff] %v4275_v30 }
 0x342   : > { %v3709_v45 = vpop.f32.mrb[20].mxu0 }
 0x343   : > { %v4268_v10 = vadd.f32 %v3709_v45, %v1723_v18  ;;  %v3815_v49 = vpop.f32.mrb[20].mxu1  ;;  %v3711_v33 = vpop.f32.mrb[21].mxu0 }
 0x344   : > { %v4276_v48 = vadd.f32 %v3815_v49, %v1731_v38  ;;  %v4269_v61 = vadd.f32 %v3711_v33, %v1727_v17  ;;  %v3817_v57 = vpop.f32.mrb[21].mxu1  ;;  %v3713_v34 = vpop.f32.mrb[22].mxu0 }
 0x345   : > { %3856 = vst [vmem:[%s6955_s21 + $0x100] sm:$0xff] %v4268_v10  ;;  %v4277_v27 = vadd.f32 %v3817_v57, %v1735_v28  ;;  %v4270_v20 = vadd.f32 %v3713_v34, %v1723_v18  ;;  %v3819_v43 = vpop.f32.mrb[22].mxu1  ;;  %v3715_v54 = vpop.f32.mrb[23].mxu0 }
 0x346   : > { %3858 = vst [vmem:[%s6955_s21 + $0x110] sm:$0xff] %v4276_v48  ;;  %3857 = vst [vmem:[%s6955_s21 + $0x108] sm:$0xff] %v4269_v61  ;;  %v4278_v26 = vadd.f32 %v3819_v43, %v1731_v38  ;;  %v4271_v21 = vadd.f32 %v3715_v54, %v1727_v17  ;;  %v3821_v40 = vpop.f32.mrb[23].mxu1 }
 0x347   : > { %3859 = vst [vmem:[%s6955_s21 + $0x118] sm:$0xff] %v4277_v27  ;;  %3868 = vst [vmem:[%s6955_s21 + $0x160] sm:$0xff] %v4270_v20  ;;  %v4279_v50 = vadd.f32 %v3821_v40, %v1735_v28 }
 0x348   : > { %3870 = vst [vmem:[%s6955_s21 + $0x170] sm:$0xff] %v4278_v26  ;;  %3869 = vst [vmem:[%s6955_s21 + $0x168] sm:$0xff] %v4271_v21 }
 0x349   : > { %3871 = vst [vmem:[%s6955_s21 + $0x178] sm:$0xff] %v4279_v50 }
 0x34a PF: > { %s14_s15 = sadd.s32 1, %s4794_s15  }
 0x34b   : > { %p11_p4 = scmp.ge.s32.totalorder %s14_s15, 4  }
 0x34d   :  { %13 = sbr.rel (!%p11_p4) target bundleno = 1 (0x1), region = 74 }

// kernel: tile.143
= control target key start
LH: loop header
LB: loop body
LE: loop exit
PB: predicated region body
PF: predicated region fallthrough
CT: control target
= control target key end

     0   :  { %s28_s0 = inlined_call_operand.vmem [shape: f32[48], index: 0, kind: input, shape index: {}]   ;;  %s29_s1 = inlined_call_operand.vmem [shape: f32[16,48], index: 1, kind: output, shape index: {}]  }
   0x1   :  { %v4_v0 = vld [vmem:[%s28_s0] ss:$0 sm:$0xff] }
   0x2   :  { %5 = vst [vmem:[%s29_s1] sm:$0xff] %v4_v0  ;;  %8 = vst [vmem:[%s29_s1 + $0x8] sm:$0xff] %v4_v0 }

// kernel: tile.144
= control target key start
LH: loop header
LB: loop body
LE: loop exit
PB: predicated region body
PF: predicated region fallthrough
CT: control target
= control target key end

     0   :  { %s7_s6 = smov 3  ;;  %s10_s7 = smov 3  ;;  %vm12_vm0 = vcmask 130048   ;;  %vm16_vm1 = vcmask 261120   ;;  %vm4_vm2 = vcmask 392192   ;;  %vm19_vm3 = vcmask 1048448   ;;  %s205_s0 = inlined_call_operand.vmem [shape: f32[16,48], index: 0, kind: input, shape index: {}]   ;;  %s206_s1 = inlined_call_operand.vmem [shape: f32[1,768], index: 1, kind: output, shape index: {}]  }
   0x1   :  { %v115_v0 = vld [vmem:[%s205_s0 + $0xd] ss:$-8 sm:%s7_s6]   ;;  %s38_s12 = smov 3  ;;  %s23_s15 = smov 3  ;;  %vm42_vm4 = vcmask 1048192   ;;  %vm35_vm5 = vcmask 1048320  }
   0x2   :  { %v116_v1 = vld [vmem:[%s205_s0 + $0xd] ss:$-8 sm:%s10_s7]   ;;  %v119_v3 = vld [vmem:[%s205_s0 + $0xf] ss:$-8 sm:%s38_s12]   ;;  %s136_s16 = smov 112   ;;  %s137_s17 = smov 80  }
   0x3   :  { %v13_v2 = vsel %vm12_vm0, %v116_v1, %v115_v0  ;;  %40 = vrot.lane.b32.xlu1 %v119_v3, %s137_s17  ;;  %v117_v4 = vld [vmem:[%s205_s0 + $0xa] ss:$-8 sm:%s23_s15]   ;;  %s26_s20 = smov 3  ;;  %s46_s23 = smov 3  ;;  %vm50_vm6 = vcmask 916992   ;;  %vm58_vm7 = vcmask 785792  }
   0x4   :  { %14 = vrot.lane.b32.xlu0 %v13_v2, %s136_s16  ;;  %v118_v5 = vld [vmem:[%s205_s0 + $0x2] ss:$8 sm:%s26_s20]   ;;  %s54_s26 = smov 3  ;;  %s61_s27 = smov 3  ;;  %vm65_vm8 = vcmask 654592   ;;  %vm73_vm9 = vcmask 523392  }
   0x5   :  { %v29_v6 = vsel %vm16_vm1, %v118_v5, %v117_v4  ;;  %v120_v7 = vld [vmem:[%s205_s0 + $0xc] ss:$-8 sm:%s46_s23]   ;;  %s138_s28 = smov 96   ;;  %s139_s29 = smov 64   ;;  %v121_v8 = vld [vmem:[%s205_s0 + $0x1] ss:$8 sm:%s54_s26]  }
   0x6   :  { %v122_v9 = vld [vmem:[%s205_s0 + $0xe] ss:$-8 sm:%s61_s27]   ;;  %s2_s5 = smov 3  ;;  %s69_s6 = smov 3 }
   0x7   :  { %48 = vrot.lane.b32.xlu1 %v120_v7, %s139_s29  ;;  %v3_v10 = vld [vmem:[%s205_s0] ss:$8 sm:%s2_s5]   ;;  %s140_s9 = smov 48   ;;  %s141_s10 = smov 32  }
   0x8   :  { %30 = vrot.lane.b32.xlu0 %v29_v6, %s138_s28  ;;  %5 = vst.msk [vmem:[#allocation0] ss:$24 sm:$0x3] %vm4_vm2, %v3_v10   ;;  %v123_v11 = vld [vmem:[%s205_s0 + $0xb] ss:$-8 sm:%s69_s6]   ;;  %s142_s0 = smov 16  }
   0xb   :  { %63 = vrot.lane.b32.xlu1 %v122_v9, %s141_s10 }
   0xc   :  { %56 = vrot.lane.b32.xlu0 %v121_v8, %s140_s9 }
  0x10   :  { %71 = vrot.lane.b32.xlu0 %v123_v11, %s142_s0 }
  0x75   :  { %v41_v13 = vpop.permute.xlu1 %40  }
  0x76   :  { %v15_v12 = vpop.permute.xlu0 %14  }
  0x77   :  { %18 = vst.msk [vmem:[#allocation0 + $0x28] ss:$-24 sm:$0x3] %vm16_vm1, %v15_v12  }
  0x78   :  { %21 = vst.msk [vmem:[#allocation0 + $0x20] ss:$-24 sm:$0x3] %vm19_vm3, %v15_v12  }
  0x79   :  { %44 = vst.msk [vmem:[#allocation0 + $0x28] ss:$-24 sm:$0x3] %vm42_vm4, %v41_v13   ;;  %v49_v15 = vpop.permute.xlu1 %48  }
  0x7a   :  { %v31_v14 = vpop.permute.xlu0 %30  }
  0x7b   :  { %34 = vst.msk [vmem:[#allocation0 + $0x20] ss:$-24 sm:$0x3] %vm12_vm0, %v31_v14  }
  0x7c   :  { %36 = vst.msk [vmem:[#allocation0] ss:$24 sm:$0x3] %vm35_vm5, %v31_v14  }
  0x7d   :  { %52 = vst.msk [vmem:[#allocation0 + $0x20] ss:$-24 sm:$0x3] %vm50_vm6, %v49_v15   ;;  %v64_v17 = vpop.permute.xlu1 %63  }
  0x7e   :  { %v57_v16 = vpop.permute.xlu0 %56   ;;  %67 = vst.msk [vmem:[#allocation0 + $0x28] ss:$-24 sm:$0x3] %vm65_vm8, %v64_v17  }
  0x7f   :  { %59 = vst.msk [vmem:[#allocation0] ss:$24 sm:$0x3] %vm58_vm7, %v57_v16  }
  0x82   :  { %v72_v18 = vpop.permute.xlu0 %71  }
  0x83   :  { %75 = vst.msk [vmem:[#allocation0 + $0x20] ss:$-24 sm:$0x3] %vm73_vm9, %v72_v18  }
  0x85   :  { %v88_v21 = vld [vmem:[#allocation0 + $0x10] sm:$0x1]  ;;  %v106_v22 = vld [vmem:[#allocation0 + $0x28] sm:$0x1] }
  0x86   :  { %v79_v19 = vld [vmem:[#allocation0] sm:$0x1]  ;;  %v94_v20 = vld [vmem:[#allocation0 + $0x18] sm:$0x1]  ;;  %125 = vst [vmem:[%s206_s1 + $0x2] sm:$0x1] %v88_v21 }
  0x87   :  { %81 = vst [vmem:[%s206_s1] sm:$0x1] %v79_v19  ;;  %126 = vst [vmem:[%s206_s1 + $0x3] sm:$0x1] %v94_v20 }
  0x88   :  { %128 = vst [vmem:[%s206_s1 + $0x5] sm:$0x1] %v106_v22 }
  0x8a   :  { %v83_v23 = vld [vmem:[#allocation0 + $0x8] sm:$0x1]  ;;  %v100_v24 = vld [vmem:[#allocation0 + $0x20] sm:$0x1] }
  0x8b   :  { %124 = vst [vmem:[%s206_s1 + $0x1] sm:$0x1] %v83_v23  ;;  %127 = vst [vmem:[%s206_s1 + $0x4] sm:$0x1] %v100_v24 }

// kernel: enc_forward.16
= control target key start
LH: loop header
LB: loop body
LE: loop exit
PB: predicated region body
PF: predicated region fallthrough
CT: control target
= control target key end

     0   :  { %s950_s15 = smov 0   ;;  %s1156_s0 = inlined_call_operand.vmem [shape: f32[2,16,128], index: 0, kind: input, shape index: {}]   ;;  %s1157_s1 = inlined_call_operand.vmem [shape: bf16[128,768], index: 1, kind: input, shape index: {}]   ;;  %s1158_s2 = inlined_call_operand.vmem [shape: f32[1,768], index: 2, kind: input, shape index: {}]   ;;  %s1159_s3 = inlined_call_operand.vmem [shape: f32[2,16,768], index: 3, kind: input, shape index: {}]   ;;  %s1160_s4 = inlined_call_operand.vmem [shape: f32[2,16,768], index: 4, kind: output, shape index: {}]  }
   0x1 LB: > { %s774_s16 = sadd.s32 4294967295, %s922_s15   ;;  %p778_p0 = scmp.ge.s32.totalorder %s922_s15, 1  ;;  %s922_s15 = sphi %s950_s15, %s14_s15  }
   0x2   : > { %p172_p1 = scmp.lt.s32.totalorder %s922_s15, 3 }
   0x4   : > { %p173_p2 = pnand %p778_p0, %p172_p1 }
   0x5   : > { %v844_v0 = vld [vmem:[%s1157_s1 + $0x4] ss:$24 sps:$4 sm:$0xff] (!%p173_p2)   ;;  %v846_v1 = vld [vmem:[%s1157_s1] ss:$24 sps:$4 sm:$0xff] (!%p173_p2)   ;;  %v924_v2 = vmov (!%p173_p2), 0   ;;  %p203_p3 = scmp.lt.s32.totalorder (!%p173_p2), %s774_s16, 1  ;;  %v272_v52 = vlaneseq (!%p173_p2) }
   0x6   : > { %176 = sbr.rel (%p173_p2) target bundleno = 291 (0x123), region = 36  ;;  %574 = vmatprep.mubr.bf16.mxu0 (!%p173_p2), %v924_v2  ;;  %617 = vmatprep.mubr.bf16.mxu1 (!%p173_p2), %v924_v2  ;;  %v847_v3 = vld [vmem:[%s1157_s1 + $0x34] ss:$24 sps:$4 sm:$0xff] (!%p173_p2)   ;;  %v849_v4 = vld [vmem:[%s1157_s1 + $0x30] ss:$24 sps:$4 sm:$0xff] (!%p173_p2)  }
   0x7   : > { %542 = vmatprep.subr.bf16.mxu0 (!%p173_p2), %v844_v0  ;;  %v850_v5 = vld [vmem:[%s1157_s1 + $0x64] ss:$24 sps:$4 sm:$0xff] (!%p173_p2)   ;;  %v852_v6 = vld [vmem:[%s1157_s1 + $0x60] ss:$24 sps:$4 sm:$0xff] (!%p173_p2)   ;;  %v853_v7 = vld [vmem:[%s1157_s1 + $0x94] ss:$24 sps:$4 sm:$0xff] (!%p173_p2)  }
   0x8   : > { %543 = vmatpush1.bf16.msra.mxu0 (!%p173_p2), %v846_v1  ;;  %v855_v8 = vld [vmem:[%s1157_s1 + $0x90] ss:$24 sps:$4 sm:$0xff] (!%p173_p2)   ;;  %v868_v9 = vld [vmem:[%s1157_s1 + $0xc] ss:$24 sps:$4 sm:$0xff] (!%p173_p2)   ;;  %v858_v12 = vld [vmem:[%s1157_s1 + $0xc0] ss:$24 sps:$4 sm:$0xff] (!%p173_p2)  }
   0x9   : > { %544 = vmatprep.subr.bf16.mxu0 (!%p173_p2), %v847_v3  ;;  %v870_v10 = vld [vmem:[%s1157_s1 + $0x8] ss:$24 sps:$4 sm:$0xff] (!%p173_p2)   ;;  %v856_v11 = vld [vmem:[%s1157_s1 + $0xc4] ss:$24 sps:$4 sm:$0xff] (!%p173_p2)   ;;  %585 = vmatprep.subr.bf16.mxu1 (!%p173_p2), %v868_v9  ;;  %v876_v14 = vld [vmem:[%s1157_s1 + $0x38] ss:$24 sps:$4 sm:$0xff] (!%p173_p2)  }
   0xa   : > { %586 = vmatpush1.bf16.msra.mxu1 (!%p173_p2), %v870_v10  ;;  %v874_v13 = vld [vmem:[%s1157_s1 + $0x3c] ss:$24 sps:$4 sm:$0xff] (!%p173_p2)   ;;  %v880_v16 = vld [vmem:[%s1157_s1 + $0x6c] ss:$24 sps:$4 sm:$0xff] (!%p173_p2)   ;;  %v882_v17 = vld [vmem:[%s1157_s1 + $0x68] ss:$24 sps:$4 sm:$0xff] (!%p173_p2)  }
   0xb   : > { %v859_v15 = vld [vmem:[%s1157_s1 + $0xf4] ss:$24 sps:$4 sm:$0xff] (!%p173_p2)   ;;  %587 = vmatprep.subr.bf16.mxu1 (!%p173_p2), %v874_v13  ;;  %v861_v18 = vld [vmem:[%s1157_s1 + $0xf0] ss:$24 sps:$4 sm:$0xff] (!%p173_p2)   ;;  %v862_v19 = vld [vmem:[%s1157_s1 + $0x124] ss:$24 sps:$4 sm:$0xff] (!%p173_p2)  }
   0xc   : > { %545 = vmatpush1.bf16.msra.mxu0 (!%p173_p2), %v849_v4  ;;  %v886_v20 = vld [vmem:[%s1157_s1 + $0x9c] ss:$24 sps:$4 sm:$0xff] (!%p173_p2)   ;;  %v864_v21 = vld [vmem:[%s1157_s1 + $0x120] ss:$24 sps:$4 sm:$0xff] (!%p173_p2)   ;;  %v892_v23 = vld [vmem:[%s1157_s1 + $0xcc] ss:$24 sps:$4 sm:$0xff] (!%p173_p2)  }
   0xd   : > { %546 = vmatprep.subr.bf16.mxu0 %v850_v5  ;;  %s1162_s16 = smov (!%p203_p3, %s774_s16), 1  ;;  %v888_v22 = vld [vmem:[%s1157_s1 + $0x98] ss:$24 sps:$4 sm:$0xff]   ;;  %v865_v24 = vld [vmem:[%s1157_s1 + $0x154] ss:$24 sps:$4 sm:$0xff]   ;;  %v273_v53 = vshrl.u32 %v272_v52, 7 }
   0xe   : > { %588 = vmatpush1.bf16.msra.mxu1 %v876_v14  ;;  %s833_s29 = sshll.u32 %s1162_s16, 4  ;;  %v867_v25 = vld [vmem:[%s1157_s1 + $0x150] ss:$24 sps:$4 sm:$0xff]   ;;  %v898_v29 = vld [vmem:[%s1157_s1 + $0xfc] ss:$24 sps:$4 sm:$0xff]   ;;  %s834_s21 = smul.u32 96, %s1162_s16 }
   0xf   : > { %589 = vmatprep.subr.bf16.mxu1 %v880_v16  ;;  %s207_s12 = scalar_lea.vmem %s1156_s0, %s833_s29  ;;  %v894_v28 = vld [vmem:[%s1157_s1 + $0xc8] ss:$24 sps:$4 sm:$0xff]   ;;  %v873_v30 = vld [vmem:[%s1157_s1 + $0x14] ss:$24 sps:$4 sm:$0xff]   ;;  %v900_v33 = vld [vmem:[%s1157_s1 + $0xf8] ss:$24 sps:$4 sm:$0xff]  }
  0x10   : > { %547 = vmatpush1.bf16.msra.mxu0 %v852_v6  ;;  %v219_v26 = vld [vmem:[%s207_s12] sm:$0xff]  ;;  %v220_v27 = vld [vmem:[%s207_s12 + $0x8] sm:$0xff]  ;;  %v910_v38 = vld [vmem:[%s1157_s1 + $0x15c] ss:$24 sps:$4 sm:$0xff]   ;;  %v274_v54 = vsub.s32 0, %v273_v53  ;;  %v278_v56 = vsub.s32 1, %v273_v53  ;;  %s1122_s26 = scalar_lea.vmem %s1159_s3, %s834_s21  ;;  %s1129_s28 = scalar_lea.vmem %s1160_s4, %s834_s21 }
  0x11   : > { %548 = vmatprep.subr.bf16.mxu0 %v853_v7  ;;  %v871_v31 = vld [vmem:[%s1157_s1 + $0x10] ss:$24 sps:$4 sm:$0xff]   ;;  %v221_v32 = vpack.c.bf16 %v220_v27, %v219_v26  ;;  %v904_v34 = vld [vmem:[%s1157_s1 + $0x12c] ss:$24 sps:$4 sm:$0xff]   ;;  %v877_v37 = vld [vmem:[%s1157_s1 + $0x40] ss:$24 sps:$4 sm:$0xff]  }
  0x12   : > { %590 = vmatpush1.bf16.msra.mxu1 %v882_v17  ;;  %v879_v35 = vld [vmem:[%s1157_s1 + $0x44] ss:$24 sps:$4 sm:$0xff]   ;;  %v906_v36 = vld [vmem:[%s1157_s1 + $0x128] ss:$24 sps:$4 sm:$0xff]   ;;  %v885_v39 = vld [vmem:[%s1157_s1 + $0x74] ss:$24 sps:$4 sm:$0xff]  }
  0x13   : > { %591 = vmatprep.subr.bf16.mxu1 %v886_v20  ;;  %v912_v40 = vld [vmem:[%s1157_s1 + $0x158] ss:$24 sps:$4 sm:$0xff]   ;;  %v891_v42 = vld [vmem:[%s1157_s1 + $0xa4] ss:$24 sps:$4 sm:$0xff]   ;;  %v897_v44 = vld [vmem:[%s1157_s1 + $0xd4] ss:$24 sps:$4 sm:$0xff]  }
  0x14   : > { %549 = vmatpush1.bf16.msra.mxu0 %v855_v8  ;;  %v883_v41 = vld [vmem:[%s1157_s1 + $0x70] ss:$24 sps:$4 sm:$0xff]   ;;  %v889_v43 = vld [vmem:[%s1157_s1 + $0xa0] ss:$24 sps:$4 sm:$0xff]   ;;  %v903_v46 = vld [vmem:[%s1157_s1 + $0x104] ss:$24 sps:$4 sm:$0xff]  }
  0x15   : > { %550 = vmatprep.subr.bf16.mxu0 %v856_v11  ;;  %v895_v45 = vld [vmem:[%s1157_s1 + $0xd0] ss:$24 sps:$4 sm:$0xff]   ;;  %v901_v47 = vld [vmem:[%s1157_s1 + $0x100] ss:$24 sps:$4 sm:$0xff]   ;;  %v909_v48 = vld [vmem:[%s1157_s1 + $0x134] ss:$24 sps:$4 sm:$0xff]  }
  0x16   : > { %592 = vmatpush1.bf16.msra.mxu1 %v888_v22  ;;  %v907_v49 = vld [vmem:[%s1157_s1 + $0x130] ss:$24 sps:$4 sm:$0xff]   ;;  %v915_v50 = vld [vmem:[%s1157_s1 + $0x164] ss:$24 sps:$4 sm:$0xff]   ;;  %v913_v51 = vld [vmem:[%s1157_s1 + $0x160] ss:$24 sps:$4 sm:$0xff]  }
  0x17   : > { %593 = vmatprep.subr.bf16.mxu1 %v892_v23  ;;  %v270_v55 = vld [vmem:[%s1158_s2] sm:$0x3f]  ;;  %v672_v63 = vld [vmem:[%s1122_s26 + $0x8] sm:$0xff]  ;;  %v678_v6 = vld [vmem:[%s1122_s26 + $0x38] sm:$0xff]  ;;  %v282_v9 = vsub.s32 2, %v273_v53  ;;  %v286_v11 = vsub.s32 3, %v273_v53 }
  0x18   : > { %551 = vmatpush1.bf16.msra.mxu0 %v858_v12  ;;  %v275_v57 = vrot.slane %v270_v55, %v274_v54  ;;  %v279_v58 = vrot.slane %v270_v55, %v278_v56  ;;  %v671_v60 = vld [vmem:[%s1122_s26] sm:$0xff]  ;;  %v673_v16 = vld [vmem:[%s1122_s26 + $0x10] sm:$0xff]  ;;  %v680_v26 = vld [vmem:[%s1122_s26 + $0x48] sm:$0xff] }
  0x19   : > { %552 = vmatprep.subr.bf16.mxu0 %v859_v15  ;;  %v283_v13 = vrot.slane %v270_v55, %v282_v9  ;;  %v287_v14 = vrot.slane %v270_v55, %v286_v11  ;;  %v679_v22 = vld [vmem:[%s1122_s26 + $0x40] sm:$0xff] }
  0x1a   : > { %594 = vmatpush1.bf16.msra.mxu1 %v894_v28 }
  0x1b   : > { %595 = vmatprep.subr.bf16.mxu1 %v898_v29 }
  0x1c   : > { %553 = vmatpush1.bf16.msra.mxu0 %v861_v18 }
  0x1d   : > { %554 = vmatprep.subr.bf16.mxu0 %v862_v19  ;;  %v674_v19 = vld [vmem:[%s1122_s26 + $0x18] sm:$0xff] }
  0x1e   : > { %596 = vmatpush1.bf16.msra.mxu1 %v900_v33 }
  0x1f   : > { %597 = vmatprep.subr.bf16.mxu1 %v904_v34 }
  0x20   : > { %555 = vmatpush1.bf16.msra.mxu0 %v864_v21 }
  0x21   : > { %556 = vmatprep.subr.bf16.mxu0 %v865_v24 }
  0x22   : > { %598 = vmatpush1.bf16.msra.mxu1 %v906_v36  ;;  %v675_v36 = vld [vmem:[%s1122_s26 + $0x20] sm:$0xff] }
  0x23   : > { %599 = vmatprep.subr.bf16.mxu1 %v910_v38 }
  0x24   : > { %557 = vmatpush1.bf16.msra.mxu0 %v867_v25 }
  0x25   : > { %628 = vmatprep.subr.bf16.mxu0 %v873_v30 }
  0x26   : > { %600 = vmatpush1.bf16.msra.mxu1 %v912_v40 }
  0x27   : > { %575 = vmatmul.mubr.bf16.vlgmr.msra.gmra.mrb[0].mxu0 %v221_v32 }
  0x28   : > { %629 = vmatpush1.bf16.msra.mxu0 %v871_v31  ;;  %660 = vmatprep.mubr.bf16.mxu0 %v924_v2  ;;  %v677_v2 = vld [vmem:[%s1122_s26 + $0x30] sm:$0xff]  ;;  %v290_v31 = vsub.s32 4, %v273_v53 }
  0x29   : > { %630 = vmatprep.subr.bf16.mxu0 %v879_v35  ;;  %618 = vmatmul.mubr.bf16.vlgmr.msra.gmra.mrb[0].mxu1 %v221_v32 }
  0x2a   : > { %v291_v33 = vrot.slane %v270_v55, %v290_v31 }
  0x2c   : > { %631 = vmatpush1.bf16.msra.mxu0 %v877_v37 }
  0x2d   : > { %632 = vmatprep.subr.bf16.mxu0 %v885_v39  ;;  %v676_v39 = vld [vmem:[%s1122_s26 + $0x28] sm:$0xff] }
  0x30   : > { %633 = vmatpush1.bf16.msra.mxu0 %v883_v41 }
  0x31   : > { %634 = vmatprep.subr.bf16.mxu0 %v891_v42  ;;  %v681_v42 = vld [vmem:[%s1122_s26 + $0x50] sm:$0xff] }
  0x34   : > { %635 = vmatpush1.bf16.msra.mxu0 %v889_v43 }
  0x35   : > { %636 = vmatprep.subr.bf16.mxu0 %v897_v44 }
  0x38   : > { %637 = vmatpush1.bf16.msra.mxu0 %v895_v45 }
  0x39   : > { %638 = vmatprep.subr.bf16.mxu0 %v903_v46  ;;  %v682_v46 = vld [vmem:[%s1122_s26 + $0x58] sm:$0xff] }
  0x3c   : > { %639 = vmatpush1.bf16.msra.mxu0 %v901_v47 }
  0x3d   : > { %640 = vmatprep.subr.bf16.mxu0 %v909_v48 }
  0x40   : > { %641 = vmatpush1.bf16.msra.mxu0 %v907_v49 }
  0x41   : > { %642 = vmatprep.subr.bf16.mxu0 %v915_v50 }
  0x44   : > { %643 = vmatpush1.bf16.msra.mxu0 %v913_v51 }
  0x47   : > { %661 = vmatmul.mubr.bf16.vlgmr.msra.gmra.mrb[4].mxu0 %v221_v32  ;;  %v294_v32 = vsub.s32 5, %v273_v53 }
  0x49   : > { %v295_v34 = vrot.slane %v270_v55, %v294_v32 }
  0xfa   : > { %v576_v59 = vpop.f32.mrb[0].mxu0 }
  0xfb   : > { %v577_v61 = vadd.f32 %v576_v59, %v275_v57  ;;  %v578_v62 = vpop.f32.mrb[1].mxu0 }
  0xfc   : > { %v579_v0 = vadd.f32 %v578_v62, %v279_v58  ;;  %v580_v1 = vpop.f32.mrb[2].mxu0  ;;  %v619_v15 = vpop.f32.mrb[0].mxu1 }
  0xfd   : > { %v683_v3 = vadd.f32 %v671_v60, %v577_v61  ;;  %v581_v4 = vadd.f32 %v580_v1, %v275_v57  ;;  %v582_v5 = vpop.f32.mrb[3].mxu0  ;;  %v620_v17 = vadd.f32 %v619_v15, %v283_v13  ;;  %v621_v18 = vpop.f32.mrb[1].mxu1 }
  0xfe   : > { %v684_v7 = vadd.f32 %v672_v63, %v579_v0  ;;  %v583_v8 = vadd.f32 %v582_v5, %v279_v58  ;;  %v622_v20 = vadd.f32 %v621_v18, %v287_v14  ;;  %v623_v21 = vpop.f32.mrb[2].mxu1 }
  0xff   : > { %695 = vst [vmem:[%s1129_s28] sm:$0xff] %v683_v3  ;;  %v689_v10 = vadd.f32 %v677_v2, %v581_v4  ;;  %v685_v23 = vadd.f32 %v673_v16, %v620_v17  ;;  %v624_v24 = vadd.f32 %v623_v21, %v283_v13  ;;  %v625_v25 = vpop.f32.mrb[3].mxu1 }
 0x100   : > { %696 = vst [vmem:[%s1129_s28 + $0x8] sm:$0xff] %v684_v7  ;;  %v690_v12 = vadd.f32 %v678_v6, %v583_v8  ;;  %v686_v27 = vadd.f32 %v674_v19, %v622_v20  ;;  %v626_v28 = vadd.f32 %v625_v25, %v287_v14 }
 0x101   : > { %701 = vst [vmem:[%s1129_s28 + $0x30] sm:$0xff] %v689_v10  ;;  %697 = vst [vmem:[%s1129_s28 + $0x10] sm:$0xff] %v685_v23  ;;  %v691_v29 = vadd.f32 %v679_v22, %v624_v24 }
 0x102   : > { %702 = vst [vmem:[%s1129_s28 + $0x38] sm:$0xff] %v690_v12  ;;  %698 = vst [vmem:[%s1129_s28 + $0x18] sm:$0xff] %v686_v27  ;;  %v692_v30 = vadd.f32 %v680_v26, %v626_v28 }
 0x103   : > { %703 = vst [vmem:[%s1129_s28 + $0x40] sm:$0xff] %v691_v29 }
 0x104   : > { %704 = vst [vmem:[%s1129_s28 + $0x48] sm:$0xff] %v692_v30 }
 0x11a   : > { %v662_v35 = vpop.f32.mrb[4].mxu0 }
 0x11b   : > { %v663_v37 = vadd.f32 %v662_v35, %v291_v33  ;;  %v664_v38 = vpop.f32.mrb[5].mxu0 }
 0x11c   : > { %v665_v40 = vadd.f32 %v664_v38, %v295_v34  ;;  %v666_v41 = vpop.f32.mrb[6].mxu0 }
 0x11d   : > { %v687_v43 = vadd.f32 %v675_v36, %v663_v37  ;;  %v667_v44 = vadd.f32 %v666_v41, %v291_v33  ;;  %v668_v45 = vpop.f32.mrb[7].mxu0 }
 0x11e   : > { %v688_v47 = vadd.f32 %v676_v39, %v665_v40  ;;  %v669_v48 = vadd.f32 %v668_v45, %v295_v34 }
 0x11f   : > { %699 = vst [vmem:[%s1129_s28 + $0x20] sm:$0xff] %v687_v43  ;;  %v693_v49 = vadd.f32 %v681_v42, %v667_v44 }
 0x120   : > { %700 = vst [vmem:[%s1129_s28 + $0x28] sm:$0xff] %v688_v47  ;;  %v694_v50 = vadd.f32 %v682_v46, %v669_v48 }
 0x121   : > { %705 = vst [vmem:[%s1129_s28 + $0x50] sm:$0xff] %v693_v49 }
 0x122   : > { %706 = vst [vmem:[%s1129_s28 + $0x58] sm:$0xff] %v694_v50 }
 0x123 PF: > { %s14_s15 = sadd.s32 1, %s922_s15  }
 0x124   : > { %p11_p4 = scmp.ge.s32.totalorder %s14_s15, 4  }
 0x126   :  { %13 = sbr.rel (!%p11_p4) target bundleno = 1 (0x1), region = 69 }

// kernel: tile.152
= control target key start
LH: loop header
LB: loop body
LE: loop exit
PB: predicated region body
PF: predicated region fallthrough
CT: control target
= control target key end

     0   :  { %s28_s0 = inlined_call_operand.vmem [shape: f32[12], index: 0, kind: input, shape index: {}]   ;;  %s29_s1 = inlined_call_operand.vmem [shape: f32[16,12], index: 1, kind: output, shape index: {}]  }
   0x1   :  { %v4_v0 = vld [vmem:[%s28_s0] ss:$0 sm:$0xff] }
   0x2   :  { %5 = vst [vmem:[%s29_s1] sm:$0xff] %v4_v0  ;;  %8 = vst [vmem:[%s29_s1 + $0x8] sm:$0xff] %v4_v0 }

// kernel: tile.153
= control target key start
LH: loop header
LB: loop body
LE: loop exit
PB: predicated region body
PF: predicated region fallthrough
CT: control target
= control target key end

     0   :  { %vm9_vm0 = vcmask 64512   ;;  %s150_s12 = smov 120   ;;  %s151_s13 = smov 96   ;;  %vm3_vm1 = vcmask 97280   ;;  %vm13_vm2 = vcmask 31744   ;;  %vm16_vm3 = vcmask 1048512   ;;  %s232_s0 = inlined_call_operand.vmem [shape: f32[16,12], index: 0, kind: input, shape index: {}]   ;;  %s233_s1 = inlined_call_operand.vmem [shape: f32[1,192], index: 1, kind: output, shape index: {}]  }
   0x1   :  { %v118_v0 = vld [vmem:[%s232_s0 + $0xa] sm:$0x1]   ;;  %v121_v3 = vld [vmem:[%s232_s0 + $0x8] sm:$0x1]   ;;  %v120_v4 = vld [vmem:[%s232_s0 + $0x9] sm:$0x1]  }
   0x2   :  { %v119_v1 = vld [vmem:[%s232_s0 + $0xa] sm:$0x1]   ;;  %26 = vrot.lane.b32.xlu1 %v121_v3, %s151_s13  ;;  %v122_v5 = vld [vmem:[%s232_s0 + $0x7] sm:$0x1]   ;;  %s152_s18 = smov 108   ;;  %s153_s19 = smov 84  }
   0x3   :  { %v10_v2 = vsel %vm9_vm0, %v119_v1, %v118_v0  ;;  %v123_v6 = vld [vmem:[%s232_s0 + $0x6] sm:$0x1]   ;;  %v124_v7 = vld [vmem:[%s232_s0 + $0x5] sm:$0x1]   ;;  %v2_v8 = vld [vmem:[%s232_s0] sm:$0x1]  }
   0x4   :  { %11 = vrot.lane.b32.xlu0 %v10_v2, %s150_s12  ;;  %4 = vst.msk [vmem:[#allocation0] sm:$0x1] %vm3_vm1, %v2_v8   ;;  %s154_s26 = smov 72   ;;  %s155_s27 = smov 60   ;;  %v125_v9 = vld [vmem:[%s232_s0 + $0xf] sm:$0x1]  }
   0x5   :  { %v126_v10 = vld [vmem:[%s232_s0 + $0x4] sm:$0x1]   ;;  %s156_s3 = smov 52   ;;  %s157_s4 = smov 48   ;;  %v127_v11 = vld [vmem:[%s232_s0 + $0xe] sm:$0x1]  }
   0x6   :  { %32 = vrot.lane.b32.xlu1 %v122_v5, %s153_s19  ;;  %v128_v12 = vld [vmem:[%s232_s0 + $0x3] sm:$0x1]   ;;  %s158_s9 = smov 40   ;;  %s159_s10 = smov 36   ;;  %v129_v13 = vld [vmem:[%s232_s0 + $0xd] sm:$0x1]  }
   0x7   :  { %v130_v14 = vld [vmem:[%s232_s0 + $0x2] sm:$0x1]   ;;  %s160_s15 = smov 28   ;;  %s161_s16 = smov 24   ;;  %v131_v15 = vld [vmem:[%s232_s0 + $0xc] sm:$0x1]  }
   0x8   :  { %20 = vrot.lane.b32.xlu0 %v120_v4, %s152_s18  ;;  %v132_v16 = vld [vmem:[%s232_s0 + $0x1] sm:$0x1]   ;;  %s162_s21 = smov 16   ;;  %s163_s22 = smov 12   ;;  %v133_v17 = vld [vmem:[%s232_s0 + $0xb] sm:$0x1]  }
   0x9   :  { %s164_s0 = smov 4   ;;  %vm22_vm4 = vcmask 982880   ;;  %vm28_vm5 = vcmask 884480   ;;  %vm34_vm6 = vcmask 786080   ;;  %vm40_vm7 = vcmask 687680  }
   0xa   :  { %44 = vrot.lane.b32.xlu1 %v124_v7, %s155_s27  ;;  %vm46_vm8 = vcmask 589280   ;;  %vm52_vm9 = vcmask 523680   ;;  %vm59_vm10 = vcmask 490880   ;;  %vm65_vm11 = vcmask 425280  }
   0xb   :  { %vm72_vm12 = vcmask 392480   ;;  %vm78_vm13 = vcmask 326880   ;;  %vm85_vm14 = vcmask 294080   ;;  %vm91_vm15 = vcmask 228480  }
   0xc   :  { %38 = vrot.lane.b32.xlu0 %v123_v6, %s154_s26  ;;  %vm98_vm0 = vcmask 195680   ;;  %vm104_vm1 = vcmask 130080  }
   0xe   :  { %57 = vrot.lane.b32.xlu1 %v126_v10, %s157_s4 }
  0x10   :  { %50 = vrot.lane.b32.xlu0 %v125_v9, %s156_s3 }
  0x12   :  { %70 = vrot.lane.b32.xlu1 %v128_v12, %s159_s10 }
  0x14   :  { %63 = vrot.lane.b32.xlu0 %v127_v11, %s158_s9 }
  0x16   :  { %83 = vrot.lane.b32.xlu1 %v130_v14, %s161_s16 }
  0x18   :  { %76 = vrot.lane.b32.xlu0 %v129_v13, %s160_s15 }
  0x1a   :  { %96 = vrot.lane.b32.xlu1 %v132_v16, %s163_s22 }
  0x1c   :  { %89 = vrot.lane.b32.xlu0 %v131_v15, %s162_s21 }
  0x20   :  { %102 = vrot.lane.b32.xlu0 %v133_v17, %s164_s0 }
  0x74   :  { %v27_v19 = vpop.permute.xlu1 %26  }
  0x76   :  { %v12_v18 = vpop.permute.xlu0 %11  }
  0x77   :  { %15 = vst.msk [vmem:[#allocation0 + $0x8] sm:$0x1] %vm13_vm2, %v12_v18  }
  0x78   :  { %17 = vst.msk [vmem:[#allocation0] sm:$0x1] %vm16_vm3, %v12_v18   ;;  %v33_v21 = vpop.permute.xlu1 %32  }
  0x7a   :  { %v21_v20 = vpop.permute.xlu0 %20  }
  0x7b   :  { %23 = vst.msk [vmem:[#allocation0] sm:$0x1] %vm22_vm4, %v21_v20  }
  0x7c   :  { %29 = vst.msk [vmem:[#allocation0] sm:$0x1] %vm28_vm5, %v27_v19   ;;  %v45_v23 = vpop.permute.xlu1 %44  }
  0x7d   :  { %35 = vst.msk [vmem:[#allocation0] sm:$0x1] %vm34_vm6, %v33_v21  }
  0x7e   :  { %v39_v22 = vpop.permute.xlu0 %38  }
  0x7f   :  { %41 = vst.msk [vmem:[#allocation0] sm:$0x1] %vm40_vm7, %v39_v22  }
  0x80   :  { %47 = vst.msk [vmem:[#allocation0] sm:$0x1] %vm46_vm8, %v45_v23   ;;  %v58_v25 = vpop.permute.xlu1 %57  }
  0x81   :  { %60 = vst.msk [vmem:[#allocation0] sm:$0x1] %vm59_vm10, %v58_v25  }
  0x82   :  { %v51_v24 = vpop.permute.xlu0 %50  }
  0x83   :  { %54 = vst.msk [vmem:[#allocation0 + $0x8] sm:$0x1] %vm52_vm9, %v51_v24  }
  0x84   :  { %v71_v27 = vpop.permute.xlu1 %70  }
  0x85   :  { %73 = vst.msk [vmem:[#allocation0] sm:$0x1] %vm72_vm12, %v71_v27  }
  0x86   :  { %v64_v26 = vpop.permute.xlu0 %63  }
  0x87   :  { %67 = vst.msk [vmem:[#allocation0 + $0x8] sm:$0x1] %vm65_vm11, %v64_v26  }
  0x88   :  { %v84_v29 = vpop.permute.xlu1 %83  }
  0x89   :  { %86 = vst.msk [vmem:[#allocation0] sm:$0x1] %vm85_vm14, %v84_v29  }
  0x8a   :  { %v77_v28 = vpop.permute.xlu0 %76  }
  0x8b   :  { %80 = vst.msk [vmem:[#allocation0 + $0x8] sm:$0x1] %vm78_vm13, %v77_v28  }
  0x8c   :  { %v97_v31 = vpop.permute.xlu1 %96  }
  0x8d   :  { %99 = vst.msk [vmem:[#allocation0] sm:$0x1] %vm98_vm0, %v97_v31  }
  0x8e   :  { %v90_v30 = vpop.permute.xlu0 %89  }
  0x8f   :  { %93 = vst.msk [vmem:[#allocation0 + $0x8] sm:$0x1] %vm91_vm15, %v90_v30  }
  0x92   :  { %v103_v32 = vpop.permute.xlu0 %102  }
  0x93   :  { %106 = vst.msk [vmem:[#allocation0 + $0x8] sm:$0x1] %vm104_vm1, %v103_v32  }
  0x94   :  { %v110_v33 = vld [vmem:[#allocation0] sm:$0x1] }
  0x95   :  { %112 = vst [vmem:[%s233_s1] sm:$0x1] %v110_v33 }
  0x9a   :  { %v114_v34 = vld [vmem:[#allocation0 + $0x8] sm:$0x1] }
  0x9b   :  { %134 = vst [vmem:[%s233_s1 + $0x1] sm:$0x1] %v114_v34 }

// kernel: enc_forward.17
= control target key start
LH: loop header
LB: loop body
LE: loop exit
PB: predicated region body
PF: predicated region fallthrough
CT: control target
= control target key end

     0   :  { %s2698_s15 = smov 0   ;;  %s4158_s0 = inlined_call_operand.vmem [shape: f32[2,18,864], index: 0, kind: input, shape index: {}]   ;;  %s4159_s1 = inlined_call_operand.vmem [shape: f32[9,1,768], index: 1, kind: input, shape index: {}]   ;;  %s4160_s2 = inlined_call_operand.vmem [shape: bf16[768,192], index: 2, kind: input, shape index: {}]   ;;  %s4161_s3 = inlined_call_operand.vmem [shape: f32[1,192], index: 3, kind: input, shape index: {}]   ;;  %s4162_s4 = inlined_call_operand.vmem [shape: f32[2,16,192], index: 4, kind: output, shape index: {}]  }
   0x1 LB: > { %s2377_s16 = sadd.s32 4294967295, %s2667_s15   ;;  %p2381_p0 = scmp.ge.s32.totalorder %s2667_s15, 1  ;;  %s2667_s15 = sphi %s2698_s15, %s14_s15  }
   0x2   : > { %p162_p1 = scmp.lt.s32.totalorder %s2667_s15, 3 }
   0x4   : > { %p163_p2 = pnand %p2381_p0, %p162_p1 }
   0x6   : > { %166 = sbr.rel (%p163_p2) target bundleno = 648 (0x288), region = 36 }
   0xd   : > { %v242_v0 = vlaneseq  ;;  %v2709_v2 = vld [vmem:[%s4159_s1 + $0x6] sm:$0x3f]  ;;  %s2669_s19 = smov 48   ;;  %v2386_v11 = vld [vmem:[%s4159_s1 + $0xc] sm:$0x3f]  ;;  %s2670_s24 = smov 96  }
   0xe   : > { %v2388_v14 = vld [vmem:[%s4159_s1 + $0x18] sm:$0x3f]  ;;  %v2389_v19 = vld [vmem:[%s4159_s1 + $0x1e] sm:$0x3f]  ;;  %v2391_v24 = vld [vmem:[%s4159_s1 + $0x2a] sm:$0x3f] }
   0xf   : > { %v243_v1 = vshrl.u32 %v242_v0, 7  ;;  %v2392_v31 = vld [vmem:[%s4159_s1 + $0x30] sm:$0x3f]  ;;  %p188_p3 = scmp.lt.s32.totalorder %s2377_s16, 1  ;;  %vm323_vm0 = vcmask 392192   ;;  %s2671_s13 = smov 80  }
  0x10   : > { %v2517_v60 = vld [vmem:[%s4160_s2 + $0x104] ss:$8 sps:$4 sm:$0xff]   ;;  %v2519_v63 = vld [vmem:[%s4160_s2 + $0x100] ss:$8 sps:$4 sm:$0xff]   ;;  %vm468_vm1 = vcmask 785408   ;;  %s2672_s28 = smov 32  }
  0x11   : > { %v2711_v3 = vsub.s32 4, %v243_v1  ;;  %v2713_v4 = vsub.s32 2, %v243_v1  ;;  %v2715_v5 = vsub.s32 3, %v243_v1  ;;  %v2717_v6 = vsub.s32 1, %v243_v1  ;;  %s4314_s16 = smov (!%p188_p3, %s2377_s16), 1  ;;  %2227 = vmatprep.subr.bf16.mxu0 %v2517_v60 }
  0x12   : > { %v2784_v36 = vsub.s32 5, %v243_v1  ;;  %v2786_v37 = vsub.s32 0, %v243_v1  ;;  %s2504_s5 = smul.u32 168, %s4314_s16  ;;  %2228 = vmatpush1.bf16.msra.mxu0 %v2519_v63  ;;  %vm643_vm2 = vcmask 1046528   ;;  %vm1151_vm3 = vcmask 1045504  }
  0x13   : > { %4213 = vst [vmem:[#allocation2_spill] sm:$0xff] %v2711_v3  ;;  %4214 = vst [vmem:[#allocation3_spill] sm:$0xff] %v2717_v6  ;;  %v306_v7 = vrot.slane %v2709_v2, %v2711_v3  ;;  %v298_v8 = vrot.slane %v2709_v2, %v2713_v4  ;;  %v302_v9 = vrot.slane %v2709_v2, %v2715_v5  ;;  %vm392_vm4 = vcmask 654336  }
  0x14   : > { %v294_v10 = vrot.slane %v2709_v2, %v2717_v6  ;;  %v443_v12 = vrot.slane %v2386_v11, %v2713_v4  ;;  %v447_v13 = vrot.slane %v2386_v11, %v2715_v5  ;;  %v451_v15 = vrot.slane %v2386_v11, %v2711_v3  ;;  %4215 = vst [vmem:[#allocation4_spill] sm:$0xff] %v2784_v36  ;;  %s2826_s8 = scalar_lea.vmem %s4158_s0, %s2504_s5 }
  0x15   : > { %319 = vrot.lane.b32.xlu1 %v306_v7, %s2669_s19  ;;  %315 = vrot.lane.b32.xlu0 %v298_v8, %s2669_s19  ;;  %v439_v16 = vrot.slane %v2386_v11, %v2717_v6  ;;  %v712_v17 = vrot.slane %v2388_v14, %v2713_v4  ;;  %v716_v18 = vrot.slane %v2388_v14, %v2715_v5  ;;  %v202_v50 = vld [vmem:[%s2826_s8 + $0x20] sm:$0xff]  ;;  %v201_v51 = vld [vmem:[%s2826_s8 + $0x18] sm:$0xff]  ;;  %vm537_vm5 = vcmask 261120  }
  0x16   : > { %v720_v20 = vrot.slane %v2388_v14, %v2711_v3  ;;  %v708_v21 = vrot.slane %v2388_v14, %v2717_v6  ;;  %v904_v22 = vrot.slane %v2389_v19, %v2713_v4  ;;  %v908_v23 = vrot.slane %v2389_v19, %v2715_v5  ;;  %4216 = vst [vmem:[#allocation5_spill] sm:$0xff] %v2786_v37  ;;  %v209_v56 = vld [vmem:[%s2826_s8 + $0x58] sm:$0xff]  ;;  %v208_v57 = vld [vmem:[%s2826_s8 + $0x50] sm:$0xff]  ;;  %v207_v8 = vld [vmem:[%s2826_s8 + $0x48] sm:$0xff] }
  0x17   : > { %v912_v25 = vrot.slane %v2389_v19, %v2711_v3  ;;  %v900_v26 = vrot.slane %v2389_v19, %v2717_v6  ;;  %v1220_v27 = vrot.slane %v2391_v24, %v2713_v4  ;;  %v1224_v28 = vrot.slane %v2391_v24, %v2715_v5 }
  0x18   : > { %v1228_v29 = vrot.slane %v2391_v24, %v2711_v3  ;;  %v1216_v30 = vrot.slane %v2391_v24, %v2717_v6  ;;  %v1412_v32 = vrot.slane %v2392_v31, %v2713_v4  ;;  %v1416_v33 = vrot.slane %v2392_v31, %v2715_v5 }
  0x19   : > { %317 = vrot.lane.b32.xlu0 %v302_v9, %s2669_s19  ;;  %313 = vrot.lane.b32.xlu1 %v294_v10, %s2669_s19  ;;  %v1420_v34 = vrot.slane %v2392_v31, %v2711_v3  ;;  %v1408_v35 = vrot.slane %v2392_v31, %v2717_v6  ;;  %v310_v38 = vrot.slane %v2709_v2, %v2784_v36  ;;  %v2832_v54 = vmax.f32 %v202_v50, 0.0  ;;  %v200_v9 = vld [vmem:[%s2826_s8 + $0x10] sm:$0xff] }
  0x1a   : > { %v290_v39 = vrot.slane %v2709_v2, %v2786_v37  ;;  %v704_v40 = vrot.slane %v2388_v14, %v2786_v37  ;;  %v435_v41 = vrot.slane %v2386_v11, %v2786_v37  ;;  %v724_v42 = vrot.slane %v2388_v14, %v2784_v36 }
  0x1b   : > { %v455_v43 = vrot.slane %v2386_v11, %v2784_v36  ;;  %v916_v44 = vrot.slane %v2389_v19, %v2784_v36  ;;  %v896_v45 = vrot.slane %v2389_v19, %v2786_v37  ;;  %v1232_v46 = vrot.slane %v2391_v24, %v2784_v36  ;;  %4217 = vst [vmem:[#allocation6_spill] sm:$0xff] %v2832_v54 }
  0x1c   : > { %v1212_v47 = vrot.slane %v2391_v24, %v2786_v37  ;;  %v1424_v48 = vrot.slane %v2392_v31, %v2784_v36  ;;  %v1404_v49 = vrot.slane %v2392_v31, %v2786_v37  ;;  %v2834_v55 = vmax.f32 %v201_v51, 0.0  ;;  %v2528_v31 = vld [vmem:[%s4160_s2 + $0x130] ss:$8 sps:$4 sm:$0xff]  }
  0x1d   : > { %460 = vrot.lane.b32.xlu0 %v443_v12, %s2670_s24  ;;  %462 = vrot.lane.b32.xlu1 %v447_v13, %s2670_s24  ;;  %v2851_v2 = vmax.f32 %v209_v56, 0.0  ;;  %v2853_v7 = vmax.f32 %v208_v57, 0.0  ;;  %v2520_v12 = vld [vmem:[%s4160_s2 + $0x114] ss:$8 sps:$4 sm:$0xff]   ;;  %v2522_v13 = vld [vmem:[%s4160_s2 + $0x110] ss:$8 sps:$4 sm:$0xff]  }
  0x1e   : > { %2229 = vmatprep.subr.bf16.mxu0 %v2520_v12  ;;  %vm2318_vm6 = vcmask 523264  }
  0x1f   : > { %4218 = vst [vmem:[#allocation7_spill] sm:$0xff] %v2851_v2  ;;  %2230 = vmatpush1.bf16.msra.mxu0 %v2522_v13 }
  0x21   : > { %464 = vrot.lane.b32.xlu0 %v451_v15, %s2670_s24  ;;  %458 = vrot.lane.b32.xlu1 %v439_v16, %s2670_s24  ;;  %v2867_v16 = vmax.f32 %v207_v8, 0.0 }
  0x25   : > { %729 = vrot.lane.b32.xlu0 %v712_v17, %s2669_s19  ;;  %731 = vrot.lane.b32.xlu1 %v716_v18, %s2669_s19  ;;  %v2869_v17 = vmax.f32 %v200_v9, 0.0 }
  0x29   : > { %733 = vrot.lane.b32.xlu0 %v720_v20, %s2669_s19  ;;  %727 = vrot.lane.b32.xlu1 %v708_v21, %s2669_s19  ;;  %v2523_v21 = vld [vmem:[%s4160_s2 + $0x124] ss:$8 sps:$4 sm:$0xff]  }
  0x2a   : > { %2231 = vmatprep.subr.bf16.mxu0 %v2523_v21  ;;  %v2537_v21 = vld [vmem:[%s4160_s2 + $0x160] ss:$8 sps:$4 sm:$0xff]  }
  0x2d   : > { %921 = vrot.lane.b32.xlu0 %v904_v22, %s2670_s24  ;;  %923 = vrot.lane.b32.xlu1 %v908_v23, %s2670_s24  ;;  %v2525_v23 = vld [vmem:[%s4160_s2 + $0x120] ss:$8 sps:$4 sm:$0xff]  }
  0x2e   : > { %2232 = vmatpush1.bf16.msra.mxu0 %v2525_v23 }
  0x31   : > { %925 = vrot.lane.b32.xlu0 %v912_v25, %s2670_s24  ;;  %919 = vrot.lane.b32.xlu1 %v900_v26, %s2670_s24 }
  0x35   : > { %1237 = vrot.lane.b32.xlu0 %v1220_v27, %s2669_s19  ;;  %1239 = vrot.lane.b32.xlu1 %v1224_v28, %s2669_s19 }
  0x39   : > { %1241 = vrot.lane.b32.xlu0 %v1228_v29, %s2669_s19  ;;  %1235 = vrot.lane.b32.xlu1 %v1216_v30, %s2669_s19  ;;  %v2526_v30 = vld [vmem:[%s4160_s2 + $0x134] ss:$8 sps:$4 sm:$0xff]  }
  0x3a   : > { %2233 = vmatprep.subr.bf16.mxu0 %v2526_v30 }
  0x3b   : > { %2234 = vmatpush1.bf16.msra.mxu0 %v2528_v31 }
  0x3d   : > { %1429 = vrot.lane.b32.xlu0 %v1412_v32, %s2670_s24  ;;  %1431 = vrot.lane.b32.xlu1 %v1416_v33, %s2670_s24  ;;  %v215_v32 = vld [vmem:[%s2826_s8 + $0x88] sm:$0x3] }
  0x41   : > { %1433 = vrot.lane.b32.xlu0 %v1420_v34, %s2670_s24  ;;  %1427 = vrot.lane.b32.xlu1 %v1408_v35, %s2670_s24 }
  0x45   : > { %321 = vrot.lane.b32.xlu1 %v310_v38, %s2669_s19  ;;  %311 = vrot.lane.b32.xlu0 %v290_v39, %s2669_s19  ;;  %v216_v38 = vld [vmem:[%s2826_s8 + $0x90] sm:$0x3] }
  0x46   : > { %v2927_v51 = vmax.f32 %v216_v38, 0.0  ;;  %v2540_v38 = vld [vmem:[%s4160_s2 + $0x170] ss:$8 sps:$4 sm:$0xff]  }
  0x48   : > { %4219 = vst [vmem:[#allocation8_spill] sm:$0xff] %v2927_v51 }
  0x49   : > { %725 = vrot.lane.b32.xlu1 %v704_v40, %s2669_s19  ;;  %456 = vrot.lane.b32.xlu0 %v435_v41, %s2670_s24  ;;  %v2529_v40 = vld [vmem:[%s4160_s2 + $0x144] ss:$8 sps:$4 sm:$0xff]   ;;  %v2912_v41 = vmax.f32 %v215_v32, 0.0  ;;  %v2538_v32 = vld [vmem:[%s4160_s2 + $0x174] ss:$8 sps:$4 sm:$0xff]  }
  0x4a   : > { %2235 = vmatprep.subr.bf16.mxu0 %v2529_v40 }
  0x4d   : > { %735 = vrot.lane.b32.xlu1 %v724_v42, %s2669_s19  ;;  %466 = vrot.lane.b32.xlu0 %v455_v43, %s2670_s24  ;;  %v2531_v43 = vld [vmem:[%s4160_s2 + $0x140] ss:$8 sps:$4 sm:$0xff]  }
  0x4e   : > { %2236 = vmatpush1.bf16.msra.mxu0 %v2531_v43 }
  0x51   : > { %927 = vrot.lane.b32.xlu1 %v916_v44, %s2670_s24  ;;  %917 = vrot.lane.b32.xlu0 %v896_v45, %s2670_s24 }
  0x55   : > { %1243 = vrot.lane.b32.xlu1 %v1232_v46, %s2669_s19  ;;  %1233 = vrot.lane.b32.xlu0 %v1212_v47, %s2669_s19 }
  0x59   : > { %1435 = vrot.lane.b32.xlu1 %v1424_v48, %s2670_s24  ;;  %1425 = vrot.lane.b32.xlu0 %v1404_v49, %s2670_s24 }
  0x87   : > { %v2830_v52 = vpop.permute.xlu1 %319  ;;  %v316_v53 = vpop.permute.xlu0 %315 }
  0x8b   : > { %v318_v58 = vpop.permute.xlu0 %317  ;;  %v2838_v59 = vpop.permute.xlu1 %313 }
  0x8c   : > { %v326_v61 = vsel %vm323_vm0, %v316_v53, %v318_v58  ;;  %v327_v62 = vsel %vm323_vm0, %v318_v58, %v2830_v52  ;;  %v325_v18 = vsel %vm323_vm0, %v2838_v59, %v316_v53  ;;  %v214_v53 = vld [vmem:[%s2826_s8 + $0x80] sm:$0x3]  ;;  %v2532_v58 = vld [vmem:[%s4160_s2 + $0x154] ss:$8 sps:$4 sm:$0xff]  }
  0x8d   : > { %v340_v0 = vmul.f32 %v327_v62, %v2832_v54  ;;  %v339_v1 = vmul.f32 %v326_v61, %v2834_v55  ;;  %v347_v14 = vmul.f32 %v327_v62, %v2851_v2  ;;  %v346_v15 = vmul.f32 %v326_v61, %v2853_v7  ;;  %v2534_v62 = vld [vmem:[%s4160_s2 + $0x150] ss:$8 sps:$4 sm:$0xff]   ;;  %2237 = vmatprep.subr.bf16.mxu0 %v2532_v58  ;;  %v2543_v58 = vld [vmem:[%s4160_s2 + $0x180] ss:$8 sps:$4 sm:$0xff]  }
  0x8e   : > { %v345_v24 = vmul.f32 %v325_v18, %v2867_v16  ;;  %v338_v25 = vmul.f32 %v325_v18, %v2869_v17  ;;  %2238 = vmatpush1.bf16.msra.mxu0 %v2534_v62 }
  0x8f   : > { %v461_v10 = vpop.permute.xlu0 %460  ;;  %v463_v11 = vpop.permute.xlu1 %462  ;;  %372 = vrot.lane.b32.xlu0 %v340_v0, %s2671_s13  ;;  %370 = vrot.lane.b32.xlu1 %v339_v1, %s2671_s13  ;;  %v2941_v0 = vmax.f32 %v214_v53, 0.0 }
  0x90   : > { %v471_v26 = vsel %vm468_vm1, %v461_v10, %v463_v11 }
  0x91   : > { %v484_v33 = vmul.f32 %v471_v26, %v2834_v55  ;;  %v491_v47 = vmul.f32 %v471_v26, %v2853_v7 }
  0x93   : > { %v2873_v19 = vpop.permute.xlu0 %464  ;;  %v2875_v20 = vpop.permute.xlu1 %458  ;;  %386 = vrot.lane.b32.xlu0 %v347_v14, %s2671_s13  ;;  %384 = vrot.lane.b32.xlu1 %v346_v15, %s2671_s13  ;;  %v2535_v15 = vld [vmem:[%s4160_s2 + $0x164] ss:$8 sps:$4 sm:$0xff]  }
  0x94   : > { %v472_v22 = vsel %vm468_vm1, %v463_v11, %v2873_v19  ;;  %v470_v48 = vsel %vm468_vm1, %v2875_v20, %v461_v10  ;;  %2239 = vmatprep.subr.bf16.mxu0 %v2535_v15 }
  0x95   : > { %v485_v29 = vmul.f32 %v472_v22, %v2832_v54  ;;  %v492_v46 = vmul.f32 %v472_v22, %v2851_v2  ;;  %v490_v1 = vmul.f32 %v470_v48, %v2867_v16  ;;  %v483_v8 = vmul.f32 %v470_v48, %v2869_v17  ;;  %2240 = vmatpush1.bf16.msra.mxu0 %v2537_v21 }
  0x96   : > { %2241 = vmatprep.subr.bf16.mxu0 %v2538_v32  ;;  %v2547_v32 = vld [vmem:[%s4160_s2 + $0x1a4] ss:$8 sps:$4 sm:$0xff]  }
  0x97   : > { %v730_v27 = vpop.permute.xlu0 %729  ;;  %v732_v28 = vpop.permute.xlu1 %731  ;;  %382 = vrot.lane.b32.xlu0 %v345_v24, %s2671_s13  ;;  %368 = vrot.lane.b32.xlu1 %v338_v25, %s2671_s13 }
  0x98   : > { %v739_v34 = vsel %vm323_vm0, %v730_v27, %v732_v28 }
  0x99   : > { %v752_v49 = vmul.f32 %v739_v34, %v2834_v55  ;;  %v759_v50 = vmul.f32 %v739_v34, %v2853_v7  ;;  %v766_v63 = vmul.f32 %v739_v34, %v2912_v41  ;;  %2242 = vmatpush1.bf16.msra.mxu0 %v2540_v38 }
  0x9b   : > { %v2902_v35 = vpop.permute.xlu0 %733  ;;  %v2905_v39 = vpop.permute.xlu1 %727  ;;  %517 = vrot.lane.b32.xlu0 %v485_v29, %s2672_s28  ;;  %515 = vrot.lane.b32.xlu1 %v484_v33, %s2672_s28  ;;  %v800_v11 = vrot.slane %v752_v49, 1  ;;  %v801_v12 = vrot.slane %v759_v50, 1  ;;  %v2541_v50 = vld [vmem:[%s4160_s2 + $0x184] ss:$8 sps:$4 sm:$0xff]  }
  0x9c   : > { %v740_v42 = vsel %vm323_vm0, %v732_v28, %v2902_v35  ;;  %v738_v10 = vsel %vm323_vm0, %v2905_v39, %v730_v27  ;;  %v818_v28 = vrot.slane %v766_v63, 1  ;;  %2243 = vmatprep.subr.bf16.mxu0 %v2541_v50 }
  0x9d   : > { %v753_v44 = vmul.f32 %v740_v42, %v2832_v54  ;;  %v760_v45 = vmul.f32 %v740_v42, %v2851_v2  ;;  %v767_v9 = vmul.f32 %v740_v42, %v2927_v51  ;;  %v751_v22 = vmul.f32 %v738_v10, %v2869_v17  ;;  %2244 = vmatpush1.bf16.msra.mxu0 %v2543_v58 }
  0x9e   : > { %v758_v23 = vmul.f32 %v738_v10, %v2867_v16  ;;  %v765_v24 = vmul.f32 %v738_v10, %v2941_v0  ;;  %v802_v26 = vsel %vm643_vm2, %v800_v11, %v801_v12 }
  0x9f   : > { %v2930_v56 = vpop.permute.xlu0 %921  ;;  %v924_v57 = vpop.permute.xlu1 %923  ;;  %531 = vrot.lane.b32.xlu0 %v492_v46, %s2672_s28  ;;  %529 = vrot.lane.b32.xlu1 %v491_v47, %s2672_s28  ;;  %v803_v60 = vrot.slane %v753_v44, 1  ;;  %v804_v61 = vrot.slane %v760_v45, 1  ;;  %v820_v27 = vrot.slane %v767_v9, 1  ;;  %v797_v43 = vrot.slane %v751_v22, 1 }
  0xa0   : > { %v931_v29 = vsel %vm468_vm1, %v2930_v56, %v924_v57  ;;  %v798_v40 = vrot.slane %v758_v23, 1  ;;  %v816_v42 = vrot.slane %v765_v24, 1  ;;  %v819_v47 = vsel %vm643_vm2, %v801_v12, %v818_v28  ;;  %v2544_v12 = vld [vmem:[%s4160_s2 + $0x194] ss:$8 sps:$4 sm:$0xff]  }
  0xa1   : > { %v805_v18 = vsel %vm643_vm2, %v803_v60, %v804_v61  ;;  %v944_v44 = vmul.f32 %v931_v29, %v2834_v55  ;;  %v951_v45 = vmul.f32 %v931_v29, %v2853_v7  ;;  %v821_v46 = vsel %vm643_vm2, %v804_v61, %v820_v27  ;;  %2245 = vmatprep.subr.bf16.mxu0 %v2544_v12 }
  0xa2   : > { %v958_v60 = vmul.f32 %v931_v29, %v2912_v41  ;;  %v817_v61 = vsel %vm643_vm2, %v798_v40, %v816_v42  ;;  %v799_v62 = vsel %vm643_vm2, %v797_v43, %v798_v40 }
  0xa3   : > { %v2948_v13 = vpop.permute.xlu0 %925  ;;  %v2950_v14 = vpop.permute.xlu1 %919  ;;  %527 = vrot.lane.b32.xlu0 %v490_v1, %s2672_s28  ;;  %513 = vrot.lane.b32.xlu1 %v483_v8, %s2672_s28  ;;  %v992_v8 = vrot.slane %v944_v44, 1  ;;  %v993_v9 = vrot.slane %v951_v45, 1 }
  0xa4   : > { %v932_v25 = vsel %vm468_vm1, %v924_v57, %v2948_v13  ;;  %v930_v1 = vsel %vm468_vm1, %v2950_v14, %v2930_v56  ;;  %v2546_v56 = vld [vmem:[%s4160_s2 + $0x190] ss:$8 sps:$4 sm:$0xff]  }
  0xa5   : > { %v945_v33 = vmul.f32 %v932_v25, %v2832_v54  ;;  %v952_v34 = vmul.f32 %v932_v25, %v2851_v2  ;;  %v959_v63 = vmul.f32 %v932_v25, %v2927_v51  ;;  %v950_v21 = vmul.f32 %v930_v1, %v2867_v16  ;;  %2246 = vmatpush1.bf16.msra.mxu0 %v2546_v56 }
  0xa6   : > { %v957_v22 = vmul.f32 %v930_v1, %v2941_v0  ;;  %v994_v24 = vsel %vm643_vm2, %v992_v8, %v993_v9  ;;  %v1010_v25 = vrot.slane %v958_v60, 1  ;;  %2247 = vmatprep.subr.bf16.mxu0 %v2547_v32 }
  0xa7   : > { %v2969_v30 = vpop.permute.xlu0 %1237  ;;  %v1240_v31 = vpop.permute.xlu1 %1239  ;;  %834 = vrot.lane.b32.xlu0 %v805_v18, %s2671_s13  ;;  %832 = vrot.lane.b32.xlu1 %v802_v26, %s2671_s13  ;;  %v995_v53 = vrot.slane %v945_v33, 1  ;;  %v996_v57 = vrot.slane %v952_v34, 1  ;;  %v943_v18 = vmul.f32 %v930_v1, %v2869_v17  ;;  %v1012_v26 = vrot.slane %v959_v63, 1 }
  0xa8   : > { %v1247_v27 = vsel %vm323_vm0, %v2969_v30, %v1240_v31  ;;  %v990_v40 = vrot.slane %v950_v21, 1  ;;  %v1008_v42 = vrot.slane %v957_v22, 1  ;;  %v1011_v45 = vsel %vm643_vm2, %v993_v9, %v1010_v25 }
  0xa9   : > { %v997_v15 = vsel %vm643_vm2, %v995_v53, %v996_v57  ;;  %v989_v38 = vrot.slane %v943_v18, 1  ;;  %v1260_v43 = vmul.f32 %v1247_v27, %v2834_v55  ;;  %v1267_v44 = vmul.f32 %v1247_v27, %v2853_v7  ;;  %v2550_v53 = vld [vmem:[%s4160_s2 + $0x1b4] ss:$8 sps:$4 sm:$0xff]   ;;  %v2553_v18 = vld [vmem:[%s4160_s2 + $0x1c4] ss:$8 sps:$4 sm:$0xff]  }
  0xaa   : > { %v1274_v58 = vmul.f32 %v1247_v27, %v2912_v41  ;;  %v1009_v63 = vsel %vm643_vm2, %v990_v40, %v1008_v42  ;;  %v2558_v42 = vld [vmem:[%s4160_s2 + $0x1d0] ss:$8 sps:$4 sm:$0xff]  }
  0xab   : > { %v2985_v48 = vpop.permute.xlu0 %1241  ;;  %v2987_v49 = vpop.permute.xlu1 %1235  ;;  %848 = vrot.lane.b32.xlu0 %v821_v46, %s2671_s13  ;;  %846 = vrot.lane.b32.xlu1 %v819_v47, %s2671_s13  ;;  %v1013_v46 = vsel %vm643_vm2, %v996_v57, %v1012_v26  ;;  %v2552_v57 = vld [vmem:[%s4160_s2 + $0x1b0] ss:$8 sps:$4 sm:$0xff]   ;;  %v1308_v9 = vrot.slane %v1260_v43, 2  ;;  %v1309_v12 = vrot.slane %v1267_v44, 2 }
  0xac   : > { %v1248_v23 = vsel %vm323_vm0, %v1240_v31, %v2985_v48  ;;  %v2549_v31 = vld [vmem:[%s4160_s2 + $0x1a0] ss:$8 sps:$4 sm:$0xff]   ;;  %v1246_v8 = vsel %vm323_vm0, %v2987_v49, %v2969_v30  ;;  %v1326_v22 = vrot.slane %v1274_v58, 2 }
  0xad   : > { %v1261_v33 = vmul.f32 %v1248_v23, %v2832_v54  ;;  %v1268_v34 = vmul.f32 %v1248_v23, %v2851_v2  ;;  %2248 = vmatpush1.bf16.msra.mxu0 %v2549_v31  ;;  %v1275_v1 = vmul.f32 %v1248_v23, %v2927_v51  ;;  %v2555_v30 = vld [vmem:[%s4160_s2 + $0x1c0] ss:$8 sps:$4 sm:$0xff]   ;;  %v1259_v23 = vmul.f32 %v1246_v8, %v2869_v17 }
  0xae   : > { %2249 = vmatprep.subr.bf16.mxu0 %v2550_v53  ;;  %v1273_v25 = vmul.f32 %v1246_v8, %v2941_v0  ;;  %v1310_v27 = vsel %vm1151_vm3, %v1308_v9, %v1309_v12 }
  0xaf   : > { %v3004_v10 = vpop.permute.xlu0 %1429  ;;  %v3006_v11 = vpop.permute.xlu1 %1431  ;;  %844 = vrot.lane.b32.xlu0 %v817_v61, %s2671_s13  ;;  %830 = vrot.lane.b32.xlu1 %v799_v62, %s2671_s13  ;;  %v1311_v60 = vrot.slane %v1261_v33, 2  ;;  %v1312_v61 = vrot.slane %v1268_v34, 2  ;;  %v991_v62 = vsel %vm643_vm2, %v989_v38, %v990_v40  ;;  %v1328_v32 = vrot.slane %v1275_v1, 2  ;;  %v2556_v38 = vld [vmem:[%s4160_s2 + $0x1d4] ss:$8 sps:$4 sm:$0xff]  }
  0xb0   : > { %v1439_v33 = vsel %vm468_vm1, %v3004_v10, %v3006_v11  ;;  %v1327_v40 = vsel %vm1151_vm3, %v1309_v12, %v1326_v22  ;;  %v2561_v1 = vld [vmem:[%s4160_s2 + $0x1e0] ss:$8 sps:$4 sm:$0xff]  }
  0xb1   : > { %2250 = vmatpush1.bf16.msra.mxu0 %v2552_v57  ;;  %v1313_v21 = vsel %vm1151_vm3, %v1311_v60, %v1312_v61  ;;  %v1459_v53 = vmul.f32 %v1439_v33, %v2853_v7  ;;  %v1329_v58 = vsel %vm1151_vm3, %v1312_v61, %v1328_v32  ;;  %v1324_v60 = vrot.slane %v1273_v25, 2 }
  0xb2   : > { %2251 = vmatprep.subr.bf16.mxu0 %v2553_v18  ;;  %v1466_v61 = vmul.f32 %v1439_v33, %v2912_v41 }
  0xb3   : > { %v3025_v28 = vpop.permute.xlu0 %1433  ;;  %v3027_v29 = vpop.permute.xlu1 %1427  ;;  %1024 = vrot.lane.b32.xlu0 %v994_v24, %s2672_s28  ;;  %1026 = vrot.lane.b32.xlu1 %v997_v15, %s2672_s28  ;;  %v1266_v24 = vmul.f32 %v1246_v8, %v2867_v16 }
  0xb4   : > { %v1440_v26 = vsel %vm468_vm1, %v3006_v11, %v3025_v28 }
  0xb5   : > { %2252 = vmatpush1.bf16.msra.mxu0 %v2555_v30  ;;  %v1453_v11 = vmul.f32 %v1440_v26, %v2832_v54  ;;  %v1460_v43 = vmul.f32 %v1440_v26, %v2851_v2  ;;  %v1306_v44 = vrot.slane %v1266_v24, 2  ;;  %v1467_v22 = vmul.f32 %v1440_v26, %v2927_v51  ;;  %v2564_v26 = vld [vmem:[%s4160_s2 + $0x1f0] ss:$8 sps:$4 sm:$0xff]  }
  0xb6   : > { %2253 = vmatprep.subr.bf16.mxu0 %v2556_v38 }
  0xb7   : > { %v3043_v47 = vpop.permute.xlu1 %321  ;;  %v3045_v50 = vpop.permute.xlu0 %311  ;;  %1038 = vrot.lane.b32.xlu0 %v1011_v45, %s2672_s28  ;;  %1040 = vrot.lane.b32.xlu1 %v1013_v46, %s2672_s28  ;;  %v1305_v45 = vrot.slane %v1259_v23, 2  ;;  %v1452_v46 = vmul.f32 %v1439_v33, %v2834_v55  ;;  %v1503_v8 = vrot.slane %v1453_v11, 2  ;;  %v1504_v9 = vrot.slane %v1460_v43, 2 }
  0xb8   : > { %v1325_v12 = vsel %vm1151_vm3, %v1306_v44, %v1324_v60  ;;  %v1438_v23 = vsel %vm468_vm1, %v3027_v29, %v3004_v10 }
  0xb9   : > { %2254 = vmatpush1.bf16.msra.mxu0 %v2558_v42  ;;  %v1307_v18 = vsel %vm1151_vm3, %v1305_v45, %v1306_v44  ;;  %v1500_v30 = vrot.slane %v1452_v46, 2  ;;  %v1505_v32 = vsel %vm1151_vm3, %v1503_v8, %v1504_v9  ;;  %v1451_v10 = vmul.f32 %v1438_v23, %v2869_v17 }
  0xba   : > { %v1458_v33 = vmul.f32 %v1438_v23, %v2867_v16  ;;  %v1520_v42 = vrot.slane %v1467_v22, 2  ;;  %v1465_v11 = vmul.f32 %v1438_v23, %v2941_v0  ;;  %v324_v22 = vsel %vm323_vm0, %v3045_v50, %v2838_v59 }
  0xbb   : > { %v3062_v15 = vpop.permute.xlu1 %725  ;;  %v3064_v56 = vpop.permute.xlu0 %456  ;;  %1022 = vrot.lane.b32.xlu0 %v991_v62, %s2672_s28  ;;  %1036 = vrot.lane.b32.xlu1 %v1009_v63, %s2672_s28  ;;  %v2559_v63 = vld [vmem:[%s4160_s2 + $0x1e4] ss:$8 sps:$4 sm:$0xff]   ;;  %v1497_v46 = vrot.slane %v1451_v10, 2 }
  0xbc   : > { %2255 = vmatprep.subr.bf16.mxu0 %v2559_v63  ;;  %v1516_v63 = vrot.slane %v1465_v11, 2  ;;  %v1521_v8 = vsel %vm1151_vm3, %v1504_v9, %v1520_v42 }
  0xbd   : > { %2256 = vmatpush1.bf16.msra.mxu0 %v2561_v1  ;;  %v206_v1 = vld [vmem:[%s2826_s8 + $0x40] sm:$0xff] }
  0xbe   : > { %v3167_v23 = vmax.f32 %v206_v1, 0.0 }
  0xbf   : > { %v3085_v34 = vpop.permute.xlu1 %735  ;;  %v3087_v31 = vpop.permute.xlu0 %466  ;;  %1342 = vrot.lane.b32.xlu0 %v1313_v21, %s2671_s13  ;;  %1340 = vrot.lane.b32.xlu1 %v1310_v27, %s2671_s13  ;;  %v1501_v21 = vrot.slane %v1459_v53, 2  ;;  %v2562_v27 = vld [vmem:[%s4160_s2 + $0x1f4] ss:$8 sps:$4 sm:$0xff]   ;;  %v1498_v53 = vrot.slane %v1458_v33, 2 }
  0xc0   : > { %2257 = vmatprep.subr.bf16.mxu0 %v2562_v27  ;;  %v218_v27 = vld [vmem:[%s2826_s8 + $0xa0] sm:$0x3] }
  0xc1   : > { %v1502_v38 = vsel %vm1151_vm3, %v1500_v30, %v1501_v21  ;;  %2258 = vmatpush1.bf16.msra.mxu0 %v2564_v26  ;;  %v198_v30 = vld [vmem:[%s2826_s8] sm:$0xff]  ;;  %v1517_v9 = vsel %vm1151_vm3, %v1498_v53, %v1516_v63  ;;  %v328_v63 = vsel %vm323_vm0, %v2830_v52, %v3043_v47 }
  0xc2   : > { %v3178_v10 = vmax.f32 %v198_v30, 0.0 }
  0xc3   : > { %v3103_v57 = vpop.permute.xlu1 %927  ;;  %v3105_v62 = vpop.permute.xlu0 %917  ;;  %1356 = vrot.lane.b32.xlu0 %v1329_v58, %s2671_s13  ;;  %1354 = vrot.lane.b32.xlu1 %v1327_v40, %s2671_s13  ;;  %v1518_v40 = vrot.slane %v1466_v61, 2  ;;  %v199_v58 = vld [vmem:[%s2826_s8 + $0x8] sm:$0xff] }
  0xc4   : > { %4221 = vst [vmem:[#allocation10_spill] sm:$0xff] %v3178_v10 }
  0xc5   : > { %v1519_v60 = vsel %vm1151_vm3, %v1501_v21, %v1518_v40  ;;  %v205_v21 = vld [vmem:[%s2826_s8 + $0x38] sm:$0xff]  ;;  %v203_v40 = vld [vmem:[%s2826_s8 + $0x28] sm:$0xff] }
  0xc6   : > { %v3180_v33 = vmax.f32 %v205_v21, 0.0 }
  0xc7   : > { %v3122_v24 = vpop.permute.xlu1 %1243  ;;  %v3124_v25 = vpop.permute.xlu0 %1233  ;;  %1352 = vrot.lane.b32.xlu0 %v1325_v12, %s2671_s13  ;;  %1338 = vrot.lane.b32.xlu1 %v1307_v18, %s2671_s13  ;;  %v211_v12 = vld [vmem:[%s2826_s8 + $0x68] sm:$0xff]  ;;  %v3160_v18 = vmax.f32 %v199_v58, 0.0  ;;  %v336_v58 = vmul.f32 %v3045_v50, %v3178_v10 }
  0xc8   : > { %4222 = vst [vmem:[#allocation11_spill] sm:$0xff] %v3180_v33  ;;  %v343_v1 = vmul.f32 %v3045_v50, %v3180_v33 }
  0xc9   : > { %4220 = vst [vmem:[#allocation9_spill] sm:$0xff] %v3160_v18  ;;  %v337_v59 = vmul.f32 %v324_v22, %v3160_v18 }
  0xcb   : > { %v1436_v43 = vpop.permute.xlu1 %1435  ;;  %1532 = vrot.lane.b32.xlu0 %v1502_v38, %s2672_s28  ;;  %1534 = vrot.lane.b32.xlu1 %v1505_v32, %s2672_s28  ;;  %v3141_v44 = vpop.permute.xlu0 %1425  ;;  %v3175_v32 = vmax.f32 %v211_v12, 0.0  ;;  %v3183_v38 = vmax.f32 %v218_v27, 0.0 }
  0xcc   : > { %v3145_v45 = vsel %vm468_vm1, %v3025_v28, %v1436_v43  ;;  %v3153_v61 = vsel %vm468_vm1, %v3141_v44, %v3027_v29  ;;  %v204_v28 = vld [vmem:[%s2826_s8 + $0x30] sm:$0xff]  ;;  %v1499_v29 = vsel %vm1151_vm3, %v1497_v46, %v1498_v53  ;;  %v344_v46 = vmul.f32 %v324_v22, %v3167_v23 }
  0xcd   : > { %v3173_v26 = vmax.f32 %v204_v28, 0.0  ;;  %v1462_v11 = vmul.f32 %v1436_v43, %v3175_v32  ;;  %v1469_v53 = vmul.f32 %v1436_v43, %v3183_v38  ;;  %v349_v27 = vmul.f32 %v3043_v47, %v3175_v32 }
  0xcf   : > { %1546 = vrot.lane.b32.xlu0 %v1519_v60, %s2672_s28  ;;  %1548 = vrot.lane.b32.xlu1 %v1521_v8, %s2672_s28  ;;  %v1455_v42 = vmul.f32 %v1436_v43, %v3173_v26  ;;  %v3194_v60 = vmax.f32 %v203_v40, 0.0  ;;  %v210_v8 = vld [vmem:[%s2826_s8 + $0x60] sm:$0xff]  ;;  %v1510_v12 = vrot.slane %v1462_v11, 2  ;;  %v342_v43 = vmul.f32 %v3043_v47, %v3173_v26  ;;  %v2568_v11 = vld [vmem:[%s4160_s2 + $0x14] ss:$8 sps:$4 sm:$0xff]  }
  0xd0   : > { %v1524_v30 = vrot.slane %v1469_v53, 2  ;;  %v3206_v21 = vmax.f32 %v210_v8, 0.0  ;;  %v2567_v40 = vld [vmem:[%s4160_s2] ss:$8 sps:$4 sm:$0xff]   ;;  %v481_v53 = vmul.f32 %v3064_v56, %v3178_v10 }
  0xd1   : > { %4223 = vst [vmem:[#allocation12_spill] sm:$0xff] %v3194_v60  ;;  %v1509_v28 = vrot.slane %v1455_v42, 2  ;;  %v341_v22 = vmul.f32 %v328_v63, %v3194_v60  ;;  %v1454_v51 = vmul.f32 %v3145_v45, %v3194_v60 }
  0xd2   : > { %4224 = vst [vmem:[#allocation13_spill] sm:$0xff] %v3206_v21  ;;  %v3215_v50 = vsel %vm1151_vm3, %v1510_v12, %v1524_v30 }
  0xd3   : > { %1530 = vrot.lane.b32.xlu0 %v1499_v29, %s2672_s28  ;;  %1544 = vrot.lane.b32.xlu1 %v1517_v9, %s2672_s28  ;;  %v3210_v52 = vsel %vm1151_vm3, %v1509_v28, %v1510_v12  ;;  %v348_v29 = vmul.f32 %v328_v63, %v3206_v21  ;;  %v469_v9 = vsel %vm468_vm1, %v3064_v56, %v2875_v20  ;;  %v213_v20 = vld [vmem:[%s2826_s8 + $0x78] sm:$0x3]  ;;  %v212_v28 = vld [vmem:[%s2826_s8 + $0x70] sm:$0x3] }
  0xd4   : > { %v482_v42 = vmul.f32 %v469_v9, %v3160_v18  ;;  %v489_v47 = vmul.f32 %v469_v9, %v3167_v23  ;;  %v473_v63 = vsel %vm468_vm1, %v2873_v19, %v3087_v31  ;;  %v3252_v8 = vmax.f32 %v213_v20, 0.0  ;;  %v2571_v19 = vld [vmem:[%s4160_s2 + $0x24] ss:$8 sps:$4 sm:$0xff]   ;;  %v2577_v9 = vld [vmem:[%s4160_s2 + $0x34] ss:$8 sps:$4 sm:$0xff]  }
  0xd5   : > { %v487_v12 = vmul.f32 %v3087_v31, %v3173_v26  ;;  %v494_v20 = vmul.f32 %v3087_v31, %v3175_v32  ;;  %v2583_v31 = vld [vmem:[%s4160_s2 + $0x44] ss:$8 sps:$4 sm:$0xff]  }
  0xd7   : > { %366 = vrot.lane.b32.xlu0 %v337_v59, %s2671_s13  ;;  %380 = vrot.lane.b32.xlu1 %v344_v46, %s2671_s13  ;;  %v2565_v59 = vld [vmem:[%s4160_s2 + $0x4] ss:$8 sps:$4 sm:$0xff]   ;;  %v2570_v46 = vld [vmem:[%s4160_s2 + $0x10] ss:$8 sps:$4 sm:$0xff]  }
  0xd8   : > { %2184 = vmatprep.subr.bf16.mxu1 %v2565_v59  ;;  %v2579_v59 = vld [vmem:[%s4160_s2 + $0x30] ss:$8 sps:$4 sm:$0xff]  }
  0xd9   : > { %2185 = vmatpush1.bf16.msra.mxu1 %v2567_v40  ;;  %v756_v40 = vmul.f32 %v3062_v15, %v3180_v33 }
  0xda   : > { %2186 = vmatprep.subr.bf16.mxu1 %v2568_v11  ;;  %v217_v11 = vld [vmem:[%s2826_s8 + $0x98] sm:$0x3]  ;;  %s2491_s8 = sshll.u32 %s4314_s16, 5 }
  0xdb   : > { %364 = vrot.lane.b32.xlu0 %v336_v58, %s2671_s13  ;;  %378 = vrot.lane.b32.xlu1 %v343_v1, %s2671_s13  ;;  %v488_v58 = vmul.f32 %v3064_v56, %v3180_v33  ;;  %v737_v1 = vsel %vm323_vm0, %v3062_v15, %v2905_v39  ;;  %v2573_v56 = vld [vmem:[%s4160_s2 + $0x20] ss:$8 sps:$4 sm:$0xff]   ;;  %v486_v39 = vmul.f32 %v473_v63, %v3194_v60  ;;  %s197_s11 = scalar_lea.vmem %s4162_s4, %s2491_s8 }
  0xdc   : > { %v757_v30 = vmul.f32 %v737_v1, %v3167_v23 }
  0xdd   : > { %2187 = vmatpush1.bf16.msra.mxu1 %v2570_v46 }
  0xde   : > { %2188 = vmatprep.subr.bf16.mxu1 %v2571_v19  ;;  %v795_v46 = vrot.slane %v757_v30, 1  ;;  %v762_v30 = vmul.f32 %v3085_v34, %v3175_v32 }
  0xdf   : > { %374 = vrot.lane.b32.xlu0 %v341_v22, %s2671_s13  ;;  %376 = vrot.lane.b32.xlu1 %v342_v43, %s2671_s13  ;;  %v2576_v43 = vld [vmem:[%s4160_s2 + $0x204] ss:$8 sps:$4 sm:$0xff]   ;;  %v750_v22 = vmul.f32 %v737_v1, %v3160_v18 }
  0xe0   : > { %2270 = vmatprep.subr.bf16.mxu0 %v2576_v43  ;;  %v755_v43 = vmul.f32 %v3085_v34, %v3173_v26 }
  0xe1   : > { %2189 = vmatpush1.bf16.msra.mxu1 %v2573_v56 }
  0xe2   : > { %2190 = vmatprep.subr.bf16.mxu1 %v2577_v9  ;;  %v2589_v9 = vld [vmem:[%s4160_s2 + $0x54] ss:$8 sps:$4 sm:$0xff]  }
  0xe3   : > { %388 = vrot.lane.b32.xlu0 %v348_v29, %s2671_s13  ;;  %390 = vrot.lane.b32.xlu1 %v349_v27, %s2671_s13  ;;  %v3271_v29 = vmax.f32 %v212_v28, 0.0  ;;  %v764_v27 = vmul.f32 %v737_v1, %v3252_v8  ;;  %v741_v1 = vsel %vm323_vm0, %v2902_v35, %v3085_v34  ;;  %v2585_v28 = vld [vmem:[%s4160_s2 + $0x40] ss:$8 sps:$4 sm:$0xff]  }
  0xe4   : > { %v754_v56 = vmul.f32 %v741_v1, %v3194_v60 }
  0xe5   : > { %4225 = vst [vmem:[#allocation14_spill] sm:$0xff] %v3271_v29  ;;  %2191 = vmatpush1.bf16.msra.mxu1 %v2579_v59  ;;  %v2591_v59 = vld [vmem:[%s4160_s2 + $0x50] ss:$8 sps:$4 sm:$0xff]  }
  0xe6   : > { %2192 = vmatprep.subr.bf16.mxu1 %v2583_v31 }
  0xe7   : > { %511 = vrot.lane.b32.xlu0 %v482_v42, %s2672_s28  ;;  %525 = vrot.lane.b32.xlu1 %v489_v47, %s2672_s28  ;;  %v493_v42 = vmul.f32 %v473_v63, %v3206_v21  ;;  %v749_v47 = vmul.f32 %v3062_v15, %v3178_v10  ;;  %v814_v63 = vrot.slane %v764_v27, 1 }
  0xe9   : > { %v791_v35 = vrot.slane %v749_v47, 1  ;;  %2193 = vmatpush1.bf16.msra.mxu1 %v2585_v28  ;;  %v806_v47 = vrot.slane %v754_v56, 1 }
  0xea   : > { %2194 = vmatprep.subr.bf16.mxu1 %v2589_v9 }
  0xeb   : > { %509 = vrot.lane.b32.xlu0 %v481_v53, %s2672_s28  ;;  %523 = vrot.lane.b32.xlu1 %v488_v58, %s2672_s28  ;;  %v794_v53 = vrot.slane %v750_v22, 1  ;;  %v763_v58 = vmul.f32 %v3062_v15, %v3271_v29  ;;  %v792_v15 = vrot.slane %v756_v40, 1  ;;  %v815_v22 = vsel %vm643_vm2, %v795_v46, %v814_v63 }
  0xec   : > { %v769_v40 = vmul.f32 %v3085_v34, %v3183_v38  ;;  %v810_v63 = vrot.slane %v762_v30, 1  ;;  %v2595_v34 = vld [vmem:[%s4160_s2 + $0x64] ss:$8 sps:$4 sm:$0xff]   ;;  %v933_v30 = vsel %vm468_vm1, %v2948_v13, %v3103_v57 }
  0xed   : > { %v796_v19 = vsel %vm643_vm2, %v794_v53, %v795_v46  ;;  %v812_v27 = vrot.slane %v763_v58, 1  ;;  %v929_v46 = vsel %vm468_vm1, %v3105_v62, %v2950_v14  ;;  %v809_v58 = vrot.slane %v755_v43, 1  ;;  %2195 = vmatpush1.bf16.msra.mxu1 %v2591_v59  ;;  %v2603_v43 = vld [vmem:[%s4160_s2 + $0x70] ss:$8 sps:$4 sm:$0xff]  }
  0xee   : > { %v949_v28 = vmul.f32 %v929_v46, %v3167_v23  ;;  %2196 = vmatprep.subr.bf16.mxu1 %v2595_v34  ;;  %v956_v56 = vmul.f32 %v929_v46, %v3252_v8  ;;  %v948_v59 = vmul.f32 %v3105_v62, %v3180_v33 }
  0xef   : > { %519 = vrot.lane.b32.xlu0 %v486_v39, %s2672_s28  ;;  %521 = vrot.lane.b32.xlu1 %v487_v12, %s2672_s28  ;;  %v3303_v12 = vmax.f32 %v217_v11, 0.0  ;;  %v761_v39 = vmul.f32 %v741_v1, %v3206_v21  ;;  %v813_v53 = vsel %vm643_vm2, %v792_v15, %v812_v27 }
  0xf1   : > { %4226 = vst [vmem:[#allocation15_spill] sm:$0xff] %v3303_v12  ;;  %v768_v11 = vmul.f32 %v741_v1, %v3303_v12  ;;  %v2597_v1 = vld [vmem:[%s4160_s2 + $0x60] ss:$8 sps:$4 sm:$0xff]  }
  0xf2   : > { %2197 = vmatpush1.bf16.msra.mxu1 %v2597_v1 }
  0xf3   : > { %533 = vrot.lane.b32.xlu0 %v493_v42, %s2672_s28  ;;  %535 = vrot.lane.b32.xlu1 %v494_v20, %s2672_s28  ;;  %v793_v42 = vsel %vm643_vm2, %v791_v35, %v792_v15  ;;  %v807_v20 = vrot.slane %v761_v39, 1  ;;  %v822_v14 = vrot.slane %v768_v11, 1  ;;  %v942_v15 = vmul.f32 %v929_v46, %v3160_v18  ;;  %v2601_v39 = vld [vmem:[%s4160_s2 + $0x74] ss:$8 sps:$4 sm:$0xff]  }
  0xf4   : > { %v824_v35 = vrot.slane %v769_v40, 1  ;;  %2198 = vmatprep.subr.bf16.mxu1 %v2601_v39  ;;  %v955_v11 = vmul.f32 %v3105_v62, %v3271_v29  ;;  %v1006_v46 = vrot.slane %v956_v56, 1  ;;  %v2613_v56 = vld [vmem:[%s4160_s2 + $0x94] ss:$8 sps:$4 sm:$0xff]   ;;  %v2615_v39 = vld [vmem:[%s4160_s2 + $0x90] ss:$8 sps:$4 sm:$0xff]  }
  0xf5   : > { %v808_v31 = vsel %vm643_vm2, %v806_v47, %v807_v20  ;;  %v823_v40 = vsel %vm643_vm2, %v807_v20, %v822_v14  ;;  %v986_v47 = vrot.slane %v942_v15, 1  ;;  %v2609_v20 = vld [vmem:[%s4160_s2 + $0x80] ss:$8 sps:$4 sm:$0xff]   ;;  %v954_v15 = vmul.f32 %v3103_v57, %v3175_v32 }
  0xf6   : > { %v825_v13 = vsel %vm643_vm2, %v810_v63, %v824_v35  ;;  %2199 = vmatpush1.bf16.msra.mxu1 %v2603_v43  ;;  %v961_v43 = vmul.f32 %v3103_v57, %v3183_v38 }
  0xf7   : > { %828 = vrot.lane.b32.xlu0 %v796_v19, %s2671_s13  ;;  %842 = vrot.lane.b32.xlu1 %v815_v22, %s2671_s13  ;;  %v811_v19 = vsel %vm643_vm2, %v809_v58, %v810_v63  ;;  %v941_v22 = vmul.f32 %v3105_v62, %v3178_v10  ;;  %v946_v58 = vmul.f32 %v933_v30, %v3194_v60 }
  0xf8   : > { %v953_v63 = vmul.f32 %v933_v30, %v3206_v21 }
  0xf9   : > { %v983_v1 = vrot.slane %v941_v22, 1 }
  0xfb   : > { %826 = vrot.lane.b32.xlu0 %v793_v42, %s2671_s13  ;;  %840 = vrot.lane.b32.xlu1 %v813_v53, %s2671_s13  ;;  %v987_v42 = vrot.slane %v949_v28, 1  ;;  %v2607_v53 = vld [vmem:[%s4160_s2 + $0x84] ss:$8 sps:$4 sm:$0xff]   ;;  %v947_v28 = vmul.f32 %v3103_v57, %v3173_v26 }
  0xfc   : > { %2200 = vmatprep.subr.bf16.mxu1 %v2607_v53  ;;  %v1245_v53 = vsel %vm323_vm0, %v3124_v25, %v2987_v49  ;;  %v2619_v57 = vld [vmem:[%s4160_s2 + $0xa4] ss:$8 sps:$4 sm:$0xff]  }
  0xfd   : > { %v988_v14 = vsel %vm643_vm2, %v986_v47, %v987_v42  ;;  %v1007_v35 = vsel %vm643_vm2, %v987_v42, %v1006_v46  ;;  %2201 = vmatpush1.bf16.msra.mxu1 %v2609_v20  ;;  %v998_v47 = vrot.slane %v946_v58, 1  ;;  %v1002_v46 = vrot.slane %v954_v15, 1 }
  0xfe   : > { %2202 = vmatprep.subr.bf16.mxu1 %v2613_v56  ;;  %v1258_v49 = vmul.f32 %v1245_v53, %v3160_v18  ;;  %v1272_v15 = vmul.f32 %v1245_v53, %v3252_v8  ;;  %v2627_v56 = vld [vmem:[%s4160_s2 + $0xb0] ss:$8 sps:$4 sm:$0xff]  }
  0xff   : > { %836 = vrot.lane.b32.xlu0 %v808_v31, %s2671_s13  ;;  %838 = vrot.lane.b32.xlu1 %v811_v19, %s2671_s13  ;;  %v984_v31 = vrot.slane %v948_v59, 1  ;;  %v1004_v19 = vrot.slane %v955_v11, 1  ;;  %v999_v11 = vrot.slane %v953_v63, 1 }
 0x101   : > { %v3355_v27 = vpop.permute.xlu0 %372  ;;  %v3357_v9 = vpop.permute.xlu1 %370  ;;  %v985_v42 = vsel %vm643_vm2, %v983_v1, %v984_v31  ;;  %v1005_v20 = vsel %vm643_vm2, %v984_v31, %v1004_v19  ;;  %2203 = vmatpush1.bf16.msra.mxu1 %v2615_v39  ;;  %v1265_v1 = vmul.f32 %v1245_v53, %v3167_v23  ;;  %v1000_v31 = vsel %vm643_vm2, %v998_v47, %v999_v11 }
 0x102   : > { %2204 = vmatprep.subr.bf16.mxu1 %v2619_v57  ;;  %v1249_v39 = vsel %vm323_vm0, %v2985_v48, %v3122_v24  ;;  %v1264_v47 = vmul.f32 %v3124_v25, %v3180_v33  ;;  %v1271_v57 = vmul.f32 %v3124_v25, %v3271_v29 }
 0x103   : > { %850 = vrot.lane.b32.xlu0 %v823_v40, %s2671_s13  ;;  %852 = vrot.lane.b32.xlu1 %v825_v13, %s2671_s13  ;;  %v960_v40 = vmul.f32 %v933_v30, %v3303_v12  ;;  %v1001_v13 = vrot.slane %v947_v28, 1  ;;  %v2621_v30 = vld [vmem:[%s4160_s2 + $0xa0] ss:$8 sps:$4 sm:$0xff]   ;;  %v1016_v28 = vrot.slane %v961_v43, 1  ;;  %v1257_v43 = vmul.f32 %v3124_v25, %v3178_v10 }
 0x104   : > { %v1303_v53 = vrot.slane %v1265_v1, 2 }
 0x105   : > { %v3374_v34 = vpop.permute.xlu0 %386  ;;  %v3376_v62 = vpop.permute.xlu1 %384  ;;  %v1003_v19 = vsel %vm643_vm2, %v1001_v13, %v1002_v46  ;;  %2205 = vmatpush1.bf16.msra.mxu1 %v2621_v30  ;;  %v1017_v48 = vsel %vm643_vm2, %v1002_v46, %v1016_v28  ;;  %v1322_v30 = vrot.slane %v1272_v15, 2  ;;  %v1269_v46 = vmul.f32 %v1249_v39, %v3206_v21 }
 0x106   : > { %4227 = vst [vmem:[#allocation16_spill] sm:$0xff] %v3374_v34  ;;  %v1300_v28 = vrot.slane %v1264_v47, 2  ;;  %v2639_v47 = vld [vmem:[%s4160_s2 + $0xd0] ss:$8 sps:$4 sm:$0xff]  }
 0x107   : > { %1020 = vrot.lane.b32.xlu0 %v988_v14, %s2672_s28  ;;  %1034 = vrot.lane.b32.xlu1 %v1007_v35, %s2672_s28  ;;  %v1014_v14 = vrot.slane %v960_v40, 1  ;;  %v2625_v35 = vld [vmem:[%s4160_s2 + $0xb4] ss:$8 sps:$4 sm:$0xff]  }
 0x108   : > { %2206 = vmatprep.subr.bf16.mxu1 %v2625_v35  ;;  %v1270_v35 = vmul.f32 %v3122_v24, %v3175_v32  ;;  %v1276_v32 = vmul.f32 %v1249_v39, %v3303_v12 }
 0x109   : > { %v3395_v22 = vpop.permute.xlu0 %382  ;;  %v3397_v59 = vpop.permute.xlu1 %368  ;;  %v1015_v13 = vsel %vm643_vm2, %v999_v11, %v1014_v14  ;;  %2207 = vmatpush1.bf16.msra.mxu1 %v2627_v56  ;;  %v2633_v11 = vld [vmem:[%s4160_s2 + $0xc0] ss:$8 sps:$4 sm:$0xff]   ;;  %v1299_v14 = vrot.slane %v1257_v43, 2  ;;  %v1320_v56 = vrot.slane %v1271_v57, 2  ;;  %v2637_v43 = vld [vmem:[%s4160_s2 + $0xd4] ss:$8 sps:$4 sm:$0xff]  }
 0x10b   : > { %1018 = vrot.lane.b32.xlu0 %v985_v42, %s2672_s28  ;;  %1032 = vrot.lane.b32.xlu1 %v1005_v20, %s2672_s28  ;;  %v1302_v20 = vrot.slane %v1258_v49, 2  ;;  %v1262_v49 = vmul.f32 %v1249_v39, %v3194_v60  ;;  %v2645_v39 = vld [vmem:[%s4160_s2 + $0xe0] ss:$8 sps:$4 sm:$0xff]  }
 0x10d   : > { %v3413_v58 = vpop.permute.xlu0 %517  ;;  %v3415_v63 = vpop.permute.xlu1 %515  ;;  %v1304_v15 = vsel %vm1151_vm3, %v1302_v20, %v1303_v53  ;;  %v1314_v57 = vrot.slane %v1262_v49, 2 }
 0x10e   : > { %4228 = vst [vmem:[#allocation17_spill] sm:$0xff] %v3413_v58 }
 0x10f   : > { %1028 = vrot.lane.b32.xlu0 %v1000_v31, %s2672_s28  ;;  %1030 = vrot.lane.b32.xlu1 %v1003_v19, %s2672_s28  ;;  %v2631_v31 = vld [vmem:[%s4160_s2 + $0xc4] ss:$8 sps:$4 sm:$0xff]   ;;  %v1263_v19 = vmul.f32 %v3122_v24, %v3173_v26 }
 0x110   : > { %2208 = vmatprep.subr.bf16.mxu1 %v2631_v31 }
 0x111   : > { %v3435_v40 = vpop.permute.xlu0 %531  ;;  %v3437_v42 = vpop.permute.xlu1 %529  ;;  %2209 = vmatpush1.bf16.msra.mxu1 %v2633_v11  ;;  %v1317_v31 = vrot.slane %v1263_v19, 2  ;;  %v1318_v11 = vrot.slane %v1270_v35, 2  ;;  %v1464_v35 = vmul.f32 %v3153_v61, %v3252_v8 }
 0x112   : > { %4229 = vst [vmem:[#allocation18_spill] sm:$0xff] %v3435_v40  ;;  %2210 = vmatprep.subr.bf16.mxu1 %v2637_v43  ;;  %v2649_v43 = vld [vmem:[%s4160_s2 + $0xf4] ss:$8 sps:$4 sm:$0xff]  }
 0x113   : > { %1042 = vrot.lane.b32.xlu0 %v1015_v13, %s2672_s28  ;;  %1044 = vrot.lane.b32.xlu1 %v1017_v48, %s2672_s28  ;;  %v1323_v13 = vsel %vm1151_vm3, %v1303_v53, %v1322_v30  ;;  %v1301_v53 = vsel %vm1151_vm3, %v1299_v14, %v1300_v28  ;;  %v1315_v48 = vrot.slane %v1269_v46, 2  ;;  %v1277_v30 = vmul.f32 %v3122_v24, %v3183_v38 }
 0x114   : > { %v1450_v38 = vmul.f32 %v3153_v61, %v3160_v18  ;;  %v1457_v46 = vmul.f32 %v3153_v61, %v3167_v23 }
 0x115   : > { %v3454_v1 = vpop.permute.xlu0 %527  ;;  %v3456_v25 = vpop.permute.xlu1 %513  ;;  %2211 = vmatpush1.bf16.msra.mxu1 %v2639_v47  ;;  %v1316_v14 = vsel %vm1151_vm3, %v1314_v57, %v1315_v48  ;;  %v1332_v19 = vrot.slane %v1277_v30, 2  ;;  %v2651_v47 = vld [vmem:[%s4160_s2 + $0xf0] ss:$8 sps:$4 sm:$0xff]   ;;  %v1456_v57 = vmul.f32 %v3141_v44, %v3180_v33 }
 0x116   : > { %v3521_v30 = vld [vmem:[%s4159_s1 + $0x12] sm:$0x3f] }
 0x117   : > { %1336 = vrot.lane.b32.xlu0 %v1304_v15, %s2671_s13  ;;  %1350 = vrot.lane.b32.xlu1 %v1323_v13, %s2671_s13  ;;  %v1321_v15 = vsel %vm1151_vm3, %v1300_v28, %v1320_v56  ;;  %v2643_v13 = vld [vmem:[%s4160_s2 + $0xe4] ss:$8 sps:$4 sm:$0xff]   ;;  %v1330_v28 = vrot.slane %v1276_v32, 2  ;;  %v1319_v56 = vsel %vm1151_vm3, %v1317_v31, %v1318_v11  ;;  %v1449_v32 = vmul.f32 %v3141_v44, %v3178_v10 }
 0x118   : > { %2212 = vmatprep.subr.bf16.mxu1 %v2643_v13  ;;  %v1494_v13 = vrot.slane %v1450_v38, 2 }
 0x119   : > { %v3473_v26 = vpop.permute.xlu0 %834  ;;  %v3475_v20 = vpop.permute.xlu1 %832  ;;  %2213 = vmatpush1.bf16.msra.mxu1 %v2645_v39  ;;  %v1331_v31 = vsel %vm1151_vm3, %v1315_v48, %v1330_v28  ;;  %v1463_v39 = vmul.f32 %v3141_v44, %v3271_v29  ;;  %v592_v48 = vrot.slane %v3521_v30, %v2715_v5  ;;  %v1461_v44 = vmul.f32 %v3145_v45, %v3206_v21 }
 0x11a   : > { %4230 = vst [vmem:[#allocation19_spill] sm:$0xff] %v3473_v26  ;;  %2214 = vmatprep.subr.bf16.mxu1 %v2649_v43  ;;  %v1492_v28 = vrot.slane %v1456_v57, 2 }
 0x11b   : > { %1334 = vrot.lane.b32.xlu0 %v1301_v53, %s2671_s13  ;;  %1348 = vrot.lane.b32.xlu1 %v1321_v15, %s2671_s13  ;;  %v1495_v15 = vrot.slane %v1457_v46, 2  ;;  %v1512_v43 = vrot.slane %v1463_v39, 2  ;;  %v1468_v39 = vmul.f32 %v3145_v45, %v3303_v12  ;;  %v616_v2 = vmul.f32 %v592_v48, %v2853_v7 }
 0x11c   : > { %v622_v60 = vmul.f32 %v592_v48, %v2912_v41 }
 0x11d   : > { %v3490_v49 = vpop.permute.xlu0 %848  ;;  %v3492_v24 = vpop.permute.xlu1 %846  ;;  %2215 = vmatpush1.bf16.msra.mxu1 %v2651_v47  ;;  %v1513_v29 = vsel %vm1151_vm3, %v1492_v28, %v1512_v43  ;;  %v654_v33 = vrot.slane %v616_v2, 1  ;;  %v547_v2 = vsel %vm537_vm5, %v3437_v42, %v3435_v40  ;;  %v401_v40 = vsel %vm392_vm4, %v3395_v22, %v3376_v62 }
 0x11e   : > { %4231 = vst [vmem:[#allocation20_spill] sm:$0xff] %v3490_v49  ;;  %v668_v36 = vrot.slane %v622_v60, 1 }
 0x11f   : > { %1344 = vrot.lane.b32.xlu0 %v1316_v14, %s2671_s13  ;;  %1346 = vrot.lane.b32.xlu1 %v1319_v56, %s2671_s13  ;;  %v1333_v14 = vsel %vm1151_vm3, %v1318_v11, %v1332_v19  ;;  %v1514_v56 = vrot.slane %v1464_v35, 2  ;;  %v1491_v11 = vrot.slane %v1449_v32, 2  ;;  %v3542_v19 = vld [vmem:[%s4159_s1] sm:$0x3f]  ;;  %v1496_v35 = vsel %vm1151_vm3, %v1494_v13, %v1495_v15 }
 0x120   : > { %v257_v32 = vrot.slane %v3542_v19, %v2715_v5  ;;  %v253_v57 = vrot.slane %v3542_v19, %v2713_v4 }
 0x121   : > { %v3512_v53 = vpop.permute.xlu0 %844  ;;  %v3514_v61 = vpop.permute.xlu1 %830  ;;  %v1515_v47 = vsel %vm1151_vm3, %v1495_v15, %v1514_v56  ;;  %v3562_v15 = vld [vmem:[%s4159_s1 + $0x24] sm:$0x3f]  ;;  %v1493_v56 = vsel %vm1151_vm3, %v1491_v11, %v1492_v28 }
 0x122   : > { %4232 = vst [vmem:[#allocation21_spill] sm:$0xff] %v3512_v53  ;;  %v1100_v45 = vrot.slane %v3562_v15, %v2715_v5  ;;  %v274_v11 = vmul.f32 %v253_v57, %v2869_v17  ;;  %v396_v5 = vsel %vm392_vm4, %v3357_v9, %v3355_v27 }
 0x123   : > { %1358 = vrot.lane.b32.xlu0 %v1331_v31, %s2671_s13  ;;  %1360 = vrot.lane.b32.xlu1 %v1333_v14, %s2671_s13  ;;  %v588_v31 = vrot.slane %v3521_v30, %v2713_v4  ;;  %v610_v14 = vmul.f32 %v592_v48, %v2834_v55  ;;  %v280_v48 = vmul.f32 %v253_v57, %v2867_v16 }
 0x125   : > { %v3533_v46 = vpop.permute.xlu0 %1024  ;;  %v3535_v38 = vpop.permute.xlu1 %1026  ;;  %v615_v54 = vmul.f32 %v588_v31, %v2867_v16  ;;  %v621_v10 = vmul.f32 %v588_v31, %v2941_v0  ;;  %v609_v18 = vmul.f32 %v588_v31, %v2869_v17 }
 0x126   : > { %4233 = vst [vmem:[#allocation22_spill] sm:$0xff] %v3535_v38 }
 0x127   : > { %1528 = vrot.lane.b32.xlu0 %v1496_v35, %s2672_s28  ;;  %1542 = vrot.lane.b32.xlu1 %v1515_v47, %s2672_s28  ;;  %v1506_v35 = vrot.slane %v1454_v51, 2  ;;  %v1507_v47 = vrot.slane %v1461_v44, 2  ;;  %v275_v51 = vmul.f32 %v257_v32, %v2834_v55  ;;  %v281_v44 = vmul.f32 %v257_v32, %v2853_v7 }
 0x128   : > { %v402_v32 = vsel %vm392_vm4, %v3376_v62, %v3374_v34  ;;  %v651_v57 = vrot.slane %v615_v54, 1  ;;  %v666_v3 = vrot.slane %v621_v10, 1  ;;  %v1124_v54 = vmul.f32 %v1100_v45, %v2853_v7 }
 0x129   : > { %v3555_v21 = vpop.permute.xlu0 %1038  ;;  %v3557_v13 = vpop.permute.xlu1 %1040  ;;  %v1508_v12 = vsel %vm1151_vm3, %v1506_v35, %v1507_v47  ;;  %v426_v31 = vadd.f32 %v402_v32, %v281_v44  ;;  %v669_v7 = vsel %vm643_vm2, %v654_v33, %v668_v36  ;;  %v650_v44 = vrot.slane %v609_v18, 1 }
 0x12a   : > { %4234 = vst [vmem:[#allocation23_spill] sm:$0xff] %v3557_v13  ;;  %v546_v62 = vsel %vm537_vm5, %v3454_v1, %v3437_v42  ;;  %v1162_v32 = vrot.slane %v1124_v54, 2  ;;  %v863_v42 = vsel %vm392_vm4, %v3492_v24, %v3490_v49 }
 0x12b   : > { %1526 = vrot.lane.b32.xlu0 %v1493_v56, %s2672_s28  ;;  %1540 = vrot.lane.b32.xlu1 %v1513_v29, %s2672_s28  ;;  %v653_v56 = vrot.slane %v610_v14, 1  ;;  %v1522_v29 = vrot.slane %v1468_v39, 2  ;;  %v1118_v14 = vmul.f32 %v1100_v45, %v2834_v55  ;;  %v541_v39 = vsel %vm537_vm5, %v3415_v63, %v3413_v58 }
 0x12c   : > { %v395_v55 = vsel %vm392_vm4, %v3397_v59, %v3357_v9 }
 0x12d   : > { %v3580_v28 = vpop.permute.xlu0 %1022  ;;  %v3582_v43 = vpop.permute.xlu1 %1036  ;;  %v1523_v35 = vsel %vm1151_vm3, %v1507_v47, %v1522_v29  ;;  %v655_v58 = vsel %vm643_vm2, %v653_v56, %v654_v33  ;;  %v419_v9 = vadd.f32 %v395_v55, %v274_v11  ;;  %v667_v47 = vsel %vm643_vm2, %v651_v57, %v666_v3 }
 0x12e   : > { %4235 = vst [vmem:[#allocation24_spill] sm:$0xff] %v3580_v28  ;;  %4236 = vst [vmem:[#allocation25_spill] sm:$0xff] %v3582_v43  ;;  %v1130_v33 = vmul.f32 %v1100_v45, %v2912_v41  ;;  %v425_v29 = vadd.f32 %v401_v40, %v280_v48  ;;  %v652_v40 = vsel %vm643_vm2, %v650_v44, %v651_v57 }
 0x12f   : > { %1536 = vrot.lane.b32.xlu0 %v1508_v12, %s2672_s28  ;;  %1538 = vrot.lane.b32.xlu1 %v3210_v52, %s2672_s28  ;;  %v1096_v12 = vrot.slane %v3562_v15, %v2713_v4  ;;  %v420_v52 = vadd.f32 %v396_v5, %v275_v51  ;;  %v571_v4 = vadd.f32 %v547_v2, %v426_v31  ;;  %v1161_v5 = vrot.slane %v1118_v14, 2 }
 0x130   : > { %v540_v51 = vsel %vm537_vm5, %v3456_v25, %v3415_v63  ;;  %v570_v11 = vadd.f32 %v546_v62, %v425_v29  ;;  %v1055_v45 = vsel %vm537_vm5, %v3555_v21, %v3557_v13  ;;  %v1176_v48 = vrot.slane %v1130_v33, 2 }
 0x131   : > { %v3602_v60 = vpop.permute.xlu0 %1342  ;;  %v3605_v10 = vpop.permute.xlu1 %1340  ;;  %v565_v34 = vadd.f32 %v541_v39, %v420_v52  ;;  %v1123_v18 = vmul.f32 %v1096_v12, %v2867_v16  ;;  %v564_v63 = vadd.f32 %v540_v51, %v419_v9  ;;  %v1117_v3 = vmul.f32 %v1096_v12, %v2869_v17 }
 0x132   : > { %4237 = vst [vmem:[#allocation26_spill] sm:$0xff] %v3602_v60  ;;  %v695_v41 = vadd.f32 %v669_v7, %v571_v4  ;;  %v1049_v16 = vsel %vm537_vm5, %v3533_v46, %v3535_v38  ;;  %v1129_v14 = vmul.f32 %v1096_v12, %v2941_v0  ;;  %v1163_v57 = vsel %vm1151_vm3, %v1161_v5, %v1162_v32 }
 0x133   : > { %1550 = vrot.lane.b32.xlu0 %v1523_v35, %s2672_s28  ;;  %1552 = vrot.lane.b32.xlu1 %v3215_v50, %s2672_s28  ;;  %v857_v50 = vsel %vm392_vm4, %v3475_v20, %v3473_v26  ;;  %v689_v39 = vadd.f32 %v655_v58, %v565_v34  ;;  %v856_v58 = vsel %vm392_vm4, %v3514_v61, %v3475_v20  ;;  %v1159_v55 = vrot.slane %v1123_v18, 2 }
 0x134   : > { %v887_v34 = vadd.f32 %v863_v42, %v695_v41  ;;  %v862_v52 = vsel %vm392_vm4, %v3512_v53, %v3492_v24  ;;  %v688_v31 = vadd.f32 %v652_v40, %v564_v63  ;;  %v1158_v35 = vrot.slane %v1117_v3, 2 }
 0x135   : > { %v3628_v36 = vpop.permute.xlu0 %1356  ;;  %v1355_v56 = vpop.permute.xlu1 %1354  ;;  %v881_v17 = vadd.f32 %v857_v50, %v689_v39  ;;  %v694_v0 = vadd.f32 %v667_v47, %v570_v11  ;;  %v1048_v4 = vsel %vm537_vm5, %v3580_v28, %v3533_v46  ;;  %v1054_v20 = vsel %vm537_vm5, %v3582_v43, %v3555_v21  ;;  %v4273_v28 = vld [vmem:[#allocation8_spill] sm:$0xff] }
 0x136   : > { %4238 = vst [vmem:[#allocation27_spill] sm:$0xff] %v3628_v36  ;;  %v1079_v7 = vadd.f32 %v1055_v45, %v887_v34  ;;  %v880_v51 = vadd.f32 %v856_v58, %v688_v31  ;;  %v1177_v44 = vsel %vm1151_vm3, %v1162_v32, %v1176_v48  ;;  %v1174_v9 = vrot.slane %v1129_v14, 2 }
 0x137   : > { %v1073_v12 = vadd.f32 %v1049_v16, %v881_v17  ;;  %v886_v24 = vadd.f32 %v862_v52, %v694_v0  ;;  %v1365_v47 = vsel %vm392_vm4, %v3605_v10, %v3602_v60  ;;  %v1371_v46 = vsel %vm392_vm4, %v1355_v56, %v3628_v36 }
 0x138   : > { %v1072_v29 = vadd.f32 %v1048_v4, %v880_v51  ;;  %v1203_v63 = vadd.f32 %v1177_v44, %v1079_v7  ;;  %v1160_v21 = vsel %vm1151_vm3, %v1158_v35, %v1159_v55  ;;  %v1175_v32 = vsel %vm1151_vm3, %v1159_v55, %v1174_v9  ;;  %v2580_v9 = vld [vmem:[%s4160_s2 + $0x210] ss:$8 sps:$4 sm:$0xff]  }
 0x139   : > { %v3647_v2 = vpop.permute.xlu0 %1352  ;;  %v3649_v54 = vpop.permute.xlu1 %1338  ;;  %v1078_v5 = vadd.f32 %v1054_v20, %v886_v24  ;;  %v1197_v18 = vadd.f32 %v1163_v57, %v1073_v12  ;;  %v2574_v12 = vld [vmem:[%s4160_s2 + $0x200] ss:$8 sps:$4 sm:$0xff]   ;;  %v2582_v20 = vld [vmem:[%s4160_s2 + $0x214] ss:$8 sps:$4 sm:$0xff]  }
 0x13a   : > { %4239 = vst [vmem:[#allocation28_spill] sm:$0xff] %v3647_v2  ;;  %4240 = vst [vmem:[#allocation29_spill] sm:$0xff] %v3649_v54  ;;  %v1395_v11 = vadd.f32 %v1371_v46, %v1203_v63  ;;  %v1364_v39 = vsel %vm392_vm4, %v3649_v54, %v3605_v10  ;;  %v1370_v40 = vsel %vm392_vm4, %v3647_v2, %v1355_v56  ;;  %v2586_v46 = vld [vmem:[%s4160_s2 + $0x220] ss:$8 sps:$4 sm:$0xff]  }
 0x13b   : > { %v1389_v3 = vadd.f32 %v1365_v47, %v1197_v18  ;;  %v1196_v16 = vadd.f32 %v1160_v21, %v1072_v29  ;;  %v1202_v48 = vadd.f32 %v1175_v32, %v1078_v5  ;;  %v2594_v18 = vld [vmem:[%s4160_s2 + $0x234] ss:$8 sps:$4 sm:$0xff]   ;;  %v2592_v32 = vld [vmem:[%s4160_s2 + $0x230] ss:$8 sps:$4 sm:$0xff]   ;;  %v4263_v2 = vld [vmem:[#allocation6_spill] sm:$0xff] }
 0x13d   : > { %v1533_v62 = vpop.permute.xlu0 %1532  ;;  %v3665_v33 = vpop.permute.xlu1 %1534  ;;  %v1388_v34 = vadd.f32 %v1364_v39, %v1196_v16  ;;  %v1394_v57 = vadd.f32 %v1370_v40, %v1202_v48  ;;  %v2598_v39 = vld [vmem:[%s4160_s2 + $0x240] ss:$8 sps:$4 sm:$0xff]   ;;  %v2606_v16 = vld [vmem:[%s4160_s2 + $0x254] ss:$8 sps:$4 sm:$0xff]   ;;  %v2604_v48 = vld [vmem:[%s4160_s2 + $0x250] ss:$8 sps:$4 sm:$0xff]  }
 0x13e   : > { %4241 = vst [vmem:[#allocation30_spill] sm:$0xff] %v3665_v33  ;;  %v1557_v50 = vsel %vm537_vm5, %v1533_v62, %v3665_v33  ;;  %v4258_v33 = vld [vmem:[#allocation4_spill] sm:$0xff] }
 0x13f   : > { %v1581_v14 = vadd.f32 %v1557_v50, %v1389_v3  ;;  %v265_v36 = vrot.slane %v3542_v19, %v4258_v33 }
 0x141   : > { %v1547_v42 = vpop.permute.xlu0 %1546  ;;  %v3679_v41 = vpop.permute.xlu1 %1548 }
 0x142   : > { %4242 = vst [vmem:[#allocation31_spill] sm:$0xff] %v3679_v41  ;;  %v1563_v45 = vsel %vm537_vm5, %v1547_v42, %v3679_v41 }
 0x143   : > { %v1587_v17 = vadd.f32 %v1563_v45, %v1395_v11 }
 0x145   : > { %v3685_v58 = vpop.permute.xlu0 %1530  ;;  %v3689_v10 = vpop.permute.xlu1 %1544  ;;  %v1593_v31 = vpack.c.bf16 %v1587_v17, %v1581_v14  ;;  %v2612_v17 = vld [vmem:[%s4160_s2 + $0x264] ss:$8 sps:$4 sm:$0xff]  }
 0x146   : > { %4243 = vst [vmem:[#allocation32_spill] sm:$0xff] %v3685_v58  ;;  %v1556_v52 = vsel %vm537_vm5, %v3685_v58, %v1533_v62  ;;  %4244 = vst [vmem:[#allocation33_spill] sm:$0xff] %v3689_v10  ;;  %v1562_v56 = vsel %vm537_vm5, %v3689_v10, %v1547_v42  ;;  %v2600_v42 = vld [vmem:[%s4160_s2 + $0x244] ss:$8 sps:$4 sm:$0xff]   ;;  %v2646_v10 = vld [vmem:[%s4160_s2 + $0x2c0] ss:$8 sps:$4 sm:$0xff]  }
 0x147   : > { %v1580_v55 = vadd.f32 %v1556_v52, %v1388_v34  ;;  %v1586_v35 = vadd.f32 %v1562_v56, %v1394_v57  ;;  %2259 = vmatprep.mubr.bf16.mxu0 %v1593_v31  ;;  %v2610_v57 = vld [vmem:[%s4160_s2 + $0x260] ss:$8 sps:$4 sm:$0xff]   ;;  %v2618_v31 = vld [vmem:[%s4160_s2 + $0x274] ss:$8 sps:$4 sm:$0xff]   ;;  %v2616_v56 = vld [vmem:[%s4160_s2 + $0x270] ss:$8 sps:$4 sm:$0xff]  }
 0x148   : > { %v4260_v58 = vld [vmem:[#allocation11_spill] sm:$0xff] }
 0x149   : > { %v367_v0 = vpop.permute.xlu0 %366  ;;  %v3696_v7 = vpop.permute.xlu1 %380  ;;  %v1592_v51 = vpack.c.bf16 %v1586_v35, %v1580_v55 }
 0x14a   : > { %v3700_v4 = vsel %vm392_vm4, %v367_v0, %v3397_v59  ;;  %v2588_v59 = vld [vmem:[%s4160_s2 + $0x224] ss:$8 sps:$4 sm:$0xff]  }
 0x14b   : > { %2260 = vmatmul.mubr.bf16.vlgmr.msra.gmra.mrb[0].mxu0 %v1592_v51  ;;  %v2622_v51 = vld [vmem:[%s4160_s2 + $0x280] ss:$8 sps:$4 sm:$0xff]  }
 0x14c   : > { %2271 = vmatpush1.bf16.msra.mxu0 %v2574_v12 }
 0x14d   : > { %v365_v44 = vpop.permute.xlu0 %364  ;;  %v379_v62 = vpop.permute.xlu1 %378  ;;  %2272 = vmatprep.subr.bf16.mxu0 %v2582_v20 }
 0x14e   : > { %v3709_v24 = vsel %vm392_vm4, %v365_v44, %v367_v0  ;;  %v3716_v29 = vsel %vm392_vm4, %v379_v62, %v3696_v7  ;;  %v2624_v0 = vld [vmem:[%s4160_s2 + $0x284] ss:$8 sps:$4 sm:$0xff]   ;;  %v2630_v44 = vld [vmem:[%s4160_s2 + $0x294] ss:$8 sps:$4 sm:$0xff]   ;;  %v2628_v62 = vld [vmem:[%s4160_s2 + $0x290] ss:$8 sps:$4 sm:$0xff]  }
 0x150   : > { %2273 = vmatpush1.bf16.msra.mxu0 %v2580_v9 }
 0x151   : > { %v3718_v47 = vpop.permute.xlu0 %374  ;;  %v377_v5 = vpop.permute.xlu1 %376  ;;  %2274 = vmatprep.subr.bf16.mxu0 %v2588_v59 }
 0x152   : > { %v3728_v63 = vsel %vm392_vm4, %v3718_v47, %v377_v5  ;;  %v584_v5 = vrot.slane %v3521_v30, %v2717_v6 }
 0x154   : > { %2275 = vmatpush1.bf16.msra.mxu0 %v2586_v46  ;;  %v2636_v46 = vld [vmem:[%s4160_s2 + $0x2a4] ss:$8 sps:$4 sm:$0xff]  }
 0x155   : > { %v3730_v21 = vpop.permute.xlu0 %388  ;;  %v391_v50 = vpop.permute.xlu1 %390  ;;  %2276 = vmatprep.subr.bf16.mxu0 %v2594_v18 }
 0x156   : > { %v3740_v3 = vsel %vm392_vm4, %v3730_v21, %v391_v50 }
 0x157   : > { %4245 = vst [vmem:[#allocation34_spill] sm:$0xff] %v3740_v3 }
 0x158   : > { %2277 = vmatpush1.bf16.msra.mxu0 %v2592_v32  ;;  %v2634_v32 = vld [vmem:[%s4160_s2 + $0x2a0] ss:$8 sps:$4 sm:$0xff]  }
 0x159   : > { %v3742_v11 = vpop.permute.xlu0 %511  ;;  %v3747_v40 = vpop.permute.xlu1 %525  ;;  %2278 = vmatprep.subr.bf16.mxu0 %v2600_v42  ;;  %v2642_v42 = vld [vmem:[%s4160_s2 + $0x2b4] ss:$8 sps:$4 sm:$0xff]  }
 0x15c   : > { %2279 = vmatpush1.bf16.msra.mxu0 %v2598_v39  ;;  %v249_v39 = vrot.slane %v3542_v19, %v2717_v6 }
 0x15d   : > { %v3752_v45 = vpop.permute.xlu0 %509  ;;  %v3757_v14 = vpop.permute.xlu1 %523  ;;  %2280 = vmatprep.subr.bf16.mxu0 %v2606_v16  ;;  %v614_v16 = vmul.f32 %v584_v5, %v3167_v23 }
 0x15e   : > { %v3836_v41 = vmul.f32 %v249_v39, %v3167_v23 }
 0x15f   : > { %v648_v60 = vrot.slane %v614_v16, 1 }
 0x160   : > { %2281 = vmatpush1.bf16.msra.mxu0 %v2604_v48  ;;  %v620_v48 = vmul.f32 %v584_v5, %v3252_v8 }
 0x161   : > { %v3762_v34 = vpop.permute.xlu0 %519  ;;  %v3767_v52 = vpop.permute.xlu1 %521  ;;  %2282 = vmatprep.subr.bf16.mxu0 %v2612_v17 }
 0x162   : > { %4246 = vst [vmem:[#allocation35_spill] sm:$0xff] %v3767_v52  ;;  %v664_v13 = vrot.slane %v620_v48, 1  ;;  %v2654_v48 = vld [vmem:[%s4160_s2 + $0x2d4] ss:$8 sps:$4 sm:$0xff]  }
 0x164   : > { %2283 = vmatpush1.bf16.msra.mxu0 %v2610_v57  ;;  %v2640_v57 = vld [vmem:[%s4160_s2 + $0x2b0] ss:$8 sps:$4 sm:$0xff]  }
 0x165   : > { %v3772_v55 = vpop.permute.xlu0 %533  ;;  %v3777_v35 = vpop.permute.xlu1 %535  ;;  %2284 = vmatprep.subr.bf16.mxu0 %v2618_v31  ;;  %v245_v31 = vrot.slane %v3542_v19, %v2786_v37 }
 0x166   : > { %4247 = vst [vmem:[#allocation36_spill] sm:$0xff] %v3772_v55  ;;  %4248 = vst [vmem:[#allocation37_spill] sm:$0xff] %v3777_v35  ;;  %v1088_v55 = vrot.slane %v3562_v15, %v2786_v37 }
 0x168   : > { %2285 = vmatpush1.bf16.msra.mxu0 %v2616_v56  ;;  %v4255_v56 = vld [vmem:[#allocation9_spill] sm:$0xff] }
 0x169   : > { %v3782_v12 = vpop.permute.xlu0 %828  ;;  %v3787_v20 = vpop.permute.xlu1 %842  ;;  %2286 = vmatprep.subr.bf16.mxu0 %v2624_v0  ;;  %v608_v0 = vmul.f32 %v584_v5, %v4255_v56  ;;  %v3841_v5 = vmul.f32 %v249_v39, %v4255_v56  ;;  %v600_v39 = vrot.slane %v3521_v30, %v4258_v33 }
 0x16a   : > { %4249 = vst [vmem:[#allocation38_spill] sm:$0xff] %v3787_v20 }
 0x16b   : > { %v647_v49 = vrot.slane %v608_v0, 1 }
 0x16c   : > { %2287 = vmatpush1.bf16.msra.mxu0 %v2622_v51  ;;  %v580_v51 = vrot.slane %v3521_v30, %v2786_v37  ;;  %v2657_v37 = vld [vmem:[%s4160_s2 + $0x2e4] ss:$8 sps:$4 sm:$0xff]  }
 0x16d   : > { %v3792_v9 = vpop.permute.xlu0 %826  ;;  %v3797_v59 = vpop.permute.xlu1 %840  ;;  %2288 = vmatprep.subr.bf16.mxu0 %v2630_v44 }
 0x16e   : > { %4250 = vst [vmem:[#allocation39_spill] sm:$0xff] %v3792_v9  ;;  %4251 = vst [vmem:[#allocation40_spill] sm:$0xff] %v3797_v59 }
 0x170   : > { %2289 = vmatpush1.bf16.msra.mxu0 %v2628_v62  ;;  %v2648_v62 = vld [vmem:[%s4160_s2 + $0x2c4] ss:$8 sps:$4 sm:$0xff]  }
 0x171   : > { %v3804_v18 = vpop.permute.xlu0 %836  ;;  %v3809_v50 = vpop.permute.xlu1 %838  ;;  %2290 = vmatprep.subr.bf16.mxu0 %v2636_v46  ;;  %v4257_v46 = vld [vmem:[#allocation2_spill] sm:$0xff] }
 0x172   : > { %4252 = vst [vmem:[#allocation41_spill] sm:$0xff] %v3804_v18  ;;  %4253 = vst [vmem:[#allocation42_spill] sm:$0xff] %v3809_v50  ;;  %v4264_v50 = vld [vmem:[#allocation14_spill] sm:$0xff]  ;;  %v4265_v18 = vld [vmem:[#allocation12_spill] sm:$0xff] }
 0x173   : > { %v619_v0 = vmul.f32 %v580_v51, %v4264_v50  ;;  %v3870_v59 = vmul.f32 %v265_v36, %v4265_v18 }
 0x174   : > { %2291 = vmatpush1.bf16.msra.mxu0 %v2634_v32  ;;  %v261_v32 = vrot.slane %v3542_v19, %v4257_v46  ;;  %v613_v19 = vmul.f32 %v580_v51, %v4260_v58 }
 0x175   : > { %v3818_v17 = vpop.permute.xlu0 %850  ;;  %v3828_v44 = vpop.permute.xlu1 %852  ;;  %2292 = vmatprep.subr.bf16.mxu0 %v2642_v42  ;;  %v596_v42 = vrot.slane %v3521_v30, %v4257_v46  ;;  %v4266_v30 = vld [vmem:[#allocation7_spill] sm:$0xff] }
 0x176   : > { %4254 = vst [vmem:[#allocation43_spill] sm:$0xff] %v3818_v17  ;;  %4256 = vst [vmem:[#allocation9_spill] sm:$0xff] %v3828_v44  ;;  %v3851_v44 = vmul.f32 %v245_v31, %v4260_v58  ;;  %v3865_v54 = vmul.f32 %v261_v32, %v4263_v2  ;;  %v3873_v9 = vmul.f32 %v261_v32, %v4266_v30 }
 0x177   : > { %v611_v43 = vmul.f32 %v596_v42, %v4263_v2  ;;  %v617_v35 = vmul.f32 %v596_v42, %v4266_v30  ;;  %v3893_v32 = vsel %vm643_vm2, %v647_v49, %v648_v60  ;;  %v1104_v49 = vrot.slane %v3562_v15, %v4257_v46  ;;  %v2655_v46 = vld [vmem:[%s4160_s2 + $0x2e0] ss:$8 sps:$4 sm:$0xff]  }
 0x178   : > { %2293 = vmatpush1.bf16.msra.mxu0 %v2640_v57  ;;  %v4262_v57 = vld [vmem:[#allocation10_spill] sm:$0xff]  ;;  %4271 = vst [vmem:[#allocation14_spill] sm:$0xff] %v3893_v32 }
 0x179   : > { %v3845_v38 = vpop.permute.xlu0 %1020  ;;  %v3856_v16 = vpop.permute.xlu1 %1034  ;;  %2294 = vmatprep.subr.bf16.mxu0 %v2648_v62  ;;  %v3862_v17 = vmul.f32 %v245_v31, %v4262_v57  ;;  %v607_v26 = vmul.f32 %v580_v51, %v4262_v57  ;;  %v4267_v62 = vld [vmem:[#allocation13_spill] sm:$0xff]  ;;  %v1092_v31 = vrot.slane %v3562_v15, %v2717_v6  ;;  %v645_v6 = vrot.slane %v613_v19, 1 }
 0x17a   : > { %4259 = vst [vmem:[#allocation2_spill] sm:$0xff] %v3845_v38  ;;  %4261 = vst [vmem:[#allocation4_spill] sm:$0xff] %v3856_v16  ;;  %v3876_v3 = vmul.f32 %v265_v36, %v4267_v62  ;;  %v3881_v16 = vsel %vm643_vm2, %v648_v60, %v664_v13  ;;  %v2652_v36 = vld [vmem:[%s4160_s2 + $0x2d0] ss:$8 sps:$4 sm:$0xff]   ;;  %v612_v13 = vmul.f32 %v600_v39, %v4265_v18  ;;  %v4274_v60 = vld [vmem:[#allocation15_spill] sm:$0xff]  ;;  %v657_v20 = vrot.slane %v617_v35, 1 }
 0x17b   : > { %4269 = vst [vmem:[#allocation10_spill] sm:$0xff] %v3881_v16  ;;  %v623_v16 = vmul.f32 %v596_v42, %v4273_v28  ;;  %v624_v19 = vmul.f32 %v600_v39, %v4274_v60  ;;  %v1122_v52 = vmul.f32 %v1092_v31, %v3167_v23  ;;  %v1128_v32 = vmul.f32 %v1092_v31, %v3252_v8 }
 0x17c   : > { %4268 = vst [vmem:[#allocation11_spill] sm:$0xff] %v3876_v3  ;;  %2295 = vmatpush1.bf16.msra.mxu0 %v2646_v10  ;;  %v618_v3 = vmul.f32 %v600_v39, %v4267_v62  ;;  %v662_v10 = vrot.slane %v619_v0, 1  ;;  %v1121_v0 = vmul.f32 %v1088_v55, %v4260_v58  ;;  %v659_v42 = vrot.slane %v612_v13, 1  ;;  %v2660_v58 = vld [vmem:[%s4160_s2 + $0x2f4] ss:$8 sps:$4 sm:$0xff]  }
 0x17d   : > { %v3885_v51 = vpop.permute.xlu0 %1018  ;;  %v3897_v38 = vpop.permute.xlu1 %1032  ;;  %2296 = vmatprep.subr.bf16.mxu0 %v2654_v48  ;;  %v656_v48 = vrot.slane %v611_v43, 1  ;;  %v1115_v8 = vmul.f32 %v1088_v55, %v4262_v57  ;;  %v1108_v43 = vrot.slane %v3562_v15, %v4258_v33 }
 0x17e   : > { %4270 = vst [vmem:[#allocation6_spill] sm:$0xff] %v3885_v51  ;;  %4272 = vst [vmem:[#allocation12_spill] sm:$0xff] %v3897_v38  ;;  %v644_v51 = vrot.slane %v607_v26, 1  ;;  %v1116_v38 = vmul.f32 %v1092_v31, %v4255_v56  ;;  %v1127_v26 = vmul.f32 %v1088_v55, %v4264_v50  ;;  %v660_v39 = vrot.slane %v618_v3, 1 }
 0x17f   : > { %v3925_v35 = vsel %vm643_vm2, %v645_v6, %v662_v10  ;;  %v670_v50 = vrot.slane %v623_v16, 1  ;;  %v1119_v56 = vmul.f32 %v1104_v49, %v4263_v2  ;;  %v3929_v3 = vmul.f32 %v1104_v49, %v4266_v30  ;;  %v2658_v2 = vld [vmem:[%s4160_s2 + $0x2f0] ss:$8 sps:$4 sm:$0xff]  }
 0x180   : > { %2297 = vmatpush1.bf16.msra.mxu0 %v2652_v36  ;;  %v672_v31 = vrot.slane %v624_v19, 1  ;;  %v1156_v36 = vrot.slane %v1122_v52, 2  ;;  %v1172_v55 = vrot.slane %v1128_v32, 2  ;;  %v1155_v57 = vrot.slane %v1116_v38, 2 }
 0x181   : > { %v3909_v53 = vpop.permute.xlu0 %1028  ;;  %v3916_v23 = vpop.permute.xlu1 %1030  ;;  %2298 = vmatprep.subr.bf16.mxu0 %v2657_v37  ;;  %v3932_v15 = vsel %vm643_vm2, %v644_v51, %v645_v6  ;;  %v3935_v37 = vsel %vm643_vm2, %v656_v48, %v657_v20  ;;  %v1153_v13 = vrot.slane %v1121_v0, 2  ;;  %v1170_v10 = vrot.slane %v1127_v26, 2 }
 0x182   : > { %v3943_v16 = vsel %vm643_vm2, %v659_v42, %v660_v39  ;;  %v1152_v38 = vrot.slane %v1115_v8, 2  ;;  %v3948_v6 = vmul.f32 %v1108_v43, %v4265_v18  ;;  %v3951_v30 = vmul.f32 %v1108_v43, %v4267_v62 }
 0x183   : > { %v400_v51 = vsel %vm392_vm4, %v3696_v7, %v3395_v22  ;;  %v3957_v32 = vsel %vm643_vm2, %v657_v20, %v670_v50  ;;  %v1164_v19 = vrot.slane %v1119_v56, 2  ;;  %v1165_v48 = vrot.slane %v3929_v3, 2  ;;  %v4275_v50 = vld [vmem:[#allocation16_spill] sm:$0xff]  ;;  %v4308_v3 = vld [vmem:[#allocation27_spill] sm:$0xff] }
 0x184   : > { %2299 = vmatpush1.bf16.msra.mxu0 %v2655_v46  ;;  %v539_v0 = vsel %vm537_vm5, %v3742_v11, %v3456_v25  ;;  %v3964_v18 = vsel %vm643_vm2, %v660_v39, %v672_v31  ;;  %v3967_v62 = vsel %vm1151_vm3, %v1156_v36, %v1172_v55  ;;  %v3970_v26 = vsel %vm1151_vm3, %v1155_v57, %v1156_v36 }
 0x185   : > { %v3937_v33 = vpop.permute.xlu0 %1042  ;;  %v3945_v52 = vpop.permute.xlu1 %1044  ;;  %2300 = vmatprep.subr.bf16.mxu0 %v2660_v58  ;;  %v418_v22 = vadd.f32 %v3700_v4, %v3841_v5  ;;  %v545_v7 = vsel %vm537_vm5, %v3747_v40, %v3454_v1  ;;  %v3980_v25 = vsel %vm1151_vm3, %v1153_v13, %v1170_v10  ;;  %v3983_v46 = vmul.f32 %v1104_v49, %v4273_v28  ;;  %v4278_v10 = vld [vmem:[#allocation38_spill] sm:$0xff] }
 0x186   : > { %v424_v42 = vadd.f32 %v400_v51, %v3836_v41  ;;  %v3989_v8 = vsel %vm1151_vm3, %v1152_v38, %v1153_v13  ;;  %v1167_v4 = vrot.slane %v3948_v6, 2  ;;  %v1168_v1 = vrot.slane %v3951_v30, 2  ;;  %v4277_v13 = vld [vmem:[#allocation21_spill] sm:$0xff]  ;;  %v4280_v38 = vld [vmem:[#allocation35_spill] sm:$0xff] }
 0x187   : > { %v397_v5 = vsel %vm392_vm4, %v3355_v27, %v3718_v47  ;;  %v563_v58 = vadd.f32 %v539_v0, %v418_v22  ;;  %v538_v28 = vsel %vm537_vm5, %v3752_v45, %v3742_v11  ;;  %v4002_v41 = vsel %vm1151_vm3, %v1164_v19, %v1165_v48  ;;  %v4276_v11 = vld [vmem:[#allocation17_spill] sm:$0xff]  ;;  %v4282_v19 = vld [vmem:[#allocation24_spill] sm:$0xff]  ;;  %v4283_v0 = vld [vmem:[#allocation2_spill] sm:$0xff] }
 0x188   : > { %2301 = vmatpush1.bf16.msra.mxu0 %v2658_v2  ;;  %v417_v49 = vadd.f32 %v3709_v24, %v3862_v17  ;;  %v403_v56 = vsel %vm392_vm4, %v4275_v50, %v3730_v21  ;;  %v569_v31 = vadd.f32 %v545_v7, %v424_v42  ;;  %v544_v27 = vsel %vm537_vm5, %v3757_v14, %v3747_v40  ;;  %v4284_v22 = vld [vmem:[#allocation36_spill] sm:$0xff]  ;;  %v4286_v42 = vld [vmem:[#allocation37_spill] sm:$0xff] }
 0x189   : > { %v3977_v20 = vpop.permute.xlu0 %1336  ;;  %v3986_v39 = vpop.permute.xlu1 %1350  ;;  %v423_v47 = vadd.f32 %v3716_v29, %v3851_v44  ;;  %v542_v45 = vsel %vm537_vm5, %v4276_v11, %v3762_v34  ;;  %v4018_v55 = vmul.f32 %v1108_v43, %v4274_v60  ;;  %v1178_v24 = vrot.slane %v3983_v46, 2  ;;  %v4279_v43 = vld [vmem:[#allocation14_spill] sm:$0xff] }
 0x18a   : > { %v421_v21 = vadd.f32 %v397_v5, %v3865_v54  ;;  %v422_v17 = vadd.f32 %v3728_v63, %v3870_v59  ;;  %v562_v57 = vadd.f32 %v538_v28, %v417_v49  ;;  %v855_v29 = vsel %vm392_vm4, %v3782_v12, %v3514_v61  ;;  %v4281_v59 = vld [vmem:[#allocation10_spill] sm:$0xff]  ;;  %v4287_v28 = vld [vmem:[#allocation25_spill] sm:$0xff]  ;;  %v4288_v49 = vld [vmem:[#allocation4_spill] sm:$0xff] }
 0x18b   : > { %v427_v14 = vadd.f32 %v403_v56, %v3873_v9  ;;  %v568_v44 = vadd.f32 %v544_v27, %v423_v47  ;;  %v861_v60 = vsel %vm392_vm4, %v4278_v10, %v4277_v13  ;;  %v687_v2 = vadd.f32 %v4279_v43, %v563_v58  ;;  %v4285_v9 = vld [vmem:[#allocation18_spill] sm:$0xff]  ;;  %v4289_v56 = vld [vmem:[#allocation11_spill] sm:$0xff] }
 0x18c   : > { %v543_v54 = vsel %vm537_vm5, %v3762_v34, %v4280_v38  ;;  %v566_v63 = vadd.f32 %v542_v45, %v421_v21  ;;  %v693_v51 = vadd.f32 %v4281_v59, %v569_v31  ;;  %v1047_v61 = vsel %vm537_vm5, %v4283_v0, %v4282_v19  ;;  %v4290_v31 = vld [vmem:[#allocation34_spill] sm:$0xff]  ;;  %v4291_v45 = vld [vmem:[#allocation39_spill] sm:$0xff] }
 0x18d   : > { %v1335_v36 = vpop.permute.xlu0 %1334  ;;  %v1349_v40 = vpop.permute.xlu1 %1348  ;;  %v548_v7 = vsel %vm537_vm5, %v4285_v9, %v4284_v22  ;;  %v549_v5 = vsel %vm537_vm5, %v4284_v22, %v4286_v42  ;;  %v879_v58 = vadd.f32 %v855_v29, %v687_v2  ;;  %v1053_v34 = vsel %vm537_vm5, %v4288_v49, %v4287_v28  ;;  %v4292_v2 = vld [vmem:[#allocation40_spill] sm:$0xff] }
 0x18e   : > { %v428_v27 = vadd.f32 %v4290_v31, %v4289_v56  ;;  %v885_v47 = vadd.f32 %v861_v60, %v693_v51  ;;  %v686_v11 = vadd.f32 %v3932_v15, %v562_v57  ;;  %v854_v21 = vsel %vm392_vm4, %v4291_v45, %v3782_v12  ;;  %v4293_v60 = vld [vmem:[#allocation6_spill] sm:$0xff]  ;;  %v4294_v51 = vld [vmem:[#allocation12_spill] sm:$0xff]  ;;  %v4300_v45 = vld [vmem:[#allocation43_spill] sm:$0xff] }
 0x18f   : > { %v567_v43 = vadd.f32 %v543_v54, %v422_v17  ;;  %v692_v29 = vadd.f32 %v3925_v35, %v568_v44  ;;  %v860_v38 = vsel %vm392_vm4, %v4292_v2, %v4278_v10  ;;  %v1071_v59 = vadd.f32 %v1047_v61, %v879_v58  ;;  %v4295_v10 = vld [vmem:[#allocation41_spill] sm:$0xff]  ;;  %v4296_v61 = vld [vmem:[#allocation19_spill] sm:$0xff]  ;;  %v4299_v28 = vld [vmem:[#allocation28_spill] sm:$0xff] }
 0x190   : > { %v572_v19 = vadd.f32 %v548_v7, %v427_v14  ;;  %v573_v22 = vadd.f32 %v549_v5, %v428_v27  ;;  %v1077_v9 = vadd.f32 %v1053_v34, %v885_v47  ;;  %v1046_v15 = vsel %vm537_vm5, %v4293_v60, %v4283_v0  ;;  %v4297_v7 = vld [vmem:[#allocation42_spill] sm:$0xff]  ;;  %v4298_v0 = vld [vmem:[#allocation29_spill] sm:$0xff] }
 0x191   : > { %v4048_v50 = vpop.permute.xlu0 %1344  ;;  %v4056_v13 = vpop.permute.xlu1 %1346  ;;  %v878_v57 = vadd.f32 %v854_v21, %v686_v11  ;;  %v690_v12 = vadd.f32 %v3935_v37, %v566_v63  ;;  %v1052_v17 = vsel %vm537_vm5, %v4294_v51, %v4288_v49  ;;  %v1180_v35 = vrot.slane %v4018_v55, 2  ;;  %v4301_v21 = vld [vmem:[#allocation20_spill] sm:$0xff]  ;;  %v4302_v2 = vld [vmem:[#allocation9_spill] sm:$0xff]  ;;  %v4306_v51 = vld [vmem:[#allocation23_spill] sm:$0xff] }
 0x192   : > { %v884_v54 = vadd.f32 %v860_v38, %v692_v29  ;;  %v858_v14 = vsel %vm392_vm4, %v4296_v61, %v4295_v10  ;;  %v859_v42 = vsel %vm392_vm4, %v4295_v10, %v4297_v7  ;;  %v1363_v37 = vsel %vm392_vm4, %v3977_v20, %v4298_v0 }
 0x193   : > { %v691_v5 = vadd.f32 %v3943_v16, %v567_v43  ;;  %v1070_v58 = vadd.f32 %v1046_v15, %v878_v57  ;;  %v1369_v55 = vsel %vm392_vm4, %v3986_v39, %v4299_v28  ;;  %v1195_v49 = vadd.f32 %v3970_v26, %v1071_v59  ;;  %v4303_v59 = vld [vmem:[#allocation32_spill] sm:$0xff]  ;;  %v4305_v57 = vld [vmem:[#allocation22_spill] sm:$0xff] }
 0x194   : > { %v696_v34 = vadd.f32 %v3957_v32, %v572_v19  ;;  %v697_v56 = vadd.f32 %v3964_v18, %v573_v22  ;;  %v1076_v31 = vadd.f32 %v1052_v17, %v884_v54  ;;  %v1201_v27 = vadd.f32 %v3967_v62, %v1077_v9  ;;  %v4304_v9 = vld [vmem:[#allocation33_spill] sm:$0xff] }
 0x195   : > { %v1359_v44 = vpop.permute.xlu0 %1358  ;;  %v1361_v63 = vpop.permute.xlu1 %1360  ;;  %v882_v47 = vadd.f32 %v858_v14, %v690_v12  ;;  %v883_v11 = vadd.f32 %v859_v42, %v691_v5  ;;  %v864_v16 = vsel %vm392_vm4, %v4301_v21, %v4300_v45  ;;  %v1387_v43 = vadd.f32 %v1363_v37, %v1195_v49 }
 0x196   : > { %v865_v38 = vsel %vm392_vm4, %v4300_v45, %v4302_v2  ;;  %v1393_v26 = vadd.f32 %v1369_v55, %v1201_v27  ;;  %v1362_v32 = vsel %vm392_vm4, %v1335_v36, %v3977_v20  ;;  %v1368_v19 = vsel %vm392_vm4, %v1349_v40, %v3986_v39  ;;  %v4309_v27 = vld [vmem:[#allocation30_spill] sm:$0xff]  ;;  %v4310_v2 = vld [vmem:[#allocation31_spill] sm:$0xff] }
 0x197   : > { %v1194_v22 = vadd.f32 %v3989_v8, %v1070_v58  ;;  %v1050_v12 = vsel %vm537_vm5, %v4305_v57, %v3909_v53  ;;  %v1056_v20 = vsel %vm537_vm5, %v4306_v51, %v3937_v33  ;;  %v1200_v36 = vadd.f32 %v3980_v25, %v1076_v31  ;;  %v4312_v57 = vld [vmem:[#allocation3_spill] sm:$0xff] }
 0x198   : > { %v888_v54 = vadd.f32 %v864_v16, %v696_v34  ;;  %v1051_v39 = vsel %vm537_vm5, %v3909_v53, %v3916_v23  ;;  %v1057_v8 = vsel %vm537_vm5, %v3937_v33, %v3945_v52  ;;  %v889_v61 = vadd.f32 %v865_v38, %v697_v56  ;;  %v4307_v34 = vld [vmem:[#allocation26_spill] sm:$0xff] }
 0x199   : > { %v1529_v29 = vpop.permute.xlu0 %1528  ;;  %v1543_v18 = vpop.permute.xlu1 %1542  ;;  %v1386_v40 = vadd.f32 %v1362_v32, %v1194_v22  ;;  %v1392_v14 = vadd.f32 %v1368_v19, %v1200_v36  ;;  %v1074_v37 = vadd.f32 %v1050_v12, %v882_v47  ;;  %v1075_v28 = vadd.f32 %v1051_v39, %v883_v11 }
 0x19a   : > { %v1555_v62 = vsel %vm537_vm5, %v1529_v29, %v4303_v59  ;;  %v1561_v60 = vsel %vm537_vm5, %v1543_v18, %v4304_v9  ;;  %v1080_v25 = vadd.f32 %v1056_v20, %v888_v54  ;;  %v1081_v55 = vadd.f32 %v1057_v8, %v889_v61 }
 0x19b   : > { %v1579_v15 = vadd.f32 %v1555_v62, %v1387_v43  ;;  %v1585_v17 = vadd.f32 %v1561_v60, %v1393_v26  ;;  %v1179_v53 = vsel %vm1151_vm3, %v1165_v48, %v1178_v24  ;;  %v1169_v33 = vsel %vm1151_vm3, %v1167_v4, %v1168_v1  ;;  %v1692_v62 = vld [vmem:[%s4161_s3] sm:$0x3]  ;;  %v4311_v60 = vld [vmem:[#allocation5_spill] sm:$0xff] }
 0x19c   : > { %v1181_v52 = vsel %vm1151_vm3, %v1168_v1, %v1180_v35  ;;  %v1366_v46 = vsel %vm392_vm4, %v4307_v34, %v4048_v50  ;;  %v1372_v48 = vsel %vm392_vm4, %v4308_v3, %v1359_v44  ;;  %v1198_v31 = vadd.f32 %v4002_v41, %v1074_v37 }
 0x19d   : > { %v1527_v10 = vpop.permute.xlu0 %1526  ;;  %v1541_v7 = vpop.permute.xlu1 %1540  ;;  %v1591_v0 = vpack.c.bf16 %v1585_v17, %v1579_v15  ;;  %v1367_v6 = vsel %vm392_vm4, %v4048_v50, %v4056_v13  ;;  %v1204_v4 = vadd.f32 %v1179_v53, %v1080_v25  ;;  %v1373_v30 = vsel %vm392_vm4, %v1359_v44, %v1361_v63 }
 0x19e   : > { %v1554_v42 = vsel %vm537_vm5, %v1527_v10, %v1529_v29  ;;  %v1560_v5 = vsel %vm537_vm5, %v1541_v7, %v1543_v18  ;;  %v1199_v1 = vadd.f32 %v1169_v33, %v1075_v28  ;;  %v1205_v35 = vadd.f32 %v1181_v52, %v1081_v55 }
 0x19f   : > { %v1578_v58 = vadd.f32 %v1554_v42, %v1386_v40  ;;  %v1584_v23 = vadd.f32 %v1560_v5, %v1392_v14  ;;  %2216 = vmatprep.mubr.bf16.mxu1 %v1591_v0  ;;  %v1390_v11 = vadd.f32 %v1366_v46, %v1198_v31  ;;  %v1396_v45 = vadd.f32 %v1372_v48, %v1204_v4 }
 0x1a0   : > { %v1391_v43 = vadd.f32 %v1367_v6, %v1199_v1  ;;  %v1397_v41 = vadd.f32 %v1373_v30, %v1205_v35  ;;  %v1697_v15 = vrot.slane %v1692_v62, %v4311_v60  ;;  %v1701_v12 = vrot.slane %v1692_v62, %v4312_v57 }
 0x1a1   : > { %v1537_v49 = vpop.permute.xlu0 %1536  ;;  %v1539_v24 = vpop.permute.xlu1 %1538  ;;  %v1590_v56 = vpack.c.bf16 %v1584_v23, %v1578_v58 }
 0x1a2   : > { %v1558_v47 = vsel %vm537_vm5, %v4309_v27, %v1537_v49  ;;  %v1559_v21 = vsel %vm537_vm5, %v1537_v49, %v1539_v24 }
 0x1a3   : > { %2217 = vmatmul.mubr.bf16.vlgmr.msra.gmra.mrb[0].mxu1 %v1590_v56  ;;  %v1582_v13 = vadd.f32 %v1558_v47, %v1390_v11  ;;  %v1583_v38 = vadd.f32 %v1559_v21, %v1391_v43 }
 0x1a5   : > { %v1551_v16 = vpop.permute.xlu0 %1550  ;;  %v1553_v29 = vpop.permute.xlu1 %1552 }
 0x1a6   : > { %v1564_v50 = vsel %vm537_vm5, %v4310_v2, %v1551_v16  ;;  %v1565_v44 = vsel %vm537_vm5, %v1551_v16, %v1553_v29 }
 0x1a7   : > { %v1588_v63 = vadd.f32 %v1564_v50, %v1396_v45  ;;  %v1589_v26 = vadd.f32 %v1565_v44, %v1397_v41 }
 0x1a9   : > { %v1594_v32 = vpack.c.bf16 %v1588_v63, %v1582_v13  ;;  %v1595_v18 = vpack.c.bf16 %v1589_v26, %v1583_v38 }
 0x1ab   : > { %2302 = vmatprep.mubr.bf16.mxu0 %v1595_v18 }
 0x1ac   : > { %2303 = vmatmul.mubr.bf16.vlgmr.msra.gmra.mrb[0].mxu0 %v1594_v32 }
 0x276   : > { %v2218_v59 = vpop.f32.mrb[0].mxu1 }
 0x277   : > { %v2220_v19 = vpop.f32.mrb[1].mxu1  ;;  %v2219_v51 = vadd.f32 %v2218_v59, %v1697_v15 }
 0x278   : > { %v2222_v22 = vpop.f32.mrb[2].mxu1  ;;  %v2221_v20 = vadd.f32 %v2220_v19, %v1701_v12 }
 0x279   : > { %v2224_v9 = vpop.f32.mrb[3].mxu1  ;;  %v2223_v17 = vadd.f32 %v2222_v22, %v1697_v15 }
 0x27a   : > { %v2225_v8 = vadd.f32 %v2224_v9, %v1701_v12 }
 0x27f   : > { %v2304_v36 = vpop.f32.mrb[0].mxu0 }
 0x280   : > { %v2493_v54 = vadd.f32 %v2304_v36, %v2219_v51  ;;  %v2306_v39 = vpop.f32.mrb[1].mxu0 }
 0x281   : > { %v2495_v40 = vadd.f32 %v2306_v39, %v2221_v20  ;;  %v2308_v10 = vpop.f32.mrb[2].mxu0 }
 0x282   : > { %v2313_v61 = vmax.f32 %v2493_v54, 0.0  ;;  %v2497_v14 = vadd.f32 %v2308_v10, %v2223_v17  ;;  %v2310_v7 = vpop.f32.mrb[3].mxu0 }
 0x283   : > { %v2314_v42 = vmax.f32 %v2495_v40, 0.0  ;;  %v2499_v0 = vadd.f32 %v2310_v7, %v2225_v8 }
 0x284   : > { %2317 = vst [vmem:[%s197_s11] sm:$0xff] %v2313_v61  ;;  %v2315_v37 = vmax.f32 %v2497_v14, 0.0 }
 0x285   : > { %2319 = vst.msk [vmem:[%s197_s11 + $0x8] sm:$0xff] %vm2318_vm6, %v2314_v42  ;;  %v2316_v25 = vmax.f32 %v2499_v0, 0.0 }
 0x286   : > { %2320 = vst [vmem:[%s197_s11 + $0x10] sm:$0xff] %v2315_v37 }
 0x287   : > { %2321 = vst.msk [vmem:[%s197_s11 + $0x18] sm:$0xff] %vm2318_vm6, %v2316_v25 }
 0x288 PF: > { %s14_s15 = sadd.s32 1, %s2667_s15  }
 0x289   : > { %p11_p4 = scmp.ge.s32.totalorder %s14_s15, 4  }
 0x28b   :  { %13 = sbr.rel (!%p11_p4) target bundleno = 1 (0x1), region = 74 }

// kernel: enc_forward.18
= control target key start
LH: loop header
LB: loop body
LE: loop exit
PB: predicated region body
PF: predicated region fallthrough
CT: control target
= control target key end

     0   :  { %s1031_s15 = smov 0   ;;  %s1350_s0 = inlined_call_operand.vmem [shape: f32[2,18,216], index: 0, kind: input, shape index: {}]   ;;  %s1351_s1 = inlined_call_operand.vmem [shape: f32[9,1,192], index: 1, kind: input, shape index: {}]   ;;  %s1352_s2 = inlined_call_operand.vmem [shape: bf16[192,192], index: 2, kind: input, shape index: {}]   ;;  %s1353_s3 = inlined_call_operand.vmem [shape: f32[1,192], index: 3, kind: input, shape index: {}]   ;;  %s1354_s4 = inlined_call_operand.vmem [shape: f32[2,16,192], index: 4, kind: output, shape index: {}]  }
   0x1 LB: > { %s901_s16 = sadd.s32 4294967295, %s1000_s15   ;;  %p905_p0 = scmp.ge.s32.totalorder %s1000_s15, 1  ;;  %s1000_s15 = sphi %s1031_s15, %s14_s15  }
   0x2   : > { %p162_p1 = scmp.lt.s32.totalorder %s1000_s15, 3 }
   0x4   : > { %p163_p2 = pnand %p905_p0, %p162_p1 }
   0x5   : > { %v207_v0 = vlaneseq (!%p163_p2)  ;;  %v909_v2 = vld [vmem:[%s1351_s1 + $0x2] sm:$0x3] (!%p163_p2)  ;;  %v910_v3 = vld [vmem:[%s1351_s1 + $0x4] sm:$0x3] (!%p163_p2)  ;;  %s1002_s21 = smov (!%p163_p2), 12   ;;  %s1003_s22 = smov (!%p163_p2), 24  }
   0x6   : > { %166 = sbr.rel (%p163_p2) target bundleno = 519 (0x207), region = 36  ;;  %v912_v10 = vld [vmem:[%s1351_s1 + $0x8] sm:$0x3] (!%p163_p2)  ;;  %v913_v13 = vld [vmem:[%s1351_s1 + $0xa] sm:$0x3] (!%p163_p2)  ;;  %p188_p3 = scmp.lt.s32.totalorder (!%p163_p2), %s901_s16, 1 }
   0x7   : > { %v208_v1 = vshrl.u32 (!%p163_p2), %v207_v0, 7  ;;  %v915_v16 = vld [vmem:[%s1351_s1 + $0xe] sm:$0x3] (!%p163_p2)  ;;  %v916_v19 = vld [vmem:[%s1351_s1 + $0x10] sm:$0x3] (!%p163_p2)  ;;  %vm236_vm0 = vcmask (!%p163_p2), 97280  }
   0x8   : > { %v958_v22 = vld [vmem:[%s1352_s2 + $0x4] ss:$8 sps:$4 sm:$0xff] (!%p163_p2)   ;;  %v960_v23 = vld [vmem:[%s1352_s2] ss:$8 sps:$4 sm:$0xff] (!%p163_p2)   ;;  %v961_v26 = vld [vmem:[%s1352_s2 + $0x14] ss:$8 sps:$4 sm:$0xff] (!%p163_p2)  }
   0x9   : > { %v1045_v4 = vsub.s32 (!%p163_p2), 0, %v208_v1  ;;  %v1047_v5 = vsub.s32 (!%p163_p2), 1, %v208_v1  ;;  %795 = vmatprep.subr.bf16.mxu0 (!%p163_p2), %v958_v22  ;;  %v911_v24 = vld [vmem:[%s1351_s1 + $0x6] sm:$0x3] (!%p163_p2)  ;;  %v963_v30 = vld [vmem:[%s1352_s2 + $0x10] ss:$8 sps:$4 sm:$0xff] (!%p163_p2)  }
   0xa   : > { %796 = vmatpush1.bf16.msra.mxu0 (!%p163_p2), %v960_v23  ;;  %v964_v38 = vld [vmem:[%s1352_s2 + $0x24] ss:$8 sps:$4 sm:$0xff] (!%p163_p2)   ;;  %s1004_s23 = smov (!%p163_p2), 116   ;;  %vm338_vm1 = vcmask (!%p163_p2), 1046528   ;;  %v966_v43 = vld [vmem:[%s1352_s2 + $0x20] ss:$8 sps:$4 sm:$0xff] (!%p163_p2)  }
   0xb   : > { %v227_v6 = vrot.slane (!%p163_p2), %v909_v2, %v1045_v4  ;;  %v273_v7 = vrot.slane (!%p163_p2), %v910_v3, %v1045_v4  ;;  %v231_v8 = vrot.slane (!%p163_p2), %v909_v2, %v1047_v5  ;;  %v277_v9 = vrot.slane (!%p163_p2), %v910_v3, %v1047_v5  ;;  %797 = vmatprep.subr.bf16.mxu0 (!%p163_p2), %v961_v26  ;;  %v967_v56 = vld [vmem:[%s1352_s2 + $0x34] ss:$8 sps:$4 sm:$0xff] (!%p163_p2)   ;;  %v969_v58 = vld [vmem:[%s1352_s2 + $0x30] ss:$8 sps:$4 sm:$0xff] (!%p163_p2)   ;;  %s1005_s6 = smov (!%p163_p2), 104  }
   0xc   : > { %v363_v11 = vrot.slane (!%p163_p2), %v912_v10, %v1045_v4  ;;  %v367_v12 = vrot.slane (!%p163_p2), %v912_v10, %v1047_v5  ;;  %v421_v14 = vrot.slane (!%p163_p2), %v913_v13, %v1045_v4  ;;  %v425_v15 = vrot.slane (!%p163_p2), %v913_v13, %v1047_v5  ;;  %v975_v22 = vld [vmem:[%s1352_s2 + $0x50] ss:$8 sps:$4 sm:$0xff] (!%p163_p2)  }
   0xd   : > { %232 = vrot.lane.b32.xlu0 %v227_v6, %s1002_s21  ;;  %278 = vrot.lane.b32.xlu1 %v273_v7, %s1003_s22  ;;  %v523_v17 = vrot.slane %v915_v16, %v1045_v4  ;;  %v527_v18 = vrot.slane %v915_v16, %v1047_v5  ;;  %v581_v20 = vrot.slane %v916_v19, %v1045_v4  ;;  %s1356_s16 = smov (!%p188_p3, %s901_s16), 1  ;;  %vm282_vm2 = vcmask 195584   ;;  %v970_v6 = vld [vmem:[%s1352_s2 + $0x44] ss:$8 sps:$4 sm:$0xff]  }
   0xe   : > { %v585_v21 = vrot.slane %v916_v19, %v1047_v5  ;;  %s945_s5 = smul.u32 48, %s1356_s16  ;;  %v323_v27 = vrot.slane %v911_v24, %v1047_v5  ;;  %v319_v31 = vrot.slane %v911_v24, %v1045_v4  ;;  %798 = vmatpush1.bf16.msra.mxu0 %v963_v30  ;;  %vm498_vm3 = vcmask 1045504  }
   0xf   : > { %799 = vmatprep.subr.bf16.mxu0 %v964_v38  ;;  %v976_v38 = vld [vmem:[%s1352_s2 + $0x64] ss:$8 sps:$4 sm:$0xff]   ;;  %vm256_vm4 = vcmask 949248   ;;  %vm302_vm5 = vcmask 850944   ;;  %vm791_vm6 = vcmask 523264  }
  0x10   : > { %s1086_s10 = scalar_lea.vmem %s1350_s0, %s945_s5 }
  0x11   : > { %234 = vrot.lane.b32.xlu0 %v231_v8, %s1002_s21  ;;  %280 = vrot.lane.b32.xlu1 %v277_v9, %s1003_s22  ;;  %v1095_v25 = vld [vmem:[%s1086_s10] sm:$0xff]  ;;  %v1102_v28 = vld [vmem:[%s1086_s10 + $0x8] sm:$0xff] }
  0x12   : > { %v1105_v29 = vld [vmem:[%s1086_s10 + $0x18] sm:$0xff]  ;;  %v327_v34 = vmul.f32 %v323_v27, %v1102_v28  ;;  %v1114_v36 = vld [vmem:[%s1086_s10 + $0x10] sm:$0xff]  ;;  %v1123_v42 = vld [vmem:[%s1086_s10 + $0x28] sm:$0x3]  ;;  %v326_v44 = vmul.f32 %v319_v31, %v1095_v25  ;;  %800 = vmatpush1.bf16.msra.mxu0 %v966_v43 }
  0x13   : > { %v329_v35 = vmul.f32 %v323_v27, %v1105_v29  ;;  %v328_v39 = vmul.f32 %v319_v31, %v1114_v36  ;;  %v1130_v47 = vld [vmem:[%s1086_s10 + $0x20] sm:$0x3]  ;;  %v331_v50 = vmul.f32 %v323_v27, %v1123_v42  ;;  %801 = vmatprep.subr.bf16.mxu0 %v967_v56 }
  0x14   : > { %v342_v40 = vrot.slane %v327_v34, 1  ;;  %v339_v53 = vrot.slane %v326_v44, 1  ;;  %v330_v54 = vmul.f32 %v319_v31, %v1130_v47  ;;  %v972_v9 = vld [vmem:[%s1352_s2 + $0x40] ss:$8 sps:$4 sm:$0xff]  }
  0x15   : > { %368 = vrot.lane.b32.xlu0 %v363_v11, %s1002_s21  ;;  %370 = vrot.lane.b32.xlu1 %v367_v12, %s1002_s21  ;;  %v343_v41 = vrot.slane %v329_v35, 1  ;;  %v340_v48 = vrot.slane %v328_v39, 1  ;;  %v347_v61 = vrot.slane %v331_v50, 1  ;;  %v914_v39 = vld [vmem:[%s1351_s1 + $0xc] sm:$0x3] }
  0x16   : > { %v345_v60 = vrot.slane %v330_v54, 1  ;;  %802 = vmatpush1.bf16.msra.mxu0 %v969_v58  ;;  %v483_v50 = vrot.slane %v914_v39, %v1047_v5  ;;  %v479_v56 = vrot.slane %v914_v39, %v1045_v4  ;;  %v981_v58 = vld [vmem:[%s1352_s2 + $0x70] ss:$8 sps:$4 sm:$0xff]  }
  0x17   : > { %v1133_v49 = vsel %vm338_vm1, %v342_v40, %v343_v41  ;;  %v1149_v59 = vsel %vm338_vm1, %v339_v53, %v340_v48  ;;  %v1168_v10 = vsel %vm338_vm1, %v343_v41, %v347_v61  ;;  %803 = vmatprep.subr.bf16.mxu0 %v970_v6  ;;  %v978_v40 = vld [vmem:[%s1352_s2 + $0x60] ss:$8 sps:$4 sm:$0xff]  }
  0x18   : > { %v1160_v7 = vsel %vm338_vm1, %v340_v48, %v345_v60 }
  0x19   : > { %426 = vrot.lane.b32.xlu0 %v421_v14, %s1003_s22  ;;  %428 = vrot.lane.b32.xlu1 %v425_v15, %s1003_s22 }
  0x1a   : > { %804 = vmatpush1.bf16.msra.mxu0 %v972_v9  ;;  %v982_v9 = vld [vmem:[%s1352_s2 + $0x84] ss:$8 sps:$4 sm:$0xff]  }
  0x1d   : > { %528 = vrot.lane.b32.xlu0 %v523_v17, %s1002_s21  ;;  %530 = vrot.lane.b32.xlu1 %v527_v18, %s1002_s21  ;;  %s944_s21 = sshll.u32 %s1356_s16, 5 }
  0x1e   : > { %s197_s25 = scalar_lea.vmem %s1354_s4, %s944_s21 }
  0x21   : > { %586 = vrot.lane.b32.xlu0 %v581_v20, %s1003_s22  ;;  %588 = vrot.lane.b32.xlu1 %v585_v21, %s1003_s22  ;;  %v973_v20 = vld [vmem:[%s1352_s2 + $0x54] ss:$8 sps:$4 sm:$0xff]  }
  0x22   : > { %805 = vmatprep.subr.bf16.mxu0 %v973_v20  ;;  %v490_v20 = vmul.f32 %v479_v56, %v1130_v47 }
  0x23   : > { %806 = vmatpush1.bf16.msra.mxu0 %v975_v22 }
  0x24   : > { %807 = vmatprep.subr.bf16.mxu0 %v976_v38  ;;  %v987_v38 = vld [vmem:[%s1352_s2 + $0x90] ss:$8 sps:$4 sm:$0xff]  }
  0x27   : > { %808 = vmatpush1.bf16.msra.mxu0 %v978_v40 }
  0x7f   : > { %v233_v32 = vpop.permute.xlu0 %232  ;;  %v279_v33 = vpop.permute.xlu1 %278 }
  0x80   : > { %v240_v37 = vmul.f32 %v233_v32, %v1095_v25  ;;  %v242_v51 = vmul.f32 %v233_v32, %v1114_v36  ;;  %v286_v57 = vmul.f32 %v279_v33, %v1095_v25  ;;  %v288_v15 = vmul.f32 %v279_v33, %v1114_v36 }
  0x82   : > { %248 = vrot.lane.b32.xlu0 %v240_v37, %s1004_s23 }
  0x83   : > { %v235_v45 = vpop.permute.xlu0 %234  ;;  %v281_v46 = vpop.permute.xlu1 %280 }
  0x84   : > { %v237_v52 = vsel %vm236_vm0, %v233_v32, %v235_v45  ;;  %v283_v8 = vsel %vm282_vm2, %v279_v33, %v281_v46 }
  0x85   : > { %v241_v55 = vmul.f32 %v237_v52, %v1102_v28  ;;  %v243_v2 = vmul.f32 %v237_v52, %v1105_v29  ;;  %v287_v19 = vmul.f32 %v283_v8, %v1102_v28  ;;  %v289_v33 = vmul.f32 %v283_v8, %v1105_v29 }
  0x86   : > { %252 = vrot.lane.b32.xlu0 %v242_v51, %s1004_s23  ;;  %v488_v8 = vmul.f32 %v479_v56, %v1114_v36 }
  0x87   : > { %250 = vrot.lane.b32.xlu1 %v241_v55, %s1004_s23  ;;  %v369_v62 = vpop.permute.xlu0 %368  ;;  %v371_v63 = vpop.permute.xlu1 %370  ;;  %v979_v55 = vld [vmem:[%s1352_s2 + $0x74] ss:$8 sps:$4 sm:$0xff]  }
  0x88   : > { %v375_v0 = vmul.f32 %v369_v62, %v1095_v25  ;;  %v377_v1 = vmul.f32 %v369_v62, %v1114_v36  ;;  %v372_v3 = vsel %vm236_vm0, %v369_v62, %v371_v63  ;;  %v379_v11 = vmul.f32 %v369_v62, %v1130_v47  ;;  %809 = vmatprep.subr.bf16.mxu0 %v979_v55 }
  0x89   : > { %v376_v16 = vmul.f32 %v372_v3, %v1102_v28  ;;  %v378_v17 = vmul.f32 %v372_v3, %v1105_v29  ;;  %v380_v30 = vmul.f32 %v372_v3, %v1123_v42  ;;  %810 = vmatpush1.bf16.msra.mxu0 %v981_v58 }
  0x8a   : > { %294 = vrot.lane.b32.xlu0 %v286_v57, %s1005_s6  ;;  %v387_v12 = vrot.slane %v375_v0, 1  ;;  %v388_v13 = vrot.slane %v377_v1, 1  ;;  %v393_v27 = vrot.slane %v379_v11, 1  ;;  %v487_v1 = vmul.f32 %v483_v50, %v1102_v28  ;;  %811 = vmatprep.subr.bf16.mxu0 %v982_v9 }
  0x8b   : > { %254 = vrot.lane.b32.xlu1 %v243_v2, %s1004_s23  ;;  %v429_v14 = vpop.permute.xlu1 %428  ;;  %v427_v18 = vpop.permute.xlu0 %426  ;;  %v390_v31 = vrot.slane %v376_v16, 1  ;;  %v391_v32 = vrot.slane %v378_v17, 1  ;;  %v395_v46 = vrot.slane %v380_v30, 1  ;;  %v985_v30 = vld [vmem:[%s1352_s2 + $0x94] ss:$8 sps:$4 sm:$0xff]  }
  0x8c   : > { %v430_v21 = vsel %vm282_vm2, %v427_v18, %v429_v14  ;;  %v389_v23 = vsel %vm338_vm1, %v387_v12, %v388_v13  ;;  %v433_v24 = vmul.f32 %v427_v18, %v1095_v25  ;;  %v435_v26 = vmul.f32 %v427_v18, %v1114_v36 }
  0x8d   : > { %v437_v34 = vmul.f32 %v427_v18, %v1130_v47  ;;  %v434_v35 = vmul.f32 %v430_v21, %v1102_v28  ;;  %v1193_v37 = vmul.f32 %v430_v21, %v1105_v29  ;;  %v394_v41 = vsel %vm338_vm1, %v388_v13, %v393_v27 }
  0x8e   : > { %298 = vrot.lane.b32.xlu0 %v288_v15, %s1005_s6  ;;  %v445_v43 = vrot.slane %v433_v24, 1  ;;  %v446_v44 = vrot.slane %v435_v26, 1  ;;  %v392_v48 = vsel %vm338_vm1, %v390_v31, %v391_v32  ;;  %v438_v62 = vmul.f32 %v430_v21, %v1123_v42  ;;  %v984_v15 = vld [vmem:[%s1352_s2 + $0x80] ss:$8 sps:$4 sm:$0xff]  }
  0x8f   : > { %296 = vrot.lane.b32.xlu1 %v287_v19, %s1005_s6  ;;  %v529_v45 = vpop.permute.xlu0 %528  ;;  %v448_v51 = vrot.slane %v434_v35, 1  ;;  %v449_v52 = vrot.slane %v1193_v37, 1  ;;  %v451_v53 = vrot.slane %v437_v34, 1  ;;  %v531_v54 = vpop.permute.xlu1 %530  ;;  %v396_v63 = vsel %vm338_vm1, %v391_v32, %v395_v46  ;;  %812 = vmatpush1.bf16.msra.mxu0 %v984_v15 }
  0x90   : > { %v535_v57 = vmul.f32 %v529_v45, %v1095_v25  ;;  %v447_v60 = vsel %vm338_vm1, %v445_v43, %v446_v44  ;;  %v537_v61 = vmul.f32 %v529_v45, %v1114_v36  ;;  %v532_v0 = vsel %vm236_vm0, %v529_v45, %v531_v54  ;;  %813 = vmatprep.subr.bf16.mxu0 %v985_v30  ;;  %v990_v54 = vld [vmem:[%s1352_s2 + $0xa0] ss:$8 sps:$4 sm:$0xff]  }
  0x91   : > { %v539_v2 = vmul.f32 %v529_v45, %v1130_v47  ;;  %v452_v3 = vsel %vm338_vm1, %v446_v44, %v451_v53  ;;  %v450_v6 = vsel %vm338_vm1, %v448_v51, %v449_v52  ;;  %v489_v12 = vmul.f32 %v483_v50, %v1105_v29 }
  0x92   : > { %397 = vrot.lane.b32.xlu0 %v389_v23, %s1004_s23  ;;  %v547_v11 = vrot.slane %v535_v57, 2  ;;  %v502_v13 = vrot.slane %v487_v1, 2  ;;  %v486_v14 = vmul.f32 %v479_v56, %v1095_v25  ;;  %v536_v16 = vmul.f32 %v532_v0, %v1102_v28 }
  0x93   : > { %300 = vrot.lane.b32.xlu1 %v289_v33, %s1005_s6  ;;  %v548_v17 = vrot.slane %v537_v61, 2  ;;  %v587_v18 = vpop.permute.xlu0 %586  ;;  %v500_v19 = vrot.slane %v488_v8, 2  ;;  %v538_v21 = vmul.f32 %v532_v0, %v1105_v29  ;;  %v503_v22 = vrot.slane %v489_v12, 2  ;;  %v589_v32 = vpop.permute.xlu1 %588  ;;  %814 = vmatpush1.bf16.msra.mxu0 %v987_v38 }
  0x94   : > { %v499_v23 = vrot.slane %v486_v14, 2  ;;  %v491_v24 = vmul.f32 %v483_v50, %v1123_v42  ;;  %v453_v26 = vrot.slane %v438_v62, 1  ;;  %v505_v27 = vrot.slane %v490_v20, 2  ;;  %v988_v50 = vld [vmem:[%s1352_s2 + $0xa4] ss:$8 sps:$4 sm:$0xff]  }
  0x95   : > { %v593_v31 = vmul.f32 %v587_v18, %v1095_v25  ;;  %v1252_v33 = vsel %vm498_vm3, %v502_v13, %v503_v22  ;;  %v549_v39 = vsel %vm498_vm3, %v547_v11, %v548_v17  ;;  %v595_v40 = vmul.f32 %v587_v18, %v1114_v36  ;;  %815 = vmatprep.subr.bf16.mxu0 %v988_v50  ;;  %v205_v13 = vld [vmem:[%s1351_s1] sm:$0x3] }
  0x96   : > { %401 = vrot.lane.b32.xlu0 %v394_v41, %s1004_s23  ;;  %v1255_v34 = vsel %vm498_vm3, %v499_v23, %v500_v19  ;;  %v507_v35 = vrot.slane %v491_v24, 2  ;;  %v553_v41 = vrot.slane %v539_v2, 2  ;;  %v1264_v43 = vsel %vm498_vm3, %v500_v19, %v505_v27 }
  0x97   : > { %399 = vrot.lane.b32.xlu1 %v392_v48, %s1004_s23  ;;  %v550_v44 = vrot.slane %v536_v16, 2  ;;  %v551_v45 = vrot.slane %v538_v21, 2  ;;  %v590_v48 = vsel %vm282_vm2, %v587_v18, %v589_v32  ;;  %v540_v51 = vmul.f32 %v532_v0, %v1123_v42  ;;  %816 = vmatpush1.bf16.msra.mxu0 %v990_v54 }
  0x98   : > { %v1267_v46 = vsel %vm498_vm3, %v503_v22, %v507_v35  ;;  %v454_v53 = vsel %vm338_vm1, %v449_v52, %v453_v26  ;;  %v597_v55 = vmul.f32 %v587_v18, %v1130_v47  ;;  %v554_v56 = vsel %vm498_vm3, %v548_v17, %v553_v41  ;;  %v991_v52 = vld [vmem:[%s1352_s2 + $0xb4] ss:$8 sps:$4 sm:$0xff]   ;;  %v993_v47 = vld [vmem:[%s1352_s2 + $0xb0] ss:$8 sps:$4 sm:$0xff]  }
  0x99   : > { %v605_v57 = vrot.slane %v593_v31, 2  ;;  %v606_v58 = vrot.slane %v595_v40, 2  ;;  %v594_v61 = vmul.f32 %v590_v48, %v1102_v28  ;;  %v596_v37 = vmul.f32 %v590_v48, %v1105_v29  ;;  %817 = vmatprep.subr.bf16.mxu0 %v991_v52 }
  0x9a   : > { %455 = vrot.lane.b32.xlu0 %v447_v60, %s1005_s6  ;;  %v552_v60 = vsel %vm498_vm3, %v550_v44, %v551_v45  ;;  %v555_v62 = vrot.slane %v540_v51, 2  ;;  %v611_v0 = vrot.slane %v597_v55, 2  ;;  %v214_v15 = vrot.slane %v205_v13, %v1047_v5 }
  0x9b   : > { %403 = vrot.lane.b32.xlu1 %v396_v63, %s1004_s23  ;;  %v607_v63 = vsel %vm498_vm3, %v605_v57, %v606_v58  ;;  %v608_v1 = vrot.slane %v594_v61, 2  ;;  %v609_v2 = vrot.slane %v596_v37, 2  ;;  %818 = vmatpush1.bf16.msra.mxu0 %v993_v47  ;;  %v210_v16 = vrot.slane %v205_v13, %v1045_v4 }
  0x9c   : > { %v612_v8 = vsel %vm498_vm3, %v606_v58, %v611_v0  ;;  %v218_v18 = vmul.f32 %v214_v15, %v1102_v28  ;;  %v220_v24 = vmul.f32 %v214_v15, %v1105_v29 }
  0x9d   : > { %v610_v9 = vsel %vm498_vm3, %v608_v1, %v609_v2  ;;  %v217_v20 = vmul.f32 %v210_v16, %v1095_v25  ;;  %v219_v30 = vmul.f32 %v210_v16, %v1114_v36 }
  0x9e   : > { %459 = vrot.lane.b32.xlu0 %v452_v3, %s1005_s6  ;;  %v598_v3 = vmul.f32 %v590_v48, %v1123_v42 }
  0x9f   : > { %457 = vrot.lane.b32.xlu1 %v450_v6, %s1005_s6  ;;  %v556_v6 = vsel %vm498_vm3, %v551_v45, %v555_v62 }
  0xa0   : > { %v613_v11 = vrot.slane %v598_v3, 2 }
  0xa2   : > { %557 = vrot.lane.b32.xlu0 %v549_v39, %s1004_s23  ;;  %v614_v12 = vsel %vm498_vm3, %v609_v2, %v613_v11 }
  0xa3   : > { %461 = vrot.lane.b32.xlu1 %v454_v53, %s1005_s6 }
  0xa6   : > { %561 = vrot.lane.b32.xlu0 %v554_v56, %s1004_s23 }
  0xa7   : > { %559 = vrot.lane.b32.xlu1 %v552_v60, %s1004_s23 }
  0xaa   : > { %615 = vrot.lane.b32.xlu0 %v607_v63, %s1005_s6 }
  0xab   : > { %563 = vrot.lane.b32.xlu1 %v556_v6, %s1004_s23 }
  0xae   : > { %619 = vrot.lane.b32.xlu0 %v612_v8, %s1005_s6 }
  0xaf   : > { %617 = vrot.lane.b32.xlu1 %v610_v9, %s1005_s6 }
  0xb3   : > { %621 = vrot.lane.b32.xlu1 %v614_v12, %s1005_s6 }
  0xf4   : > { %v249_v42 = vpop.permute.xlu0 %248 }
  0xf8   : > { %v253_v14 = vpop.permute.xlu0 %252 }
  0xf9   : > { %v251_v17 = vpop.permute.xlu1 %250 }
  0xfa   : > { %v257_v22 = vsel %vm256_vm4, %v249_v42, %v251_v17  ;;  %v264_v23 = vadd.f32 %v251_v17, %v218_v18 }
  0xfb   : > { %v263_v27 = vadd.f32 %v257_v22, %v217_v20 }
  0xfc   : > { %v295_v19 = vpop.permute.xlu0 %294 }
  0xfd   : > { %v255_v21 = vpop.permute.xlu1 %254 }
  0xfe   : > { %v258_v32 = vsel %vm256_vm4, %v253_v14, %v255_v21  ;;  %v266_v39 = vadd.f32 %v255_v21, %v220_v24 }
  0xff   : > { %v265_v41 = vadd.f32 %v258_v32, %v219_v30  ;;  %v659_v30 = vld [vmem:[%s1353_s3] sm:$0x3] }
 0x100   : > { %v299_v26 = vpop.permute.xlu0 %298  ;;  %v668_v32 = vrot.slane %v659_v30, %v1047_v5 }
 0x101   : > { %v297_v31 = vpop.permute.xlu1 %296 }
 0x102   : > { %v303_v35 = vsel %vm302_vm5, %v295_v19, %v297_v31  ;;  %v310_v28 = vadd.f32 %v297_v31, %v264_v23  ;;  %v664_v31 = vrot.slane %v659_v30, %v1045_v4 }
 0x103   : > { %v309_v38 = vadd.f32 %v303_v35, %v263_v27 }
 0x104   : > { %v398_v25 = vpop.permute.xlu0 %397  ;;  %v354_v40 = vadd.f32 %v1133_v49, %v310_v28 }
 0x105   : > { %v301_v44 = vpop.permute.xlu1 %300  ;;  %v353_v45 = vadd.f32 %v1149_v59, %v309_v38 }
 0x106   : > { %v304_v29 = vsel %vm302_vm5, %v299_v26, %v301_v44  ;;  %v312_v48 = vadd.f32 %v301_v44, %v266_v39 }
 0x107   : > { %v311_v50 = vadd.f32 %v304_v29, %v265_v41 }
 0x108   : > { %v402_v36 = vpop.permute.xlu0 %401  ;;  %v356_v51 = vadd.f32 %v1168_v10, %v312_v48 }
 0x109   : > { %v400_v53 = vpop.permute.xlu1 %399  ;;  %v355_v54 = vadd.f32 %v1160_v7, %v311_v50 }
 0x10a   : > { %v405_v57 = vsel %vm256_vm4, %v398_v25, %v400_v53  ;;  %v412_v58 = vadd.f32 %v400_v53, %v354_v40 }
 0x10b   : > { %v411_v60 = vadd.f32 %v405_v57, %v353_v45 }
 0x10c   : > { %v456_v55 = vpop.permute.xlu0 %455 }
 0x10d   : > { %v404_v56 = vpop.permute.xlu1 %403 }
 0x10e   : > { %v406_v59 = vsel %vm256_vm4, %v402_v36, %v404_v56  ;;  %v414_v47 = vadd.f32 %v404_v56, %v356_v51 }
 0x10f   : > { %v413_v0 = vadd.f32 %v406_v59, %v355_v54 }
 0x110   : > { %v460_v49 = vpop.permute.xlu0 %459 }
 0x111   : > { %v458_v61 = vpop.permute.xlu1 %457 }
 0x112   : > { %v463_v37 = vsel %vm302_vm5, %v456_v55, %v458_v61  ;;  %v470_v52 = vadd.f32 %v458_v61, %v412_v58 }
 0x113   : > { %v469_v62 = vadd.f32 %v463_v37, %v411_v60 }
 0x114   : > { %v558_v63 = vpop.permute.xlu0 %557  ;;  %v514_v10 = vadd.f32 %v1252_v33, %v470_v52 }
 0x115   : > { %v462_v7 = vpop.permute.xlu1 %461  ;;  %v513_v1 = vadd.f32 %v1255_v34, %v469_v62 }
 0x116   : > { %v464_v2 = vsel %vm302_vm5, %v460_v49, %v462_v7  ;;  %v472_v3 = vadd.f32 %v462_v7, %v414_v47 }
 0x117   : > { %v471_v6 = vadd.f32 %v464_v2, %v413_v0 }
 0x118   : > { %v516_v8 = vadd.f32 %v1267_v46, %v472_v3  ;;  %v562_v9 = vpop.permute.xlu0 %561 }
 0x119   : > { %v560_v11 = vpop.permute.xlu1 %559  ;;  %v515_v12 = vadd.f32 %v1264_v43, %v471_v6 }
 0x11a   : > { %v565_v15 = vsel %vm256_vm4, %v558_v63, %v560_v11  ;;  %v572_v16 = vadd.f32 %v560_v11, %v514_v10 }
 0x11b   : > { %v571_v18 = vadd.f32 %v565_v15, %v513_v1 }
 0x11c   : > { %v616_v13 = vpop.permute.xlu0 %615 }
 0x11d   : > { %v564_v42 = vpop.permute.xlu1 %563 }
 0x11e   : > { %v566_v33 = vsel %vm256_vm4, %v562_v9, %v564_v42  ;;  %v574_v17 = vadd.f32 %v564_v42, %v516_v8 }
 0x11f   : > { %v573_v19 = vadd.f32 %v566_v33, %v515_v12 }
 0x120   : > { %v620_v20 = vpop.permute.xlu0 %619 }
 0x121   : > { %v618_v14 = vpop.permute.xlu1 %617 }
 0x122   : > { %v623_v34 = vsel %vm302_vm5, %v616_v13, %v618_v14  ;;  %v630_v21 = vadd.f32 %v618_v14, %v572_v16 }
 0x123   : > { %v629_v23 = vadd.f32 %v623_v34, %v571_v18 }
 0x125   : > { %v622_v46 = vpop.permute.xlu1 %621 }
 0x126   : > { %v624_v22 = vsel %vm302_vm5, %v620_v20, %v622_v46  ;;  %v632_v43 = vadd.f32 %v622_v46, %v574_v17 }
 0x127   : > { %v631_v24 = vadd.f32 %v624_v22, %v573_v19 }
 0x128   : > { %v634_v26 = vpack.c.bf16 %v632_v43, %v630_v21 }
 0x129   : > { %v633_v27 = vpack.c.bf16 %v631_v24, %v629_v23 }
 0x12a   : > { %941 = vmatprep.mubr.msk.bf16.mxu0 %vm791_vm6, %v634_v26 }
 0x12b   : > { %828 = vmatmul.mubr.bf16.vlgmr.msra.gmra.mrb[0].mxu0 %v633_v27 }
 0x1fe   : > { %v829_v35 = vpop.f32.mrb[0].mxu0 }
 0x1ff   : > { %v830_v28 = vadd.f32 %v829_v35, %v664_v31  ;;  %v831_v38 = vpop.f32.mrb[1].mxu0 }
 0x200   : > { %v832_v39 = vadd.f32 %v831_v38, %v668_v32  ;;  %v833_v25 = vpop.f32.mrb[2].mxu0 }
 0x201   : > { %v838_v40 = vmax.f32 %v830_v28, 0.0  ;;  %v834_v41 = vadd.f32 %v833_v25, %v664_v31  ;;  %v835_v44 = vpop.f32.mrb[3].mxu0 }
 0x202   : > { %v839_v45 = vmax.f32 %v832_v39, 0.0  ;;  %v836_v29 = vadd.f32 %v835_v44, %v668_v32 }
 0x203   : > { %842 = vst [vmem:[%s197_s25] sm:$0xff] %v838_v40  ;;  %v840_v48 = vmax.f32 %v834_v41, 0.0 }
 0x204   : > { %843 = vst.msk [vmem:[%s197_s25 + $0x8] sm:$0xff] %vm791_vm6, %v839_v45  ;;  %v841_v4 = vmax.f32 %v836_v29, 0.0 }
 0x205   : > { %844 = vst [vmem:[%s197_s25 + $0x10] sm:$0xff] %v840_v48 }
 0x206   : > { %845 = vst.msk [vmem:[%s197_s25 + $0x18] sm:$0xff] %vm791_vm6, %v841_v4 }
 0x207 PF: > { %s14_s15 = sadd.s32 1, %s1000_s15  }
 0x208   : > { %p11_p4 = scmp.ge.s32.totalorder %s14_s15, 4  }
 0x20a   :  { %13 = sbr.rel (!%p11_p4) target bundleno = 1 (0x1), region = 74 }

// kernel: enc_forward.19
= control target key start
LH: loop header
LB: loop body
LE: loop exit
PB: predicated region body
PF: predicated region fallthrough
CT: control target
= control target key end

     0   :  { %s1639_s18 = smov 0   ;;  %s2158_s0 = inlined_call_operand.vmem [shape: f32[2,18,216], index: 0, kind: input, shape index: {}]   ;;  %s2159_s1 = inlined_call_operand.vmem [shape: f32[9,1,192], index: 1, kind: input, shape index: {}]   ;;  %s2160_s2 = inlined_call_operand.vmem [shape: bf16[192,768], index: 2, kind: input, shape index: {}]   ;;  %s2161_s3 = inlined_call_operand.vmem [shape: f32[1,768], index: 3, kind: input, shape index: {}]   ;;  %s2162_s4 = inlined_call_operand.vmem [shape: f32[2,16,768], index: 4, kind: input, shape index: {}]   ;;  %s2163_s5 = inlined_call_operand.vmem [shape: f32[2,16,768], index: 5, kind: output, shape index: {}]  }
   0x1 LB: > { %s1382_s19 = sadd.s32 4294967295, %s1603_s18   ;;  %p1386_p0 = scmp.ge.s32.totalorder %s1603_s18, 1  ;;  %s1603_s18 = sphi %s1639_s18, %s15_s18  }
   0x2   : > { %p197_p1 = scmp.lt.s32.totalorder %s1603_s18, 3 }
   0x4   : > { %p198_p2 = pnand %p1386_p0, %p197_p1 }
   0x5   : > { %v254_v0 = vlaneseq (!%p198_p2)  ;;  %v1390_v2 = vld [vmem:[%s2159_s1 + $0x2] sm:$0x3] (!%p198_p2)  ;;  %v1391_v3 = vld [vmem:[%s2159_s1 + $0x4] sm:$0x3] (!%p198_p2)  ;;  %s1605_s24 = smov (!%p198_p2), 12   ;;  %s1606_s25 = smov (!%p198_p2), 24  }
   0x6   : > { %201 = sbr.rel (%p198_p2) target bundleno = 567 (0x237), region = 40  ;;  %v1393_v10 = vld [vmem:[%s2159_s1 + $0x8] sm:$0x3] (!%p198_p2)  ;;  %v1394_v11 = vld [vmem:[%s2159_s1 + $0xa] sm:$0x3] (!%p198_p2)  ;;  %p230_p3 = scmp.lt.s32.totalorder (!%p198_p2), %s1382_s19, 1 }
   0x7   : > { %v1647_v1 = vshrl.u32 (!%p198_p2), %v254_v0, 7  ;;  %v1396_v14 = vld [vmem:[%s2159_s1 + $0xe] sm:$0x3] (!%p198_p2)  ;;  %v1397_v17 = vld [vmem:[%s2159_s1 + $0x10] sm:$0x3] (!%p198_p2)  ;;  %vm283_vm0 = vcmask (!%p198_p2), 97280  }
   0x8   : > { %v1489_v22 = vld [vmem:[%s2160_s2 + $0x4] ss:$24 sps:$4 sm:$0xff] (!%p198_p2)   ;;  %v1491_v23 = vld [vmem:[%s2160_s2] ss:$24 sps:$4 sm:$0xff] (!%p198_p2)   ;;  %v1495_v26 = vld [vmem:[%s2160_s2 + $0x34] ss:$24 sps:$4 sm:$0xff] (!%p198_p2)  }
   0x9   : > { %v1656_v4 = vsub.s32 (!%p198_p2), 0, %v1647_v1  ;;  %v1659_v5 = vsub.s32 (!%p198_p2), 1, %v1647_v1  ;;  %v1492_v24 = vld [vmem:[%s2160_s2 + $0xc] ss:$24 sps:$4 sm:$0xff] (!%p198_p2)   ;;  %1150 = vmatprep.subr.bf16.mxu0 (!%p198_p2), %v1489_v22  ;;  %v1494_v25 = vld [vmem:[%s2160_s2 + $0x8] ss:$24 sps:$4 sm:$0xff] (!%p198_p2)  }
   0xa   : > { %1151 = vmatpush1.bf16.msra.mxu0 (!%p198_p2), %v1491_v23  ;;  %1193 = vmatprep.subr.bf16.mxu1 (!%p198_p2), %v1492_v24  ;;  %v1392_v27 = vld [vmem:[%s2159_s1 + $0x6] sm:$0x3] (!%p198_p2)  ;;  %v1497_v29 = vld [vmem:[%s2160_s2 + $0x30] ss:$24 sps:$4 sm:$0xff] (!%p198_p2)   ;;  %v1498_v30 = vld [vmem:[%s2160_s2 + $0x3c] ss:$24 sps:$4 sm:$0xff] (!%p198_p2)  }
   0xb   : > { %v274_v6 = vrot.slane (!%p198_p2), %v1390_v2, %v1656_v4  ;;  %v320_v7 = vrot.slane (!%p198_p2), %v1391_v3, %v1656_v4  ;;  %v278_v8 = vrot.slane (!%p198_p2), %v1390_v2, %v1659_v5  ;;  %v324_v9 = vrot.slane (!%p198_p2), %v1391_v3, %v1659_v5  ;;  %1194 = vmatpush1.bf16.msra.mxu1 (!%p198_p2), %v1494_v25  ;;  %v1500_v34 = vld [vmem:[%s2160_s2 + $0x38] ss:$24 sps:$4 sm:$0xff] (!%p198_p2)   ;;  %v1501_v42 = vld [vmem:[%s2160_s2 + $0x64] ss:$24 sps:$4 sm:$0xff] (!%p198_p2)   ;;  %s1607_s14 = smov (!%p198_p2), 116   ;;  %s1608_s8 = smov (!%p198_p2), 104  }
   0xc   : > { %v410_v12 = vrot.slane (!%p198_p2), %v1393_v10, %v1656_v4  ;;  %v414_v13 = vrot.slane (!%p198_p2), %v1393_v10, %v1659_v5  ;;  %v468_v15 = vrot.slane (!%p198_p2), %v1394_v11, %v1656_v4  ;;  %v472_v16 = vrot.slane (!%p198_p2), %v1394_v11, %v1659_v5  ;;  %1152 = vmatprep.subr.bf16.mxu0 (!%p198_p2), %v1495_v26  ;;  %v1503_v43 = vld [vmem:[%s2160_s2 + $0x60] ss:$24 sps:$4 sm:$0xff] (!%p198_p2)   ;;  %v1504_v44 = vld [vmem:[%s2160_s2 + $0x6c] ss:$24 sps:$4 sm:$0xff] (!%p198_p2)   ;;  %v1509_v63 = vld [vmem:[%s2160_s2 + $0x90] ss:$24 sps:$4 sm:$0xff] (!%p198_p2)  }
   0xd   : > { %279 = vrot.lane.b32.xlu0 %v274_v6, %s1605_s24  ;;  %325 = vrot.lane.b32.xlu1 %v320_v7, %s1606_s25  ;;  %v570_v18 = vrot.slane %v1396_v14, %v1656_v4  ;;  %v574_v19 = vrot.slane %v1396_v14, %v1659_v5  ;;  %v628_v20 = vrot.slane %v1397_v17, %v1656_v4  ;;  %s2165_s19 = smov (!%p230_p3, %s1382_s19), 1  ;;  %v1506_v49 = vld [vmem:[%s2160_s2 + $0x68] ss:$24 sps:$4 sm:$0xff]   ;;  %vm385_vm1 = vcmask 1046528   ;;  %v1507_v59 = vld [vmem:[%s2160_s2 + $0x94] ss:$24 sps:$4 sm:$0xff]  }
   0xe   : > { %v632_v21 = vrot.slane %v1397_v17, %v1659_v5  ;;  %s1475_s9 = smul.u32 48, %s2165_s19  ;;  %v370_v31 = vrot.slane %v1392_v27, %v1659_v5  ;;  %v366_v35 = vrot.slane %v1392_v27, %v1656_v4  ;;  %1153 = vmatpush1.bf16.msra.mxu0 %v1497_v29  ;;  %1195 = vmatprep.subr.bf16.mxu1 %v1498_v30  ;;  %v1510_v0 = vld [vmem:[%s2160_s2 + $0x9c] ss:$24 sps:$4 sm:$0xff]   ;;  %v1512_v3 = vld [vmem:[%s2160_s2 + $0x98] ss:$24 sps:$4 sm:$0xff]   ;;  %vm329_vm2 = vcmask 195584  }
   0xf   : > { %1196 = vmatpush1.bf16.msra.mxu1 %v1500_v34  ;;  %1154 = vmatprep.subr.bf16.mxu0 %v1501_v42  ;;  %v1516_v17 = vld [vmem:[%s2160_s2 + $0xcc] ss:$24 sps:$4 sm:$0xff]   ;;  %vm545_vm3 = vcmask 1045504   ;;  %vm303_vm4 = vcmask 949248   ;;  %vm349_vm5 = vcmask 850944   ;;  %vm1146_vm6 = vcmask 523264  }
  0x10   : > { %s1704_s20 = scalar_lea.vmem %s2158_s0, %s1475_s9  ;;  %1197 = vmatprep.subr.bf16.mxu1 %v1504_v44 }
  0x11   : > { %281 = vrot.lane.b32.xlu0 %v278_v8, %s1605_s24  ;;  %327 = vrot.lane.b32.xlu1 %v324_v9, %s1606_s25  ;;  %v1716_v28 = vld [vmem:[%s1704_s20] sm:$0xff]  ;;  %v1726_v32 = vld [vmem:[%s1704_s20 + $0x8] sm:$0xff] }
  0x12   : > { %v1729_v33 = vld [vmem:[%s1704_s20 + $0x18] sm:$0xff]  ;;  %v374_v38 = vmul.f32 %v370_v31, %v1726_v32  ;;  %v1742_v40 = vld [vmem:[%s1704_s20 + $0x10] sm:$0xff]  ;;  %v373_v47 = vmul.f32 %v366_v35, %v1716_v28  ;;  %v1758_v48 = vld [vmem:[%s1704_s20 + $0x28] sm:$0x3]  ;;  %1155 = vmatpush1.bf16.msra.mxu0 %v1503_v43 }
  0x13   : > { %v1739_v39 = vmul.f32 %v370_v31, %v1729_v33  ;;  %v375_v45 = vmul.f32 %v366_v35, %v1742_v40  ;;  %v1765_v53 = vld [vmem:[%s1704_s20 + $0x20] sm:$0x3]  ;;  %v378_v56 = vmul.f32 %v370_v31, %v1758_v48  ;;  %1198 = vmatpush1.bf16.msra.mxu1 %v1506_v49  ;;  %1156 = vmatprep.subr.bf16.mxu0 %v1507_v59  ;;  %v1519_v31 = vld [vmem:[%s2160_s2 + $0xf4] ss:$24 sps:$4 sm:$0xff]  }
  0x14   : > { %v389_v46 = vrot.slane %v374_v38, 1  ;;  %v386_v55 = vrot.slane %v373_v47, 1  ;;  %v377_v61 = vmul.f32 %v366_v35, %v1765_v53  ;;  %1199 = vmatprep.subr.bf16.mxu1 %v1510_v0  ;;  %v1521_v35 = vld [vmem:[%s2160_s2 + $0xf0] ss:$24 sps:$4 sm:$0xff]   ;;  %v1525_v47 = vld [vmem:[%s2160_s2 + $0x124] ss:$24 sps:$4 sm:$0xff]  }
  0x15   : > { %415 = vrot.lane.b32.xlu0 %v410_v12, %s1605_s24  ;;  %417 = vrot.lane.b32.xlu1 %v414_v13, %s1605_s24  ;;  %v390_v50 = vrot.slane %v1739_v39, 1  ;;  %v387_v54 = vrot.slane %v375_v45, 1  ;;  %v394_v8 = vrot.slane %v378_v56, 1  ;;  %v1513_v13 = vld [vmem:[%s2160_s2 + $0xc4] ss:$24 sps:$4 sm:$0xff]  }
  0x16   : > { %v392_v7 = vrot.slane %v377_v61, 1  ;;  %1157 = vmatpush1.bf16.msra.mxu0 %v1509_v63  ;;  %v1524_v39 = vld [vmem:[%s2160_s2 + $0xf8] ss:$24 sps:$4 sm:$0xff]   ;;  %v1395_v56 = vld [vmem:[%s2159_s1 + $0xc] sm:$0x3] }
  0x17   : > { %v1774_v60 = vsel %vm385_vm1, %v389_v46, %v390_v50  ;;  %v1791_v6 = vsel %vm385_vm1, %v386_v55, %v387_v54  ;;  %1200 = vmatpush1.bf16.msra.mxu1 %v1512_v3  ;;  %1158 = vmatprep.subr.bf16.mxu0 %v1513_v13  ;;  %v1528_v55 = vld [vmem:[%s2160_s2 + $0x12c] ss:$24 sps:$4 sm:$0xff]   ;;  %v530_v3 = vrot.slane %v1395_v56, %v1659_v5 }
  0x18   : > { %1201 = vmatprep.subr.bf16.mxu1 %v1516_v17 }
  0x19   : > { %473 = vrot.lane.b32.xlu0 %v468_v15, %s1606_s25  ;;  %475 = vrot.lane.b32.xlu1 %v472_v16, %s1606_s25  ;;  %v1515_v16 = vld [vmem:[%s2160_s2 + $0xc0] ss:$24 sps:$4 sm:$0xff]  }
  0x1a   : > { %1159 = vmatpush1.bf16.msra.mxu0 %v1515_v16 }
  0x1b   : > { %1160 = vmatprep.subr.bf16.mxu0 %v1519_v31 }
  0x1d   : > { %575 = vrot.lane.b32.xlu0 %v570_v18, %s1605_s24  ;;  %577 = vrot.lane.b32.xlu1 %v574_v19, %s1605_s24  ;;  %v1808_v18 = vsel %vm385_vm1, %v387_v54, %v392_v7  ;;  %v1527_v54 = vld [vmem:[%s2160_s2 + $0x120] ss:$24 sps:$4 sm:$0xff]  }
  0x1e   : > { %1161 = vmatpush1.bf16.msra.mxu0 %v1521_v35 }
  0x1f   : > { %1162 = vmatprep.subr.bf16.mxu0 %v1525_v47 }
  0x21   : > { %633 = vrot.lane.b32.xlu0 %v628_v20, %s1606_s25  ;;  %635 = vrot.lane.b32.xlu1 %v632_v21, %s1606_s25  ;;  %v1518_v20 = vld [vmem:[%s2160_s2 + $0xc8] ss:$24 sps:$4 sm:$0xff]   ;;  %v1817_v21 = vsel %vm385_vm1, %v390_v50, %v394_v8 }
  0x22   : > { %1202 = vmatpush1.bf16.msra.mxu1 %v1518_v20  ;;  %1163 = vmatpush1.bf16.msra.mxu0 %v1527_v54 }
  0x7f   : > { %v280_v36 = vpop.permute.xlu0 %279  ;;  %v1735_v37 = vpop.permute.xlu1 %325 }
  0x80   : > { %v287_v41 = vmul.f32 %v280_v36, %v1716_v28  ;;  %v289_v57 = vmul.f32 %v280_v36, %v1742_v40  ;;  %v333_v2 = vmul.f32 %v1735_v37, %v1716_v28  ;;  %v335_v26 = vmul.f32 %v1735_v37, %v1742_v40 }
  0x82   : > { %295 = vrot.lane.b32.xlu0 %v287_v41, %s1607_s14 }
  0x83   : > { %v282_v51 = vpop.permute.xlu0 %281  ;;  %v328_v52 = vpop.permute.xlu1 %327 }
  0x84   : > { %v284_v58 = vsel %vm283_vm0, %v280_v36, %v282_v51  ;;  %v330_v19 = vsel %vm329_vm2, %v1735_v37, %v328_v52  ;;  %v1522_v36 = vld [vmem:[%s2160_s2 + $0xfc] ss:$24 sps:$4 sm:$0xff]  }
  0x85   : > { %v288_v62 = vmul.f32 %v284_v58, %v1726_v32  ;;  %v290_v14 = vmul.f32 %v284_v58, %v1729_v33  ;;  %v334_v34 = vmul.f32 %v330_v19, %v1726_v32  ;;  %1203 = vmatprep.subr.bf16.mxu1 %v1522_v36  ;;  %v336_v49 = vmul.f32 %v330_v19, %v1729_v33 }
  0x86   : > { %299 = vrot.lane.b32.xlu0 %v289_v57, %s1607_s14  ;;  %1204 = vmatpush1.bf16.msra.mxu1 %v1524_v39  ;;  %v1530_v57 = vld [vmem:[%s2160_s2 + $0x128] ss:$24 sps:$4 sm:$0xff]  }
  0x87   : > { %297 = vrot.lane.b32.xlu1 %v288_v62, %s1607_s14  ;;  %v416_v9 = vpop.permute.xlu0 %415  ;;  %v418_v10 = vpop.permute.xlu1 %417  ;;  %1205 = vmatprep.subr.bf16.mxu1 %v1528_v55  ;;  %v1545_v55 = vld [vmem:[%s2160_s2 + $0x1b0] ss:$24 sps:$4 sm:$0xff]  }
  0x88   : > { %v422_v11 = vmul.f32 %v416_v9, %v1716_v28  ;;  %v424_v12 = vmul.f32 %v416_v9, %v1742_v40  ;;  %v419_v15 = vsel %vm283_vm0, %v416_v9, %v418_v10  ;;  %v426_v22 = vmul.f32 %v416_v9, %v1765_v53 }
  0x89   : > { %v423_v27 = vmul.f32 %v419_v15, %v1726_v32  ;;  %v425_v29 = vmul.f32 %v419_v15, %v1729_v33  ;;  %v427_v37 = vmul.f32 %v419_v15, %v1758_v48  ;;  %v1536_v15 = vld [vmem:[%s2160_s2 + $0x158] ss:$24 sps:$4 sm:$0xff]  }
  0x8a   : > { %341 = vrot.lane.b32.xlu0 %v333_v2, %s1608_s8  ;;  %v434_v23 = vrot.slane %v422_v11, 1  ;;  %v435_v24 = vrot.slane %v424_v12, 1  ;;  %v440_v44 = vrot.slane %v426_v22, 1  ;;  %v1531_v2 = vld [vmem:[%s2160_s2 + $0x154] ss:$24 sps:$4 sm:$0xff]   ;;  %1206 = vmatpush1.bf16.msra.mxu1 %v1530_v57  ;;  %v526_v12 = vrot.slane %v1395_v56, %v1656_v4 }
  0x8b   : > { %301 = vrot.lane.b32.xlu1 %v290_v14, %s1607_s14  ;;  %v476_v25 = vpop.permute.xlu1 %475  ;;  %v474_v30 = vpop.permute.xlu0 %473  ;;  %v437_v45 = vrot.slane %v423_v27, 1  ;;  %v438_v46 = vrot.slane %v425_v29, 1  ;;  %v442_v58 = vrot.slane %v427_v37, 1  ;;  %v1533_v11 = vld [vmem:[%s2160_s2 + $0x150] ss:$24 sps:$4 sm:$0xff]   ;;  %1164 = vmatprep.subr.bf16.mxu0 %v1531_v2 }
  0x8c   : > { %v477_v38 = vsel %vm329_vm2, %v474_v30, %v476_v25  ;;  %v436_v41 = vsel %vm385_vm1, %v434_v23, %v435_v24  ;;  %v480_v42 = vmul.f32 %v474_v30, %v1716_v28  ;;  %v482_v43 = vmul.f32 %v474_v30, %v1742_v40  ;;  %v1534_v14 = vld [vmem:[%s2160_s2 + $0x15c] ss:$24 sps:$4 sm:$0xff]   ;;  %1165 = vmatpush1.bf16.msra.mxu0 %v1533_v11  ;;  %v1540_v37 = vld [vmem:[%s2160_s2 + $0x18c] ss:$24 sps:$4 sm:$0xff]  }
  0x8d   : > { %v484_v50 = vmul.f32 %v474_v30, %v1765_v53  ;;  %v481_v51 = vmul.f32 %v477_v38, %v1726_v32  ;;  %v1852_v52 = vmul.f32 %v477_v38, %v1729_v33  ;;  %v441_v59 = vsel %vm385_vm1, %v435_v24, %v440_v44  ;;  %1207 = vmatprep.subr.bf16.mxu1 %v1534_v14  ;;  %v1537_v24 = vld [vmem:[%s2160_s2 + $0x184] ss:$24 sps:$4 sm:$0xff]   ;;  %v1539_v30 = vld [vmem:[%s2160_s2 + $0x180] ss:$24 sps:$4 sm:$0xff]  }
  0x8e   : > { %345 = vrot.lane.b32.xlu0 %v335_v26, %s1608_s8  ;;  %v492_v61 = vrot.slane %v480_v42, 1  ;;  %v493_v62 = vrot.slane %v482_v43, 1  ;;  %v439_v0 = vsel %vm385_vm1, %v437_v45, %v438_v46  ;;  %v443_v17 = vsel %vm385_vm1, %v438_v46, %v442_v58  ;;  %1208 = vmatpush1.bf16.msra.mxu1 %v1536_v15  ;;  %v1546_v56 = vld [vmem:[%s2160_s2 + $0x1bc] ss:$24 sps:$4 sm:$0xff]   ;;  %v1551_v14 = vld [vmem:[%s2160_s2 + $0x1e0] ss:$24 sps:$4 sm:$0xff]  }
  0x8f   : > { %343 = vrot.lane.b32.xlu1 %v334_v34, %s1608_s8  ;;  %v576_v63 = vpop.permute.xlu0 %575  ;;  %v495_v7 = vrot.slane %v481_v51, 1  ;;  %v496_v8 = vrot.slane %v1852_v52, 1  ;;  %v498_v9 = vrot.slane %v484_v50, 1  ;;  %v578_v10 = vpop.permute.xlu1 %577  ;;  %v1894_v20 = vmul.f32 %v477_v38, %v1758_v48  ;;  %1166 = vmatprep.subr.bf16.mxu0 %v1537_v24  ;;  %v1542_v38 = vld [vmem:[%s2160_s2 + $0x188] ss:$24 sps:$4 sm:$0xff]  }
  0x90   : > { %v582_v13 = vmul.f32 %v576_v63, %v1716_v28  ;;  %v494_v16 = vsel %vm385_vm1, %v492_v61, %v493_v62  ;;  %v1891_v19 = vmul.f32 %v576_v63, %v1742_v40  ;;  %v579_v22 = vsel %vm283_vm0, %v576_v63, %v578_v10  ;;  %1167 = vmatpush1.bf16.msra.mxu0 %v1539_v30  ;;  %v1543_v50 = vld [vmem:[%s2160_s2 + $0x1b4] ss:$24 sps:$4 sm:$0xff]   ;;  %v1560_v30 = vld [vmem:[%s2160_s2 + $0x218] ss:$24 sps:$4 sm:$0xff]  }
  0x91   : > { %v534_v23 = vmul.f32 %v530_v3, %v1726_v32  ;;  %v1902_v25 = vmul.f32 %v576_v63, %v1765_v53  ;;  %v499_v26 = vsel %vm385_vm1, %v493_v62, %v498_v9  ;;  %v497_v27 = vsel %vm385_vm1, %v495_v7, %v496_v8  ;;  %1209 = vmatprep.subr.bf16.mxu1 %v1540_v37  ;;  %v1548_v63 = vld [vmem:[%s2160_s2 + $0x1b8] ss:$24 sps:$4 sm:$0xff]   ;;  %v1552_v15 = vld [vmem:[%s2160_s2 + $0x1ec] ss:$24 sps:$4 sm:$0xff]  }
  0x92   : > { %444 = vrot.lane.b32.xlu0 %v436_v41, %s1607_s14  ;;  %v535_v29 = vmul.f32 %v526_v12, %v1742_v40  ;;  %v594_v31 = vrot.slane %v582_v13, 2  ;;  %v536_v34 = vmul.f32 %v530_v3, %v1729_v33  ;;  %v533_v36 = vmul.f32 %v526_v12, %v1716_v28  ;;  %1210 = vmatpush1.bf16.msra.mxu1 %v1542_v38  ;;  %v1563_v37 = vld [vmem:[%s2160_s2 + $0x14] ss:$24 sps:$4 sm:$0xff]  }
  0x93   : > { %347 = vrot.lane.b32.xlu1 %v336_v49, %s1608_s8  ;;  %v549_v35 = vrot.slane %v534_v23, 2  ;;  %v583_v39 = vmul.f32 %v579_v22, %v1726_v32  ;;  %v595_v41 = vrot.slane %v1891_v19, 2  ;;  %v634_v42 = vpop.permute.xlu0 %633  ;;  %v537_v44 = vmul.f32 %v526_v12, %v1765_v53  ;;  %v636_v58 = vpop.permute.xlu1 %635  ;;  %1168 = vmatprep.subr.bf16.mxu0 %v1543_v50  ;;  %v1549_v12 = vld [vmem:[%s2160_s2 + $0x1e4] ss:$24 sps:$4 sm:$0xff]   ;;  %v1554_v19 = vld [vmem:[%s2160_s2 + $0x1e8] ss:$24 sps:$4 sm:$0xff]  }
  0x94   : > { %v547_v43 = vrot.slane %v535_v29, 2  ;;  %v1926_v45 = vmul.f32 %v579_v22, %v1729_v33  ;;  %v550_v46 = vrot.slane %v536_v34, 2  ;;  %v546_v47 = vrot.slane %v533_v36, 2  ;;  %1211 = vmatprep.subr.bf16.mxu1 %v1546_v56  ;;  %1169 = vmatpush1.bf16.msra.mxu0 %v1545_v55 }
  0x95   : > { %v538_v49 = vmul.f32 %v530_v3, %v1758_v48  ;;  %v500_v51 = vrot.slane %v1894_v20, 1  ;;  %v552_v54 = vrot.slane %v537_v44, 2  ;;  %v640_v57 = vmul.f32 %v634_v42, %v1716_v28  ;;  %1170 = vmatprep.subr.bf16.mxu0 %v1549_v12 }
  0x96   : > { %448 = vrot.lane.b32.xlu0 %v441_v59, %s1607_s14  ;;  %v1942_v59 = vsel %vm545_vm3, %v549_v35, %v550_v46  ;;  %v1945_v61 = vsel %vm545_vm3, %v546_v47, %v547_v43  ;;  %v642_v2 = vmul.f32 %v634_v42, %v1742_v40  ;;  %v600_v3 = vrot.slane %v1902_v25, 2  ;;  %1212 = vmatpush1.bf16.msra.mxu1 %v1548_v63 }
  0x97   : > { %446 = vrot.lane.b32.xlu1 %v439_v0, %s1607_s14  ;;  %v554_v62 = vrot.slane %v538_v49, 2  ;;  %v596_v0 = vsel %vm545_vm3, %v594_v31, %v595_v41  ;;  %v1955_v7 = vsel %vm545_vm3, %v547_v43, %v552_v54  ;;  %v597_v9 = vrot.slane %v583_v39, 2  ;;  %1213 = vmatprep.subr.bf16.mxu1 %v1552_v15 }
  0x98   : > { %v598_v10 = vrot.slane %v1926_v45, 2  ;;  %v637_v13 = vsel %vm329_vm2, %v634_v42, %v636_v58  ;;  %v644_v20 = vmul.f32 %v634_v42, %v1765_v53  ;;  %v601_v23 = vsel %vm545_vm3, %v595_v41, %v600_v3  ;;  %1171 = vmatpush1.bf16.msra.mxu0 %v1551_v14  ;;  %v1557_v53 = vld [vmem:[%s2160_s2 + $0x210] ss:$24 sps:$4 sm:$0xff]   ;;  %v252_v45 = vld [vmem:[%s2159_s1] sm:$0x3] }
  0x99   : > { %v1959_v11 = vsel %vm545_vm3, %v550_v46, %v554_v62  ;;  %v652_v24 = vrot.slane %v640_v57, 2  ;;  %v653_v25 = vrot.slane %v642_v2, 2  ;;  %v641_v52 = vmul.f32 %v637_v13, %v1726_v32 }
  0x9a   : > { %502 = vrot.lane.b32.xlu0 %v494_v16, %s1608_s8  ;;  %v587_v16 = vmul.f32 %v579_v22, %v1758_v48  ;;  %v599_v22 = vsel %vm545_vm3, %v597_v9, %v598_v10  ;;  %1214 = vmatpush1.bf16.msra.mxu1 %v1554_v19  ;;  %v658_v34 = vrot.slane %v644_v20, 2  ;;  %v645_v38 = vmul.f32 %v637_v13, %v1758_v48 }
  0x9b   : > { %450 = vrot.lane.b32.xlu1 %v443_v17, %s1607_s14  ;;  %v501_v17 = vsel %vm385_vm1, %v496_v8, %v500_v51  ;;  %v643_v8 = vmul.f32 %v637_v13, %v1729_v33  ;;  %v654_v31 = vsel %vm545_vm3, %v652_v24, %v653_v25  ;;  %v655_v35 = vrot.slane %v641_v52, 2 }
  0x9c   : > { %v602_v29 = vrot.slane %v587_v16, 2  ;;  %v659_v41 = vsel %vm545_vm3, %v653_v25, %v658_v34  ;;  %v660_v43 = vrot.slane %v645_v38, 2  ;;  %v261_v47 = vrot.slane %v252_v45, %v1659_v5 }
  0x9d   : > { %v656_v36 = vrot.slane %v643_v8, 2  ;;  %v257_v49 = vrot.slane %v252_v45, %v1656_v4 }
  0x9e   : > { %506 = vrot.lane.b32.xlu0 %v499_v26, %s1608_s8  ;;  %v1555_v26 = vld [vmem:[%s2160_s2 + $0x214] ss:$24 sps:$4 sm:$0xff]   ;;  %v603_v39 = vsel %vm545_vm3, %v598_v10, %v602_v29  ;;  %v265_v51 = vmul.f32 %v261_v47, %v1726_v32  ;;  %v267_v62 = vmul.f32 %v261_v47, %v1729_v33 }
  0x9f   : > { %504 = vrot.lane.b32.xlu1 %v497_v27, %s1608_s8  ;;  %v1558_v27 = vld [vmem:[%s2160_s2 + $0x21c] ss:$24 sps:$4 sm:$0xff]   ;;  %1172 = vmatprep.subr.bf16.mxu0 %v1555_v26  ;;  %v657_v42 = vsel %vm545_vm3, %v655_v35, %v656_v36  ;;  %v661_v44 = vsel %vm545_vm3, %v656_v36, %v660_v43  ;;  %v264_v55 = vmul.f32 %v257_v49, %v1716_v28 }
  0xa0   : > { %1215 = vmatprep.subr.bf16.mxu1 %v1558_v27  ;;  %1173 = vmatpush1.bf16.msra.mxu0 %v1557_v53  ;;  %v266_v2 = vmul.f32 %v257_v49, %v1742_v40 }
  0xa1   : > { %1216 = vmatpush1.bf16.msra.mxu1 %v1560_v30  ;;  %1236 = vmatprep.subr.bf16.mxu0 %v1563_v37 }
  0xa2   : > { %604 = vrot.lane.b32.xlu0 %v596_v0, %s1607_s14 }
  0xa3   : > { %508 = vrot.lane.b32.xlu1 %v501_v17, %s1608_s8 }
  0xa6   : > { %608 = vrot.lane.b32.xlu0 %v601_v23, %s1607_s14 }
  0xa7   : > { %606 = vrot.lane.b32.xlu1 %v599_v22, %s1607_s14 }
  0xaa   : > { %662 = vrot.lane.b32.xlu0 %v654_v31, %s1608_s8 }
  0xab   : > { %610 = vrot.lane.b32.xlu1 %v603_v39, %s1607_s14  ;;  %s1476_s14 = smul.u32 96, %s2165_s19 }
  0xad   : > { %s2120_s13 = scalar_lea.vmem %s2162_s4, %s1476_s14  ;;  %s2131_s16 = scalar_lea.vmem %s2163_s5, %s1476_s14 }
  0xae   : > { %666 = vrot.lane.b32.xlu0 %v659_v41, %s1608_s8 }
  0xaf   : > { %664 = vrot.lane.b32.xlu1 %v657_v42, %s1608_s8 }
  0xb3   : > { %668 = vrot.lane.b32.xlu1 %v661_v44, %s1608_s8 }
  0xf4   : > { %v296_v48 = vpop.permute.xlu0 %295 }
  0xf8   : > { %v300_v46 = vpop.permute.xlu0 %299 }
  0xf9   : > { %v298_v50 = vpop.permute.xlu1 %297 }
  0xfa   : > { %v304_v57 = vsel %vm303_vm4, %v296_v48, %v298_v50  ;;  %v311_v58 = vadd.f32 %v298_v50, %v265_v51 }
  0xfb   : > { %v310_v0 = vadd.f32 %v304_v57, %v264_v55 }
  0xfc   : > { %v342_v54 = vpop.permute.xlu0 %341 }
  0xfd   : > { %v302_v56 = vpop.permute.xlu1 %301 }
  0xfe   : > { %v305_v9 = vsel %vm303_vm4, %v300_v46, %v302_v56  ;;  %v313_v13 = vadd.f32 %v302_v56, %v267_v62 }
  0xff   : > { %v312_v15 = vadd.f32 %v305_v9, %v266_v2  ;;  %v1561_v2 = vld [vmem:[%s2160_s2 + $0x10] ss:$24 sps:$4 sm:$0xff]   ;;  %v1566_v9 = vld [vmem:[%s2160_s2 + $0x44] ss:$24 sps:$4 sm:$0xff]  }
 0x100   : > { %v346_v63 = vpop.permute.xlu0 %345 }
 0x101   : > { %v344_v3 = vpop.permute.xlu1 %343 }
 0x102   : > { %v350_v10 = vsel %vm349_vm5, %v342_v54, %v344_v3  ;;  %v357_v32 = vadd.f32 %v344_v3, %v311_v58 }
 0x103   : > { %v356_v12 = vadd.f32 %v350_v10, %v310_v0  ;;  %v1564_v10 = vld [vmem:[%s2160_s2 + $0x40] ss:$24 sps:$4 sm:$0xff]  }
 0x104   : > { %v445_v28 = vpop.permute.xlu0 %444  ;;  %v401_v14 = vadd.f32 %v1774_v60, %v357_v32  ;;  %v1569_v32 = vld [vmem:[%s2160_s2 + $0x74] ss:$24 sps:$4 sm:$0xff]  }
 0x105   : > { %v348_v16 = vpop.permute.xlu1 %347  ;;  %v400_v17 = vadd.f32 %v1791_v6, %v356_v12  ;;  %v1567_v12 = vld [vmem:[%s2160_s2 + $0x70] ss:$24 sps:$4 sm:$0xff]  }
 0x106   : > { %v351_v33 = vsel %vm349_vm5, %v346_v63, %v348_v16  ;;  %v359_v19 = vadd.f32 %v348_v16, %v313_v13  ;;  %v1572_v13 = vld [vmem:[%s2160_s2 + $0xa4] ss:$24 sps:$4 sm:$0xff]  }
 0x107   : > { %v358_v20 = vadd.f32 %v351_v33, %v312_v15  ;;  %v1573_v15 = vld [vmem:[%s2160_s2 + $0xd0] ss:$24 sps:$4 sm:$0xff]   ;;  %v1578_v16 = vld [vmem:[%s2160_s2 + $0x104] ss:$24 sps:$4 sm:$0xff]   ;;  %v1581_v33 = vld [vmem:[%s2160_s2 + $0x134] ss:$24 sps:$4 sm:$0xff]  }
 0x108   : > { %v449_v40 = vpop.permute.xlu0 %448  ;;  %v403_v23 = vadd.f32 %v1817_v21, %v359_v19  ;;  %v1579_v19 = vld [vmem:[%s2160_s2 + $0x130] ss:$24 sps:$4 sm:$0xff]  }
 0x109   : > { %v447_v24 = vpop.permute.xlu1 %446  ;;  %v402_v25 = vadd.f32 %v1808_v18, %v358_v20  ;;  %v1584_v20 = vld [vmem:[%s2160_s2 + $0x164] ss:$24 sps:$4 sm:$0xff]  }
 0x10a   : > { %v452_v8 = vsel %vm303_vm4, %v445_v28, %v447_v24  ;;  %v459_v26 = vadd.f32 %v447_v24, %v401_v14  ;;  %v1570_v28 = vld [vmem:[%s2160_s2 + $0xa0] ss:$24 sps:$4 sm:$0xff]   ;;  %v1575_v14 = vld [vmem:[%s2160_s2 + $0xd4] ss:$24 sps:$4 sm:$0xff]   ;;  %v1585_v24 = vld [vmem:[%s2160_s2 + $0x190] ss:$24 sps:$4 sm:$0xff]  }
 0x10b   : > { %v458_v53 = vadd.f32 %v452_v8, %v400_v17  ;;  %v1576_v17 = vld [vmem:[%s2160_s2 + $0x100] ss:$24 sps:$4 sm:$0xff]   ;;  %v1591_v8 = vld [vmem:[%s2160_s2 + $0x1f0] ss:$24 sps:$4 sm:$0xff]  }
 0x10c   : > { %v503_v22 = vpop.permute.xlu0 %502 }
 0x10d   : > { %v451_v52 = vpop.permute.xlu1 %450 }
 0x10e   : > { %v453_v6 = vsel %vm303_vm4, %v449_v40, %v451_v52  ;;  %v461_v34 = vadd.f32 %v451_v52, %v403_v23  ;;  %v1582_v40 = vld [vmem:[%s2160_s2 + $0x160] ss:$24 sps:$4 sm:$0xff]   ;;  %v1587_v23 = vld [vmem:[%s2160_s2 + $0x194] ss:$24 sps:$4 sm:$0xff]  }
 0x10f   : > { %v460_v36 = vadd.f32 %v453_v6, %v402_v25  ;;  %v1590_v25 = vld [vmem:[%s2160_s2 + $0x1c4] ss:$24 sps:$4 sm:$0xff]   ;;  %v1593_v52 = vld [vmem:[%s2160_s2 + $0x1f4] ss:$24 sps:$4 sm:$0xff]   ;;  %v770_v6 = vsub.s32 3, %v1647_v1 }
 0x110   : > { %v507_v60 = vpop.permute.xlu0 %506 }
 0x111   : > { %v505_v27 = vpop.permute.xlu1 %504 }
 0x112   : > { %v510_v29 = vsel %vm349_vm5, %v503_v22, %v505_v27  ;;  %v517_v30 = vadd.f32 %v505_v27, %v459_v26  ;;  %v1588_v22 = vld [vmem:[%s2160_s2 + $0x1c0] ss:$24 sps:$4 sm:$0xff]   ;;  %v1596_v26 = vld [vmem:[%s2160_s2 + $0x224] ss:$24 sps:$4 sm:$0xff]  }
 0x113   : > { %v516_v31 = vadd.f32 %v510_v29, %v458_v53  ;;  %v766_v53 = vsub.s32 2, %v1647_v1  ;;  %v754_v27 = vld [vmem:[%s2161_s3] sm:$0x3f] }
 0x114   : > { %v605_v35 = vpop.permute.xlu0 %604  ;;  %v561_v21 = vadd.f32 %v1942_v59, %v517_v30  ;;  %v759_v29 = vrot.slane %v754_v27, %v1656_v4 }
 0x115   : > { %v509_v18 = vpop.permute.xlu1 %508  ;;  %v560_v37 = vadd.f32 %v1945_v61, %v516_v31  ;;  %v767_v30 = vrot.slane %v754_v27, %v766_v53  ;;  %v763_v31 = vrot.slane %v754_v27, %v1659_v5 }
 0x116   : > { %v511_v38 = vsel %vm349_vm5, %v507_v60, %v509_v18  ;;  %v519_v39 = vadd.f32 %v509_v18, %v461_v34  ;;  %v1594_v60 = vld [vmem:[%s2160_s2 + $0x220] ss:$24 sps:$4 sm:$0xff]   ;;  %v771_v34 = vrot.slane %v754_v27, %v770_v6  ;;  %v1281_v18 = vld [vmem:[%s2120_s13 + $0x10] sm:$0xff] }
 0x117   : > { %v518_v41 = vadd.f32 %v511_v38, %v460_v36 }
 0x118   : > { %v563_v42 = vadd.f32 %v1959_v11, %v519_v39  ;;  %v609_v43 = vpop.permute.xlu0 %608 }
 0x119   : > { %v607_v44 = vpop.permute.xlu1 %606  ;;  %v562_v48 = vadd.f32 %v1955_v7, %v518_v41  ;;  %v1280_v41 = vld [vmem:[%s2120_s13 + $0x8] sm:$0xff] }
 0x11a   : > { %v612_v49 = vsel %vm303_vm4, %v605_v35, %v607_v44  ;;  %v619_v50 = vadd.f32 %v607_v44, %v561_v21  ;;  %v1279_v21 = vld [vmem:[%s2120_s13] sm:$0xff] }
 0x11b   : > { %v618_v54 = vadd.f32 %v612_v49, %v560_v37 }
 0x11c   : > { %v663_v46 = vpop.permute.xlu0 %662 }
 0x11d   : > { %v611_v45 = vpop.permute.xlu1 %610 }
 0x11e   : > { %v613_v59 = vsel %vm303_vm4, %v609_v43, %v611_v45  ;;  %v621_v51 = vadd.f32 %v611_v45, %v563_v42  ;;  %v1282_v43 = vld [vmem:[%s2120_s13 + $0x18] sm:$0xff] }
 0x11f   : > { %v620_v55 = vadd.f32 %v613_v59, %v562_v48  ;;  %v1285_v48 = vld [vmem:[%s2120_s13 + $0x30] sm:$0xff] }
 0x120   : > { %v667_v56 = vpop.permute.xlu0 %666 }
 0x121   : > { %v665_v47 = vpop.permute.xlu1 %664 }
 0x122   : > { %v670_v61 = vsel %vm349_vm5, %v663_v46, %v665_v47  ;;  %v677_v11 = vadd.f32 %v665_v47, %v619_v50  ;;  %v1287_v46 = vld [vmem:[%s2120_s13 + $0x40] sm:$0xff] }
 0x123   : > { %v676_v7 = vadd.f32 %v670_v61, %v618_v54  ;;  %v1286_v61 = vld [vmem:[%s2120_s13 + $0x38] sm:$0xff] }
 0x125   : > { %v669_v57 = vpop.permute.xlu1 %668 }
 0x126   : > { %v671_v58 = vsel %vm349_vm5, %v667_v56, %v669_v57  ;;  %v679_v62 = vadd.f32 %v669_v57, %v621_v51 }
 0x127   : > { %v678_v63 = vadd.f32 %v671_v58, %v620_v55  ;;  %v1288_v55 = vld [vmem:[%s2120_s13 + $0x48] sm:$0xff] }
 0x128   : > { %v681_v0 = vpack.c.bf16 %v679_v62, %v677_v11 }
 0x129   : > { %v680_v3 = vpack.c.bf16 %v678_v63, %v676_v7 }
 0x12a   : > { %1470 = vmatprep.mubr.msk.bf16.mxu0 %vm1146_vm6, %v681_v0  ;;  %1471 = vmatprep.mubr.msk.bf16.mxu1 %vm1146_vm6, %v681_v0 }
 0x12b   : > { %1183 = vmatmul.mubr.bf16.vlgmr.msra.gmra.mrb[0].mxu0 %v680_v3  ;;  %1226 = vmatmul.mubr.bf16.vlgmr.msra.gmra.mrb[0].mxu1 %v680_v3 }
 0x12c   : > { %1237 = vmatpush1.bf16.msra.mxu0 %v1561_v2  ;;  %1472 = vmatprep.mubr.msk.bf16.mxu0 %vm1146_vm6, %v681_v0  ;;  %v774_v2 = vsub.s32 4, %v1647_v1 }
 0x12d   : > { %1238 = vmatprep.subr.bf16.mxu0 %v1566_v9 }
 0x12e   : > { %v775_v9 = vrot.slane %v754_v27, %v774_v2 }
 0x130   : > { %1239 = vmatpush1.bf16.msra.mxu0 %v1564_v10 }
 0x131   : > { %1240 = vmatprep.subr.bf16.mxu0 %v1569_v32 }
 0x134   : > { %1241 = vmatpush1.bf16.msra.mxu0 %v1567_v12  ;;  %v1283_v12 = vld [vmem:[%s2120_s13 + $0x20] sm:$0xff] }
 0x135   : > { %1242 = vmatprep.subr.bf16.mxu0 %v1572_v13 }
 0x138   : > { %1243 = vmatpush1.bf16.msra.mxu0 %v1570_v28 }
 0x139   : > { %1244 = vmatprep.subr.bf16.mxu0 %v1575_v14  ;;  %v1284_v14 = vld [vmem:[%s2120_s13 + $0x28] sm:$0xff] }
 0x13c   : > { %1245 = vmatpush1.bf16.msra.mxu0 %v1573_v15 }
 0x13d   : > { %1246 = vmatprep.subr.bf16.mxu0 %v1578_v16 }
 0x140   : > { %1247 = vmatpush1.bf16.msra.mxu0 %v1576_v17  ;;  %v1289_v17 = vld [vmem:[%s2120_s13 + $0x50] sm:$0xff] }
 0x141   : > { %1248 = vmatprep.subr.bf16.mxu0 %v1581_v33 }
 0x144   : > { %1249 = vmatpush1.bf16.msra.mxu0 %v1579_v19 }
 0x145   : > { %1250 = vmatprep.subr.bf16.mxu0 %v1584_v20 }
 0x148   : > { %1251 = vmatpush1.bf16.msra.mxu0 %v1582_v40  ;;  %v1290_v40 = vld [vmem:[%s2120_s13 + $0x58] sm:$0xff] }
 0x149   : > { %1252 = vmatprep.subr.bf16.mxu0 %v1587_v23 }
 0x14c   : > { %1253 = vmatpush1.bf16.msra.mxu0 %v1585_v24 }
 0x14d   : > { %1254 = vmatprep.subr.bf16.mxu0 %v1590_v25 }
 0x150   : > { %1255 = vmatpush1.bf16.msra.mxu0 %v1588_v22 }
 0x151   : > { %1256 = vmatprep.subr.bf16.mxu0 %v1593_v52 }
 0x154   : > { %1257 = vmatpush1.bf16.msra.mxu0 %v1591_v8 }
 0x155   : > { %1258 = vmatprep.subr.bf16.mxu0 %v1596_v26 }
 0x158   : > { %1259 = vmatpush1.bf16.msra.mxu0 %v1594_v60 }
 0x15b   : > { %1269 = vmatmul.mubr.bf16.vlgmr.msra.gmra.mrb[4].mxu0 %v680_v3  ;;  %v778_v3 = vsub.s32 5, %v1647_v1 }
 0x15d   : > { %v779_v10 = vrot.slane %v754_v27, %v778_v3 }
 0x1fe   : > { %v1184_v35 = vpop.f32.mrb[0].mxu0  ;;  %v1227_v36 = vpop.f32.mrb[0].mxu1 }
 0x1ff   : > { %v1185_v37 = vadd.f32 %v1184_v35, %v759_v29  ;;  %v1228_v38 = vadd.f32 %v1227_v36, %v767_v30  ;;  %v1186_v39 = vpop.f32.mrb[1].mxu0  ;;  %v1229_v42 = vpop.f32.mrb[1].mxu1 }
 0x200   : > { %v1187_v4 = vadd.f32 %v1186_v39, %v763_v31  ;;  %v1230_v5 = vadd.f32 %v1229_v42, %v771_v34  ;;  %v1188_v44 = vpop.f32.mrb[2].mxu0  ;;  %v1231_v45 = vpop.f32.mrb[2].mxu1 }
 0x201   : > { %v1291_v47 = vadd.f32 %v1279_v21, %v1185_v37  ;;  %v1293_v49 = vadd.f32 %v1281_v18, %v1228_v38  ;;  %v1189_v59 = vadd.f32 %v1188_v44, %v759_v29  ;;  %v1232_v50 = vadd.f32 %v1231_v45, %v767_v30  ;;  %v1190_v51 = vpop.f32.mrb[3].mxu0  ;;  %v1233_v54 = vpop.f32.mrb[3].mxu1 }
 0x202   : > { %v1292_v56 = vadd.f32 %v1280_v41, %v1187_v4  ;;  %v1294_v57 = vadd.f32 %v1282_v43, %v1230_v5  ;;  %v1191_v11 = vadd.f32 %v1190_v51, %v763_v31  ;;  %v1234_v58 = vadd.f32 %v1233_v54, %v771_v34 }
 0x203   : > { %1303 = vst [vmem:[%s2131_s16] sm:$0xff] %v1291_v47  ;;  %1305 = vst [vmem:[%s2131_s16 + $0x10] sm:$0xff] %v1293_v49  ;;  %v1297_v62 = vadd.f32 %v1285_v48, %v1189_v59  ;;  %v1299_v7 = vadd.f32 %v1287_v46, %v1232_v50 }
 0x204   : > { %1304 = vst [vmem:[%s2131_s16 + $0x8] sm:$0xff] %v1292_v56  ;;  %1306 = vst [vmem:[%s2131_s16 + $0x18] sm:$0xff] %v1294_v57  ;;  %v1298_v63 = vadd.f32 %v1286_v61, %v1191_v11  ;;  %v1300_v0 = vadd.f32 %v1288_v55, %v1234_v58 }
 0x205   : > { %1309 = vst [vmem:[%s2131_s16 + $0x30] sm:$0xff] %v1297_v62  ;;  %1311 = vst [vmem:[%s2131_s16 + $0x40] sm:$0xff] %v1299_v7 }
 0x206   : > { %1310 = vst [vmem:[%s2131_s16 + $0x38] sm:$0xff] %v1298_v63  ;;  %1312 = vst [vmem:[%s2131_s16 + $0x48] sm:$0xff] %v1300_v0 }
 0x22e   : > { %v1270_v32 = vpop.f32.mrb[4].mxu0 }
 0x22f   : > { %v1271_v13 = vadd.f32 %v1270_v32, %v775_v9  ;;  %v1272_v28 = vpop.f32.mrb[5].mxu0 }
 0x230   : > { %v1273_v15 = vadd.f32 %v1272_v28, %v779_v10  ;;  %v1274_v16 = vpop.f32.mrb[6].mxu0 }
 0x231   : > { %v1295_v33 = vadd.f32 %v1283_v12, %v1271_v13  ;;  %v1275_v19 = vadd.f32 %v1274_v16, %v775_v9  ;;  %v1276_v20 = vpop.f32.mrb[7].mxu0 }
 0x232   : > { %v1296_v23 = vadd.f32 %v1284_v14, %v1273_v15  ;;  %v1277_v1 = vadd.f32 %v1276_v20, %v779_v10 }
 0x233   : > { %1307 = vst [vmem:[%s2131_s16 + $0x20] sm:$0xff] %v1295_v33  ;;  %v1301_v24 = vadd.f32 %v1289_v17, %v1275_v19 }
 0x234   : > { %1308 = vst [vmem:[%s2131_s16 + $0x28] sm:$0xff] %v1296_v23  ;;  %v1302_v25 = vadd.f32 %v1290_v40, %v1277_v1 }
 0x235   : > { %1313 = vst [vmem:[%s2131_s16 + $0x50] sm:$0xff] %v1301_v24 }
 0x236   : > { %1314 = vst [vmem:[%s2131_s16 + $0x58] sm:$0xff] %v1302_v25 }
 0x237 PF: > { %s15_s18 = sadd.s32 1, %s1603_s18  }
 0x238   : > { %p12_p4 = scmp.ge.s32.totalorder %s15_s18, 4  }
 0x23a   :  { %14 = sbr.rel (!%p12_p4) target bundleno = 1 (0x1), region = 81 }

</bundles_post_ra>
